<compile_context>
chip_gen: v7x
topology: tpu7x:2x2x1
jax: 0.10.0
libtpu: 0.0.40
codegen_flags: <defaults>
</compile_context>

<pallas_src>
import numpy as np
import jax
import jax.numpy as jnp
from jax.experimental import pallas as pl
from jax.experimental.pallas import tpu as pltpu

LANES = 128
VMEM_LIMIT = 32 * 1024 * 1024
FC_TILE_N = 256          # batch tile for the fc stack (multiple of 8)


def _round_up(a, b):
    return (a + b - 1) // b * b


# ----------------------------------------------------------------------------
# Kernel 1: fused conv1 -> ReLU -> pool -> conv2 -> ReLU -> pool, one sample
# per grid step.
#   x_ref : (1, 4, 16, 64)   image rows split by (row mod 4), lane dim = W
#   t1_ref: (5, 2, 64, 180)  conv1 Toeplitz blocks [kh, dw]; cols = (wp, cout)
#   b1_ref: (1, 180)         conv1 bias tiled over wp
#   t2_ref: (5, 2, 180, 208) conv2 Toeplitz blocks [kh, dw]; cols = (wp2, cout)
#   b2_ref: (1, 208)         conv2 bias tiled over wp2
#   o_ref : (1, 13, 208)     pooled conv2 output, layout (h, w*16 + c)
# ----------------------------------------------------------------------------
def _lenet_conv_kernel(x_ref, t1_ref, b1_ref, t2_ref, b2_ref, o_ref):
    f32 = jnp.float32

    # conv1 + ReLU + 2x2 pool; output kept split by pooled-row parity so that
    # conv2's row accesses below are static contiguous slices as well.
    p1 = []
    for pi in range(2):                       # pooled-row parity of the output
        best = None
        for dh in range(2):                   # pool offset (rows)
            for dw in range(2):               # pool offset (cols, baked in t1)
                acc = None
                for kh in range(5):           # conv taps along H
                    r = 2 * pi + dh + kh      # absolute row offset (0..7)
                    lhs = x_ref[0, r % 4, r // 4:r // 4 + 15, :]        # (15, 64)
                    y = jnp.dot(lhs, t1_ref[kh, dw], preferred_element_type=f32)
                    acc = y if acc is None else acc + y
                best = acc if best is None else jnp.maximum(best, acc)
        # bias + ReLU hoisted out of the pool-offset loop (monotone / constant).
        p1.append(jnp.maximum(best + b1_ref[...], 0.0))                # (15, 180)

    # conv2 + ReLU + 2x2 pool.
    best2 = None
    for dh in range(2):
        for dw in range(2):
            acc = None
            for kh in range(5):
                r = dh + kh                                            # 0..5
                lhs = p1[r % 2][r // 2:r // 2 + 13, :]                 # (13, 180)
                y = jnp.dot(lhs, t2_ref[kh, dw], preferred_element_type=f32)
                acc = y if acc is None else acc + y
            best2 = acc if best2 is None else jnp.maximum(best2, acc)
    p2 = jnp.maximum(best2 + b2_ref[...], 0.0)                         # (13, 208)
    o_ref[0] = p2.astype(o_ref.dtype)


# ----------------------------------------------------------------------------
# Kernel 2: fused fc1 -> ReLU -> fc2 -> ReLU -> fc3 -> ReLU, tiled over batch.
# Hidden dims zero-padded to 128; padded lanes stay exactly 0 through the stack.
# ----------------------------------------------------------------------------
def _fc_stack_kernel(x_ref, w1_ref, b1_ref, w2_ref, b2_ref, w3_ref, b3_ref, o_ref):
    h = jnp.dot(x_ref[...], w1_ref[...], preferred_element_type=jnp.float32) + b1_ref[...]
    h = jnp.maximum(h, 0.0)
    h = jnp.dot(h, w2_ref[...], preferred_element_type=jnp.float32) + b2_ref[...]
    h = jnp.maximum(h, 0.0)
    h = jnp.dot(h, w3_ref[...], preferred_element_type=jnp.float32) + b3_ref[...]
    o_ref[...] = jnp.maximum(h, 0.0).astype(o_ref.dtype)


# ----------------------------------------------------------------------------
# Forward pass.
# ----------------------------------------------------------------------------
def lenet5_forward(x_nchw, p, num_classes):
    N = x_nchw.shape[0]
    assert x_nchw.shape[1:] == (1, 64, 64), "LeNet5 fc1 expects a 1x64x64 input"

    # Split image rows by (row mod 4): x_q[n, q, t, :] = x[n, 4t + q, :].
    # Tiny boundary relayout (16 KB/sample) that makes every pooled-conv row
    # access inside the kernel a static contiguous slice.
    x_q = x_nchw[:, 0].reshape(N, 16, 4, 64).transpose(0, 2, 1, 3)

    p2 = pl.pallas_call(
        _lenet_conv_kernel,
        out_shape=jax.ShapeDtypeStruct((N, 13, 208), jnp.float32),
        grid=(N,),
        in_specs=[
            pl.BlockSpec((1, 4, 16, 64), lambda i: (i, 0, 0, 0)),
            pl.BlockSpec((5, 2, 64, 180), lambda i: (0, 0, 0, 0)),   # pinned
            pl.BlockSpec((1, 180), lambda i: (0, 0)),                # pinned
            pl.BlockSpec((5, 2, 180, 208), lambda i: (0, 0, 0, 0)),  # pinned
            pl.BlockSpec((1, 208), lambda i: (0, 0)),                # pinned
        ],
        out_specs=pl.BlockSpec((1, 13, 208), lambda i: (i, 0, 0)),
        compiler_params=pltpu.CompilerParams(
            dimension_semantics=("parallel",),
            vmem_limit_bytes=VMEM_LIMIT),
    )(x_q, p["t1"], p["b1row"], p["t2"], p["b2row"])

    # (N, 13, 208) -> (N, 2704): contiguous trailing-dim merge, free in XLA.
    flat = p2.reshape(N, 13 * 208)

    tile_n = min(FC_TILE_N, _round_up(N, 8))
    n_pad = _round_up(N, tile_n)
    if n_pad > N:
        flat = jnp.pad(flat, ((0, n_pad - N), (0, 0)))

    out = pl.pallas_call(
        _fc_stack_kernel,
        out_shape=jax.ShapeDtypeStruct((n_pad, LANES), jnp.float32),
        grid=(n_pad // tile_n,),
        in_specs=[
            pl.BlockSpec((tile_n, 13 * 208), lambda i: (i, 0)),
            pl.BlockSpec((13 * 208, LANES), lambda i: (0, 0)),       # pinned fc1
            pl.BlockSpec((1, LANES), lambda i: (0, 0)),
            pl.BlockSpec((LANES, LANES), lambda i: (0, 0)),          # pinned fc2
            pl.BlockSpec((1, LANES), lambda i: (0, 0)),
            pl.BlockSpec((LANES, LANES), lambda i: (0, 0)),          # pinned fc3
            pl.BlockSpec((1, LANES), lambda i: (0, 0)),
        ],
        out_specs=pl.BlockSpec((tile_n, LANES), lambda i: (i, 0)),
        compiler_params=pltpu.CompilerParams(
            dimension_semantics=("parallel",),
            vmem_limit_bytes=VMEM_LIMIT),
    )(flat, p["fc1_w"], p["fc1_b"], p["fc2_w"], p["fc2_b"], p["fc3_w"], p["fc3_b"])

    return out[:N, :num_classes]


# ----------------------------------------------------------------------------
# One-time parameter layout transform (host-side, outside jit).
#   conv weights -> "pooled Toeplitz" blocks so the in-kernel conv is a plain
#   lane-contraction matmul per (kh, pool-offset):
#     t1[kh, dw, W, wp*6  + co] = w1[co, 0,  kh, W   - (2*wp  + dw)]
#     t2[kh, dw, wp1*6+ci, wp2*16 + co] = w2[co, ci, kh, wp1 - (2*wp2 + dw)]
#   (entries outside the 5-tap window are zero).
# ----------------------------------------------------------------------------
def prepare_params(params):
    def npf(a):
        return np.asarray(a, dtype=np.float32)

    w1, b1 = npf(params["conv1_w"]), npf(params["conv1_b"])      # (6,1,5,5), (6,)
    w2, b2 = npf(params["conv2_w"]), npf(params["conv2_b"])      # (16,6,5,5), (16,)

    t1 = np.zeros((5, 2, 64, 30 * 6), np.float32)
    for kh in range(5):
        for dw in range(2):
            for wp in range(30):
                for kw in range(5):
                    t1[kh, dw, 2 * wp + dw + kw, wp * 6:(wp + 1) * 6] = w1[:, 0, kh, kw]
    b1row = np.tile(b1, 30).reshape(1, 180)

    t2 = np.zeros((5, 2, 180, 13 * 16), np.float32)
    for kh in range(5):
        for dw in range(2):
            for wp2 in range(13):
                for kw in range(5):
                    wp1 = 2 * wp2 + dw + kw
                    t2[kh, dw, wp1 * 6:(wp1 + 1) * 6,
                       wp2 * 16:(wp2 + 1) * 16] = w2[:, :, kh, kw].T   # (ci, co)
    b2row = np.tile(b2, 13).reshape(1, 208)

    # fc1: permute columns from PyTorch's (c, h, w) flatten to our (h, w, c)
    # flatten of the (13, 13*16) conv2 output, then pad to 128 lanes.
    fw1 = npf(params["fc1_w"]).reshape(120, 16, 13, 13).transpose(0, 2, 3, 1).reshape(120, -1)
    fc1_w = np.zeros((13 * 208, LANES), np.float32)
    fc1_w[:, :120] = fw1.T
    fc1_b = np.zeros((1, LANES), np.float32)
    fc1_b[0, :120] = npf(params["fc1_b"])

    fc2_w = np.zeros((LANES, LANES), np.float32)
    fc2_w[:120, :84] = npf(params["fc2_w"]).T
    fc2_b = np.zeros((1, LANES), np.float32)
    fc2_b[0, :84] = npf(params["fc2_b"])

    nc = params["fc3_w"].shape[0]
    fc3_w = np.zeros((LANES, LANES), np.float32)
    fc3_w[:84, :nc] = npf(params["fc3_w"]).T
    fc3_b = np.zeros((1, LANES), np.float32)
    fc3_b[0, :nc] = npf(params["fc3_b"])

    return {
        "t1": jnp.asarray(t1), "b1row": jnp.asarray(b1row),
        "t2": jnp.asarray(t2), "b2row": jnp.asarray(b2row),
        "fc1_w": jnp.asarray(fc1_w), "fc1_b": jnp.asarray(fc1_b),
        "fc2_w": jnp.asarray(fc2_w), "fc2_b": jnp.asarray(fc2_b),
        "fc3_w": jnp.asarray(fc3_w), "fc3_b": jnp.asarray(fc3_b),
    }


# ----------------------------------------------------------------------------
# Deterministic parameter init (PyTorch default: U(-1/sqrt(fan_in), +)).
# ----------------------------------------------------------------------------
def _uniform(key, shape, bound):
    return jax.random.uniform(key, shape, jnp.float32, -bound, bound)


def init_params(key, num_classes):
    ks = jax.random.split(key, 10)

    def conv_init(kw, kb, cout, cin, ksz):
        bound = 1.0 / np.sqrt(cin * ksz * ksz)
        return _uniform(kw, (cout, cin, ksz, ksz), bound), _uniform(kb, (cout,), bound)

    def fc_init(kw, kb, cout, cin):
        bound = 1.0 / np.sqrt(cin)
        return _uniform(kw, (cout, cin), bound), _uniform(kb, (cout,), bound)

    p = {}
    p["conv1_w"], p["conv1_b"] = conv_init(ks[0], ks[1], 6, 1, 5)
    p["conv2_w"], p["conv2_b"] = conv_init(ks[2], ks[3], 16, 6, 5)
    p["fc1_w"], p["fc1_b"] = fc_init(ks[4], ks[5], 120, 16 * 13 * 13)
    p["fc2_w"], p["fc2_b"] = fc_init(ks[6], ks[7], 84, 120)
    p["fc3_w"], p["fc3_b"] = fc_init(ks[8], ks[9], num_classes, 84)
    return p


# ----------------------------------------------------------------------------
# Pure-JAX reference (NCHW, PyTorch-layout params) for a numeric sanity check.
# ----------------------------------------------------------------------------
def lenet5_reference(x, params):
    def conv(x, w, b):
        y = jax.lax.conv_general_dilated(
            x, w, (1, 1), "VALID", dimension_numbers=("NCHW", "OIHW", "NCHW"))
        return y + b.reshape(1, -1, 1, 1)

    def pool(x):
        return jax.lax.reduce_window(
            x, -jnp.inf, jax.lax.max, (1, 1, 2, 2), (1, 1, 2, 2), "VALID")

    r = jax.nn.relu
    c1 = pool(r(conv(x, params["conv1_w"], params["conv1_b"])))
    c2 = pool(r(conv(c1, params["conv2_w"], params["conv2_b"])))
    flat = c2.reshape(c2.shape[0], -1)
    h1 = r(flat @ params["fc1_w"].T + params["fc1_b"])
    h2 = r(h1 @ params["fc2_w"].T + params["fc2_b"])
    return r(h2 @ params["fc3_w"].T + params["fc3_b"])


if __name__ == "__main__":
    num_classes = 10
    key = jax.random.PRNGKey(0)
    kx, kp = jax.random.split(key)

    # fc1 expects 16*13*13 features -> input must be (N, 1, 64, 64)
    x = jax.random.normal(kx, (2, 1, 64, 64), jnp.float32)
    params = init_params(kp, num_classes)
    prepped = prepare_params(params)          # one-time layout transform, outside jit

    fwd = jax.jit(lenet5_forward, static_argnums=2)
    out = jax.block_until_ready(fwd(x, prepped, num_classes))
    assert out.shape == (2, num_classes)

    # Tolerance covers the TPU MXU's default (bf16-pass) f32 matmul precision on
    # both the kernel and the XLA reference paths.
    ref = lenet5_reference(x, params)
    np.testing.assert_allclose(np.asarray(out), np.asarray(ref), rtol=2e-2, atol=2e-2)
    print("KERNEL_OK")
</pallas_src>

<mosaic_0001>
module attributes {stable_mosaic.version = 11 : i64} {
  func.func @_lenet_conv_kernel(%arg0: i32, %arg1: memref<1x4x16x64xf32, #tpu.memory_space<vmem>>, %arg2: memref<5x2x64x180xf32, #tpu.memory_space<vmem>>, %arg3: memref<1x180xf32, #tpu.memory_space<vmem>>, %arg4: memref<5x2x180x208xf32, #tpu.memory_space<vmem>>, %arg5: memref<1x208xf32, #tpu.memory_space<vmem>>, %arg6: memref<1x13x208xf32, #tpu.memory_space<vmem>>) attributes {dimension_semantics = [#tpu.dimension_semantics<parallel>], iteration_bounds = array<i64: 2>, scalar_prefetch = 0 : i64, scratch_operands = 0 : i64, tpu.core_type = #tpu.core_type<tc>, window_params = [{transform_indices = @transform_0, window_bounds = array<i64: 1, 4, 16, 64>}, {pipeline_mode = #tpu.pipeline_mode<synchronous>, transform_indices = @transform_1, window_bounds = array<i64: 5, 2, 64, 180>}, {pipeline_mode = #tpu.pipeline_mode<synchronous>, transform_indices = @transform_2, window_bounds = array<i64: 1, 180>}, {pipeline_mode = #tpu.pipeline_mode<synchronous>, transform_indices = @transform_3, window_bounds = array<i64: 5, 2, 180, 208>}, {pipeline_mode = #tpu.pipeline_mode<synchronous>, transform_indices = @transform_4, window_bounds = array<i64: 1, 208>}, {transform_indices = @transform_5, window_bounds = array<i64: 1, 13, 208>}]} {
    %c0 = arith.constant 0 : index
    %c0_0 = arith.constant 0 : index
    %c0_1 = arith.constant 0 : index
    %c0_2 = arith.constant 0 : index
    %0 = vector.load %arg1[%c0, %c0_0, %c0_1, %c0_2] : memref<1x4x16x64xf32, #tpu.memory_space<vmem>>, vector<1x1x15x64xf32>
    %1 = vector.shape_cast %0 : vector<1x1x15x64xf32> to vector<15x64xf32>
    %c0_3 = arith.constant 0 : index
    %c0_4 = arith.constant 0 : index
    %c0_5 = arith.constant 0 : index
    %c0_6 = arith.constant 0 : index
    %2 = vector.load %arg2[%c0_3, %c0_4, %c0_5, %c0_6] : memref<5x2x64x180xf32, #tpu.memory_space<vmem>>, vector<1x1x64x180xf32>
    %3 = vector.shape_cast %2 : vector<1x1x64x180xf32> to vector<64x180xf32>
    %cst = arith.constant dense<0.000000e+00> : vector<15x180xf32>
    %4 = tpu.matmul %1, %3, %cst {dimension_numbers = #tpu.dot_dimension_numbers<[1], [0], [0], [1], [0, 0, 1, 1], [], []>} : vector<15x64xf32>, vector<64x180xf32>, vector<15x180xf32> -> vector<15x180xf32>
    %c0_7 = arith.constant 0 : index
    %c1 = arith.constant 1 : index
    %c0_8 = arith.constant 0 : index
    %c0_9 = arith.constant 0 : index
    %5 = vector.load %arg1[%c0_7, %c1, %c0_8, %c0_9] : memref<1x4x16x64xf32, #tpu.memory_space<vmem>>, vector<1x1x15x64xf32>
    %6 = vector.shape_cast %5 : vector<1x1x15x64xf32> to vector<15x64xf32>
    %c1_10 = arith.constant 1 : index
    %c0_11 = arith.constant 0 : index
    %c0_12 = arith.constant 0 : index
    %c0_13 = arith.constant 0 : index
    %7 = vector.load %arg2[%c1_10, %c0_11, %c0_12, %c0_13] : memref<5x2x64x180xf32, #tpu.memory_space<vmem>>, vector<1x1x64x180xf32>
    %8 = vector.shape_cast %7 : vector<1x1x64x180xf32> to vector<64x180xf32>
    %cst_14 = arith.constant dense<0.000000e+00> : vector<15x180xf32>
    %9 = tpu.matmul %6, %8, %cst_14 {dimension_numbers = #tpu.dot_dimension_numbers<[1], [0], [0], [1], [0, 0, 1, 1], [], []>} : vector<15x64xf32>, vector<64x180xf32>, vector<15x180xf32> -> vector<15x180xf32>
    %10 = arith.addf %4, %9 : vector<15x180xf32>
    %c0_15 = arith.constant 0 : index
    %c2 = arith.constant 2 : index
    %c0_16 = arith.constant 0 : index
    %c0_17 = arith.constant 0 : index
    %11 = vector.load %arg1[%c0_15, %c2, %c0_16, %c0_17] : memref<1x4x16x64xf32, #tpu.memory_space<vmem>>, vector<1x1x15x64xf32>
    %12 = vector.shape_cast %11 : vector<1x1x15x64xf32> to vector<15x64xf32>
    %c2_18 = arith.constant 2 : index
    %c0_19 = arith.constant 0 : index
    %c0_20 = arith.constant 0 : index
    %c0_21 = arith.constant 0 : index
    %13 = vector.load %arg2[%c2_18, %c0_19, %c0_20, %c0_21] : memref<5x2x64x180xf32, #tpu.memory_space<vmem>>, vector<1x1x64x180xf32>
    %14 = vector.shape_cast %13 : vector<1x1x64x180xf32> to vector<64x180xf32>
    %cst_22 = arith.constant dense<0.000000e+00> : vector<15x180xf32>
    %15 = tpu.matmul %12, %14, %cst_22 {dimension_numbers = #tpu.dot_dimension_numbers<[1], [0], [0], [1], [0, 0, 1, 1], [], []>} : vector<15x64xf32>, vector<64x180xf32>, vector<15x180xf32> -> vector<15x180xf32>
    %16 = arith.addf %10, %15 : vector<15x180xf32>
    %c0_23 = arith.constant 0 : index
    %c3 = arith.constant 3 : index
    %c0_24 = arith.constant 0 : index
    %c0_25 = arith.constant 0 : index
    %17 = vector.load %arg1[%c0_23, %c3, %c0_24, %c0_25] : memref<1x4x16x64xf32, #tpu.memory_space<vmem>>, vector<1x1x15x64xf32>
    %18 = vector.shape_cast %17 : vector<1x1x15x64xf32> to vector<15x64xf32>
    %c3_26 = arith.constant 3 : index
    %c0_27 = arith.constant 0 : index
    %c0_28 = arith.constant 0 : index
    %c0_29 = arith.constant 0 : index
    %19 = vector.load %arg2[%c3_26, %c0_27, %c0_28, %c0_29] : memref<5x2x64x180xf32, #tpu.memory_space<vmem>>, vector<1x1x64x180xf32>
    %20 = vector.shape_cast %19 : vector<1x1x64x180xf32> to vector<64x180xf32>
    %cst_30 = arith.constant dense<0.000000e+00> : vector<15x180xf32>
    %21 = tpu.matmul %18, %20, %cst_30 {dimension_numbers = #tpu.dot_dimension_numbers<[1], [0], [0], [1], [0, 0, 1, 1], [], []>} : vector<15x64xf32>, vector<64x180xf32>, vector<15x180xf32> -> vector<15x180xf32>
    %22 = arith.addf %16, %21 : vector<15x180xf32>
    %c0_31 = arith.constant 0 : index
    %c0_32 = arith.constant 0 : index
    %c1_33 = arith.constant 1 : index
    %c0_34 = arith.constant 0 : index
    %23 = vector.load %arg1[%c0_31, %c0_32, %c1_33, %c0_34] : memref<1x4x16x64xf32, #tpu.memory_space<vmem>>, vector<1x1x15x64xf32>
    %24 = vector.shape_cast %23 : vector<1x1x15x64xf32> to vector<15x64xf32>
    %c4 = arith.constant 4 : index
    %c0_35 = arith.constant 0 : index
    %c0_36 = arith.constant 0 : index
    %c0_37 = arith.constant 0 : index
    %25 = vector.load %arg2[%c4, %c0_35, %c0_36, %c0_37] : memref<5x2x64x180xf32, #tpu.memory_space<vmem>>, vector<1x1x64x180xf32>
    %26 = vector.shape_cast %25 : vector<1x1x64x180xf32> to vector<64x180xf32>
    %cst_38 = arith.constant dense<0.000000e+00> : vector<15x180xf32>
    %27 = tpu.matmul %24, %26, %cst_38 {dimension_numbers = #tpu.dot_dimension_numbers<[1], [0], [0], [1], [0, 0, 1, 1], [], []>} : vector<15x64xf32>, vector<64x180xf32>, vector<15x180xf32> -> vector<15x180xf32>
    %28 = arith.addf %22, %27 : vector<15x180xf32>
    %c0_39 = arith.constant 0 : index
    %c0_40 = arith.constant 0 : index
    %c0_41 = arith.constant 0 : index
    %c0_42 = arith.constant 0 : index
    %29 = vector.load %arg1[%c0_39, %c0_40, %c0_41, %c0_42] : memref<1x4x16x64xf32, #tpu.memory_space<vmem>>, vector<1x1x15x64xf32>
    %30 = vector.shape_cast %29 : vector<1x1x15x64xf32> to vector<15x64xf32>
    %c0_43 = arith.constant 0 : index
    %c1_44 = arith.constant 1 : index
    %c0_45 = arith.constant 0 : index
    %c0_46 = arith.constant 0 : index
    %31 = vector.load %arg2[%c0_43, %c1_44, %c0_45, %c0_46] : memref<5x2x64x180xf32, #tpu.memory_space<vmem>>, vector<1x1x64x180xf32>
    %32 = vector.shape_cast %31 : vector<1x1x64x180xf32> to vector<64x180xf32>
    %cst_47 = arith.constant dense<0.000000e+00> : vector<15x180xf32>
    %33 = tpu.matmul %30, %32, %cst_47 {dimension_numbers = #tpu.dot_dimension_numbers<[1], [0], [0], [1], [0, 0, 1, 1], [], []>} : vector<15x64xf32>, vector<64x180xf32>, vector<15x180xf32> -> vector<15x180xf32>
    %c0_48 = arith.constant 0 : index
    %c1_49 = arith.constant 1 : index
    %c0_50 = arith.constant 0 : index
    %c0_51 = arith.constant 0 : index
    %34 = vector.load %arg1[%c0_48, %c1_49, %c0_50, %c0_51] : memref<1x4x16x64xf32, #tpu.memory_space<vmem>>, vector<1x1x15x64xf32>
    %35 = vector.shape_cast %34 : vector<1x1x15x64xf32> to vector<15x64xf32>
    %c1_52 = arith.constant 1 : index
    %c1_53 = arith.constant 1 : index
    %c0_54 = arith.constant 0 : index
    %c0_55 = arith.constant 0 : index
    %36 = vector.load %arg2[%c1_52, %c1_53, %c0_54, %c0_55] : memref<5x2x64x180xf32, #tpu.memory_space<vmem>>, vector<1x1x64x180xf32>
    %37 = vector.shape_cast %36 : vector<1x1x64x180xf32> to vector<64x180xf32>
    %cst_56 = arith.constant dense<0.000000e+00> : vector<15x180xf32>
    %38 = tpu.matmul %35, %37, %cst_56 {dimension_numbers = #tpu.dot_dimension_numbers<[1], [0], [0], [1], [0, 0, 1, 1], [], []>} : vector<15x64xf32>, vector<64x180xf32>, vector<15x180xf32> -> vector<15x180xf32>
    %39 = arith.addf %33, %38 : vector<15x180xf32>
    %c0_57 = arith.constant 0 : index
    %c2_58 = arith.constant 2 : index
    %c0_59 = arith.constant 0 : index
    %c0_60 = arith.constant 0 : index
    %40 = vector.load %arg1[%c0_57, %c2_58, %c0_59, %c0_60] : memref<1x4x16x64xf32, #tpu.memory_space<vmem>>, vector<1x1x15x64xf32>
    %41 = vector.shape_cast %40 : vector<1x1x15x64xf32> to vector<15x64xf32>
    %c2_61 = arith.constant 2 : index
    %c1_62 = arith.constant 1 : index
    %c0_63 = arith.constant 0 : index
    %c0_64 = arith.constant 0 : index
    %42 = vector.load %arg2[%c2_61, %c1_62, %c0_63, %c0_64] : memref<5x2x64x180xf32, #tpu.memory_space<vmem>>, vector<1x1x64x180xf32>
    %43 = vector.shape_cast %42 : vector<1x1x64x180xf32> to vector<64x180xf32>
    %cst_65 = arith.constant dense<0.000000e+00> : vector<15x180xf32>
    %44 = tpu.matmul %41, %43, %cst_65 {dimension_numbers = #tpu.dot_dimension_numbers<[1], [0], [0], [1], [0, 0, 1, 1], [], []>} : vector<15x64xf32>, vector<64x180xf32>, vector<15x180xf32> -> vector<15x180xf32>
    %45 = arith.addf %39, %44 : vector<15x180xf32>
    %c0_66 = arith.constant 0 : index
    %c3_67 = arith.constant 3 : index
    %c0_68 = arith.constant 0 : index
    %c0_69 = arith.constant 0 : index
    %46 = vector.load %arg1[%c0_66, %c3_67, %c0_68, %c0_69] : memref<1x4x16x64xf32, #tpu.memory_space<vmem>>, vector<1x1x15x64xf32>
    %47 = vector.shape_cast %46 : vector<1x1x15x64xf32> to vector<15x64xf32>
    %c3_70 = arith.constant 3 : index
    %c1_71 = arith.constant 1 : index
    %c0_72 = arith.constant 0 : index
    %c0_73 = arith.constant 0 : index
    %48 = vector.load %arg2[%c3_70, %c1_71, %c0_72, %c0_73] : memref<5x2x64x180xf32, #tpu.memory_space<vmem>>, vector<1x1x64x180xf32>
    %49 = vector.shape_cast %48 : vector<1x1x64x180xf32> to vector<64x180xf32>
    %cst_74 = arith.constant dense<0.000000e+00> : vector<15x180xf32>
    %50 = tpu.matmul %47, %49, %cst_74 {dimension_numbers = #tpu.dot_dimension_numbers<[1], [0], [0], [1], [0, 0, 1, 1], [], []>} : vector<15x64xf32>, vector<64x180xf32>, vector<15x180xf32> -> vector<15x180xf32>
    %51 = arith.addf %45, %50 : vector<15x180xf32>
    %c0_75 = arith.constant 0 : index
    %c0_76 = arith.constant 0 : index
    %c1_77 = arith.constant 1 : index
    %c0_78 = arith.constant 0 : index
    %52 = vector.load %arg1[%c0_75, %c0_76, %c1_77, %c0_78] : memref<1x4x16x64xf32, #tpu.memory_space<vmem>>, vector<1x1x15x64xf32>
    %53 = vector.shape_cast %52 : vector<1x1x15x64xf32> to vector<15x64xf32>
    %c4_79 = arith.constant 4 : index
    %c1_80 = arith.constant 1 : index
    %c0_81 = arith.constant 0 : index
    %c0_82 = arith.constant 0 : index
    %54 = vector.load %arg2[%c4_79, %c1_80, %c0_81, %c0_82] : memref<5x2x64x180xf32, #tpu.memory_space<vmem>>, vector<1x1x64x180xf32>
    %55 = vector.shape_cast %54 : vector<1x1x64x180xf32> to vector<64x180xf32>
    %cst_83 = arith.constant dense<0.000000e+00> : vector<15x180xf32>
    %56 = tpu.matmul %53, %55, %cst_83 {dimension_numbers = #tpu.dot_dimension_numbers<[1], [0], [0], [1], [0, 0, 1, 1], [], []>} : vector<15x64xf32>, vector<64x180xf32>, vector<15x180xf32> -> vector<15x180xf32>
    %57 = arith.addf %51, %56 : vector<15x180xf32>
    %58 = arith.maximumf %28, %57 : vector<15x180xf32>
    %c0_84 = arith.constant 0 : index
    %c1_85 = arith.constant 1 : index
    %c0_86 = arith.constant 0 : index
    %c0_87 = arith.constant 0 : index
    %59 = vector.load %arg1[%c0_84, %c1_85, %c0_86, %c0_87] : memref<1x4x16x64xf32, #tpu.memory_space<vmem>>, vector<1x1x15x64xf32>
    %60 = vector.shape_cast %59 : vector<1x1x15x64xf32> to vector<15x64xf32>
    %c0_88 = arith.constant 0 : index
    %c0_89 = arith.constant 0 : index
    %c0_90 = arith.constant 0 : index
    %c0_91 = arith.constant 0 : index
    %61 = vector.load %arg2[%c0_88, %c0_89, %c0_90, %c0_91] : memref<5x2x64x180xf32, #tpu.memory_space<vmem>>, vector<1x1x64x180xf32>
    %62 = vector.shape_cast %61 : vector<1x1x64x180xf32> to vector<64x180xf32>
    %cst_92 = arith.constant dense<0.000000e+00> : vector<15x180xf32>
    %63 = tpu.matmul %60, %62, %cst_92 {dimension_numbers = #tpu.dot_dimension_numbers<[1], [0], [0], [1], [0, 0, 1, 1], [], []>} : vector<15x64xf32>, vector<64x180xf32>, vector<15x180xf32> -> vector<15x180xf32>
    %c0_93 = arith.constant 0 : index
    %c2_94 = arith.constant 2 : index
    %c0_95 = arith.constant 0 : index
    %c0_96 = arith.constant 0 : index
    %64 = vector.load %arg1[%c0_93, %c2_94, %c0_95, %c0_96] : memref<1x4x16x64xf32, #tpu.memory_space<vmem>>, vector<1x1x15x64xf32>
    %65 = vector.shape_cast %64 : vector<1x1x15x64xf32> to vector<15x64xf32>
    %c1_97 = arith.constant 1 : index
    %c0_98 = arith.constant 0 : index
    %c0_99 = arith.constant 0 : index
    %c0_100 = arith.constant 0 : index
    %66 = vector.load %arg2[%c1_97, %c0_98, %c0_99, %c0_100] : memref<5x2x64x180xf32, #tpu.memory_space<vmem>>, vector<1x1x64x180xf32>
    %67 = vector.shape_cast %66 : vector<1x1x64x180xf32> to vector<64x180xf32>
    %cst_101 = arith.constant dense<0.000000e+00> : vector<15x180xf32>
    %68 = tpu.matmul %65, %67, %cst_101 {dimension_numbers = #tpu.dot_dimension_numbers<[1], [0], [0], [1], [0, 0, 1, 1], [], []>} : vector<15x64xf32>, vector<64x180xf32>, vector<15x180xf32> -> vector<15x180xf32>
    %69 = arith.addf %63, %68 : vector<15x180xf32>
    %c0_102 = arith.constant 0 : index
    %c3_103 = arith.constant 3 : index
    %c0_104 = arith.constant 0 : index
    %c0_105 = arith.constant 0 : index
    %70 = vector.load %arg1[%c0_102, %c3_103, %c0_104, %c0_105] : memref<1x4x16x64xf32, #tpu.memory_space<vmem>>, vector<1x1x15x64xf32>
    %71 = vector.shape_cast %70 : vector<1x1x15x64xf32> to vector<15x64xf32>
    %c2_106 = arith.constant 2 : index
    %c0_107 = arith.constant 0 : index
    %c0_108 = arith.constant 0 : index
    %c0_109 = arith.constant 0 : index
    %72 = vector.load %arg2[%c2_106, %c0_107, %c0_108, %c0_109] : memref<5x2x64x180xf32, #tpu.memory_space<vmem>>, vector<1x1x64x180xf32>
    %73 = vector.shape_cast %72 : vector<1x1x64x180xf32> to vector<64x180xf32>
    %cst_110 = arith.constant dense<0.000000e+00> : vector<15x180xf32>
    %74 = tpu.matmul %71, %73, %cst_110 {dimension_numbers = #tpu.dot_dimension_numbers<[1], [0], [0], [1], [0, 0, 1, 1], [], []>} : vector<15x64xf32>, vector<64x180xf32>, vector<15x180xf32> -> vector<15x180xf32>
    %75 = arith.addf %69, %74 : vector<15x180xf32>
    %c0_111 = arith.constant 0 : index
    %c0_112 = arith.constant 0 : index
    %c1_113 = arith.constant 1 : index
    %c0_114 = arith.constant 0 : index
    %76 = vector.load %arg1[%c0_111, %c0_112, %c1_113, %c0_114] : memref<1x4x16x64xf32, #tpu.memory_space<vmem>>, vector<1x1x15x64xf32>
    %77 = vector.shape_cast %76 : vector<1x1x15x64xf32> to vector<15x64xf32>
    %c3_115 = arith.constant 3 : index
    %c0_116 = arith.constant 0 : index
    %c0_117 = arith.constant 0 : index
    %c0_118 = arith.constant 0 : index
    %78 = vector.load %arg2[%c3_115, %c0_116, %c0_117, %c0_118] : memref<5x2x64x180xf32, #tpu.memory_space<vmem>>, vector<1x1x64x180xf32>
    %79 = vector.shape_cast %78 : vector<1x1x64x180xf32> to vector<64x180xf32>
    %cst_119 = arith.constant dense<0.000000e+00> : vector<15x180xf32>
    %80 = tpu.matmul %77, %79, %cst_119 {dimension_numbers = #tpu.dot_dimension_numbers<[1], [0], [0], [1], [0, 0, 1, 1], [], []>} : vector<15x64xf32>, vector<64x180xf32>, vector<15x180xf32> -> vector<15x180xf32>
    %81 = arith.addf %75, %80 : vector<15x180xf32>
    %c0_120 = arith.constant 0 : index
    %c1_121 = arith.constant 1 : index
    %c1_122 = arith.constant 1 : index
    %c0_123 = arith.constant 0 : index
    %82 = vector.load %arg1[%c0_120, %c1_121, %c1_122, %c0_123] : memref<1x4x16x64xf32, #tpu.memory_space<vmem>>, vector<1x1x15x64xf32>
    %83 = vector.shape_cast %82 : vector<1x1x15x64xf32> to vector<15x64xf32>
    %c4_124 = arith.constant 4 : index
    %c0_125 = arith.constant 0 : index
    %c0_126 = arith.constant 0 : index
    %c0_127 = arith.constant 0 : index
    %84 = vector.load %arg2[%c4_124, %c0_125, %c0_126, %c0_127] : memref<5x2x64x180xf32, #tpu.memory_space<vmem>>, vector<1x1x64x180xf32>
    %85 = vector.shape_cast %84 : vector<1x1x64x180xf32> to vector<64x180xf32>
    %cst_128 = arith.constant dense<0.000000e+00> : vector<15x180xf32>
    %86 = tpu.matmul %83, %85, %cst_128 {dimension_numbers = #tpu.dot_dimension_numbers<[1], [0], [0], [1], [0, 0, 1, 1], [], []>} : vector<15x64xf32>, vector<64x180xf32>, vector<15x180xf32> -> vector<15x180xf32>
    %87 = arith.addf %81, %86 : vector<15x180xf32>
    %88 = arith.maximumf %58, %87 : vector<15x180xf32>
    %c0_129 = arith.constant 0 : index
    %c1_130 = arith.constant 1 : index
    %c0_131 = arith.constant 0 : index
    %c0_132 = arith.constant 0 : index
    %89 = vector.load %arg1[%c0_129, %c1_130, %c0_131, %c0_132] : memref<1x4x16x64xf32, #tpu.memory_space<vmem>>, vector<1x1x15x64xf32>
    %90 = vector.shape_cast %89 : vector<1x1x15x64xf32> to vector<15x64xf32>
    %c0_133 = arith.constant 0 : index
    %c1_134 = arith.constant 1 : index
    %c0_135 = arith.constant 0 : index
    %c0_136 = arith.constant 0 : index
    %91 = vector.load %arg2[%c0_133, %c1_134, %c0_135, %c0_136] : memref<5x2x64x180xf32, #tpu.memory_space<vmem>>, vector<1x1x64x180xf32>
    %92 = vector.shape_cast %91 : vector<1x1x64x180xf32> to vector<64x180xf32>
    %cst_137 = arith.constant dense<0.000000e+00> : vector<15x180xf32>
    %93 = tpu.matmul %90, %92, %cst_137 {dimension_numbers = #tpu.dot_dimension_numbers<[1], [0], [0], [1], [0, 0, 1, 1], [], []>} : vector<15x64xf32>, vector<64x180xf32>, vector<15x180xf32> -> vector<15x180xf32>
    %c0_138 = arith.constant 0 : index
    %c2_139 = arith.constant 2 : index
    %c0_140 = arith.constant 0 : index
    %c0_141 = arith.constant 0 : index
    %94 = vector.load %arg1[%c0_138, %c2_139, %c0_140, %c0_141] : memref<1x4x16x64xf32, #tpu.memory_space<vmem>>, vector<1x1x15x64xf32>
    %95 = vector.shape_cast %94 : vector<1x1x15x64xf32> to vector<15x64xf32>
    %c1_142 = arith.constant 1 : index
    %c1_143 = arith.constant 1 : index
    %c0_144 = arith.constant 0 : index
    %c0_145 = arith.constant 0 : index
    %96 = vector.load %arg2[%c1_142, %c1_143, %c0_144, %c0_145] : memref<5x2x64x180xf32, #tpu.memory_space<vmem>>, vector<1x1x64x180xf32>
    %97 = vector.shape_cast %96 : vector<1x1x64x180xf32> to vector<64x180xf32>
    %cst_146 = arith.constant dense<0.000000e+00> : vector<15x180xf32>
    %98 = tpu.matmul %95, %97, %cst_146 {dimension_numbers = #tpu.dot_dimension_numbers<[1], [0], [0], [1], [0, 0, 1, 1], [], []>} : vector<15x64xf32>, vector<64x180xf32>, vector<15x180xf32> -> vector<15x180xf32>
    %99 = arith.addf %93, %98 : vector<15x180xf32>
    %c0_147 = arith.constant 0 : index
    %c3_148 = arith.constant 3 : index
    %c0_149 = arith.constant 0 : index
    %c0_150 = arith.constant 0 : index
    %100 = vector.load %arg1[%c0_147, %c3_148, %c0_149, %c0_150] : memref<1x4x16x64xf32, #tpu.memory_space<vmem>>, vector<1x1x15x64xf32>
    %101 = vector.shape_cast %100 : vector<1x1x15x64xf32> to vector<15x64xf32>
    %c2_151 = arith.constant 2 : index
    %c1_152 = arith.constant 1 : index
    %c0_153 = arith.constant 0 : index
    %c0_154 = arith.constant 0 : index
    %102 = vector.load %arg2[%c2_151, %c1_152, %c0_153, %c0_154] : memref<5x2x64x180xf32, #tpu.memory_space<vmem>>, vector<1x1x64x180xf32>
    %103 = vector.shape_cast %102 : vector<1x1x64x180xf32> to vector<64x180xf32>
    %cst_155 = arith.constant dense<0.000000e+00> : vector<15x180xf32>
    %104 = tpu.matmul %101, %103, %cst_155 {dimension_numbers = #tpu.dot_dimension_numbers<[1], [0], [0], [1], [0, 0, 1, 1], [], []>} : vector<15x64xf32>, vector<64x180xf32>, vector<15x180xf32> -> vector<15x180xf32>
    %105 = arith.addf %99, %104 : vector<15x180xf32>
    %c0_156 = arith.constant 0 : index
    %c0_157 = arith.constant 0 : index
    %c1_158 = arith.constant 1 : index
    %c0_159 = arith.constant 0 : index
    %106 = vector.load %arg1[%c0_156, %c0_157, %c1_158, %c0_159] : memref<1x4x16x64xf32, #tpu.memory_space<vmem>>, vector<1x1x15x64xf32>
    %107 = vector.shape_cast %106 : vector<1x1x15x64xf32> to vector<15x64xf32>
    %c3_160 = arith.constant 3 : index
    %c1_161 = arith.constant 1 : index
    %c0_162 = arith.constant 0 : index
    %c0_163 = arith.constant 0 : index
    %108 = vector.load %arg2[%c3_160, %c1_161, %c0_162, %c0_163] : memref<5x2x64x180xf32, #tpu.memory_space<vmem>>, vector<1x1x64x180xf32>
    %109 = vector.shape_cast %108 : vector<1x1x64x180xf32> to vector<64x180xf32>
    %cst_164 = arith.constant dense<0.000000e+00> : vector<15x180xf32>
    %110 = tpu.matmul %107, %109, %cst_164 {dimension_numbers = #tpu.dot_dimension_numbers<[1], [0], [0], [1], [0, 0, 1, 1], [], []>} : vector<15x64xf32>, vector<64x180xf32>, vector<15x180xf32> -> vector<15x180xf32>
    %111 = arith.addf %105, %110 : vector<15x180xf32>
    %c0_165 = arith.constant 0 : index
    %c1_166 = arith.constant 1 : index
    %c1_167 = arith.constant 1 : index
    %c0_168 = arith.constant 0 : index
    %112 = vector.load %arg1[%c0_165, %c1_166, %c1_167, %c0_168] : memref<1x4x16x64xf32, #tpu.memory_space<vmem>>, vector<1x1x15x64xf32>
    %113 = vector.shape_cast %112 : vector<1x1x15x64xf32> to vector<15x64xf32>
    %c4_169 = arith.constant 4 : index
    %c1_170 = arith.constant 1 : index
    %c0_171 = arith.constant 0 : index
    %c0_172 = arith.constant 0 : index
    %114 = vector.load %arg2[%c4_169, %c1_170, %c0_171, %c0_172] : memref<5x2x64x180xf32, #tpu.memory_space<vmem>>, vector<1x1x64x180xf32>
    %115 = vector.shape_cast %114 : vector<1x1x64x180xf32> to vector<64x180xf32>
    %cst_173 = arith.constant dense<0.000000e+00> : vector<15x180xf32>
    %116 = tpu.matmul %113, %115, %cst_173 {dimension_numbers = #tpu.dot_dimension_numbers<[1], [0], [0], [1], [0, 0, 1, 1], [], []>} : vector<15x64xf32>, vector<64x180xf32>, vector<15x180xf32> -> vector<15x180xf32>
    %117 = arith.addf %111, %116 : vector<15x180xf32>
    %118 = arith.maximumf %88, %117 : vector<15x180xf32>
    %c0_174 = arith.constant 0 : index
    %c0_175 = arith.constant 0 : index
    %119 = vector.load %arg3[%c0_174, %c0_175] : memref<1x180xf32, #tpu.memory_space<vmem>>, vector<1x180xf32>
    %120 = vector.broadcast %119 : vector<1x180xf32> to vector<15x180xf32>
    %121 = arith.addf %118, %120 : vector<15x180xf32>
    %cst_176 = arith.constant 0.000000e+00 : f32
    %122 = vector.broadcast %cst_176 : f32 to vector<15x180xf32>
    %123 = arith.maximumf %121, %122 : vector<15x180xf32>
    %c0_177 = arith.constant 0 : index
    %c2_178 = arith.constant 2 : index
    %c0_179 = arith.constant 0 : index
    %c0_180 = arith.constant 0 : index
    %124 = vector.load %arg1[%c0_177, %c2_178, %c0_179, %c0_180] : memref<1x4x16x64xf32, #tpu.memory_space<vmem>>, vector<1x1x15x64xf32>
    %125 = vector.shape_cast %124 : vector<1x1x15x64xf32> to vector<15x64xf32>
    %c0_181 = arith.constant 0 : index
    %c0_182 = arith.constant 0 : index
    %c0_183 = arith.constant 0 : index
    %c0_184 = arith.constant 0 : index
    %126 = vector.load %arg2[%c0_181, %c0_182, %c0_183, %c0_184] : memref<5x2x64x180xf32, #tpu.memory_space<vmem>>, vector<1x1x64x180xf32>
    %127 = vector.shape_cast %126 : vector<1x1x64x180xf32> to vector<64x180xf32>
    %cst_185 = arith.constant dense<0.000000e+00> : vector<15x180xf32>
    %128 = tpu.matmul %125, %127, %cst_185 {dimension_numbers = #tpu.dot_dimension_numbers<[1], [0], [0], [1], [0, 0, 1, 1], [], []>} : vector<15x64xf32>, vector<64x180xf32>, vector<15x180xf32> -> vector<15x180xf32>
    %c0_186 = arith.constant 0 : index
    %c3_187 = arith.constant 3 : index
    %c0_188 = arith.constant 0 : index
    %c0_189 = arith.constant 0 : index
    %129 = vector.load %arg1[%c0_186, %c3_187, %c0_188, %c0_189] : memref<1x4x16x64xf32, #tpu.memory_space<vmem>>, vector<1x1x15x64xf32>
    %130 = vector.shape_cast %129 : vector<1x1x15x64xf32> to vector<15x64xf32>
    %c1_190 = arith.constant 1 : index
    %c0_191 = arith.constant 0 : index
    %c0_192 = arith.constant 0 : index
    %c0_193 = arith.constant 0 : index
    %131 = vector.load %arg2[%c1_190, %c0_191, %c0_192, %c0_193] : memref<5x2x64x180xf32, #tpu.memory_space<vmem>>, vector<1x1x64x180xf32>
    %132 = vector.shape_cast %131 : vector<1x1x64x180xf32> to vector<64x180xf32>
    %cst_194 = arith.constant dense<0.000000e+00> : vector<15x180xf32>
    %133 = tpu.matmul %130, %132, %cst_194 {dimension_numbers = #tpu.dot_dimension_numbers<[1], [0], [0], [1], [0, 0, 1, 1], [], []>} : vector<15x64xf32>, vector<64x180xf32>, vector<15x180xf32> -> vector<15x180xf32>
    %134 = arith.addf %128, %133 : vector<15x180xf32>
    %c0_195 = arith.constant 0 : index
    %c0_196 = arith.constant 0 : index
    %c1_197 = arith.constant 1 : index
    %c0_198 = arith.constant 0 : index
    %135 = vector.load %arg1[%c0_195, %c0_196, %c1_197, %c0_198] : memref<1x4x16x64xf32, #tpu.memory_space<vmem>>, vector<1x1x15x64xf32>
    %136 = vector.shape_cast %135 : vector<1x1x15x64xf32> to vector<15x64xf32>
    %c2_199 = arith.constant 2 : index
    %c0_200 = arith.constant 0 : index
    %c0_201 = arith.constant 0 : index
    %c0_202 = arith.constant 0 : index
    %137 = vector.load %arg2[%c2_199, %c0_200, %c0_201, %c0_202] : memref<5x2x64x180xf32, #tpu.memory_space<vmem>>, vector<1x1x64x180xf32>
    %138 = vector.shape_cast %137 : vector<1x1x64x180xf32> to vector<64x180xf32>
    %cst_203 = arith.constant dense<0.000000e+00> : vector<15x180xf32>
    %139 = tpu.matmul %136, %138, %cst_203 {dimension_numbers = #tpu.dot_dimension_numbers<[1], [0], [0], [1], [0, 0, 1, 1], [], []>} : vector<15x64xf32>, vector<64x180xf32>, vector<15x180xf32> -> vector<15x180xf32>
    %140 = arith.addf %134, %139 : vector<15x180xf32>
    %c0_204 = arith.constant 0 : index
    %c1_205 = arith.constant 1 : index
    %c1_206 = arith.constant 1 : index
    %c0_207 = arith.constant 0 : index
    %141 = vector.load %arg1[%c0_204, %c1_205, %c1_206, %c0_207] : memref<1x4x16x64xf32, #tpu.memory_space<vmem>>, vector<1x1x15x64xf32>
    %142 = vector.shape_cast %141 : vector<1x1x15x64xf32> to vector<15x64xf32>
    %c3_208 = arith.constant 3 : index
    %c0_209 = arith.constant 0 : index
    %c0_210 = arith.constant 0 : index
    %c0_211 = arith.constant 0 : index
    %143 = vector.load %arg2[%c3_208, %c0_209, %c0_210, %c0_211] : memref<5x2x64x180xf32, #tpu.memory_space<vmem>>, vector<1x1x64x180xf32>
    %144 = vector.shape_cast %143 : vector<1x1x64x180xf32> to vector<64x180xf32>
    %cst_212 = arith.constant dense<0.000000e+00> : vector<15x180xf32>
    %145 = tpu.matmul %142, %144, %cst_212 {dimension_numbers = #tpu.dot_dimension_numbers<[1], [0], [0], [1], [0, 0, 1, 1], [], []>} : vector<15x64xf32>, vector<64x180xf32>, vector<15x180xf32> -> vector<15x180xf32>
    %146 = arith.addf %140, %145 : vector<15x180xf32>
    %c0_213 = arith.constant 0 : index
    %c2_214 = arith.constant 2 : index
    %c1_215 = arith.constant 1 : index
    %c0_216 = arith.constant 0 : index
    %147 = vector.load %arg1[%c0_213, %c2_214, %c1_215, %c0_216] : memref<1x4x16x64xf32, #tpu.memory_space<vmem>>, vector<1x1x15x64xf32>
    %148 = vector.shape_cast %147 : vector<1x1x15x64xf32> to vector<15x64xf32>
    %c4_217 = arith.constant 4 : index
    %c0_218 = arith.constant 0 : index
    %c0_219 = arith.constant 0 : index
    %c0_220 = arith.constant 0 : index
    %149 = vector.load %arg2[%c4_217, %c0_218, %c0_219, %c0_220] : memref<5x2x64x180xf32, #tpu.memory_space<vmem>>, vector<1x1x64x180xf32>
    %150 = vector.shape_cast %149 : vector<1x1x64x180xf32> to vector<64x180xf32>
    %cst_221 = arith.constant dense<0.000000e+00> : vector<15x180xf32>
    %151 = tpu.matmul %148, %150, %cst_221 {dimension_numbers = #tpu.dot_dimension_numbers<[1], [0], [0], [1], [0, 0, 1, 1], [], []>} : vector<15x64xf32>, vector<64x180xf32>, vector<15x180xf32> -> vector<15x180xf32>
    %152 = arith.addf %146, %151 : vector<15x180xf32>
    %c0_222 = arith.constant 0 : index
    %c2_223 = arith.constant 2 : index
    %c0_224 = arith.constant 0 : index
    %c0_225 = arith.constant 0 : index
    %153 = vector.load %arg1[%c0_222, %c2_223, %c0_224, %c0_225] : memref<1x4x16x64xf32, #tpu.memory_space<vmem>>, vector<1x1x15x64xf32>
    %154 = vector.shape_cast %153 : vector<1x1x15x64xf32> to vector<15x64xf32>
    %c0_226 = arith.constant 0 : index
    %c1_227 = arith.constant 1 : index
    %c0_228 = arith.constant 0 : index
    %c0_229 = arith.constant 0 : index
    %155 = vector.load %arg2[%c0_226, %c1_227, %c0_228, %c0_229] : memref<5x2x64x180xf32, #tpu.memory_space<vmem>>, vector<1x1x64x180xf32>
    %156 = vector.shape_cast %155 : vector<1x1x64x180xf32> to vector<64x180xf32>
    %cst_230 = arith.constant dense<0.000000e+00> : vector<15x180xf32>
    %157 = tpu.matmul %154, %156, %cst_230 {dimension_numbers = #tpu.dot_dimension_numbers<[1], [0], [0], [1], [0, 0, 1, 1], [], []>} : vector<15x64xf32>, vector<64x180xf32>, vector<15x180xf32> -> vector<15x180xf32>
    %c0_231 = arith.constant 0 : index
    %c3_232 = arith.constant 3 : index
    %c0_233 = arith.constant 0 : index
    %c0_234 = arith.constant 0 : index
    %158 = vector.load %arg1[%c0_231, %c3_232, %c0_233, %c0_234] : memref<1x4x16x64xf32, #tpu.memory_space<vmem>>, vector<1x1x15x64xf32>
    %159 = vector.shape_cast %158 : vector<1x1x15x64xf32> to vector<15x64xf32>
    %c1_235 = arith.constant 1 : index
    %c1_236 = arith.constant 1 : index
    %c0_237 = arith.constant 0 : index
    %c0_238 = arith.constant 0 : index
    %160 = vector.load %arg2[%c1_235, %c1_236, %c0_237, %c0_238] : memref<5x2x64x180xf32, #tpu.memory_space<vmem>>, vector<1x1x64x180xf32>
    %161 = vector.shape_cast %160 : vector<1x1x64x180xf32> to vector<64x180xf32>
    %cst_239 = arith.constant dense<0.000000e+00> : vector<15x180xf32>
    %162 = tpu.matmul %159, %161, %cst_239 {dimension_numbers = #tpu.dot_dimension_numbers<[1], [0], [0], [1], [0, 0, 1, 1], [], []>} : vector<15x64xf32>, vector<64x180xf32>, vector<15x180xf32> -> vector<15x180xf32>
    %163 = arith.addf %157, %162 : vector<15x180xf32>
    %c0_240 = arith.constant 0 : index
    %c0_241 = arith.constant 0 : index
    %c1_242 = arith.constant 1 : index
    %c0_243 = arith.constant 0 : index
    %164 = vector.load %arg1[%c0_240, %c0_241, %c1_242, %c0_243] : memref<1x4x16x64xf32, #tpu.memory_space<vmem>>, vector<1x1x15x64xf32>
    %165 = vector.shape_cast %164 : vector<1x1x15x64xf32> to vector<15x64xf32>
    %c2_244 = arith.constant 2 : index
    %c1_245 = arith.constant 1 : index
    %c0_246 = arith.constant 0 : index
    %c0_247 = arith.constant 0 : index
    %166 = vector.load %arg2[%c2_244, %c1_245, %c0_246, %c0_247] : memref<5x2x64x180xf32, #tpu.memory_space<vmem>>, vector<1x1x64x180xf32>
    %167 = vector.shape_cast %166 : vector<1x1x64x180xf32> to vector<64x180xf32>
    %cst_248 = arith.constant dense<0.000000e+00> : vector<15x180xf32>
    %168 = tpu.matmul %165, %167, %cst_248 {dimension_numbers = #tpu.dot_dimension_numbers<[1], [0], [0], [1], [0, 0, 1, 1], [], []>} : vector<15x64xf32>, vector<64x180xf32>, vector<15x180xf32> -> vector<15x180xf32>
    %169 = arith.addf %163, %168 : vector<15x180xf32>
    %c0_249 = arith.constant 0 : index
    %c1_250 = arith.constant 1 : index
    %c1_251 = arith.constant 1 : index
    %c0_252 = arith.constant 0 : index
    %170 = vector.load %arg1[%c0_249, %c1_250, %c1_251, %c0_252] : memref<1x4x16x64xf32, #tpu.memory_space<vmem>>, vector<1x1x15x64xf32>
    %171 = vector.shape_cast %170 : vector<1x1x15x64xf32> to vector<15x64xf32>
    %c3_253 = arith.constant 3 : index
    %c1_254 = arith.constant 1 : index
    %c0_255 = arith.constant 0 : index
    %c0_256 = arith.constant 0 : index
    %172 = vector.load %arg2[%c3_253, %c1_254, %c0_255, %c0_256] : memref<5x2x64x180xf32, #tpu.memory_space<vmem>>, vector<1x1x64x180xf32>
    %173 = vector.shape_cast %172 : vector<1x1x64x180xf32> to vector<64x180xf32>
    %cst_257 = arith.constant dense<0.000000e+00> : vector<15x180xf32>
    %174 = tpu.matmul %171, %173, %cst_257 {dimension_numbers = #tpu.dot_dimension_numbers<[1], [0], [0], [1], [0, 0, 1, 1], [], []>} : vector<15x64xf32>, vector<64x180xf32>, vector<15x180xf32> -> vector<15x180xf32>
    %175 = arith.addf %169, %174 : vector<15x180xf32>
    %c0_258 = arith.constant 0 : index
    %c2_259 = arith.constant 2 : index
    %c1_260 = arith.constant 1 : index
    %c0_261 = arith.constant 0 : index
    %176 = vector.load %arg1[%c0_258, %c2_259, %c1_260, %c0_261] : memref<1x4x16x64xf32, #tpu.memory_space<vmem>>, vector<1x1x15x64xf32>
    %177 = vector.shape_cast %176 : vector<1x1x15x64xf32> to vector<15x64xf32>
    %c4_262 = arith.constant 4 : index
    %c1_263 = arith.constant 1 : index
    %c0_264 = arith.constant 0 : index
    %c0_265 = arith.constant 0 : index
    %178 = vector.load %arg2[%c4_262, %c1_263, %c0_264, %c0_265] : memref<5x2x64x180xf32, #tpu.memory_space<vmem>>, vector<1x1x64x180xf32>
    %179 = vector.shape_cast %178 : vector<1x1x64x180xf32> to vector<64x180xf32>
    %cst_266 = arith.constant dense<0.000000e+00> : vector<15x180xf32>
    %180 = tpu.matmul %177, %179, %cst_266 {dimension_numbers = #tpu.dot_dimension_numbers<[1], [0], [0], [1], [0, 0, 1, 1], [], []>} : vector<15x64xf32>, vector<64x180xf32>, vector<15x180xf32> -> vector<15x180xf32>
    %181 = arith.addf %175, %180 : vector<15x180xf32>
    %182 = arith.maximumf %152, %181 : vector<15x180xf32>
    %c0_267 = arith.constant 0 : index
    %c3_268 = arith.constant 3 : index
    %c0_269 = arith.constant 0 : index
    %c0_270 = arith.constant 0 : index
    %183 = vector.load %arg1[%c0_267, %c3_268, %c0_269, %c0_270] : memref<1x4x16x64xf32, #tpu.memory_space<vmem>>, vector<1x1x15x64xf32>
    %184 = vector.shape_cast %183 : vector<1x1x15x64xf32> to vector<15x64xf32>
    %c0_271 = arith.constant 0 : index
    %c0_272 = arith.constant 0 : index
    %c0_273 = arith.constant 0 : index
    %c0_274 = arith.constant 0 : index
    %185 = vector.load %arg2[%c0_271, %c0_272, %c0_273, %c0_274] : memref<5x2x64x180xf32, #tpu.memory_space<vmem>>, vector<1x1x64x180xf32>
    %186 = vector.shape_cast %185 : vector<1x1x64x180xf32> to vector<64x180xf32>
    %cst_275 = arith.constant dense<0.000000e+00> : vector<15x180xf32>
    %187 = tpu.matmul %184, %186, %cst_275 {dimension_numbers = #tpu.dot_dimension_numbers<[1], [0], [0], [1], [0, 0, 1, 1], [], []>} : vector<15x64xf32>, vector<64x180xf32>, vector<15x180xf32> -> vector<15x180xf32>
    %c0_276 = arith.constant 0 : index
    %c0_277 = arith.constant 0 : index
    %c1_278 = arith.constant 1 : index
    %c0_279 = arith.constant 0 : index
    %188 = vector.load %arg1[%c0_276, %c0_277, %c1_278, %c0_279] : memref<1x4x16x64xf32, #tpu.memory_space<vmem>>, vector<1x1x15x64xf32>
    %189 = vector.shape_cast %188 : vector<1x1x15x64xf32> to vector<15x64xf32>
    %c1_280 = arith.constant 1 : index
    %c0_281 = arith.constant 0 : index
    %c0_282 = arith.constant 0 : index
    %c0_283 = arith.constant 0 : index
    %190 = vector.load %arg2[%c1_280, %c0_281, %c0_282, %c0_283] : memref<5x2x64x180xf32, #tpu.memory_space<vmem>>, vector<1x1x64x180xf32>
    %191 = vector.shape_cast %190 : vector<1x1x64x180xf32> to vector<64x180xf32>
    %cst_284 = arith.constant dense<0.000000e+00> : vector<15x180xf32>
    %192 = tpu.matmul %189, %191, %cst_284 {dimension_numbers = #tpu.dot_dimension_numbers<[1], [0], [0], [1], [0, 0, 1, 1], [], []>} : vector<15x64xf32>, vector<64x180xf32>, vector<15x180xf32> -> vector<15x180xf32>
    %193 = arith.addf %187, %192 : vector<15x180xf32>
    %c0_285 = arith.constant 0 : index
    %c1_286 = arith.constant 1 : index
    %c1_287 = arith.constant 1 : index
    %c0_288 = arith.constant 0 : index
    %194 = vector.load %arg1[%c0_285, %c1_286, %c1_287, %c0_288] : memref<1x4x16x64xf32, #tpu.memory_space<vmem>>, vector<1x1x15x64xf32>
    %195 = vector.shape_cast %194 : vector<1x1x15x64xf32> to vector<15x64xf32>
    %c2_289 = arith.constant 2 : index
    %c0_290 = arith.constant 0 : index
    %c0_291 = arith.constant 0 : index
    %c0_292 = arith.constant 0 : index
    %196 = vector.load %arg2[%c2_289, %c0_290, %c0_291, %c0_292] : memref<5x2x64x180xf32, #tpu.memory_space<vmem>>, vector<1x1x64x180xf32>
    %197 = vector.shape_cast %196 : vector<1x1x64x180xf32> to vector<64x180xf32>
    %cst_293 = arith.constant dense<0.000000e+00> : vector<15x180xf32>
    %198 = tpu.matmul %195, %197, %cst_293 {dimension_numbers = #tpu.dot_dimension_numbers<[1], [0], [0], [1], [0, 0, 1, 1], [], []>} : vector<15x64xf32>, vector<64x180xf32>, vector<15x180xf32> -> vector<15x180xf32>
    %199 = arith.addf %193, %198 : vector<15x180xf32>
    %c0_294 = arith.constant 0 : index
    %c2_295 = arith.constant 2 : index
    %c1_296 = arith.constant 1 : index
    %c0_297 = arith.constant 0 : index
    %200 = vector.load %arg1[%c0_294, %c2_295, %c1_296, %c0_297] : memref<1x4x16x64xf32, #tpu.memory_space<vmem>>, vector<1x1x15x64xf32>
    %201 = vector.shape_cast %200 : vector<1x1x15x64xf32> to vector<15x64xf32>
    %c3_298 = arith.constant 3 : index
    %c0_299 = arith.constant 0 : index
    %c0_300 = arith.constant 0 : index
    %c0_301 = arith.constant 0 : index
    %202 = vector.load %arg2[%c3_298, %c0_299, %c0_300, %c0_301] : memref<5x2x64x180xf32, #tpu.memory_space<vmem>>, vector<1x1x64x180xf32>
    %203 = vector.shape_cast %202 : vector<1x1x64x180xf32> to vector<64x180xf32>
    %cst_302 = arith.constant dense<0.000000e+00> : vector<15x180xf32>
    %204 = tpu.matmul %201, %203, %cst_302 {dimension_numbers = #tpu.dot_dimension_numbers<[1], [0], [0], [1], [0, 0, 1, 1], [], []>} : vector<15x64xf32>, vector<64x180xf32>, vector<15x180xf32> -> vector<15x180xf32>
    %205 = arith.addf %199, %204 : vector<15x180xf32>
    %c0_303 = arith.constant 0 : index
    %c3_304 = arith.constant 3 : index
    %c1_305 = arith.constant 1 : index
    %c0_306 = arith.constant 0 : index
    %206 = vector.load %arg1[%c0_303, %c3_304, %c1_305, %c0_306] : memref<1x4x16x64xf32, #tpu.memory_space<vmem>>, vector<1x1x15x64xf32>
    %207 = vector.shape_cast %206 : vector<1x1x15x64xf32> to vector<15x64xf32>
    %c4_307 = arith.constant 4 : index
    %c0_308 = arith.constant 0 : index
    %c0_309 = arith.constant 0 : index
    %c0_310 = arith.constant 0 : index
    %208 = vector.load %arg2[%c4_307, %c0_308, %c0_309, %c0_310] : memref<5x2x64x180xf32, #tpu.memory_space<vmem>>, vector<1x1x64x180xf32>
    %209 = vector.shape_cast %208 : vector<1x1x64x180xf32> to vector<64x180xf32>
    %cst_311 = arith.constant dense<0.000000e+00> : vector<15x180xf32>
    %210 = tpu.matmul %207, %209, %cst_311 {dimension_numbers = #tpu.dot_dimension_numbers<[1], [0], [0], [1], [0, 0, 1, 1], [], []>} : vector<15x64xf32>, vector<64x180xf32>, vector<15x180xf32> -> vector<15x180xf32>
    %211 = arith.addf %205, %210 : vector<15x180xf32>
    %212 = arith.maximumf %182, %211 : vector<15x180xf32>
    %c0_312 = arith.constant 0 : index
    %c3_313 = arith.constant 3 : index
    %c0_314 = arith.constant 0 : index
    %c0_315 = arith.constant 0 : index
    %213 = vector.load %arg1[%c0_312, %c3_313, %c0_314, %c0_315] : memref<1x4x16x64xf32, #tpu.memory_space<vmem>>, vector<1x1x15x64xf32>
    %214 = vector.shape_cast %213 : vector<1x1x15x64xf32> to vector<15x64xf32>
    %c0_316 = arith.constant 0 : index
    %c1_317 = arith.constant 1 : index
    %c0_318 = arith.constant 0 : index
    %c0_319 = arith.constant 0 : index
    %215 = vector.load %arg2[%c0_316, %c1_317, %c0_318, %c0_319] : memref<5x2x64x180xf32, #tpu.memory_space<vmem>>, vector<1x1x64x180xf32>
    %216 = vector.shape_cast %215 : vector<1x1x64x180xf32> to vector<64x180xf32>
    %cst_320 = arith.constant dense<0.000000e+00> : vector<15x180xf32>
    %217 = tpu.matmul %214, %216, %cst_320 {dimension_numbers = #tpu.dot_dimension_numbers<[1], [0], [0], [1], [0, 0, 1, 1], [], []>} : vector<15x64xf32>, vector<64x180xf32>, vector<15x180xf32> -> vector<15x180xf32>
    %c0_321 = arith.constant 0 : index
    %c0_322 = arith.constant 0 : index
    %c1_323 = arith.constant 1 : index
    %c0_324 = arith.constant 0 : index
    %218 = vector.load %arg1[%c0_321, %c0_322, %c1_323, %c0_324] : memref<1x4x16x64xf32, #tpu.memory_space<vmem>>, vector<1x1x15x64xf32>
    %219 = vector.shape_cast %218 : vector<1x1x15x64xf32> to vector<15x64xf32>
    %c1_325 = arith.constant 1 : index
    %c1_326 = arith.constant 1 : index
    %c0_327 = arith.constant 0 : index
    %c0_328 = arith.constant 0 : index
    %220 = vector.load %arg2[%c1_325, %c1_326, %c0_327, %c0_328] : memref<5x2x64x180xf32, #tpu.memory_space<vmem>>, vector<1x1x64x180xf32>
    %221 = vector.shape_cast %220 : vector<1x1x64x180xf32> to vector<64x180xf32>
    %cst_329 = arith.constant dense<0.000000e+00> : vector<15x180xf32>
    %222 = tpu.matmul %219, %221, %cst_329 {dimension_numbers = #tpu.dot_dimension_numbers<[1], [0], [0], [1], [0, 0, 1, 1], [], []>} : vector<15x64xf32>, vector<64x180xf32>, vector<15x180xf32> -> vector<15x180xf32>
    %223 = arith.addf %217, %222 : vector<15x180xf32>
    %c0_330 = arith.constant 0 : index
    %c1_331 = arith.constant 1 : index
    %c1_332 = arith.constant 1 : index
    %c0_333 = arith.constant 0 : index
    %224 = vector.load %arg1[%c0_330, %c1_331, %c1_332, %c0_333] : memref<1x4x16x64xf32, #tpu.memory_space<vmem>>, vector<1x1x15x64xf32>
    %225 = vector.shape_cast %224 : vector<1x1x15x64xf32> to vector<15x64xf32>
    %c2_334 = arith.constant 2 : index
    %c1_335 = arith.constant 1 : index
    %c0_336 = arith.constant 0 : index
    %c0_337 = arith.constant 0 : index
    %226 = vector.load %arg2[%c2_334, %c1_335, %c0_336, %c0_337] : memref<5x2x64x180xf32, #tpu.memory_space<vmem>>, vector<1x1x64x180xf32>
    %227 = vector.shape_cast %226 : vector<1x1x64x180xf32> to vector<64x180xf32>
    %cst_338 = arith.constant dense<0.000000e+00> : vector<15x180xf32>
    %228 = tpu.matmul %225, %227, %cst_338 {dimension_numbers = #tpu.dot_dimension_numbers<[1], [0], [0], [1], [0, 0, 1, 1], [], []>} : vector<15x64xf32>, vector<64x180xf32>, vector<15x180xf32> -> vector<15x180xf32>
    %229 = arith.addf %223, %228 : vector<15x180xf32>
    %c0_339 = arith.constant 0 : index
    %c2_340 = arith.constant 2 : index
    %c1_341 = arith.constant 1 : index
    %c0_342 = arith.constant 0 : index
    %230 = vector.load %arg1[%c0_339, %c2_340, %c1_341, %c0_342] : memref<1x4x16x64xf32, #tpu.memory_space<vmem>>, vector<1x1x15x64xf32>
    %231 = vector.shape_cast %230 : vector<1x1x15x64xf32> to vector<15x64xf32>
    %c3_343 = arith.constant 3 : index
    %c1_344 = arith.constant 1 : index
    %c0_345 = arith.constant 0 : index
    %c0_346 = arith.constant 0 : index
    %232 = vector.load %arg2[%c3_343, %c1_344, %c0_345, %c0_346] : memref<5x2x64x180xf32, #tpu.memory_space<vmem>>, vector<1x1x64x180xf32>
    %233 = vector.shape_cast %232 : vector<1x1x64x180xf32> to vector<64x180xf32>
    %cst_347 = arith.constant dense<0.000000e+00> : vector<15x180xf32>
    %234 = tpu.matmul %231, %233, %cst_347 {dimension_numbers = #tpu.dot_dimension_numbers<[1], [0], [0], [1], [0, 0, 1, 1], [], []>} : vector<15x64xf32>, vector<64x180xf32>, vector<15x180xf32> -> vector<15x180xf32>
    %235 = arith.addf %229, %234 : vector<15x180xf32>
    %c0_348 = arith.constant 0 : index
    %c3_349 = arith.constant 3 : index
    %c1_350 = arith.constant 1 : index
    %c0_351 = arith.constant 0 : index
    %236 = vector.load %arg1[%c0_348, %c3_349, %c1_350, %c0_351] : memref<1x4x16x64xf32, #tpu.memory_space<vmem>>, vector<1x1x15x64xf32>
    %237 = vector.shape_cast %236 : vector<1x1x15x64xf32> to vector<15x64xf32>
    %c4_352 = arith.constant 4 : index
    %c1_353 = arith.constant 1 : index
    %c0_354 = arith.constant 0 : index
    %c0_355 = arith.constant 0 : index
    %238 = vector.load %arg2[%c4_352, %c1_353, %c0_354, %c0_355] : memref<5x2x64x180xf32, #tpu.memory_space<vmem>>, vector<1x1x64x180xf32>
    %239 = vector.shape_cast %238 : vector<1x1x64x180xf32> to vector<64x180xf32>
    %cst_356 = arith.constant dense<0.000000e+00> : vector<15x180xf32>
    %240 = tpu.matmul %237, %239, %cst_356 {dimension_numbers = #tpu.dot_dimension_numbers<[1], [0], [0], [1], [0, 0, 1, 1], [], []>} : vector<15x64xf32>, vector<64x180xf32>, vector<15x180xf32> -> vector<15x180xf32>
    %241 = arith.addf %235, %240 : vector<15x180xf32>
    %242 = arith.maximumf %212, %241 : vector<15x180xf32>
    %c0_357 = arith.constant 0 : index
    %c0_358 = arith.constant 0 : index
    %243 = vector.load %arg3[%c0_357, %c0_358] : memref<1x180xf32, #tpu.memory_space<vmem>>, vector<1x180xf32>
    %244 = vector.broadcast %243 : vector<1x180xf32> to vector<15x180xf32>
    %245 = arith.addf %242, %244 : vector<15x180xf32>
    %cst_359 = arith.constant 0.000000e+00 : f32
    %246 = vector.broadcast %cst_359 : f32 to vector<15x180xf32>
    %247 = arith.maximumf %245, %246 : vector<15x180xf32>
    %248 = vector.extract_strided_slice %123 {offsets = [0, 0], sizes = [13, 180], strides = [1, 1]} : vector<15x180xf32> to vector<13x180xf32>
    %c0_360 = arith.constant 0 : index
    %c0_361 = arith.constant 0 : index
    %c0_362 = arith.constant 0 : index
    %c0_363 = arith.constant 0 : index
    %249 = vector.load %arg4[%c0_360, %c0_361, %c0_362, %c0_363] : memref<5x2x180x208xf32, #tpu.memory_space<vmem>>, vector<1x1x180x208xf32>
    %250 = vector.shape_cast %249 : vector<1x1x180x208xf32> to vector<180x208xf32>
    %cst_364 = arith.constant dense<0.000000e+00> : vector<13x208xf32>
    %251 = tpu.matmul %248, %250, %cst_364 {dimension_numbers = #tpu.dot_dimension_numbers<[1], [0], [0], [1], [0, 0, 1, 1], [], []>} : vector<13x180xf32>, vector<180x208xf32>, vector<13x208xf32> -> vector<13x208xf32>
    %252 = vector.extract_strided_slice %247 {offsets = [0, 0], sizes = [13, 180], strides = [1, 1]} : vector<15x180xf32> to vector<13x180xf32>
    %c1_365 = arith.constant 1 : index
    %c0_366 = arith.constant 0 : index
    %c0_367 = arith.constant 0 : index
    %c0_368 = arith.constant 0 : index
    %253 = vector.load %arg4[%c1_365, %c0_366, %c0_367, %c0_368] : memref<5x2x180x208xf32, #tpu.memory_space<vmem>>, vector<1x1x180x208xf32>
    %254 = vector.shape_cast %253 : vector<1x1x180x208xf32> to vector<180x208xf32>
    %cst_369 = arith.constant dense<0.000000e+00> : vector<13x208xf32>
    %255 = tpu.matmul %252, %254, %cst_369 {dimension_numbers = #tpu.dot_dimension_numbers<[1], [0], [0], [1], [0, 0, 1, 1], [], []>} : vector<13x180xf32>, vector<180x208xf32>, vector<13x208xf32> -> vector<13x208xf32>
    %256 = arith.addf %251, %255 : vector<13x208xf32>
    %257 = vector.extract_strided_slice %123 {offsets = [1, 0], sizes = [13, 180], strides = [1, 1]} : vector<15x180xf32> to vector<13x180xf32>
    %c2_370 = arith.constant 2 : index
    %c0_371 = arith.constant 0 : index
    %c0_372 = arith.constant 0 : index
    %c0_373 = arith.constant 0 : index
    %258 = vector.load %arg4[%c2_370, %c0_371, %c0_372, %c0_373] : memref<5x2x180x208xf32, #tpu.memory_space<vmem>>, vector<1x1x180x208xf32>
    %259 = vector.shape_cast %258 : vector<1x1x180x208xf32> to vector<180x208xf32>
    %cst_374 = arith.constant dense<0.000000e+00> : vector<13x208xf32>
    %260 = tpu.matmul %257, %259, %cst_374 {dimension_numbers = #tpu.dot_dimension_numbers<[1], [0], [0], [1], [0, 0, 1, 1], [], []>} : vector<13x180xf32>, vector<180x208xf32>, vector<13x208xf32> -> vector<13x208xf32>
    %261 = arith.addf %256, %260 : vector<13x208xf32>
    %262 = vector.extract_strided_slice %247 {offsets = [1, 0], sizes = [13, 180], strides = [1, 1]} : vector<15x180xf32> to vector<13x180xf32>
    %c3_375 = arith.constant 3 : index
    %c0_376 = arith.constant 0 : index
    %c0_377 = arith.constant 0 : index
    %c0_378 = arith.constant 0 : index
    %263 = vector.load %arg4[%c3_375, %c0_376, %c0_377, %c0_378] : memref<5x2x180x208xf32, #tpu.memory_space<vmem>>, vector<1x1x180x208xf32>
    %264 = vector.shape_cast %263 : vector<1x1x180x208xf32> to vector<180x208xf32>
    %cst_379 = arith.constant dense<0.000000e+00> : vector<13x208xf32>
    %265 = tpu.matmul %262, %264, %cst_379 {dimension_numbers = #tpu.dot_dimension_numbers<[1], [0], [0], [1], [0, 0, 1, 1], [], []>} : vector<13x180xf32>, vector<180x208xf32>, vector<13x208xf32> -> vector<13x208xf32>
    %266 = arith.addf %261, %265 : vector<13x208xf32>
    %267 = vector.extract_strided_slice %123 {offsets = [2, 0], sizes = [13, 180], strides = [1, 1]} : vector<15x180xf32> to vector<13x180xf32>
    %c4_380 = arith.constant 4 : index
    %c0_381 = arith.constant 0 : index
    %c0_382 = arith.constant 0 : index
    %c0_383 = arith.constant 0 : index
    %268 = vector.load %arg4[%c4_380, %c0_381, %c0_382, %c0_383] : memref<5x2x180x208xf32, #tpu.memory_space<vmem>>, vector<1x1x180x208xf32>
    %269 = vector.shape_cast %268 : vector<1x1x180x208xf32> to vector<180x208xf32>
    %cst_384 = arith.constant dense<0.000000e+00> : vector<13x208xf32>
    %270 = tpu.matmul %267, %269, %cst_384 {dimension_numbers = #tpu.dot_dimension_numbers<[1], [0], [0], [1], [0, 0, 1, 1], [], []>} : vector<13x180xf32>, vector<180x208xf32>, vector<13x208xf32> -> vector<13x208xf32>
    %271 = arith.addf %266, %270 : vector<13x208xf32>
    %272 = vector.extract_strided_slice %123 {offsets = [0, 0], sizes = [13, 180], strides = [1, 1]} : vector<15x180xf32> to vector<13x180xf32>
    %c0_385 = arith.constant 0 : index
    %c1_386 = arith.constant 1 : index
    %c0_387 = arith.constant 0 : index
    %c0_388 = arith.constant 0 : index
    %273 = vector.load %arg4[%c0_385, %c1_386, %c0_387, %c0_388] : memref<5x2x180x208xf32, #tpu.memory_space<vmem>>, vector<1x1x180x208xf32>
    %274 = vector.shape_cast %273 : vector<1x1x180x208xf32> to vector<180x208xf32>
    %cst_389 = arith.constant dense<0.000000e+00> : vector<13x208xf32>
    %275 = tpu.matmul %272, %274, %cst_389 {dimension_numbers = #tpu.dot_dimension_numbers<[1], [0], [0], [1], [0, 0, 1, 1], [], []>} : vector<13x180xf32>, vector<180x208xf32>, vector<13x208xf32> -> vector<13x208xf32>
    %276 = vector.extract_strided_slice %247 {offsets = [0, 0], sizes = [13, 180], strides = [1, 1]} : vector<15x180xf32> to vector<13x180xf32>
    %c1_390 = arith.constant 1 : index
    %c1_391 = arith.constant 1 : index
    %c0_392 = arith.constant 0 : index
    %c0_393 = arith.constant 0 : index
    %277 = vector.load %arg4[%c1_390, %c1_391, %c0_392, %c0_393] : memref<5x2x180x208xf32, #tpu.memory_space<vmem>>, vector<1x1x180x208xf32>
    %278 = vector.shape_cast %277 : vector<1x1x180x208xf32> to vector<180x208xf32>
    %cst_394 = arith.constant dense<0.000000e+00> : vector<13x208xf32>
    %279 = tpu.matmul %276, %278, %cst_394 {dimension_numbers = #tpu.dot_dimension_numbers<[1], [0], [0], [1], [0, 0, 1, 1], [], []>} : vector<13x180xf32>, vector<180x208xf32>, vector<13x208xf32> -> vector<13x208xf32>
    %280 = arith.addf %275, %279 : vector<13x208xf32>
    %281 = vector.extract_strided_slice %123 {offsets = [1, 0], sizes = [13, 180], strides = [1, 1]} : vector<15x180xf32> to vector<13x180xf32>
    %c2_395 = arith.constant 2 : index
    %c1_396 = arith.constant 1 : index
    %c0_397 = arith.constant 0 : index
    %c0_398 = arith.constant 0 : index
    %282 = vector.load %arg4[%c2_395, %c1_396, %c0_397, %c0_398] : memref<5x2x180x208xf32, #tpu.memory_space<vmem>>, vector<1x1x180x208xf32>
    %283 = vector.shape_cast %282 : vector<1x1x180x208xf32> to vector<180x208xf32>
    %cst_399 = arith.constant dense<0.000000e+00> : vector<13x208xf32>
    %284 = tpu.matmul %281, %283, %cst_399 {dimension_numbers = #tpu.dot_dimension_numbers<[1], [0], [0], [1], [0, 0, 1, 1], [], []>} : vector<13x180xf32>, vector<180x208xf32>, vector<13x208xf32> -> vector<13x208xf32>
    %285 = arith.addf %280, %284 : vector<13x208xf32>
    %286 = vector.extract_strided_slice %247 {offsets = [1, 0], sizes = [13, 180], strides = [1, 1]} : vector<15x180xf32> to vector<13x180xf32>
    %c3_400 = arith.constant 3 : index
    %c1_401 = arith.constant 1 : index
    %c0_402 = arith.constant 0 : index
    %c0_403 = arith.constant 0 : index
    %287 = vector.load %arg4[%c3_400, %c1_401, %c0_402, %c0_403] : memref<5x2x180x208xf32, #tpu.memory_space<vmem>>, vector<1x1x180x208xf32>
    %288 = vector.shape_cast %287 : vector<1x1x180x208xf32> to vector<180x208xf32>
    %cst_404 = arith.constant dense<0.000000e+00> : vector<13x208xf32>
    %289 = tpu.matmul %286, %288, %cst_404 {dimension_numbers = #tpu.dot_dimension_numbers<[1], [0], [0], [1], [0, 0, 1, 1], [], []>} : vector<13x180xf32>, vector<180x208xf32>, vector<13x208xf32> -> vector<13x208xf32>
    %290 = arith.addf %285, %289 : vector<13x208xf32>
    %291 = vector.extract_strided_slice %123 {offsets = [2, 0], sizes = [13, 180], strides = [1, 1]} : vector<15x180xf32> to vector<13x180xf32>
    %c4_405 = arith.constant 4 : index
    %c1_406 = arith.constant 1 : index
    %c0_407 = arith.constant 0 : index
    %c0_408 = arith.constant 0 : index
    %292 = vector.load %arg4[%c4_405, %c1_406, %c0_407, %c0_408] : memref<5x2x180x208xf32, #tpu.memory_space<vmem>>, vector<1x1x180x208xf32>
    %293 = vector.shape_cast %292 : vector<1x1x180x208xf32> to vector<180x208xf32>
    %cst_409 = arith.constant dense<0.000000e+00> : vector<13x208xf32>
    %294 = tpu.matmul %291, %293, %cst_409 {dimension_numbers = #tpu.dot_dimension_numbers<[1], [0], [0], [1], [0, 0, 1, 1], [], []>} : vector<13x180xf32>, vector<180x208xf32>, vector<13x208xf32> -> vector<13x208xf32>
    %295 = arith.addf %290, %294 : vector<13x208xf32>
    %296 = arith.maximumf %271, %295 : vector<13x208xf32>
    %297 = vector.extract_strided_slice %247 {offsets = [0, 0], sizes = [13, 180], strides = [1, 1]} : vector<15x180xf32> to vector<13x180xf32>
    %c0_410 = arith.constant 0 : index
    %c0_411 = arith.constant 0 : index
    %c0_412 = arith.constant 0 : index
    %c0_413 = arith.constant 0 : index
    %298 = vector.load %arg4[%c0_410, %c0_411, %c0_412, %c0_413] : memref<5x2x180x208xf32, #tpu.memory_space<vmem>>, vector<1x1x180x208xf32>
    %299 = vector.shape_cast %298 : vector<1x1x180x208xf32> to vector<180x208xf32>
    %cst_414 = arith.constant dense<0.000000e+00> : vector<13x208xf32>
    %300 = tpu.matmul %297, %299, %cst_414 {dimension_numbers = #tpu.dot_dimension_numbers<[1], [0], [0], [1], [0, 0, 1, 1], [], []>} : vector<13x180xf32>, vector<180x208xf32>, vector<13x208xf32> -> vector<13x208xf32>
    %301 = vector.extract_strided_slice %123 {offsets = [1, 0], sizes = [13, 180], strides = [1, 1]} : vector<15x180xf32> to vector<13x180xf32>
    %c1_415 = arith.constant 1 : index
    %c0_416 = arith.constant 0 : index
    %c0_417 = arith.constant 0 : index
    %c0_418 = arith.constant 0 : index
    %302 = vector.load %arg4[%c1_415, %c0_416, %c0_417, %c0_418] : memref<5x2x180x208xf32, #tpu.memory_space<vmem>>, vector<1x1x180x208xf32>
    %303 = vector.shape_cast %302 : vector<1x1x180x208xf32> to vector<180x208xf32>
    %cst_419 = arith.constant dense<0.000000e+00> : vector<13x208xf32>
    %304 = tpu.matmul %301, %303, %cst_419 {dimension_numbers = #tpu.dot_dimension_numbers<[1], [0], [0], [1], [0, 0, 1, 1], [], []>} : vector<13x180xf32>, vector<180x208xf32>, vector<13x208xf32> -> vector<13x208xf32>
    %305 = arith.addf %300, %304 : vector<13x208xf32>
    %306 = vector.extract_strided_slice %247 {offsets = [1, 0], sizes = [13, 180], strides = [1, 1]} : vector<15x180xf32> to vector<13x180xf32>
    %c2_420 = arith.constant 2 : index
    %c0_421 = arith.constant 0 : index
    %c0_422 = arith.constant 0 : index
    %c0_423 = arith.constant 0 : index
    %307 = vector.load %arg4[%c2_420, %c0_421, %c0_422, %c0_423] : memref<5x2x180x208xf32, #tpu.memory_space<vmem>>, vector<1x1x180x208xf32>
    %308 = vector.shape_cast %307 : vector<1x1x180x208xf32> to vector<180x208xf32>
    %cst_424 = arith.constant dense<0.000000e+00> : vector<13x208xf32>
    %309 = tpu.matmul %306, %308, %cst_424 {dimension_numbers = #tpu.dot_dimension_numbers<[1], [0], [0], [1], [0, 0, 1, 1], [], []>} : vector<13x180xf32>, vector<180x208xf32>, vector<13x208xf32> -> vector<13x208xf32>
    %310 = arith.addf %305, %309 : vector<13x208xf32>
    %311 = vector.extract_strided_slice %123 {offsets = [2, 0], sizes = [13, 180], strides = [1, 1]} : vector<15x180xf32> to vector<13x180xf32>
    %c3_425 = arith.constant 3 : index
    %c0_426 = arith.constant 0 : index
    %c0_427 = arith.constant 0 : index
    %c0_428 = arith.constant 0 : index
    %312 = vector.load %arg4[%c3_425, %c0_426, %c0_427, %c0_428] : memref<5x2x180x208xf32, #tpu.memory_space<vmem>>, vector<1x1x180x208xf32>
    %313 = vector.shape_cast %312 : vector<1x1x180x208xf32> to vector<180x208xf32>
    %cst_429 = arith.constant dense<0.000000e+00> : vector<13x208xf32>
    %314 = tpu.matmul %311, %313, %cst_429 {dimension_numbers = #tpu.dot_dimension_numbers<[1], [0], [0], [1], [0, 0, 1, 1], [], []>} : vector<13x180xf32>, vector<180x208xf32>, vector<13x208xf32> -> vector<13x208xf32>
    %315 = arith.addf %310, %314 : vector<13x208xf32>
    %316 = vector.extract_strided_slice %247 {offsets = [2, 0], sizes = [13, 180], strides = [1, 1]} : vector<15x180xf32> to vector<13x180xf32>
    %c4_430 = arith.constant 4 : index
    %c0_431 = arith.constant 0 : index
    %c0_432 = arith.constant 0 : index
    %c0_433 = arith.constant 0 : index
    %317 = vector.load %arg4[%c4_430, %c0_431, %c0_432, %c0_433] : memref<5x2x180x208xf32, #tpu.memory_space<vmem>>, vector<1x1x180x208xf32>
    %318 = vector.shape_cast %317 : vector<1x1x180x208xf32> to vector<180x208xf32>
    %cst_434 = arith.constant dense<0.000000e+00> : vector<13x208xf32>
    %319 = tpu.matmul %316, %318, %cst_434 {dimension_numbers = #tpu.dot_dimension_numbers<[1], [0], [0], [1], [0, 0, 1, 1], [], []>} : vector<13x180xf32>, vector<180x208xf32>, vector<13x208xf32> -> vector<13x208xf32>
    %320 = arith.addf %315, %319 : vector<13x208xf32>
    %321 = arith.maximumf %296, %320 : vector<13x208xf32>
    %322 = vector.extract_strided_slice %247 {offsets = [0, 0], sizes = [13, 180], strides = [1, 1]} : vector<15x180xf32> to vector<13x180xf32>
    %c0_435 = arith.constant 0 : index
    %c1_436 = arith.constant 1 : index
    %c0_437 = arith.constant 0 : index
    %c0_438 = arith.constant 0 : index
    %323 = vector.load %arg4[%c0_435, %c1_436, %c0_437, %c0_438] : memref<5x2x180x208xf32, #tpu.memory_space<vmem>>, vector<1x1x180x208xf32>
    %324 = vector.shape_cast %323 : vector<1x1x180x208xf32> to vector<180x208xf32>
    %cst_439 = arith.constant dense<0.000000e+00> : vector<13x208xf32>
    %325 = tpu.matmul %322, %324, %cst_439 {dimension_numbers = #tpu.dot_dimension_numbers<[1], [0], [0], [1], [0, 0, 1, 1], [], []>} : vector<13x180xf32>, vector<180x208xf32>, vector<13x208xf32> -> vector<13x208xf32>
    %326 = vector.extract_strided_slice %123 {offsets = [1, 0], sizes = [13, 180], strides = [1, 1]} : vector<15x180xf32> to vector<13x180xf32>
    %c1_440 = arith.constant 1 : index
    %c1_441 = arith.constant 1 : index
    %c0_442 = arith.constant 0 : index
    %c0_443 = arith.constant 0 : index
    %327 = vector.load %arg4[%c1_440, %c1_441, %c0_442, %c0_443] : memref<5x2x180x208xf32, #tpu.memory_space<vmem>>, vector<1x1x180x208xf32>
    %328 = vector.shape_cast %327 : vector<1x1x180x208xf32> to vector<180x208xf32>
    %cst_444 = arith.constant dense<0.000000e+00> : vector<13x208xf32>
    %329 = tpu.matmul %326, %328, %cst_444 {dimension_numbers = #tpu.dot_dimension_numbers<[1], [0], [0], [1], [0, 0, 1, 1], [], []>} : vector<13x180xf32>, vector<180x208xf32>, vector<13x208xf32> -> vector<13x208xf32>
    %330 = arith.addf %325, %329 : vector<13x208xf32>
    %331 = vector.extract_strided_slice %247 {offsets = [1, 0], sizes = [13, 180], strides = [1, 1]} : vector<15x180xf32> to vector<13x180xf32>
    %c2_445 = arith.constant 2 : index
    %c1_446 = arith.constant 1 : index
    %c0_447 = arith.constant 0 : index
    %c0_448 = arith.constant 0 : index
    %332 = vector.load %arg4[%c2_445, %c1_446, %c0_447, %c0_448] : memref<5x2x180x208xf32, #tpu.memory_space<vmem>>, vector<1x1x180x208xf32>
    %333 = vector.shape_cast %332 : vector<1x1x180x208xf32> to vector<180x208xf32>
    %cst_449 = arith.constant dense<0.000000e+00> : vector<13x208xf32>
    %334 = tpu.matmul %331, %333, %cst_449 {dimension_numbers = #tpu.dot_dimension_numbers<[1], [0], [0], [1], [0, 0, 1, 1], [], []>} : vector<13x180xf32>, vector<180x208xf32>, vector<13x208xf32> -> vector<13x208xf32>
    %335 = arith.addf %330, %334 : vector<13x208xf32>
    %336 = vector.extract_strided_slice %123 {offsets = [2, 0], sizes = [13, 180], strides = [1, 1]} : vector<15x180xf32> to vector<13x180xf32>
    %c3_450 = arith.constant 3 : index
    %c1_451 = arith.constant 1 : index
    %c0_452 = arith.constant 0 : index
    %c0_453 = arith.constant 0 : index
    %337 = vector.load %arg4[%c3_450, %c1_451, %c0_452, %c0_453] : memref<5x2x180x208xf32, #tpu.memory_space<vmem>>, vector<1x1x180x208xf32>
    %338 = vector.shape_cast %337 : vector<1x1x180x208xf32> to vector<180x208xf32>
    %cst_454 = arith.constant dense<0.000000e+00> : vector<13x208xf32>
    %339 = tpu.matmul %336, %338, %cst_454 {dimension_numbers = #tpu.dot_dimension_numbers<[1], [0], [0], [1], [0, 0, 1, 1], [], []>} : vector<13x180xf32>, vector<180x208xf32>, vector<13x208xf32> -> vector<13x208xf32>
    %340 = arith.addf %335, %339 : vector<13x208xf32>
    %341 = vector.extract_strided_slice %247 {offsets = [2, 0], sizes = [13, 180], strides = [1, 1]} : vector<15x180xf32> to vector<13x180xf32>
    %c4_455 = arith.constant 4 : index
    %c1_456 = arith.constant 1 : index
    %c0_457 = arith.constant 0 : index
    %c0_458 = arith.constant 0 : index
    %342 = vector.load %arg4[%c4_455, %c1_456, %c0_457, %c0_458] : memref<5x2x180x208xf32, #tpu.memory_space<vmem>>, vector<1x1x180x208xf32>
    %343 = vector.shape_cast %342 : vector<1x1x180x208xf32> to vector<180x208xf32>
    %cst_459 = arith.constant dense<0.000000e+00> : vector<13x208xf32>
    %344 = tpu.matmul %341, %343, %cst_459 {dimension_numbers = #tpu.dot_dimension_numbers<[1], [0], [0], [1], [0, 0, 1, 1], [], []>} : vector<13x180xf32>, vector<180x208xf32>, vector<13x208xf32> -> vector<13x208xf32>
    %345 = arith.addf %340, %344 : vector<13x208xf32>
    %346 = arith.maximumf %321, %345 : vector<13x208xf32>
    %c0_460 = arith.constant 0 : index
    %c0_461 = arith.constant 0 : index
    %347 = vector.load %arg5[%c0_460, %c0_461] : memref<1x208xf32, #tpu.memory_space<vmem>>, vector<1x208xf32>
    %348 = vector.broadcast %347 : vector<1x208xf32> to vector<13x208xf32>
    %349 = arith.addf %346, %348 : vector<13x208xf32>
    %cst_462 = arith.constant 0.000000e+00 : f32
    %350 = vector.broadcast %cst_462 : f32 to vector<13x208xf32>
    %351 = arith.maximumf %349, %350 : vector<13x208xf32>
    %c0_463 = arith.constant 0 : index
    %c0_464 = arith.constant 0 : index
    %c0_465 = arith.constant 0 : index
    %352 = vector.load %arg6[%c0_463, %c0_464, %c0_465] : memref<1x13x208xf32, #tpu.memory_space<vmem>>, vector<1x13x208xf32>
    %353 = vector.shape_cast %352 : vector<1x13x208xf32> to vector<13x208xf32>
    %354 = vector.shape_cast %351 : vector<13x208xf32> to vector<1x13x208xf32>
    tpu.vector_store %arg6[%c0_463, %c0_464, %c0_465], %354 {strides = array<i32>} : memref<1x13x208xf32, #tpu.memory_space<vmem>>, vector<1x13x208xf32>,
    return
  }
  func.func @transform_0(%arg0: i32) -> (i32, i32, i32, i32) {
    %c0_i32 = arith.constant 0 : i32
    %c0_i32_0 = arith.constant 0 : i32
    %c0_i32_1 = arith.constant 0 : i32
    %c0_i32_2 = arith.constant 0 : i32
    return %arg0, %c0_i32, %c0_i32_0, %c0_i32_1 : i32, i32, i32, i32
  }
  func.func @transform_1(%arg0: i32) -> (i32, i32, i32, i32) {
    %c0_i32 = arith.constant 0 : i32
    %c0_i32_0 = arith.constant 0 : i32
    %c0_i32_1 = arith.constant 0 : i32
    %c0_i32_2 = arith.constant 0 : i32
    %c0_i32_3 = arith.constant 0 : i32
    return %c0_i32, %c0_i32_0, %c0_i32_1, %c0_i32_2 : i32, i32, i32, i32
  }
  func.func @transform_2(%arg0: i32) -> (i32, i32) {
    %c0_i32 = arith.constant 0 : i32
    %c0_i32_0 = arith.constant 0 : i32
    %c0_i32_1 = arith.constant 0 : i32
    return %c0_i32, %c0_i32_0 : i32, i32
  }
  func.func @transform_3(%arg0: i32) -> (i32, i32, i32, i32) {
    %c0_i32 = arith.constant 0 : i32
    %c0_i32_0 = arith.constant 0 : i32
    %c0_i32_1 = arith.constant 0 : i32
    %c0_i32_2 = arith.constant 0 : i32
    %c0_i32_3 = arith.constant 0 : i32
    return %c0_i32, %c0_i32_0, %c0_i32_1, %c0_i32_2 : i32, i32, i32, i32
  }
  func.func @transform_4(%arg0: i32) -> (i32, i32) {
    %c0_i32 = arith.constant 0 : i32
    %c0_i32_0 = arith.constant 0 : i32
    %c0_i32_1 = arith.constant 0 : i32
    return %c0_i32, %c0_i32_0 : i32, i32
  }
  func.func @transform_5(%arg0: i32) -> (i32, i32, i32) {
    %c0_i32 = arith.constant 0 : i32
    %c0_i32_0 = arith.constant 0 : i32
    %c0_i32_1 = arith.constant 0 : i32
    return %arg0, %c0_i32, %c0_i32_0 : i32, i32, i32
  }
}

module attributes {stable_mosaic.version = 11 : i64} {
  func.func @_fc_stack_kernel(%arg0: i32, %arg1: memref<8x2704xf32, #tpu.memory_space<vmem>>, %arg2: memref<2704x128xf32, #tpu.memory_space<vmem>>, %arg3: memref<1x128xf32, #tpu.memory_space<vmem>>, %arg4: memref<128x128xf32, #tpu.memory_space<vmem>>, %arg5: memref<1x128xf32, #tpu.memory_space<vmem>>, %arg6: memref<128x128xf32, #tpu.memory_space<vmem>>, %arg7: memref<1x128xf32, #tpu.memory_space<vmem>>, %arg8: memref<8x128xf32, #tpu.memory_space<vmem>>) attributes {dimension_semantics = [#tpu.dimension_semantics<parallel>], iteration_bounds = array<i64: 1>, scalar_prefetch = 0 : i64, scratch_operands = 0 : i64, tpu.core_type = #tpu.core_type<tc>, window_params = [{transform_indices = @transform_0, window_bounds = array<i64: 8, 2704>}, {pipeline_mode = #tpu.pipeline_mode<synchronous>, transform_indices = @transform_1, window_bounds = array<i64: 2704, 128>}, {pipeline_mode = #tpu.pipeline_mode<synchronous>, transform_indices = @transform_2, window_bounds = array<i64: 1, 128>}, {pipeline_mode = #tpu.pipeline_mode<synchronous>, transform_indices = @transform_3, window_bounds = array<i64: 128, 128>}, {pipeline_mode = #tpu.pipeline_mode<synchronous>, transform_indices = @transform_4, window_bounds = array<i64: 1, 128>}, {pipeline_mode = #tpu.pipeline_mode<synchronous>, transform_indices = @transform_5, window_bounds = array<i64: 128, 128>}, {pipeline_mode = #tpu.pipeline_mode<synchronous>, transform_indices = @transform_6, window_bounds = array<i64: 1, 128>}, {transform_indices = @transform_7, window_bounds = array<i64: 8, 128>}]} {
    %c0 = arith.constant 0 : index
    %c0_0 = arith.constant 0 : index
    %0 = vector.load %arg1[%c0, %c0_0] : memref<8x2704xf32, #tpu.memory_space<vmem>>, vector<8x2704xf32>
    %c0_1 = arith.constant 0 : index
    %c0_2 = arith.constant 0 : index
    %1 = vector.load %arg2[%c0_1, %c0_2] : memref<2704x128xf32, #tpu.memory_space<vmem>>, vector<2704x128xf32>
    %cst = arith.constant dense<0.000000e+00> : vector<8x128xf32>
    %2 = tpu.matmul %0, %1, %cst {dimension_numbers = #tpu.dot_dimension_numbers<[1], [0], [0], [1], [0, 0, 1, 1], [], []>} : vector<8x2704xf32>, vector<2704x128xf32>, vector<8x128xf32> -> vector<8x128xf32>
    %c0_3 = arith.constant 0 : index
    %c0_4 = arith.constant 0 : index
    %3 = vector.load %arg3[%c0_3, %c0_4] : memref<1x128xf32, #tpu.memory_space<vmem>>, vector<1x128xf32>
    %4 = vector.broadcast %3 : vector<1x128xf32> to vector<8x128xf32>
    %5 = arith.addf %2, %4 : vector<8x128xf32>
    %cst_5 = arith.constant 0.000000e+00 : f32
    %6 = vector.broadcast %cst_5 : f32 to vector<8x128xf32>
    %7 = arith.maximumf %5, %6 : vector<8x128xf32>
    %c0_6 = arith.constant 0 : index
    %c0_7 = arith.constant 0 : index
    %8 = vector.load %arg4[%c0_6, %c0_7] : memref<128x128xf32, #tpu.memory_space<vmem>>, vector<128x128xf32>
    %cst_8 = arith.constant dense<0.000000e+00> : vector<8x128xf32>
    %9 = tpu.matmul %7, %8, %cst_8 {dimension_numbers = #tpu.dot_dimension_numbers<[1], [0], [0], [1], [0, 0, 1, 1], [], []>} : vector<8x128xf32>, vector<128x128xf32>, vector<8x128xf32> -> vector<8x128xf32>
    %c0_9 = arith.constant 0 : index
    %c0_10 = arith.constant 0 : index
    %10 = vector.load %arg5[%c0_9, %c0_10] : memref<1x128xf32, #tpu.memory_space<vmem>>, vector<1x128xf32>
    %11 = vector.broadcast %10 : vector<1x128xf32> to vector<8x128xf32>
    %12 = arith.addf %9, %11 : vector<8x128xf32>
    %cst_11 = arith.constant 0.000000e+00 : f32
    %13 = vector.broadcast %cst_11 : f32 to vector<8x128xf32>
    %14 = arith.maximumf %12, %13 : vector<8x128xf32>
    %c0_12 = arith.constant 0 : index
    %c0_13 = arith.constant 0 : index
    %15 = vector.load %arg6[%c0_12, %c0_13] : memref<128x128xf32, #tpu.memory_space<vmem>>, vector<128x128xf32>
    %cst_14 = arith.constant dense<0.000000e+00> : vector<8x128xf32>
    %16 = tpu.matmul %14, %15, %cst_14 {dimension_numbers = #tpu.dot_dimension_numbers<[1], [0], [0], [1], [0, 0, 1, 1], [], []>} : vector<8x128xf32>, vector<128x128xf32>, vector<8x128xf32> -> vector<8x128xf32>
    %c0_15 = arith.constant 0 : index
    %c0_16 = arith.constant 0 : index
    %17 = vector.load %arg7[%c0_15, %c0_16] : memref<1x128xf32, #tpu.memory_space<vmem>>, vector<1x128xf32>
    %18 = vector.broadcast %17 : vector<1x128xf32> to vector<8x128xf32>
    %19 = arith.addf %16, %18 : vector<8x128xf32>
    %cst_17 = arith.constant 0.000000e+00 : f32
    %20 = vector.broadcast %cst_17 : f32 to vector<8x128xf32>
    %21 = arith.maximumf %19, %20 : vector<8x128xf32>
    %c0_18 = arith.constant 0 : index
    %c0_19 = arith.constant 0 : index
    %22 = vector.load %arg8[%c0_18, %c0_19] : memref<8x128xf32, #tpu.memory_space<vmem>>, vector<8x128xf32>
    tpu.vector_store %arg8[%c0_18, %c0_19], %21 {strides = array<i32>} : memref<8x128xf32, #tpu.memory_space<vmem>>, vector<8x128xf32>,
    return
  }
  func.func @transform_0(%arg0: i32) -> (i32, i32) {
    %c0_i32 = arith.constant 0 : i32
    %c0_i32_0 = arith.constant 0 : i32
    return %arg0, %c0_i32 : i32, i32
  }
  func.func @transform_1(%arg0: i32) -> (i32, i32) {
    %c0_i32 = arith.constant 0 : i32
    %c0_i32_0 = arith.constant 0 : i32
    %c0_i32_1 = arith.constant 0 : i32
    return %c0_i32, %c0_i32_0 : i32, i32
  }
  func.func @transform_2(%arg0: i32) -> (i32, i32) {
    %c0_i32 = arith.constant 0 : i32
    %c0_i32_0 = arith.constant 0 : i32
    %c0_i32_1 = arith.constant 0 : i32
    return %c0_i32, %c0_i32_0 : i32, i32
  }
  func.func @transform_3(%arg0: i32) -> (i32, i32) {
    %c0_i32 = arith.constant 0 : i32
    %c0_i32_0 = arith.constant 0 : i32
    %c0_i32_1 = arith.constant 0 : i32
    return %c0_i32, %c0_i32_0 : i32, i32
  }
  func.func @transform_4(%arg0: i32) -> (i32, i32) {
    %c0_i32 = arith.constant 0 : i32
    %c0_i32_0 = arith.constant 0 : i32
    %c0_i32_1 = arith.constant 0 : i32
    return %c0_i32, %c0_i32_0 : i32, i32
  }
  func.func @transform_5(%arg0: i32) -> (i32, i32) {
    %c0_i32 = arith.constant 0 : i32
    %c0_i32_0 = arith.constant 0 : i32
    %c0_i32_1 = arith.constant 0 : i32
    return %c0_i32, %c0_i32_0 : i32, i32
  }
  func.func @transform_6(%arg0: i32) -> (i32, i32) {
    %c0_i32 = arith.constant 0 : i32
    %c0_i32_0 = arith.constant 0 : i32
    %c0_i32_1 = arith.constant 0 : i32
    return %c0_i32, %c0_i32_0 : i32, i32
  }
  func.func @transform_7(%arg0: i32) -> (i32, i32) {
    %c0_i32 = arith.constant 0 : i32
    %c0_i32_0 = arith.constant 0 : i32
    return %arg0, %c0_i32 : i32, i32
  }
}

</mosaic_0001>

<bundles_post_ra>
// kernel: lenet5_forward.3
= control target key start
LH: loop header
LB: loop body
LE: loop exit
PB: predicated region body
PF: predicated region fallthrough
CT: control target
= control target key end

     0   :  { %vm393_vm0 = vcmask 130048   ;;  %vm2218_vm1 = vmmov 0   ;;  %s3475_s1 = inlined_call_operand.vmem [shape: f32[2704,128], index: 1, kind: input, shape index: {}]   ;;  %s3476_s0 = inlined_call_operand.vmem [shape: f32[8,2704], index: 0, kind: input, shape index: {}]   ;;  %s3477_s2 = inlined_call_operand.vmem [shape: f32[1,128], index: 2, kind: input, shape index: {}]   ;;  %s3478_s3 = inlined_call_operand.vmem [shape: f32[128,128], index: 3, kind: input, shape index: {}]   ;;  %s3479_s5 = inlined_call_operand.vmem [shape: f32[128,128], index: 5, kind: input, shape index: {}]   ;;  %s3480_s4 = inlined_call_operand.vmem [shape: f32[1,128], index: 4, kind: input, shape index: {}]   ;;  %s3481_s6 = inlined_call_operand.vmem [shape: f32[1,128], index: 6, kind: input, shape index: {}]   ;;  %s3482_s7 = inlined_call_operand.vmem [shape: f32[8,128], index: 7, kind: output, shape index: {}]  }
   0x1   :  { %v64_v0 = vld [vmem:[%s3475_s1 + $0x80] sm:$0xff]  ;;  %v65_v1 = vld [vmem:[%s3475_s1 + $0x88] sm:$0xff]  ;;  %v66_v11 = vld [vmem:[%s3475_s1 + $0x90] sm:$0xff] }
   0x2   :  { %v48_v2 = vld [vmem:[%s3475_s1] sm:$0xff]  ;;  %v1819_v3 = vpack.c.bf16 %v65_v1, %v64_v0  ;;  %v49_v4 = vld [vmem:[%s3475_s1 + $0x8] sm:$0xff]  ;;  %v67_v13 = vld [vmem:[%s3475_s1 + $0x98] sm:$0xff] }
   0x3   :  { %v96_v5 = vld [vmem:[%s3475_s1 + $0x180] sm:$0xff]  ;;  %v97_v6 = vld [vmem:[%s3475_s1 + $0x188] sm:$0xff]  ;;  %v1821_v7 = vpack.c.bf16 %v49_v4, %v48_v2  ;;  %v50_v14 = vld [vmem:[%s3475_s1 + $0x10] sm:$0xff]  ;;  %v1823_v16 = vpack.c.bf16 %v67_v13, %v66_v11 }
   0x4   :  { %v1851_v8 = vpack.c.bf16 %v97_v6, %v96_v5  ;;  %v80_v9 = vld [vmem:[%s3475_s1 + $0x100] sm:$0xff]  ;;  %v81_v10 = vld [vmem:[%s3475_s1 + $0x108] sm:$0xff]  ;;  %1820 = vmatprep.subr.bf16.mxu0 %v1819_v3  ;;  %v51_v15 = vld [vmem:[%s3475_s1 + $0x18] sm:$0xff] }
   0x5   :  { %v1853_v12 = vpack.c.bf16 %v81_v10, %v80_v9  ;;  %1822 = vmatpush3.bf16.msra.mxu0 %v1821_v7  ;;  %v1825_v17 = vpack.c.bf16 %v51_v15, %v50_v14  ;;  %v98_v18 = vld [vmem:[%s3475_s1 + $0x190] sm:$0xff]  ;;  %v99_v19 = vld [vmem:[%s3475_s1 + $0x198] sm:$0xff]  ;;  %v68_v23 = vld [vmem:[%s3475_s1 + $0xa0] sm:$0xff] }
   0x6   :  { %1852 = vmatprep.subr.bf16.mxu1 %v1851_v8  ;;  %v82_v20 = vld [vmem:[%s3475_s1 + $0x110] sm:$0xff]  ;;  %v1855_v21 = vpack.c.bf16 %v99_v19, %v98_v18  ;;  %v83_v22 = vld [vmem:[%s3475_s1 + $0x118] sm:$0xff]  ;;  %v69_v24 = vld [vmem:[%s3475_s1 + $0xa8] sm:$0xff]  ;;  %1824 = vmatprep.subr.bf16.mxu0 %v1823_v16 }
   0x7   :  { %1854 = vmatpush3.bf16.msra.mxu1 %v1853_v12  ;;  %v1857_v25 = vpack.c.bf16 %v83_v22, %v82_v20  ;;  %v1827_v26 = vpack.c.bf16 %v69_v24, %v68_v23  ;;  %v52_v27 = vld [vmem:[%s3475_s1 + $0x20] sm:$0xff]  ;;  %v53_v28 = vld [vmem:[%s3475_s1 + $0x28] sm:$0xff]  ;;  %v70_v35 = vld [vmem:[%s3475_s1 + $0xb0] sm:$0xff] }
   0x8   :  { %v100_v29 = vld [vmem:[%s3475_s1 + $0x1a0] sm:$0xff]  ;;  %1856 = vmatprep.subr.bf16.mxu1 %v1855_v21  ;;  %v101_v30 = vld [vmem:[%s3475_s1 + $0x1a8] sm:$0xff]  ;;  %v1829_v33 = vpack.c.bf16 %v53_v28, %v52_v27  ;;  %v71_v36 = vld [vmem:[%s3475_s1 + $0xb8] sm:$0xff] }
   0x9   :  { %v84_v31 = vld [vmem:[%s3475_s1 + $0x120] sm:$0xff]  ;;  %v85_v32 = vld [vmem:[%s3475_s1 + $0x128] sm:$0xff]  ;;  %1826 = vmatpush3.bf16.msra.mxu0 %v1825_v17  ;;  %v1859_v34 = vpack.c.bf16 %v101_v30, %v100_v29  ;;  %v54_v37 = vld [vmem:[%s3475_s1 + $0x30] sm:$0xff]  ;;  %v1831_v39 = vpack.c.bf16 %v71_v36, %v70_v35 }
   0xa   :  { %1828 = vmatprep.subr.bf16.mxu0 %v1827_v26  ;;  %v1861_v38 = vpack.c.bf16 %v85_v32, %v84_v31  ;;  %v55_v40 = vld [vmem:[%s3475_s1 + $0x38] sm:$0xff]  ;;  %v102_v41 = vld [vmem:[%s3475_s1 + $0x1b0] sm:$0xff]  ;;  %v72_v46 = vld [vmem:[%s3475_s1 + $0xc0] sm:$0xff] }
   0xb   :  { %1858 = vmatpush3.bf16.msra.mxu1 %v1857_v25  ;;  %v103_v42 = vld [vmem:[%s3475_s1 + $0x1b8] sm:$0xff]  ;;  %v86_v44 = vld [vmem:[%s3475_s1 + $0x130] sm:$0xff]  ;;  %v73_v47 = vld [vmem:[%s3475_s1 + $0xc8] sm:$0xff]  ;;  %v1833_v48 = vpack.c.bf16 %v55_v40, %v54_v37 }
   0xc   :  { %1860 = vmatprep.subr.bf16.mxu1 %v1859_v34  ;;  %v1863_v43 = vpack.c.bf16 %v103_v42, %v102_v41  ;;  %v87_v45 = vld [vmem:[%s3475_s1 + $0x138] sm:$0xff]  ;;  %v104_v49 = vld [vmem:[%s3475_s1 + $0x1c0] sm:$0xff]  ;;  %v105_v50 = vld [vmem:[%s3475_s1 + $0x1c8] sm:$0xff]  ;;  %v1835_v52 = vpack.c.bf16 %v73_v47, %v72_v46 }
   0xd   :  { %1830 = vmatpush3.bf16.msra.mxu0 %v1829_v33  ;;  %v1865_v51 = vpack.c.bf16 %v87_v45, %v86_v44  ;;  %v56_v53 = vld [vmem:[%s3475_s1 + $0x40] sm:$0xff]  ;;  %v57_v54 = vld [vmem:[%s3475_s1 + $0x48] sm:$0xff]  ;;  %v1867_v56 = vpack.c.bf16 %v105_v50, %v104_v49  ;;  %v74_v58 = vld [vmem:[%s3475_s1 + $0xd0] sm:$0xff] }
   0xe   :  { %1832 = vmatprep.subr.bf16.mxu0 %v1831_v39  ;;  %v88_v55 = vld [vmem:[%s3475_s1 + $0x140] sm:$0xff]  ;;  %v89_v57 = vld [vmem:[%s3475_s1 + $0x148] sm:$0xff]  ;;  %v75_v59 = vld [vmem:[%s3475_s1 + $0xd8] sm:$0xff]  ;;  %v1837_v62 = vpack.c.bf16 %v57_v54, %v56_v53 }
   0xf   :  { %1862 = vmatpush3.bf16.msra.mxu1 %v1861_v38  ;;  %v106_v60 = vld [vmem:[%s3475_s1 + $0x1d0] sm:$0xff]  ;;  %v107_v61 = vld [vmem:[%s3475_s1 + $0x1d8] sm:$0xff]  ;;  %v1869_v63 = vpack.c.bf16 %v89_v57, %v88_v55  ;;  %v1839_v0 = vpack.c.bf16 %v75_v59, %v74_v58  ;;  %v76_v6 = vld [vmem:[%s3475_s1 + $0xe0] sm:$0xff] }
  0x10   :  { %1864 = vmatprep.subr.bf16.mxu1 %v1863_v43  ;;  %v58_v1 = vld [vmem:[%s3475_s1 + $0x50] sm:$0xff]  ;;  %v59_v2 = vld [vmem:[%s3475_s1 + $0x58] sm:$0xff]  ;;  %v1871_v4 = vpack.c.bf16 %v107_v61, %v106_v60  ;;  %v77_v7 = vld [vmem:[%s3475_s1 + $0xe8] sm:$0xff] }
  0x11   :  { %1834 = vmatpush3.bf16.msra.mxu0 %v1833_v48  ;;  %v90_v3 = vld [vmem:[%s3475_s1 + $0x150] sm:$0xff]  ;;  %v91_v5 = vld [vmem:[%s3475_s1 + $0x158] sm:$0xff]  ;;  %v108_v8 = vld [vmem:[%s3475_s1 + $0x1e0] sm:$0xff]  ;;  %v1841_v10 = vpack.c.bf16 %v59_v2, %v58_v1  ;;  %v1843_v14 = vpack.c.bf16 %v77_v7, %v76_v6 }
  0x12   :  { %1836 = vmatprep.subr.bf16.mxu0 %v1835_v52  ;;  %v109_v9 = vld [vmem:[%s3475_s1 + $0x1e8] sm:$0xff]  ;;  %v60_v11 = vld [vmem:[%s3475_s1 + $0x60] sm:$0xff]  ;;  %v1873_v13 = vpack.c.bf16 %v91_v5, %v90_v3  ;;  %v78_v19 = vld [vmem:[%s3475_s1 + $0xf0] sm:$0xff] }
  0x13   :  { %1866 = vmatpush3.bf16.msra.mxu1 %v1865_v51  ;;  %v27_v12 = vld [vmem:[%s3476_s0 + $0x8] sm:$0xff]  ;;  %v92_v16 = vld [vmem:[%s3475_s1 + $0x160] sm:$0xff]  ;;  %v1875_v18 = vpack.c.bf16 %v109_v9, %v108_v8  ;;  %v79_v20 = vld [vmem:[%s3475_s1 + $0xf8] sm:$0xff] }
  0x14   :  { %1868 = vmatprep.subr.bf16.mxu1 %v1867_v56  ;;  %v61_v15 = vld [vmem:[%s3475_s1 + $0x68] sm:$0xff]  ;;  %461 = vmatprep.mubr.f32.mxu0 %v27_v12  ;;  %v29_v21 = vld [vmem:[%s3476_s0 + $0x18] sm:$0xff]  ;;  %v110_v22 = vld [vmem:[%s3475_s1 + $0x1f0] sm:$0xff]  ;;  %v1847_v26 = vpack.c.bf16 %v79_v20, %v78_v19 }
  0x15   :  { %1838 = vmatpush3.bf16.msra.mxu0 %v1837_v62  ;;  %v93_v17 = vld [vmem:[%s3475_s1 + $0x168] sm:$0xff]  ;;  %v111_v23 = vld [vmem:[%s3475_s1 + $0x1f8] sm:$0xff]  ;;  %531 = vmatprep.mubr.f32.mxu1 %v29_v21  ;;  %v1845_v24 = vpack.c.bf16 %v61_v15, %v60_v11  ;;  %v62_v27 = vld [vmem:[%s3475_s1 + $0x70] sm:$0xff] }
  0x16   :  { %1840 = vmatprep.subr.bf16.mxu0 %v1839_v0  ;;  %v1877_v25 = vpack.c.bf16 %v93_v17, %v92_v16  ;;  %v63_v28 = vld [vmem:[%s3475_s1 + $0x78] sm:$0xff]  ;;  %v94_v29 = vld [vmem:[%s3475_s1 + $0x170] sm:$0xff]  ;;  %v1879_v30 = vpack.c.bf16 %v111_v23, %v110_v22  ;;  %v128_v32 = vld [vmem:[%s3475_s1 + $0x280] sm:$0xff] }
  0x17   :  { %1870 = vmatpush3.bf16.msra.mxu1 %v1869_v63  ;;  %v95_v31 = vld [vmem:[%s3475_s1 + $0x178] sm:$0xff]  ;;  %v129_v33 = vld [vmem:[%s3475_s1 + $0x288] sm:$0xff]  ;;  %v160_v34 = vld [vmem:[%s3475_s1 + $0x380] sm:$0xff]  ;;  %v1849_v36 = vpack.c.bf16 %v63_v28, %v62_v27 }
  0x18   :  { %1872 = vmatprep.subr.bf16.mxu1 %v1871_v4  ;;  %v161_v35 = vld [vmem:[%s3475_s1 + $0x388] sm:$0xff]  ;;  %v1881_v37 = vpack.c.bf16 %v95_v31, %v94_v29  ;;  %v1883_v38 = vpack.c.bf16 %v129_v33, %v128_v32  ;;  %v112_v39 = vld [vmem:[%s3475_s1 + $0x200] sm:$0xff]  ;;  %v130_v44 = vld [vmem:[%s3475_s1 + $0x290] sm:$0xff] }
  0x19   :  { %1842 = vmatpush3.bf16.msra.mxu0 %v1841_v10  ;;  %v113_v40 = vld [vmem:[%s3475_s1 + $0x208] sm:$0xff]  ;;  %v144_v41 = vld [vmem:[%s3475_s1 + $0x300] sm:$0xff]  ;;  %v1915_v42 = vpack.c.bf16 %v161_v35, %v160_v34  ;;  %v131_v45 = vld [vmem:[%s3475_s1 + $0x298] sm:$0xff] }
  0x1a   :  { %1844 = vmatprep.subr.bf16.mxu0 %v1843_v14  ;;  %v145_v43 = vld [vmem:[%s3475_s1 + $0x308] sm:$0xff]  ;;  %v162_v46 = vld [vmem:[%s3475_s1 + $0x390] sm:$0xff]  ;;  %v163_v47 = vld [vmem:[%s3475_s1 + $0x398] sm:$0xff]  ;;  %v1885_v49 = vpack.c.bf16 %v113_v40, %v112_v39  ;;  %v1887_v52 = vpack.c.bf16 %v131_v45, %v130_v44 }
  0x1b   :  { %1874 = vmatpush3.bf16.msra.mxu1 %v1873_v13  ;;  %v26_v48 = vld [vmem:[%s3476_s0] sm:$0xff]  ;;  %v28_v50 = vld [vmem:[%s3476_s0 + $0x10] sm:$0xff]  ;;  %v1917_v51 = vpack.c.bf16 %v145_v43, %v144_v41  ;;  %v115_v54 = vld [vmem:[%s3475_s1 + $0x218] sm:$0xff]  ;;  %v1919_v56 = vpack.c.bf16 %v163_v47, %v162_v46 }
  0x1c   :  { %1876 = vmatprep.subr.bf16.mxu1 %v1875_v18  ;;  %v114_v53 = vld [vmem:[%s3475_s1 + $0x210] sm:$0xff]  ;;  %v147_v57 = vld [vmem:[%s3475_s1 + $0x318] sm:$0xff]  ;;  %v132_v58 = vld [vmem:[%s3475_s1 + $0x2a0] sm:$0xff] }
  0x1d   :  { %1846 = vmatpush3.bf16.msra.mxu0 %v1845_v24  ;;  %v146_v55 = vld [vmem:[%s3475_s1 + $0x310] sm:$0xff]  ;;  %v133_v59 = vld [vmem:[%s3475_s1 + $0x2a8] sm:$0xff]  ;;  %v164_v60 = vld [vmem:[%s3475_s1 + $0x3a0] sm:$0xff]  ;;  %v1889_v62 = vpack.c.bf16 %v115_v54, %v114_v53 }
  0x1e   :  { %1848 = vmatprep.subr.bf16.mxu0 %v1847_v26  ;;  %v165_v61 = vld [vmem:[%s3475_s1 + $0x3a8] sm:$0xff]  ;;  %v1921_v63 = vpack.c.bf16 %v147_v57, %v146_v55  ;;  %v1891_v0 = vpack.c.bf16 %v133_v59, %v132_v58  ;;  %v116_v1 = vld [vmem:[%s3475_s1 + $0x220] sm:$0xff]  ;;  %v134_v6 = vld [vmem:[%s3475_s1 + $0x2b0] sm:$0xff] }
  0x1f   :  { %1878 = vmatpush3.bf16.msra.mxu1 %v1877_v25  ;;  %v117_v2 = vld [vmem:[%s3475_s1 + $0x228] sm:$0xff]  ;;  %v148_v3 = vld [vmem:[%s3475_s1 + $0x320] sm:$0xff]  ;;  %v1923_v4 = vpack.c.bf16 %v165_v61, %v164_v60  ;;  %v135_v7 = vld [vmem:[%s3475_s1 + $0x2b8] sm:$0xff] }
  0x20   :  { %1880 = vmatprep.subr.bf16.mxu1 %v1879_v30  ;;  %v149_v5 = vld [vmem:[%s3475_s1 + $0x328] sm:$0xff]  ;;  %v166_v8 = vld [vmem:[%s3475_s1 + $0x3b0] sm:$0xff]  ;;  %v167_v9 = vld [vmem:[%s3475_s1 + $0x3b8] sm:$0xff]  ;;  %v1893_v10 = vpack.c.bf16 %v117_v2, %v116_v1  ;;  %v1895_v12 = vpack.c.bf16 %v135_v7, %v134_v6 }
  0x21   :  { %1850 = vmatpush3.bf16.msra.mxu0 %v1849_v36  ;;  %v1925_v11 = vpack.c.bf16 %v149_v5, %v148_v3  ;;  %v118_v13 = vld [vmem:[%s3475_s1 + $0x230] sm:$0xff]  ;;  %v119_v14 = vld [vmem:[%s3475_s1 + $0x238] sm:$0xff]  ;;  %v1927_v16 = vpack.c.bf16 %v167_v9, %v166_v8  ;;  %v136_v18 = vld [vmem:[%s3475_s1 + $0x2c0] sm:$0xff] }
  0x22   :  { %1884 = vmatprep.subr.bf16.mxu0 %v1883_v38  ;;  %v150_v15 = vld [vmem:[%s3475_s1 + $0x330] sm:$0xff]  ;;  %v151_v17 = vld [vmem:[%s3475_s1 + $0x338] sm:$0xff]  ;;  %v137_v19 = vld [vmem:[%s3475_s1 + $0x2c8] sm:$0xff]  ;;  %v1897_v23 = vpack.c.bf16 %v119_v14, %v118_v13 }
  0x23   :  { %1882 = vmatpush3.bf16.msra.mxu1 %v1881_v37  ;;  %v168_v20 = vld [vmem:[%s3475_s1 + $0x3c0] sm:$0xff]  ;;  %v169_v21 = vld [vmem:[%s3475_s1 + $0x3c8] sm:$0xff]  ;;  %v1929_v25 = vpack.c.bf16 %v151_v17, %v150_v15  ;;  %v1899_v26 = vpack.c.bf16 %v137_v19, %v136_v18  ;;  %v33_v29 = vld [vmem:[%s3476_s0 + $0x38] sm:$0xff] }
  0x24   :  { %1916 = vmatprep.subr.bf16.mxu1 %v1915_v42  ;;  %462 = vmatmul.mubr.f32.vlgmr.msra.gmra.mrb[0].mxu0 %v26_v48  ;;  %v31_v22 = vld [vmem:[%s3476_s0 + $0x28] sm:$0xff]  ;;  %v120_v24 = vld [vmem:[%s3475_s1 + $0x240] sm:$0xff]  ;;  %v1931_v30 = vpack.c.bf16 %v169_v21, %v168_v20  ;;  %v138_v32 = vld [vmem:[%s3475_s1 + $0x2d0] sm:$0xff] }
  0x25   :  { %1886 = vmatpush3.bf16.msra.mxu0 %v1885_v49  ;;  %601 = vmatprep.mubr.f32.mxu0 %v31_v22  ;;  %v121_v27 = vld [vmem:[%s3475_s1 + $0x248] sm:$0xff]  ;;  %v152_v28 = vld [vmem:[%s3475_s1 + $0x340] sm:$0xff]  ;;  %v139_v33 = vld [vmem:[%s3475_s1 + $0x2d8] sm:$0xff] }
  0x26   :  { %532 = vmatmul.mubr.f32.vlgmr.msra.gmra.mrb[0].mxu1 %v28_v50  ;;  %1888 = vmatprep.subr.bf16.mxu0 %v1887_v52  ;;  %v153_v31 = vld [vmem:[%s3475_s1 + $0x348] sm:$0xff]  ;;  %v170_v34 = vld [vmem:[%s3475_s1 + $0x3d0] sm:$0xff]  ;;  %v171_v35 = vld [vmem:[%s3475_s1 + $0x3d8] sm:$0xff]  ;;  %v1901_v36 = vpack.c.bf16 %v121_v27, %v120_v24  ;;  %v1903_v38 = vpack.c.bf16 %v139_v33, %v138_v32 }
  0x27   :  { %1918 = vmatpush3.bf16.msra.mxu1 %v1917_v51  ;;  %671 = vmatprep.mubr.f32.mxu1 %v33_v29  ;;  %v1933_v37 = vpack.c.bf16 %v153_v31, %v152_v28  ;;  %v122_v39 = vld [vmem:[%s3475_s1 + $0x250] sm:$0xff]  ;;  %v123_v40 = vld [vmem:[%s3475_s1 + $0x258] sm:$0xff]  ;;  %v1935_v42 = vpack.c.bf16 %v171_v35, %v170_v34  ;;  %v140_v44 = vld [vmem:[%s3475_s1 + $0x2e0] sm:$0xff] }
  0x28   :  { %1920 = vmatprep.subr.bf16.mxu1 %v1919_v56  ;;  %v154_v41 = vld [vmem:[%s3475_s1 + $0x350] sm:$0xff]  ;;  %v155_v43 = vld [vmem:[%s3475_s1 + $0x358] sm:$0xff]  ;;  %v141_v45 = vld [vmem:[%s3475_s1 + $0x2e8] sm:$0xff]  ;;  %v1905_v48 = vpack.c.bf16 %v123_v40, %v122_v39 }
  0x29   :  { %1890 = vmatpush3.bf16.msra.mxu0 %v1889_v62  ;;  %v172_v46 = vld [vmem:[%s3475_s1 + $0x3e0] sm:$0xff]  ;;  %v173_v47 = vld [vmem:[%s3475_s1 + $0x3e8] sm:$0xff]  ;;  %v1937_v49 = vpack.c.bf16 %v155_v43, %v154_v41  ;;  %v1907_v50 = vpack.c.bf16 %v141_v45, %v140_v44  ;;  %v142_v56 = vld [vmem:[%s3475_s1 + $0x2f0] sm:$0xff] }
  0x2a   :  { %1892 = vmatprep.subr.bf16.mxu0 %v1891_v0  ;;  %v124_v51 = vld [vmem:[%s3475_s1 + $0x260] sm:$0xff]  ;;  %v125_v52 = vld [vmem:[%s3475_s1 + $0x268] sm:$0xff]  ;;  %v1939_v54 = vpack.c.bf16 %v173_v47, %v172_v46  ;;  %v143_v57 = vld [vmem:[%s3475_s1 + $0x2f8] sm:$0xff] }
  0x2b   :  { %1922 = vmatpush3.bf16.msra.mxu1 %v1921_v63  ;;  %v156_v53 = vld [vmem:[%s3475_s1 + $0x360] sm:$0xff]  ;;  %v157_v55 = vld [vmem:[%s3475_s1 + $0x368] sm:$0xff]  ;;  %v174_v58 = vld [vmem:[%s3475_s1 + $0x3f0] sm:$0xff]  ;;  %v1909_v60 = vpack.c.bf16 %v125_v52, %v124_v51  ;;  %v1911_v62 = vpack.c.bf16 %v143_v57, %v142_v56 }
  0x2c   :  { %1924 = vmatprep.subr.bf16.mxu1 %v1923_v4  ;;  %v175_v59 = vld [vmem:[%s3475_s1 + $0x3f8] sm:$0xff]  ;;  %v1941_v61 = vpack.c.bf16 %v157_v55, %v156_v53  ;;  %v126_v63 = vld [vmem:[%s3475_s1 + $0x270] sm:$0xff]  ;;  %v192_v4 = vld [vmem:[%s3475_s1 + $0x480] sm:$0xff] }
  0x2d   :  { %1894 = vmatpush3.bf16.msra.mxu0 %v1893_v10  ;;  %v127_v0 = vld [vmem:[%s3475_s1 + $0x278] sm:$0xff]  ;;  %v158_v1 = vld [vmem:[%s3475_s1 + $0x370] sm:$0xff]  ;;  %v1943_v2 = vpack.c.bf16 %v175_v59, %v174_v58  ;;  %v193_v5 = vld [vmem:[%s3475_s1 + $0x488] sm:$0xff] }
  0x2e   :  { %1896 = vmatprep.subr.bf16.mxu0 %v1895_v12  ;;  %v159_v3 = vld [vmem:[%s3475_s1 + $0x378] sm:$0xff]  ;;  %v224_v6 = vld [vmem:[%s3475_s1 + $0x580] sm:$0xff]  ;;  %v225_v7 = vld [vmem:[%s3475_s1 + $0x588] sm:$0xff]  ;;  %v1913_v8 = vpack.c.bf16 %v127_v0, %v126_v63  ;;  %v1947_v10 = vpack.c.bf16 %v193_v5, %v192_v4 }
  0x2f   :  { %1926 = vmatpush3.bf16.msra.mxu1 %v1925_v11  ;;  %v1945_v9 = vpack.c.bf16 %v159_v3, %v158_v1  ;;  %v176_v11 = vld [vmem:[%s3475_s1 + $0x400] sm:$0xff]  ;;  %v177_v12 = vld [vmem:[%s3475_s1 + $0x408] sm:$0xff]  ;;  %v1979_v14 = vpack.c.bf16 %v225_v7, %v224_v6  ;;  %v195_v17 = vld [vmem:[%s3475_s1 + $0x498] sm:$0xff] }
  0x30   :  { %1928 = vmatprep.subr.bf16.mxu1 %v1927_v16  ;;  %v208_v13 = vld [vmem:[%s3475_s1 + $0x500] sm:$0xff]  ;;  %v209_v15 = vld [vmem:[%s3475_s1 + $0x508] sm:$0xff]  ;;  %v194_v16 = vld [vmem:[%s3475_s1 + $0x490] sm:$0xff]  ;;  %v1949_v21 = vpack.c.bf16 %v177_v12, %v176_v11 }
  0x31   :  { %1898 = vmatpush3.bf16.msra.mxu0 %v1897_v23  ;;  %v226_v18 = vld [vmem:[%s3475_s1 + $0x590] sm:$0xff]  ;;  %v227_v19 = vld [vmem:[%s3475_s1 + $0x598] sm:$0xff]  ;;  %v30_v20 = vld [vmem:[%s3476_s0 + $0x20] sm:$0xff]  ;;  %v1981_v23 = vpack.c.bf16 %v209_v15, %v208_v13  ;;  %v1951_v24 = vpack.c.bf16 %v195_v17, %v194_v16 }
  0x32   :  { %1900 = vmatprep.subr.bf16.mxu0 %v1899_v26  ;;  %v32_v22 = vld [vmem:[%s3476_s0 + $0x30] sm:$0xff]  ;;  %v179_v26 = vld [vmem:[%s3475_s1 + $0x418] sm:$0xff]  ;;  %v1983_v28 = vpack.c.bf16 %v227_v19, %v226_v18  ;;  %v197_v31 = vld [vmem:[%s3475_s1 + $0x4a8] sm:$0xff] }
  0x33   :  { %1930 = vmatpush3.bf16.msra.mxu1 %v1929_v25  ;;  %v178_v25 = vld [vmem:[%s3475_s1 + $0x410] sm:$0xff]  ;;  %v211_v29 = vld [vmem:[%s3475_s1 + $0x518] sm:$0xff]  ;;  %v228_v32 = vld [vmem:[%s3475_s1 + $0x5a0] sm:$0xff] }
  0x34   :  { %1932 = vmatprep.subr.bf16.mxu1 %v1931_v30  ;;  %v210_v27 = vld [vmem:[%s3475_s1 + $0x510] sm:$0xff]  ;;  %v196_v30 = vld [vmem:[%s3475_s1 + $0x4a0] sm:$0xff]  ;;  %v229_v33 = vld [vmem:[%s3475_s1 + $0x5a8] sm:$0xff]  ;;  %v1953_v35 = vpack.c.bf16 %v179_v26, %v178_v25 }
  0x35   :  { %1902 = vmatpush3.bf16.msra.mxu0 %v1901_v36  ;;  %v35_v34 = vld [vmem:[%s3476_s0 + $0x48] sm:$0xff]  ;;  %v37_v36 = vld [vmem:[%s3476_s0 + $0x58] sm:$0xff]  ;;  %v180_v39 = vld [vmem:[%s3475_s1 + $0x420] sm:$0xff] }
  0x36   :  { %1904 = vmatprep.subr.bf16.mxu0 %v1903_v38  ;;  %v1955_v38 = vpack.c.bf16 %v197_v31, %v196_v30  ;;  %v181_v40 = vld [vmem:[%s3475_s1 + $0x428] sm:$0xff]  ;;  %v212_v41 = vld [vmem:[%s3475_s1 + $0x520] sm:$0xff]  ;;  %v198_v44 = vld [vmem:[%s3475_s1 + $0x4b0] sm:$0xff] }
  0x37   :  { %1934 = vmatpush3.bf16.msra.mxu1 %v1933_v37  ;;  %v1985_v37 = vpack.c.bf16 %v211_v29, %v210_v27  ;;  %v213_v43 = vld [vmem:[%s3475_s1 + $0x528] sm:$0xff]  ;;  %v199_v45 = vld [vmem:[%s3475_s1 + $0x4b8] sm:$0xff]  ;;  %v230_v46 = vld [vmem:[%s3475_s1 + $0x5b0] sm:$0xff] }
  0x38   :  { %1936 = vmatprep.subr.bf16.mxu1 %v1935_v42  ;;  %v1987_v42 = vpack.c.bf16 %v229_v33, %v228_v32  ;;  %v231_v47 = vld [vmem:[%s3475_s1 + $0x5b8] sm:$0xff]  ;;  %v182_v51 = vld [vmem:[%s3475_s1 + $0x430] sm:$0xff]  ;;  %v200_v56 = vld [vmem:[%s3475_s1 + $0x4c0] sm:$0xff] }
  0x39   :  { %1906 = vmatpush3.bf16.msra.mxu0 %v1905_v48  ;;  %v1957_v48 = vpack.c.bf16 %v181_v40, %v180_v39  ;;  %v183_v52 = vld [vmem:[%s3475_s1 + $0x438] sm:$0xff]  ;;  %v214_v53 = vld [vmem:[%s3475_s1 + $0x530] sm:$0xff]  ;;  %v201_v57 = vld [vmem:[%s3475_s1 + $0x4c8] sm:$0xff] }
  0x3a   :  { %1908 = vmatprep.subr.bf16.mxu0 %v1907_v50  ;;  %v1959_v50 = vpack.c.bf16 %v199_v45, %v198_v44  ;;  %v215_v55 = vld [vmem:[%s3475_s1 + $0x538] sm:$0xff]  ;;  %v232_v58 = vld [vmem:[%s3475_s1 + $0x5c0] sm:$0xff]  ;;  %v233_v59 = vld [vmem:[%s3475_s1 + $0x5c8] sm:$0xff] }
  0x3b   :  { %1938 = vmatpush3.bf16.msra.mxu1 %v1937_v49  ;;  %v1989_v49 = vpack.c.bf16 %v213_v43, %v212_v41  ;;  %v184_v63 = vld [vmem:[%s3475_s1 + $0x440] sm:$0xff]  ;;  %v185_v0 = vld [vmem:[%s3475_s1 + $0x448] sm:$0xff]  ;;  %v202_v4 = vld [vmem:[%s3475_s1 + $0x4d0] sm:$0xff] }
  0x3c   :  { %1940 = vmatprep.subr.bf16.mxu1 %v1939_v54  ;;  %v1991_v54 = vpack.c.bf16 %v231_v47, %v230_v46  ;;  %v216_v1 = vld [vmem:[%s3475_s1 + $0x540] sm:$0xff]  ;;  %v217_v3 = vld [vmem:[%s3475_s1 + $0x548] sm:$0xff]  ;;  %v203_v5 = vld [vmem:[%s3475_s1 + $0x4d8] sm:$0xff] }
  0x3d   :  { %1910 = vmatpush3.bf16.msra.mxu0 %v1909_v60  ;;  %v1961_v60 = vpack.c.bf16 %v183_v52, %v182_v51  ;;  %v234_v6 = vld [vmem:[%s3475_s1 + $0x5d0] sm:$0xff]  ;;  %v235_v7 = vld [vmem:[%s3475_s1 + $0x5d8] sm:$0xff]  ;;  %v204_v16 = vld [vmem:[%s3475_s1 + $0x4e0] sm:$0xff] }
  0x3e   :  { %1912 = vmatprep.subr.bf16.mxu0 %v1911_v62  ;;  %v1963_v62 = vpack.c.bf16 %v201_v57, %v200_v56  ;;  %v186_v11 = vld [vmem:[%s3475_s1 + $0x450] sm:$0xff]  ;;  %v187_v12 = vld [vmem:[%s3475_s1 + $0x458] sm:$0xff]  ;;  %v205_v17 = vld [vmem:[%s3475_s1 + $0x4e8] sm:$0xff] }
  0x3f   :  { %1942 = vmatpush3.bf16.msra.mxu1 %v1941_v61  ;;  %v1993_v61 = vpack.c.bf16 %v215_v55, %v214_v53  ;;  %v218_v13 = vld [vmem:[%s3475_s1 + $0x550] sm:$0xff]  ;;  %v219_v15 = vld [vmem:[%s3475_s1 + $0x558] sm:$0xff]  ;;  %v236_v18 = vld [vmem:[%s3475_s1 + $0x5e0] sm:$0xff] }
  0x40   :  { %1944 = vmatprep.subr.bf16.mxu1 %v1943_v2  ;;  %v1995_v2 = vpack.c.bf16 %v233_v59, %v232_v58  ;;  %v237_v19 = vld [vmem:[%s3475_s1 + $0x5e8] sm:$0xff]  ;;  %v220_v25 = vld [vmem:[%s3475_s1 + $0x560] sm:$0xff]  ;;  %v207_v29 = vld [vmem:[%s3475_s1 + $0x4f8] sm:$0xff] }
  0x41   :  { %1914 = vmatpush3.bf16.msra.mxu0 %v1913_v8  ;;  %v1965_v8 = vpack.c.bf16 %v185_v0, %v184_v63  ;;  %v2003_v26 = vpack.c.bf16 %v237_v19, %v236_v18  ;;  %v221_v27 = vld [vmem:[%s3475_s1 + $0x568] sm:$0xff]  ;;  %v238_v30 = vld [vmem:[%s3475_s1 + $0x5f0] sm:$0xff]  ;;  %v239_v31 = vld [vmem:[%s3475_s1 + $0x5f8] sm:$0xff] }
  0x42   :  { %1948 = vmatprep.subr.bf16.mxu0 %v1947_v10  ;;  %v1967_v10 = vpack.c.bf16 %v203_v5, %v202_v4  ;;  %v2005_v33 = vpack.c.bf16 %v221_v27, %v220_v25  ;;  %v223_v39 = vld [vmem:[%s3475_s1 + $0x578] sm:$0xff]  ;;  %v256_v40 = vld [vmem:[%s3475_s1 + $0x680] sm:$0xff]  ;;  %v257_v41 = vld [vmem:[%s3475_s1 + $0x688] sm:$0xff] }
  0x43   :  { %1946 = vmatpush3.bf16.msra.mxu1 %v1945_v9  ;;  %v1997_v9 = vpack.c.bf16 %v217_v3, %v216_v1  ;;  %v289_v43 = vld [vmem:[%s3475_s1 + $0x788] sm:$0xff]  ;;  %v2011_v46 = vpack.c.bf16 %v257_v41, %v256_v40  ;;  %v240_v47 = vld [vmem:[%s3475_s1 + $0x600] sm:$0xff]  ;;  %v258_v52 = vld [vmem:[%s3475_s1 + $0x690] sm:$0xff] }
  0x44   :  { %1980 = vmatprep.subr.bf16.mxu1 %v1979_v14  ;;  %602 = vmatmul.mubr.f32.vlgmr.msra.gmra.mrb[2].mxu0 %v30_v20  ;;  %v1999_v14 = vpack.c.bf16 %v235_v7, %v234_v6  ;;  %v1969_v20 = vpack.c.bf16 %v187_v12, %v186_v11  ;;  %v273_v51 = vld [vmem:[%s3475_s1 + $0x708] sm:$0xff]  ;;  %v259_v53 = vld [vmem:[%s3475_s1 + $0x698] sm:$0xff]  ;;  %v34_v56 = vld [vmem:[%s3476_s0 + $0x40] sm:$0xff] }
  0x45   :  { %1950 = vmatpush3.bf16.msra.mxu0 %v1949_v21  ;;  %741 = vmatprep.mubr.f32.mxu0 %v35_v34  ;;  %v2001_v21 = vpack.c.bf16 %v219_v15, %v218_v13  ;;  %v291_v55 = vld [vmem:[%s3475_s1 + $0x798] sm:$0xff]  ;;  %v36_v58 = vld [vmem:[%s3476_s0 + $0x50] sm:$0xff]  ;;  %v261_v3 = vld [vmem:[%s3475_s1 + $0x6a8] sm:$0xff] }
  0x46   :  { %672 = vmatmul.mubr.f32.vlgmr.msra.gmra.mrb[2].mxu1 %v32_v22  ;;  %1952 = vmatprep.subr.bf16.mxu0 %v1951_v24  ;;  %v1971_v22 = vpack.c.bf16 %v205_v17, %v204_v16  ;;  %v189_v24 = vld [vmem:[%s3475_s1 + $0x468] sm:$0xff]  ;;  %v274_v63 = vld [vmem:[%s3475_s1 + $0x710] sm:$0xff]  ;;  %v275_v1 = vld [vmem:[%s3475_s1 + $0x718] sm:$0xff] }
  0x47   :  { %1982 = vmatpush3.bf16.msra.mxu1 %v1981_v23  ;;  %811 = vmatprep.mubr.f32.mxu1 %v37_v36  ;;  %v188_v23 = vld [vmem:[%s3475_s1 + $0x460] sm:$0xff]  ;;  %v191_v36 = vld [vmem:[%s3475_s1 + $0x478] sm:$0xff]  ;;  %v293_v5 = vld [vmem:[%s3475_s1 + $0x7a8] sm:$0xff] }
  0x48   :  { %1984 = vmatprep.subr.bf16.mxu1 %v1983_v28  ;;  %v206_v28 = vld [vmem:[%s3475_s1 + $0x4f0] sm:$0xff]  ;;  %v1973_v32 = vpack.c.bf16 %v189_v24, %v188_v23  ;;  %v292_v4 = vld [vmem:[%s3475_s1 + $0x7a0] sm:$0xff]  ;;  %v39_v6 = vld [vmem:[%s3476_s0 + $0x68] sm:$0xff] }
  0x49   :  { %1954 = vmatpush3.bf16.msra.mxu0 %v1953_v35  ;;  %v1975_v34 = vpack.c.bf16 %v207_v29, %v206_v28  ;;  %v190_v35 = vld [vmem:[%s3475_s1 + $0x470] sm:$0xff]  ;;  %v244_v11 = vld [vmem:[%s3475_s1 + $0x620] sm:$0xff]  ;;  %v245_v12 = vld [vmem:[%s3475_s1 + $0x628] sm:$0xff] }
  0x4a   :  { %1956 = vmatprep.subr.bf16.mxu0 %v1955_v38  ;;  %v2007_v38 = vpack.c.bf16 %v239_v31, %v238_v30  ;;  %v1977_v44 = vpack.c.bf16 %v191_v36, %v190_v35  ;;  %v276_v13 = vld [vmem:[%s3475_s1 + $0x720] sm:$0xff]  ;;  %v277_v15 = vld [vmem:[%s3475_s1 + $0x728] sm:$0xff]  ;;  %v262_v16 = vld [vmem:[%s3475_s1 + $0x6b0] sm:$0xff] }
  0x4b   :  { %1986 = vmatpush3.bf16.msra.mxu1 %v1985_v37  ;;  %v222_v37 = vld [vmem:[%s3475_s1 + $0x570] sm:$0xff]  ;;  %v263_v17 = vld [vmem:[%s3475_s1 + $0x6b8] sm:$0xff]  ;;  %v264_v28 = vld [vmem:[%s3475_s1 + $0x6c0] sm:$0xff] }
  0x4c   :  { %1988 = vmatprep.subr.bf16.mxu1 %v1987_v42  ;;  %v288_v42 = vld [vmem:[%s3475_s1 + $0x780] sm:$0xff]  ;;  %v2009_v45 = vpack.c.bf16 %v223_v39, %v222_v37  ;;  %v294_v18 = vld [vmem:[%s3475_s1 + $0x7b0] sm:$0xff]  ;;  %v295_v19 = vld [vmem:[%s3475_s1 + $0x7b8] sm:$0xff] }
  0x4d   :  { %1958 = vmatpush3.bf16.msra.mxu0 %v1957_v48  ;;  %v241_v48 = vld [vmem:[%s3475_s1 + $0x608] sm:$0xff]  ;;  %v246_v23 = vld [vmem:[%s3475_s1 + $0x630] sm:$0xff]  ;;  %v247_v24 = vld [vmem:[%s3475_s1 + $0x638] sm:$0xff] }
  0x4e   :  { %1960 = vmatprep.subr.bf16.mxu0 %v1959_v50  ;;  %v2043_v50 = vpack.c.bf16 %v289_v43, %v288_v42  ;;  %v2013_v57 = vpack.c.bf16 %v241_v48, %v240_v47  ;;  %v278_v25 = vld [vmem:[%s3475_s1 + $0x730] sm:$0xff]  ;;  %v279_v27 = vld [vmem:[%s3475_s1 + $0x738] sm:$0xff]  ;;  %v265_v29 = vld [vmem:[%s3475_s1 + $0x6c8] sm:$0xff] }
  0x4f   :  { %1990 = vmatpush3.bf16.msra.mxu1 %v1989_v49  ;;  %v272_v49 = vld [vmem:[%s3475_s1 + $0x700] sm:$0xff]  ;;  %v297_v31 = vld [vmem:[%s3475_s1 + $0x7c8] sm:$0xff]  ;;  %v266_v40 = vld [vmem:[%s3475_s1 + $0x6d0] sm:$0xff] }
  0x50   :  { %1992 = vmatprep.subr.bf16.mxu1 %v1991_v54  ;;  %v290_v54 = vld [vmem:[%s3475_s1 + $0x790] sm:$0xff]  ;;  %v2045_v59 = vpack.c.bf16 %v273_v51, %v272_v49  ;;  %v296_v30 = vld [vmem:[%s3475_s1 + $0x7c0] sm:$0xff]  ;;  %v249_v36 = vld [vmem:[%s3475_s1 + $0x648] sm:$0xff] }
  0x51   :  { %1962 = vmatpush3.bf16.msra.mxu0 %v1961_v60  ;;  %v2015_v60 = vpack.c.bf16 %v259_v53, %v258_v52  ;;  %v2047_v0 = vpack.c.bf16 %v291_v55, %v290_v54  ;;  %v248_v35 = vld [vmem:[%s3475_s1 + $0x640] sm:$0xff]  ;;  %v281_v39 = vld [vmem:[%s3475_s1 + $0x748] sm:$0xff]  ;;  %v267_v41 = vld [vmem:[%s3475_s1 + $0x6d8] sm:$0xff] }
  0x52   :  { %1964 = vmatprep.subr.bf16.mxu0 %v1963_v62  ;;  %v243_v62 = vld [vmem:[%s3475_s1 + $0x618] sm:$0xff]  ;;  %v280_v37 = vld [vmem:[%s3475_s1 + $0x740] sm:$0xff]  ;;  %v298_v42 = vld [vmem:[%s3475_s1 + $0x7d0] sm:$0xff] }
  0x53   :  { %1994 = vmatpush3.bf16.msra.mxu1 %v1993_v61  ;;  %v242_v61 = vld [vmem:[%s3475_s1 + $0x610] sm:$0xff]  ;;  %v299_v43 = vld [vmem:[%s3475_s1 + $0x7d8] sm:$0xff]  ;;  %v268_v52 = vld [vmem:[%s3475_s1 + $0x6e0] sm:$0xff] }
  0x54   :  { %1996 = vmatprep.subr.bf16.mxu1 %v1995_v2  ;;  %v260_v2 = vld [vmem:[%s3475_s1 + $0x6a0] sm:$0xff]  ;;  %v2017_v7 = vpack.c.bf16 %v243_v62, %v242_v61  ;;  %v250_v47 = vld [vmem:[%s3475_s1 + $0x650] sm:$0xff]  ;;  %v251_v48 = vld [vmem:[%s3475_s1 + $0x658] sm:$0xff] }
  0x55   :  { %1966 = vmatpush3.bf16.msra.mxu0 %v1965_v8  ;;  %v41_v8 = vld [vmem:[%s3476_s0 + $0x78] sm:$0xff]  ;;  %v282_v49 = vld [vmem:[%s3475_s1 + $0x750] sm:$0xff]  ;;  %v269_v53 = vld [vmem:[%s3475_s1 + $0x6e8] sm:$0xff] }
  0x56   :  { %1968 = vmatprep.subr.bf16.mxu0 %v1967_v10  ;;  %v2019_v10 = vpack.c.bf16 %v261_v3, %v260_v2  ;;  %v283_v51 = vld [vmem:[%s3475_s1 + $0x758] sm:$0xff]  ;;  %v300_v54 = vld [vmem:[%s3475_s1 + $0x7e0] sm:$0xff]  ;;  %v301_v55 = vld [vmem:[%s3475_s1 + $0x7e8] sm:$0xff] }
  0x57   :  { %1998 = vmatpush3.bf16.msra.mxu1 %v1997_v9  ;;  %v2049_v9 = vpack.c.bf16 %v275_v1, %v274_v63  ;;  %v284_v61 = vld [vmem:[%s3475_s1 + $0x760] sm:$0xff]  ;;  %v2067_v62 = vpack.c.bf16 %v301_v55, %v300_v54  ;;  %v285_v63 = vld [vmem:[%s3475_s1 + $0x768] sm:$0xff]  ;;  %v271_v1 = vld [vmem:[%s3475_s1 + $0x6f8] sm:$0xff] }
  0x58   :  { %2000 = vmatprep.subr.bf16.mxu1 %v1999_v14  ;;  %v2051_v14 = vpack.c.bf16 %v293_v5, %v292_v4  ;;  %v302_v2 = vld [vmem:[%s3475_s1 + $0x7f0] sm:$0xff]  ;;  %v303_v3 = vld [vmem:[%s3475_s1 + $0x7f8] sm:$0xff]  ;;  %v2069_v5 = vpack.c.bf16 %v285_v63, %v284_v61 }
  0x59   :  { %1970 = vmatpush3.bf16.msra.mxu0 %v1969_v20  ;;  %v2021_v20 = vpack.c.bf16 %v245_v12, %v244_v11  ;;  %v287_v11 = vld [vmem:[%s3475_s1 + $0x778] sm:$0xff]  ;;  %v320_v12 = vld [vmem:[%s3475_s1 + $0x880] sm:$0xff]  ;;  %v358_v54 = vld [vmem:[%s3475_s1 + $0x9b0] sm:$0xff] }
  0x5a   :  { %1972 = vmatprep.subr.bf16.mxu0 %v1971_v22  ;;  %v2023_v22 = vpack.c.bf16 %v263_v17, %v262_v16  ;;  %v359_v55 = vld [vmem:[%s3475_s1 + $0x9b8] sm:$0xff]  ;;  %v342_v61 = vld [vmem:[%s3475_s1 + $0x930] sm:$0xff] }
  0x5b   :  { %2002 = vmatpush3.bf16.msra.mxu1 %v2001_v21  ;;  %v2053_v21 = vpack.c.bf16 %v277_v15, %v276_v13  ;;  %v321_v13 = vld [vmem:[%s3475_s1 + $0x888] sm:$0xff]  ;;  %v343_v63 = vld [vmem:[%s3475_s1 + $0x938] sm:$0xff] }
  0x5c   :  { %2004 = vmatprep.subr.bf16.mxu1 %v2003_v26  ;;  %v2055_v26 = vpack.c.bf16 %v295_v19, %v294_v18  ;;  %v353_v15 = vld [vmem:[%s3475_s1 + $0x988] sm:$0xff]  ;;  %v2075_v18 = vpack.c.bf16 %v321_v13, %v320_v12  ;;  %v304_v19 = vld [vmem:[%s3475_s1 + $0x800] sm:$0xff]  ;;  %v330_v12 = vld [vmem:[%s3475_s1 + $0x8d0] sm:$0xff] }
  0x5d   :  { %1974 = vmatpush3.bf16.msra.mxu0 %v1973_v32  ;;  %v2025_v32 = vpack.c.bf16 %v247_v24, %v246_v23  ;;  %v337_v23 = vld [vmem:[%s3475_s1 + $0x908] sm:$0xff]  ;;  %v322_v24 = vld [vmem:[%s3475_s1 + $0x890] sm:$0xff]  ;;  %v331_v13 = vld [vmem:[%s3475_s1 + $0x8d8] sm:$0xff] }
  0x5e   :  { %1976 = vmatprep.subr.bf16.mxu0 %v1975_v34  ;;  %v2027_v34 = vpack.c.bf16 %v265_v29, %v264_v28  ;;  %v38_v28 = vld [vmem:[%s3476_s0 + $0x60] sm:$0xff] }
  0x5f   :  { %2006 = vmatpush3.bf16.msra.mxu1 %v2005_v33  ;;  %v2057_v33 = vpack.c.bf16 %v279_v27, %v278_v25  ;;  %v323_v25 = vld [vmem:[%s3475_s1 + $0x898] sm:$0xff] }
  0x60   :  { %2008 = vmatprep.subr.bf16.mxu1 %v2007_v38  ;;  %v2059_v38 = vpack.c.bf16 %v297_v31, %v296_v30  ;;  %v355_v27 = vld [vmem:[%s3475_s1 + $0x998] sm:$0xff]  ;;  %v40_v30 = vld [vmem:[%s3476_s0 + $0x70] sm:$0xff] }
  0x61   :  { %1978 = vmatpush3.bf16.msra.mxu0 %v1977_v44  ;;  %v2029_v44 = vpack.c.bf16 %v249_v36, %v248_v35  ;;  %v338_v35 = vld [vmem:[%s3475_s1 + $0x910] sm:$0xff] }
  0x62   :  { %2012 = vmatprep.subr.bf16.mxu0 %v2011_v46  ;;  %v2031_v46 = vpack.c.bf16 %v267_v41, %v266_v40  ;;  %v356_v40 = vld [vmem:[%s3475_s1 + $0x9a0] sm:$0xff]  ;;  %v357_v41 = vld [vmem:[%s3475_s1 + $0x9a8] sm:$0xff] }
  0x63   :  { %2010 = vmatpush3.bf16.msra.mxu1 %v2009_v45  ;;  %v2061_v45 = vpack.c.bf16 %v281_v39, %v280_v37  ;;  %v339_v37 = vld [vmem:[%s3475_s1 + $0x918] sm:$0xff]  ;;  %v325_v39 = vld [vmem:[%s3475_s1 + $0x8a8] sm:$0xff] }
  0x64   :  { %2044 = vmatprep.subr.bf16.mxu1 %v2043_v50  ;;  %742 = vmatmul.mubr.f32.vlgmr.msra.gmra.mrb[4].mxu0 %v34_v56  ;;  %v2063_v50 = vpack.c.bf16 %v299_v43, %v298_v42  ;;  %v2033_v56 = vpack.c.bf16 %v251_v48, %v250_v47  ;;  %v43_v42 = vld [vmem:[%s3476_s0 + $0x88] sm:$0xff]  ;;  %v308_v47 = vld [vmem:[%s3475_s1 + $0x820] sm:$0xff] }
  0x65   :  { %2014 = vmatpush3.bf16.msra.mxu0 %v2013_v57  ;;  %881 = vmatprep.mubr.f32.mxu0 %v39_v6  ;;  %v2065_v57 = vpack.c.bf16 %v283_v51, %v282_v49  ;;  %v309_v48 = vld [vmem:[%s3475_s1 + $0x828] sm:$0xff]  ;;  %v340_v49 = vld [vmem:[%s3475_s1 + $0x920] sm:$0xff] }
  0x66   :  { %812 = vmatmul.mubr.f32.vlgmr.msra.gmra.mrb[4].mxu1 %v36_v58  ;;  %2016 = vmatprep.subr.bf16.mxu0 %v2015_v60  ;;  %v2035_v58 = vpack.c.bf16 %v269_v53, %v268_v52  ;;  %v253_v60 = vld [vmem:[%s3475_s1 + $0x668] sm:$0xff]  ;;  %v326_v52 = vld [vmem:[%s3475_s1 + $0x8b0] sm:$0xff]  ;;  %v327_v53 = vld [vmem:[%s3475_s1 + $0x8b8] sm:$0xff] }
  0x67   :  { %2046 = vmatpush3.bf16.msra.mxu1 %v2045_v59  ;;  %951 = vmatprep.mubr.f32.mxu1 %v41_v8  ;;  %v252_v59 = vld [vmem:[%s3475_s1 + $0x660] sm:$0xff]  ;;  %v255_v8 = vld [vmem:[%s3475_s1 + $0x678] sm:$0xff]  ;;  %v341_v51 = vld [vmem:[%s3475_s1 + $0x928] sm:$0xff] }
  0x68   :  { %2048 = vmatprep.subr.bf16.mxu1 %v2047_v0  ;;  %v270_v0 = vld [vmem:[%s3475_s1 + $0x6f0] sm:$0xff]  ;;  %v2037_v4 = vpack.c.bf16 %v253_v60, %v252_v59  ;;  %v311_v60 = vld [vmem:[%s3475_s1 + $0x838] sm:$0xff] }
  0x69   :  { %2018 = vmatpush3.bf16.msra.mxu0 %v2017_v7  ;;  %v2039_v6 = vpack.c.bf16 %v271_v1, %v270_v0  ;;  %v254_v7 = vld [vmem:[%s3475_s1 + $0x670] sm:$0xff]  ;;  %v328_v0 = vld [vmem:[%s3475_s1 + $0x8c0] sm:$0xff]  ;;  %v329_v1 = vld [vmem:[%s3475_s1 + $0x8c8] sm:$0xff] }
  0x6a   :  { %2020 = vmatprep.subr.bf16.mxu0 %v2019_v10  ;;  %v2071_v10 = vpack.c.bf16 %v303_v3, %v302_v2  ;;  %v2041_v16 = vpack.c.bf16 %v255_v8, %v254_v7  ;;  %v310_v59 = vld [vmem:[%s3475_s1 + $0x830] sm:$0xff]  ;;  %v360_v2 = vld [vmem:[%s3475_s1 + $0x9c0] sm:$0xff]  ;;  %v361_v3 = vld [vmem:[%s3475_s1 + $0x9c8] sm:$0xff] }
  0x6b   :  { %2050 = vmatpush3.bf16.msra.mxu1 %v2049_v9  ;;  %v286_v9 = vld [vmem:[%s3475_s1 + $0x770] sm:$0xff]  ;;  %v312_v7 = vld [vmem:[%s3475_s1 + $0x840] sm:$0xff]  ;;  %v313_v8 = vld [vmem:[%s3475_s1 + $0x848] sm:$0xff] }
  0x6c   :  { %2052 = vmatprep.subr.bf16.mxu1 %v2051_v14  ;;  %v352_v14 = vld [vmem:[%s3475_s1 + $0x980] sm:$0xff]  ;;  %v2073_v17 = vpack.c.bf16 %v287_v11, %v286_v9  ;;  %v345_v11 = vld [vmem:[%s3475_s1 + $0x948] sm:$0xff] }
  0x6d   :  { %2022 = vmatpush3.bf16.msra.mxu0 %v2021_v20  ;;  %v305_v20 = vld [vmem:[%s3475_s1 + $0x808] sm:$0xff]  ;;  %v344_v9 = vld [vmem:[%s3475_s1 + $0x940] sm:$0xff] }
  0x6e   :  { %2024 = vmatprep.subr.bf16.mxu0 %v2023_v22  ;;  %v2107_v22 = vpack.c.bf16 %v353_v15, %v352_v14  ;;  %v2077_v29 = vpack.c.bf16 %v305_v20, %v304_v19  ;;  %v362_v14 = vld [vmem:[%s3475_s1 + $0x9d0] sm:$0xff]  ;;  %v363_v15 = vld [vmem:[%s3475_s1 + $0x9d8] sm:$0xff] }
  0x6f   :  { %2054 = vmatpush3.bf16.msra.mxu1 %v2053_v21  ;;  %v336_v21 = vld [vmem:[%s3475_s1 + $0x900] sm:$0xff]  ;;  %v314_v19 = vld [vmem:[%s3475_s1 + $0x850] sm:$0xff]  ;;  %v315_v20 = vld [vmem:[%s3475_s1 + $0x858] sm:$0xff] }
  0x70   :  { %2056 = vmatprep.subr.bf16.mxu1 %v2055_v26  ;;  %v354_v26 = vld [vmem:[%s3475_s1 + $0x990] sm:$0xff]  ;;  %v2109_v31 = vpack.c.bf16 %v337_v23, %v336_v21  ;;  %v347_v23 = vld [vmem:[%s3475_s1 + $0x958] sm:$0xff] }
  0x71   :  { %2026 = vmatpush3.bf16.msra.mxu0 %v2025_v32  ;;  %v2079_v32 = vpack.c.bf16 %v323_v25, %v322_v24  ;;  %v2111_v36 = vpack.c.bf16 %v355_v27, %v354_v26  ;;  %v346_v21 = vld [vmem:[%s3475_s1 + $0x950] sm:$0xff]  ;;  %v332_v24 = vld [vmem:[%s3475_s1 + $0x8e0] sm:$0xff]  ;;  %v333_v25 = vld [vmem:[%s3475_s1 + $0x8e8] sm:$0xff] }
  0x72   :  { %2028 = vmatprep.subr.bf16.mxu0 %v2027_v34  ;;  %v307_v34 = vld [vmem:[%s3475_s1 + $0x818] sm:$0xff]  ;;  %v364_v26 = vld [vmem:[%s3475_s1 + $0x9e0] sm:$0xff]  ;;  %v365_v27 = vld [vmem:[%s3475_s1 + $0x9e8] sm:$0xff] }
  0x73   :  { %2058 = vmatpush3.bf16.msra.mxu1 %v2057_v33  ;;  %v306_v33 = vld [vmem:[%s3475_s1 + $0x810] sm:$0xff] }
  0x74   :  { %2060 = vmatprep.subr.bf16.mxu1 %v2059_v38  ;;  %v324_v38 = vld [vmem:[%s3475_s1 + $0x8a0] sm:$0xff]  ;;  %v2081_v43 = vpack.c.bf16 %v307_v34, %v306_v33  ;;  %v2131_v34 = vpack.c.bf16 %v365_v27, %v364_v26  ;;  %v1169_v27 = vld [vmem:[%s3478_s3 + $0x8] sm:$0xff] }
  0x75   :  { %2030 = vmatpush3.bf16.msra.mxu0 %v2029_v44  ;;  %v45_v44 = vld [vmem:[%s3476_s0 + $0x98] sm:$0xff]  ;;  %v348_v33 = vld [vmem:[%s3475_s1 + $0x960] sm:$0xff] }
  0x76   :  { %2032 = vmatprep.subr.bf16.mxu0 %v2031_v46  ;;  %v2083_v46 = vpack.c.bf16 %v325_v39, %v324_v38  ;;  %v366_v38 = vld [vmem:[%s3475_s1 + $0x9f0] sm:$0xff]  ;;  %v367_v39 = vld [vmem:[%s3475_s1 + $0x9f8] sm:$0xff]  ;;  %v1168_v26 = vld [vmem:[%s3478_s3] sm:$0xff] }
  0x77   :  { %2062 = vmatpush3.bf16.msra.mxu1 %v2061_v45  ;;  %v2113_v45 = vpack.c.bf16 %v339_v37, %v338_v35  ;;  %v349_v35 = vld [vmem:[%s3475_s1 + $0x968] sm:$0xff]  ;;  %v335_v37 = vld [vmem:[%s3475_s1 + $0x8f8] sm:$0xff] }
  0x78   :  { %2064 = vmatprep.subr.bf16.mxu1 %v2063_v50  ;;  %v2115_v50 = vpack.c.bf16 %v357_v41, %v356_v40  ;;  %v2133_v41 = vpack.c.bf16 %v349_v35, %v348_v33  ;;  %v1172_v33 = vld [vmem:[%s3478_s3 + $0x20] sm:$0xff] }
  0x79   :  { %2034 = vmatpush3.bf16.msra.mxu0 %v2033_v56  ;;  %v2085_v56 = vpack.c.bf16 %v309_v48, %v308_v47  ;;  %v351_v47 = vld [vmem:[%s3475_s1 + $0x978] sm:$0xff] }
  0x7a   :  { %2036 = vmatprep.subr.bf16.mxu0 %v2035_v58  ;;  %v2087_v58 = vpack.c.bf16 %v327_v53, %v326_v52  ;;  %v42_v52 = vld [vmem:[%s3476_s0 + $0x80] sm:$0xff] }
  0x7b   :  { %2066 = vmatpush3.bf16.msra.mxu1 %v2065_v57  ;;  %v2117_v57 = vpack.c.bf16 %v341_v51, %v340_v49  ;;  %v369_v51 = vld [vmem:[%s3475_s1 + $0xa08] sm:$0xff] }
  0x7c   :  { %2068 = vmatprep.subr.bf16.mxu1 %v2067_v62  ;;  %v2119_v62 = vpack.c.bf16 %v359_v55, %v358_v54  ;;  %v2217_v54 = vmov 0.0|0.0   ;;  %v44_v55 = vld [vmem:[%s3476_s0 + $0x90] sm:$0xff] }
  0x7d   :  { %2038 = vmatpush3.bf16.msra.mxu0 %v2037_v4  ;;  %v2089_v4 = vpack.c.bf16 %v311_v60, %v310_v59  ;;  %v372_v60 = vld [vmem:[%s3475_s1 + $0xa20] sm:$0xff] }
  0x7e   :  { %2040 = vmatprep.subr.bf16.mxu0 %v2039_v6  ;;  %v2091_v6 = vpack.c.bf16 %v329_v1, %v328_v0  ;;  %v375_v0 = vld [vmem:[%s3475_s1 + $0xa38] sm:$0xff] }
  0x7f   :  { %2070 = vmatpush3.bf16.msra.mxu1 %v2069_v5  ;;  %v2121_v5 = vpack.c.bf16 %v343_v63, %v342_v61  ;;  %v373_v61 = vld [vmem:[%s3475_s1 + $0xa28] sm:$0xff]  ;;  %v374_v63 = vld [vmem:[%s3475_s1 + $0xa30] sm:$0xff] }
  0x80   :  { %2072 = vmatprep.subr.bf16.mxu1 %v2071_v10  ;;  %v2123_v10 = vpack.c.bf16 %v361_v3, %v360_v2  ;;  %v2149_v1 = vpack.c.bf16 %v375_v0, %v374_v63  ;;  %v376_v2 = vld [vmem:[%s3475_s1 + $0xa40] sm:$0xff]  ;;  %v377_v3 = vld [vmem:[%s3475_s1 + $0xa48] sm:$0xff] }
  0x81   :  { %2042 = vmatpush3.bf16.msra.mxu0 %v2041_v16  ;;  %v2093_v16 = vpack.c.bf16 %v313_v8, %v312_v7  ;;  %v380_v8 = vld [vmem:[%s3475_s1 + $0xa60] sm:$0xff] }
  0x82   :  { %2076 = vmatprep.subr.bf16.mxu0 %v2075_v18  ;;  %v2095_v18 = vpack.c.bf16 %v331_v13, %v330_v12  ;;  %v383_v12 = vld [vmem:[%s3475_s1 + $0xa78] sm:$0xff] }
  0x83   :  { %2074 = vmatpush3.bf16.msra.mxu1 %v2073_v17  ;;  %v2125_v17 = vpack.c.bf16 %v345_v11, %v344_v9  ;;  %v381_v9 = vld [vmem:[%s3475_s1 + $0xa68] sm:$0xff]  ;;  %v382_v11 = vld [vmem:[%s3475_s1 + $0xa70] sm:$0xff] }
  0x84   :  { %2108 = vmatprep.subr.bf16.mxu1 %v2107_v22  ;;  %882 = vmatmul.mubr.f32.vlgmr.msra.gmra.mrb[6].mxu0 %v38_v28  ;;  %v2127_v22 = vpack.c.bf16 %v363_v15, %v362_v14  ;;  %v2097_v28 = vpack.c.bf16 %v315_v20, %v314_v19  ;;  %v2161_v13 = vpack.c.bf16 %v383_v12, %v382_v11  ;;  %v384_v14 = vld [vmem:[%s3475_s1 + $0xa80] sm:$0xff]  ;;  %v385_v15 = vld [vmem:[%s3475_s1 + $0xa88] sm:$0xff] }
  0x85   :  { %2078 = vmatpush3.bf16.msra.mxu0 %v2077_v29  ;;  %1021 = vmatprep.mubr.f32.mxu0 %v43_v42  ;;  %v2129_v29 = vpack.c.bf16 %v347_v23, %v346_v21  ;;  %v1361_v19 = vld [vmem:[%s3477_s2] ss:$0 sm:$0xff] }
  0x86   :  { %952 = vmatmul.mubr.f32.vlgmr.msra.gmra.mrb[6].mxu1 %v40_v30  ;;  %2080 = vmatprep.subr.bf16.mxu0 %v2079_v32  ;;  %v2099_v30 = vpack.c.bf16 %v333_v25, %v332_v24  ;;  %v317_v32 = vld [vmem:[%s3475_s1 + $0x868] sm:$0xff] }
  0x87   :  { %2110 = vmatpush3.bf16.msra.mxu1 %v2109_v31  ;;  %1091 = vmatprep.mubr.f32.mxu1 %v45_v44  ;;  %v316_v31 = vld [vmem:[%s3475_s1 + $0x860] sm:$0xff]  ;;  %v319_v44 = vld [vmem:[%s3475_s1 + $0x878] sm:$0xff] }
  0x88   :  { %2112 = vmatprep.subr.bf16.mxu1 %v2111_v36  ;;  %v334_v36 = vld [vmem:[%s3475_s1 + $0x8f0] sm:$0xff]  ;;  %v2101_v40 = vpack.c.bf16 %v317_v32, %v316_v31  ;;  %v1171_v31 = vld [vmem:[%s3478_s3 + $0x18] sm:$0xff] }
  0x89   :  { %2082 = vmatpush3.bf16.msra.mxu0 %v2081_v43  ;;  %v2103_v42 = vpack.c.bf16 %v335_v37, %v334_v36  ;;  %v318_v43 = vld [vmem:[%s3475_s1 + $0x870] sm:$0xff]  ;;  %v1175_v37 = vld [vmem:[%s3478_s3 + $0x38] sm:$0xff] }
  0x8a   :  { %2084 = vmatprep.subr.bf16.mxu0 %v2083_v46  ;;  %v350_v46 = vld [vmem:[%s3475_s1 + $0x970] sm:$0xff]  ;;  %v2105_v48 = vpack.c.bf16 %v319_v44, %v318_v43  ;;  %v1179_v43 = vld [vmem:[%s3478_s3 + $0x58] sm:$0xff] }
  0x8b   :  { %2114 = vmatpush3.bf16.msra.mxu1 %v2113_v45  ;;  %v2135_v45 = vpack.c.bf16 %v367_v39, %v366_v38  ;;  %v2137_v49 = vpack.c.bf16 %v351_v47, %v350_v46  ;;  %v1174_v36 = vld [vmem:[%s3478_s3 + $0x30] sm:$0xff]  ;;  %v1176_v39 = vld [vmem:[%s3478_s3 + $0x40] sm:$0xff]  ;;  %v1181_v46 = vld [vmem:[%s3478_s3 + $0x68] sm:$0xff] }
  0x8c   :  { %2116 = vmatprep.subr.bf16.mxu1 %v2115_v50  ;;  %v368_v50 = vld [vmem:[%s3475_s1 + $0xa00] sm:$0xff]  ;;  %v2176_v38 = vpack.c.bf16 %v1175_v37, %v1174_v36 }
  0x8d   :  { %2086 = vmatpush3.bf16.msra.mxu0 %v2085_v56  ;;  %v2140_v53 = vpack.c.bf16 %v369_v51, %v368_v50  ;;  %v370_v56 = vld [vmem:[%s3475_s1 + $0xa10] sm:$0xff]  ;;  %v1270_v37 = vld [vmem:[%s3479_s5 + $0x40] sm:$0xff] }
  0x8e   :  { %2088 = vmatprep.subr.bf16.mxu0 %v2087_v58  ;;  %v47_v58 = vld [vmem:[%s3476_s0 + $0xa8] sm:$0xff] }
  0x8f   :  { %2118 = vmatpush3.bf16.msra.mxu1 %v2117_v57  ;;  %v371_v57 = vld [vmem:[%s3475_s1 + $0xa18] sm:$0xff] }
  0x90   :  { %2120 = vmatprep.subr.bf16.mxu1 %v2119_v62  ;;  %v2143_v59 = vpack.c.bf16 %v371_v57, %v370_v56  ;;  %v2146_v62 = vpack.c.bf16 %v373_v61, %v372_v60  ;;  %v1183_v56 = vld [vmem:[%s3478_s3 + $0x78] sm:$0xff]  ;;  %v2219_v60 = vmov 0.0  }
  0x91   :  { %2090 = vmatpush3.bf16.msra.mxu0 %v2089_v4  ;;  %v2152_v4 = vpack.c.bf16 %v377_v3, %v376_v2 }
  0x92   :  { %2092 = vmatprep.subr.bf16.mxu0 %v2091_v6  ;;  %v379_v6 = vld [vmem:[%s3475_s1 + $0xa58] sm:$0xff] }
  0x93   :  { %2122 = vmatpush3.bf16.msra.mxu1 %v2121_v5  ;;  %v378_v5 = vld [vmem:[%s3475_s1 + $0xa50] sm:$0xff] }
  0x94   :  { %2124 = vmatprep.subr.bf16.mxu1 %v2123_v10  ;;  %v2155_v7 = vpack.c.bf16 %v379_v6, %v378_v5  ;;  %v2158_v10 = vpack.c.bf16 %v381_v9, %v380_v8 }
  0x95   :  { %2094 = vmatpush3.bf16.msra.mxu0 %v2093_v16  ;;  %v2164_v16 = vpack.c.bf16 %v385_v15, %v384_v14 }
  0x96   :  { %2096 = vmatprep.subr.bf16.mxu0 %v2095_v18 }
  0x97   :  { %2126 = vmatpush3.bf16.msra.mxu1 %v2125_v17  ;;  %v46_v17 = vld [vmem:[%s3476_s0 + $0xa0] sm:$0xff] }
  0x98   :  { %2128 = vmatprep.subr.bf16.mxu1 %v2127_v22 }
  0x99   :  { %2098 = vmatpush3.bf16.msra.mxu0 %v2097_v28  ;;  %v1170_v28 = vld [vmem:[%s3478_s3 + $0x10] sm:$0xff] }
  0x9a   :  { %2100 = vmatprep.subr.bf16.mxu0 %v2099_v30  ;;  %v2167_v30 = vpack.c.bf16 %v1169_v27, %v1168_v26  ;;  %v2170_v32 = vpack.c.bf16 %v1171_v31, %v1170_v28  ;;  %v1264_v28 = vld [vmem:[%s3479_s5 + $0x10] sm:$0xff]  ;;  %v1266_v31 = vld [vmem:[%s3479_s5 + $0x20] sm:$0xff] }
  0x9b   :  { %2130 = vmatpush3.bf16.msra.mxu1 %v2129_v29 }
  0x9c   :  { %2132 = vmatprep.subr.bf16.mxu1 %v2131_v34  ;;  %v1173_v34 = vld [vmem:[%s3478_s3 + $0x28] sm:$0xff] }
  0x9d   :  { %2102 = vmatpush3.bf16.msra.mxu0 %v2101_v40  ;;  %v2173_v35 = vpack.c.bf16 %v1173_v34, %v1172_v33  ;;  %v1177_v40 = vld [vmem:[%s3478_s3 + $0x48] sm:$0xff]  ;;  %v1268_v34 = vld [vmem:[%s3479_s5 + $0x30] sm:$0xff] }
  0x9e   :  { %2104 = vmatprep.subr.bf16.mxu0 %v2103_v42  ;;  %v1178_v42 = vld [vmem:[%s3478_s3 + $0x50] sm:$0xff] }
  0x9f   :  { %2134 = vmatpush3.bf16.msra.mxu1 %v2133_v41  ;;  %v2179_v41 = vpack.c.bf16 %v1177_v40, %v1176_v39  ;;  %v2182_v44 = vpack.c.bf16 %v1179_v43, %v1178_v42  ;;  %v1272_v40 = vld [vmem:[%s3479_s5 + $0x50] sm:$0xff]  ;;  %v1274_v43 = vld [vmem:[%s3479_s5 + $0x60] sm:$0xff] }
  0xa0   :  { %2136 = vmatprep.subr.bf16.mxu1 %v2135_v45  ;;  %v1180_v45 = vld [vmem:[%s3478_s3 + $0x60] sm:$0xff] }
  0xa1   :  { %2106 = vmatpush3.bf16.msra.mxu0 %v2105_v48  ;;  %v2185_v47 = vpack.c.bf16 %v1181_v46, %v1180_v45  ;;  %v1276_v46 = vld [vmem:[%s3479_s5 + $0x70] sm:$0xff] }
  0xa2   :  { %2139 = vmatprep.subr.bf16.mxu0 %v2217_v54 }
  0xa3   :  { %2138 = vmatpush3.bf16.msra.mxu1 %v2137_v49 }
  0xa4   :  { %2166 = vmatprep.subr.bf16.mxu1 %v2217_v54  ;;  %1022 = vmatmul.mubr.f32.vlgmr.msra.gmra.mrb[8].mxu0 %v42_v52 }
  0xa5   :  { %2141 = vmatpush1.bf16.msra.mxu0 %v2140_v53  ;;  %1362 = vmatprep.mubr.msk.f32.mxu0 %vm393_vm0, %v47_v58 }
  0xa6   :  { %1092 = vmatmul.mubr.f32.vlgmr.msra.gmra.mrb[8].mxu1 %v44_v55  ;;  %2142 = vmatprep.subr.bf16.mxu0 %v2217_v54  ;;  %v1182_v55 = vld [vmem:[%s3478_s3 + $0x70] sm:$0xff] }
  0xa7   :  { %2168 = vmatpush3.bf16.msra.mxu1 %v2167_v30  ;;  %v2188_v58 = vpack.c.bf16 %v1183_v56, %v1182_v55  ;;  %1781 = vmatprep.mubr.msk.f32.mxu1 %vm2218_vm1, %v2219_v60 }
  0xa8   :  { %2169 = vmatprep.subr.bf16.mxu1 %v2217_v54 }
  0xa9   :  { %2144 = vmatpush1.bf16.msra.mxu0 %v2143_v59 }
  0xaa   :  { %2145 = vmatprep.subr.bf16.mxu0 %v2217_v54 }
  0xab   :  { %2171 = vmatpush3.bf16.msra.mxu1 %v2170_v32  ;;  %v1267_v32 = vld [vmem:[%s3479_s5 + $0x28] sm:$0xff] }
  0xac   :  { %2172 = vmatprep.subr.bf16.mxu1 %v2217_v54  ;;  %v2197_v33 = vpack.c.bf16 %v1267_v32, %v1266_v31 }
  0xad   :  { %2147 = vmatpush1.bf16.msra.mxu0 %v2146_v62 }
  0xae   :  { %2148 = vmatprep.subr.bf16.mxu0 %v2217_v54 }
  0xaf   :  { %2174 = vmatpush3.bf16.msra.mxu1 %v2173_v35  ;;  %v1269_v35 = vld [vmem:[%s3479_s5 + $0x38] sm:$0xff] }
  0xb0   :  { %2175 = vmatprep.subr.bf16.mxu1 %v2217_v54  ;;  %v2200_v36 = vpack.c.bf16 %v1269_v35, %v1268_v34 }
  0xb1   :  { %2150 = vmatpush1.bf16.msra.mxu0 %v2149_v1 }
  0xb2   :  { %2151 = vmatprep.subr.bf16.mxu0 %v2217_v54 }
  0xb3   :  { %2177 = vmatpush3.bf16.msra.mxu1 %v2176_v38  ;;  %v1271_v38 = vld [vmem:[%s3479_s5 + $0x48] sm:$0xff] }
  0xb4   :  { %2178 = vmatprep.subr.bf16.mxu1 %v2217_v54  ;;  %v2203_v39 = vpack.c.bf16 %v1271_v38, %v1270_v37 }
  0xb5   :  { %2153 = vmatpush1.bf16.msra.mxu0 %v2152_v4 }
  0xb6   :  { %2154 = vmatprep.subr.bf16.mxu0 %v2217_v54 }
  0xb7   :  { %2180 = vmatpush3.bf16.msra.mxu1 %v2179_v41  ;;  %v1273_v41 = vld [vmem:[%s3479_s5 + $0x58] sm:$0xff] }
  0xb8   :  { %2181 = vmatprep.subr.bf16.mxu1 %v2217_v54  ;;  %v2206_v42 = vpack.c.bf16 %v1273_v41, %v1272_v40 }
  0xb9   :  { %2156 = vmatpush1.bf16.msra.mxu0 %v2155_v7 }
  0xba   :  { %2157 = vmatprep.subr.bf16.mxu0 %v2217_v54 }
  0xbb   :  { %2183 = vmatpush3.bf16.msra.mxu1 %v2182_v44  ;;  %v1275_v44 = vld [vmem:[%s3479_s5 + $0x68] sm:$0xff] }
  0xbc   :  { %2184 = vmatprep.subr.bf16.mxu1 %v2217_v54  ;;  %v2209_v45 = vpack.c.bf16 %v1275_v44, %v1274_v43 }
  0xbd   :  { %2159 = vmatpush1.bf16.msra.mxu0 %v2158_v10 }
  0xbe   :  { %2160 = vmatprep.subr.bf16.mxu0 %v2217_v54 }
  0xbf   :  { %2186 = vmatpush3.bf16.msra.mxu1 %v2185_v47  ;;  %v1277_v47 = vld [vmem:[%s3479_s5 + $0x78] sm:$0xff] }
  0xc0   :  { %2187 = vmatprep.subr.bf16.mxu1 %v2217_v54 }
  0xc1   :  { %2162 = vmatpush1.bf16.msra.mxu0 %v2161_v13 }
  0xc2   :  { %2163 = vmatprep.subr.bf16.mxu0 %v2217_v54 }
  0xc3   :  { %2189 = vmatpush3.bf16.msra.mxu1 %v2188_v58 }
  0xc4   :  { %2190 = vmatprep.subr.bf16.mxu1 %v2217_v54 }
  0xc5   :  { %2165 = vmatpush1.bf16.msra.mxu0 %v2164_v16 }
  0xc8   :  { %1162 = vmatmul.mubr.f32.vlgmr.msra.gmra.mrb[10].mxu0 %v46_v17 }
  0xf7   :  { %v1397_v18 = vpop.f32.mrb[0].mxu0 }
  0xf8   :  { %v1398_v20 = vpop.f32.mrb[1].mxu0 }
  0xf9   :  { %v1432_v21 = vpop.f32.mrb[0].mxu1  ;;  %v1399_v22 = vadd.f32 %v1398_v20, %v1397_v18 }
  0xfa   :  { %v1433_v23 = vpop.f32.mrb[1].mxu1 }
  0xfb   :  { %v1434_v24 = vadd.f32 %v1433_v23, %v1432_v21  ;;  %v464_v25 = vadd.f32 %v1399_v22, %v1361_v19  ;;  %v1262_v21 = vld [vmem:[%s3479_s5] sm:$0xff]  ;;  %v1263_v22 = vld [vmem:[%s3479_s5 + $0x8] sm:$0xff] }
  0xfc   :  { %v2191_v26 = vpack.c.bf16 %v1263_v22, %v1262_v21 }
  0xfd   :  { %v534_v29 = vadd.f32 %v1434_v24, %v464_v25 }
 0x117   :  { %v1467_v48 = vpop.f32.mrb[2].mxu0 }
 0x118   :  { %v1468_v49 = vpop.f32.mrb[3].mxu0 }
 0x119   :  { %v1502_v50 = vpop.f32.mrb[2].mxu1  ;;  %v1469_v51 = vadd.f32 %v1468_v49, %v1467_v48  ;;  %v2212_v48 = vpack.c.bf16 %v1277_v47, %v1276_v46  ;;  %v1363_v49 = vld [vmem:[%s3480_s4] ss:$0 sm:$0xff] }
 0x11a   :  { %v1503_v52 = vpop.f32.mrb[3].mxu1 }
 0x11b   :  { %v1504_v53 = vadd.f32 %v1503_v52, %v1502_v50  ;;  %v604_v57 = vadd.f32 %v1469_v51, %v534_v29  ;;  %v1265_v29 = vld [vmem:[%s3479_s5 + $0x18] sm:$0xff] }
 0x11c   :  { %v2194_v30 = vpack.c.bf16 %v1265_v29, %v1264_v28 }
 0x11d   :  { %v674_v59 = vadd.f32 %v1504_v53, %v604_v57 }
 0x137   :  { %v1537_v61 = vpop.f32.mrb[4].mxu0 }
 0x138   :  { %v1538_v62 = vpop.f32.mrb[5].mxu0 }
 0x139   :  { %v1572_v63 = vpop.f32.mrb[4].mxu1  ;;  %v1539_v0 = vadd.f32 %v1538_v62, %v1537_v61 }
 0x13a   :  { %v1573_v1 = vpop.f32.mrb[5].mxu1 }
 0x13b   :  { %v1574_v2 = vadd.f32 %v1573_v1, %v1572_v63  ;;  %v744_v3 = vadd.f32 %v1539_v0, %v674_v59 }
 0x13d   :  { %v814_v4 = vadd.f32 %v1574_v2, %v744_v3 }
 0x157   :  { %v1607_v5 = vpop.f32.mrb[6].mxu0 }
 0x158   :  { %v1608_v6 = vpop.f32.mrb[7].mxu0 }
 0x159   :  { %v1642_v7 = vpop.f32.mrb[6].mxu1  ;;  %v1609_v8 = vadd.f32 %v1608_v6, %v1607_v5 }
 0x15a   :  { %v1643_v9 = vpop.f32.mrb[7].mxu1 }
 0x15b   :  { %v1644_v10 = vadd.f32 %v1643_v9, %v1642_v7  ;;  %v884_v11 = vadd.f32 %v1609_v8, %v814_v4 }
 0x15d   :  { %v954_v12 = vadd.f32 %v1644_v10, %v884_v11 }
 0x177   :  { %v1677_v13 = vpop.f32.mrb[8].mxu0 }
 0x178   :  { %v1678_v14 = vpop.f32.mrb[9].mxu0 }
 0x179   :  { %v1712_v15 = vpop.f32.mrb[8].mxu1  ;;  %v1679_v16 = vadd.f32 %v1678_v14, %v1677_v13 }
 0x17a   :  { %v1713_v17 = vpop.f32.mrb[9].mxu1 }
 0x17b   :  { %v1714_v18 = vadd.f32 %v1713_v17, %v1712_v15  ;;  %v1024_v19 = vadd.f32 %v1679_v16, %v954_v12 }
 0x17d   :  { %v1094_v20 = vadd.f32 %v1714_v18, %v1024_v19 }
 0x19b   :  { %v1163_v23 = vpop.f32.mrb[10].mxu0 }
 0x19c   :  { %v1164_v24 = vadd.f32 %v1163_v23, %v1094_v20  ;;  %v1165_v25 = vpop.f32.mrb[11].mxu0 }
 0x19e   :  { %v1167_v27 = vmax.f32 %v1164_v24, 0.0 }
 0x1a0   :  { %1782 = vmatmul.mubr.f32.vlgmr.msra.gmra.mrb[10].mxu1 %v1167_v27 }
 0x1a1   :  { %2192 = vmatpush3.bf16.msra.mxu1 %v2191_v26  ;;  %1816 = vmatprep.mubr.msk.f32.mxu1 %vm2218_vm1, %v2219_v60 }
 0x1a2   :  { %2193 = vmatprep.subr.bf16.mxu1 %v2217_v54 }
 0x1a5   :  { %2195 = vmatpush3.bf16.msra.mxu1 %v2194_v30 }
 0x1a6   :  { %2196 = vmatprep.subr.bf16.mxu1 %v2217_v54 }
 0x1a9   :  { %2198 = vmatpush3.bf16.msra.mxu1 %v2197_v33 }
 0x1aa   :  { %2199 = vmatprep.subr.bf16.mxu1 %v2217_v54 }
 0x1ad   :  { %2201 = vmatpush3.bf16.msra.mxu1 %v2200_v36 }
 0x1ae   :  { %2202 = vmatprep.subr.bf16.mxu1 %v2217_v54 }
 0x1b1   :  { %2204 = vmatpush3.bf16.msra.mxu1 %v2203_v39 }
 0x1b2   :  { %2205 = vmatprep.subr.bf16.mxu1 %v2217_v54 }
 0x1b5   :  { %2207 = vmatpush3.bf16.msra.mxu1 %v2206_v42 }
 0x1b6   :  { %2208 = vmatprep.subr.bf16.mxu1 %v2217_v54 }
 0x1b9   :  { %2210 = vmatpush3.bf16.msra.mxu1 %v2209_v45 }
 0x1ba   :  { %2211 = vmatprep.subr.bf16.mxu1 %v2217_v54  ;;  %v1364_v54 = vld [vmem:[%s3481_s6] ss:$0 sm:$0xff] }
 0x1bd   :  { %2213 = vmatpush3.bf16.msra.mxu1 %v2212_v48 }
 0x273   :  { %v1257_v50 = vpop.f32.mrb[10].mxu1 }
 0x274   :  { %v1258_v51 = vadd.f32 %v1363_v49, %v1257_v50  ;;  %v1783_v52 = vpop.f32.mrb[11].mxu1 }
 0x276   :  { %v1261_v53 = vmax.f32 %v1258_v51, 0.0 }
 0x278   :  { %1817 = vmatmul.mubr.f32.vlgmr.msra.gmra.mrb[12].mxu1 %v1261_v53 }
 0x34b   :  { %v1351_v55 = vpop.f32.mrb[12].mxu1 }
 0x34c   :  { %v1352_v56 = vadd.f32 %v1364_v54, %v1351_v55  ;;  %v1818_v57 = vpop.f32.mrb[13].mxu1 }
 0x34e   :  { %v1355_v58 = vmax.f32 %v1352_v56, 0.0 }
 0x350   :  { %1356 = vst [vmem:[%s3482_s7] sm:$0xff] %v1355_v58 }

// kernel: lenet5_forward.2
= control target key start
LH: loop header
LB: loop body
LE: loop exit
PB: predicated region body
PF: predicated region fallthrough
CT: control target
= control target key end

     0   :  { %s8483_s18 = smov 0   ;;  %s12405_s0 = inlined_call_operand.vmem [shape: f32[2,4,16,64], index: 0, kind: input, shape index: {}]   ;;  %s12406_s1 = inlined_call_operand.vmem [shape: f32[5,2,64,180], index: 1, kind: input, shape index: {}]   ;;  %s12407_s2 = inlined_call_operand.vmem [shape: f32[1,180], index: 2, kind: input, shape index: {}]   ;;  %s12408_s3 = inlined_call_operand.vmem [shape: f32[5,2,180,208], index: 3, kind: input, shape index: {}]   ;;  %s12409_s4 = inlined_call_operand.vmem [shape: f32[1,208], index: 4, kind: input, shape index: {}]   ;;  %s12410_s5 = inlined_call_operand.vmem [shape: f32[2,13,208], index: 5, kind: output, shape index: {}]  }
   0x1 LB: > { %s5968_s19 = sadd.s32 4294967295, %s8450_s18   ;;  %p5972_p0 = scmp.ge.s32.totalorder %s8450_s18, 1  ;;  %s8450_s18 = sphi %s8483_s18, %s15_s18  }
   0x2   : > { %p187_p1 = scmp.lt.s32.totalorder %s8450_s18, 3 }
   0x4   : > { %p188_p2 = pnand %p5972_p0, %p187_p1 }
   0x6   : > { %191 = sbr.rel (%p188_p2) target bundleno = 1213 (0x4bd), region = 40 }
   0xd   : > { %v5980_v0 = vld [vmem:[%s12406_s1 + $0x108] sm:$0xff]  ;;  %v5982_v1 = vld [vmem:[%s12406_s1 + $0x118] sm:$0xff]  ;;  %v5979_v5 = vld [vmem:[%s12406_s1 + $0x100] sm:$0xff]  ;;  %v12411_v7 = vmov 0.0   ;;  %p8528_p3 = scmp.lt.s32.totalorder %s5968_s19, 1  ;;  %vm263_vm0 = vcmask 523264  }
   0xe   : > { %v6074_v2 = vld [vmem:[%s12406_s1 + $0x188] sm:$0xff]  ;;  %v8500_v3 = vpack.c.bf16 %v5982_v1, %v5980_v0  ;;  %v6076_v4 = vld [vmem:[%s12406_s1 + $0x198] sm:$0xff]  ;;  %v5981_v6 = vld [vmem:[%s12406_s1 + $0x110] sm:$0xff]  ;;  %334 = vmatprep.mubr.f32.mxu0 %v12411_v7  ;;  %848 = vmatprep.mubr.f32.mxu1 %v12411_v7  ;;  %vm3790_vm1 = vcmask 1043456   ;;  %vm3783_vm2 = vcmask 424960   ;;  %vm4012_vm3 = vcmask 1046528  }
   0xf   : > { %v8513_v8 = vpack.c.bf16 %v6076_v4, %v6074_v2  ;;  %v8515_v9 = vpack.c.bf16 %v5981_v6, %v5979_v5  ;;  %v6073_v10 = vld [vmem:[%s12406_s1 + $0x180] sm:$0xff]  ;;  %v6075_v11 = vld [vmem:[%s12406_s1 + $0x190] sm:$0xff]  ;;  %v5984_v12 = vld [vmem:[%s12406_s1 + $0x128] sm:$0xff]  ;;  %s13180_s19 = smov (!%p8528_p3, %s5968_s19), 1  ;;  %vm4307_vm4 = vcmask 1045504   ;;  %vm5908_vm5 = vcmask 654336  }
  0x10   : > { %6712 = vmatprep.subr.bf16.mxu0 %v8500_v3  ;;  %v8533_v13 = vpack.c.bf16 %v6075_v11, %v6073_v10  ;;  %v5986_v14 = vld [vmem:[%s12406_s1 + $0x138] sm:$0xff]  ;;  %v6078_v15 = vld [vmem:[%s12406_s1 + $0x1a8] sm:$0xff]  ;;  %v5983_v19 = vld [vmem:[%s12406_s1 + $0x120] sm:$0xff]  ;;  %s6709_s17 = sshll.u32 %s13180_s19, 6  ;;  %s6710_s15 = sshll.u32 %s13180_s19, 5  ;;  %vm5911_vm6 = vcmask 651264  }
  0x11   : > { %v6080_v16 = vld [vmem:[%s12406_s1 + $0x1b8] sm:$0xff]  ;;  %6792 = vmatprep.subr.bf16.mxu1 %v8513_v8  ;;  %6714 = vmatpush1.bf16.msra.mxu0 %v8515_v9  ;;  %v8546_v17 = vpack.c.bf16 %v5986_v14, %v5984_v12  ;;  %v5985_v20 = vld [vmem:[%s12406_s1 + $0x130] sm:$0xff]  ;;  %v6077_v21 = vld [vmem:[%s12406_s1 + $0x1a0] sm:$0xff]  ;;  %s8664_s27 = scalar_lea.vmem %s12405_s0, %s6709_s17  ;;  %s224_s17 = scalar_lea.vmem %s12410_s5, %s6710_s15 }
  0x12   : > { %v8548_v18 = vpack.c.bf16 %v6080_v16, %v6078_v15  ;;  %6794 = vmatpush1.bf16.msra.mxu1 %v8533_v13  ;;  %v8560_v22 = vpack.c.bf16 %v5985_v20, %v5983_v19  ;;  %v6079_v23 = vld [vmem:[%s12406_s1 + $0x1b0] sm:$0xff]  ;;  %v5988_v24 = vld [vmem:[%s12406_s1 + $0x148] sm:$0xff]  ;;  %v5990_v25 = vld [vmem:[%s12406_s1 + $0x158] sm:$0xff] }
  0x13   : > { %6716 = vmatprep.subr.bf16.mxu0 %v8546_v17  ;;  %v8573_v26 = vpack.c.bf16 %v6079_v23, %v6077_v21  ;;  %v8575_v27 = vpack.c.bf16 %v5990_v25, %v5988_v24  ;;  %v6082_v28 = vld [vmem:[%s12406_s1 + $0x1c8] sm:$0xff]  ;;  %v6084_v29 = vld [vmem:[%s12406_s1 + $0x1d8] sm:$0xff]  ;;  %v5987_v30 = vld [vmem:[%s12406_s1 + $0x140] sm:$0xff] }
  0x14   : > { %6796 = vmatprep.subr.bf16.mxu1 %v8548_v18  ;;  %v8592_v31 = vpack.c.bf16 %v6084_v29, %v6082_v28  ;;  %v5989_v32 = vld [vmem:[%s12406_s1 + $0x150] sm:$0xff]  ;;  %v6081_v33 = vld [vmem:[%s12406_s1 + $0x1c0] sm:$0xff]  ;;  %v5992_v36 = vld [vmem:[%s12406_s1 + $0x168] sm:$0xff] }
  0x15   : > { %v6083_v34 = vld [vmem:[%s12406_s1 + $0x1d0] sm:$0xff]  ;;  %6718 = vmatpush1.bf16.msra.mxu0 %v8560_v22  ;;  %v8604_v35 = vpack.c.bf16 %v5989_v32, %v5987_v30  ;;  %v5994_v37 = vld [vmem:[%s12406_s1 + $0x178] sm:$0xff]  ;;  %v6086_v38 = vld [vmem:[%s12406_s1 + $0x1e8] sm:$0xff] }
  0x16   : > { %6798 = vmatpush1.bf16.msra.mxu1 %v8573_v26  ;;  %6720 = vmatprep.subr.bf16.mxu0 %v8575_v27  ;;  %v8617_v39 = vpack.c.bf16 %v6083_v34, %v6081_v33  ;;  %v8619_v40 = vpack.c.bf16 %v5994_v37, %v5992_v36  ;;  %v6088_v41 = vld [vmem:[%s12406_s1 + $0x1f8] sm:$0xff]  ;;  %v5991_v42 = vld [vmem:[%s12406_s1 + $0x160] sm:$0xff]  ;;  %v5993_v43 = vld [vmem:[%s12406_s1 + $0x170] sm:$0xff] }
  0x17   : > { %6800 = vmatprep.subr.bf16.mxu1 %v8592_v31  ;;  %v8631_v44 = vpack.c.bf16 %v6088_v41, %v6086_v38  ;;  %v6085_v45 = vld [vmem:[%s12406_s1 + $0x1e0] sm:$0xff]  ;;  %v6087_v46 = vld [vmem:[%s12406_s1 + $0x1f0] sm:$0xff]  ;;  %v228_v47 = vld [vmem:[%s12406_s1 + $0x8] sm:$0xff]  ;;  %v8653_v51 = vpack.c.bf16 %v5993_v43, %v5991_v42 }
  0x18   : > { %v230_v48 = vld [vmem:[%s12406_s1 + $0x18] sm:$0xff]  ;;  %v6058_v49 = vld [vmem:[%s12406_s1 + $0x88] sm:$0xff]  ;;  %v8657_v52 = vpack.c.bf16 %v6087_v46, %v6085_v45  ;;  %v227_v54 = vld [vmem:[%s12406_s1] sm:$0xff] }
  0x19   : > { %v6060_v50 = vld [vmem:[%s12406_s1 + $0x98] sm:$0xff]  ;;  %6722 = vmatpush1.bf16.msra.mxu0 %v8604_v35  ;;  %v8659_v53 = vpack.c.bf16 %v230_v48, %v228_v47  ;;  %v229_v55 = vld [vmem:[%s12406_s1 + $0x10] sm:$0xff]  ;;  %v6057_v56 = vld [vmem:[%s12406_s1 + $0x80] sm:$0xff] }
  0x1a   : > { %6802 = vmatpush1.bf16.msra.mxu1 %v8617_v39  ;;  %6724 = vmatprep.subr.bf16.mxu0 %v8619_v40  ;;  %v8676_v57 = vpack.c.bf16 %v6060_v50, %v6058_v49  ;;  %v6059_v58 = vld [vmem:[%s12406_s1 + $0x90] sm:$0xff]  ;;  %v232_v59 = vld [vmem:[%s12406_s1 + $0x28] sm:$0xff]  ;;  %v234_v60 = vld [vmem:[%s12406_s1 + $0x38] sm:$0xff]  ;;  %v8697_v0 = vpack.c.bf16 %v229_v55, %v227_v54 }
  0x1b   : > { %6804 = vmatprep.subr.bf16.mxu1 %v8631_v44  ;;  %v6062_v61 = vld [vmem:[%s12406_s1 + $0xa8] sm:$0xff]  ;;  %v6064_v62 = vld [vmem:[%s12406_s1 + $0xb8] sm:$0xff]  ;;  %v8695_v63 = vld [vmem:[%s8664_s27 + $0x10] sm:$0xff]  ;;  %v8701_v1 = vpack.c.bf16 %v6059_v58, %v6057_v56  ;;  %v8703_v2 = vpack.c.bf16 %v234_v60, %v232_v59 }
  0x1c   : > { %v231_v4 = vld [vmem:[%s12406_s1 + $0x20] sm:$0xff]  ;;  %v233_v5 = vld [vmem:[%s12406_s1 + $0x30] sm:$0xff]  ;;  %v8715_v10 = vpack.c.bf16 %v6064_v62, %v6062_v61  ;;  %v236_v12 = vld [vmem:[%s12406_s1 + $0x48] sm:$0xff] }
  0x1d   : > { %6726 = vmatpush1.bf16.msra.mxu0 %v8653_v51  ;;  %v6061_v6 = vld [vmem:[%s12406_s1 + $0xa0] sm:$0xff]  ;;  %v6063_v11 = vld [vmem:[%s12406_s1 + $0xb0] sm:$0xff]  ;;  %v238_v14 = vld [vmem:[%s12406_s1 + $0x58] sm:$0xff]  ;;  %v8737_v19 = vpack.c.bf16 %v233_v5, %v231_v4 }
  0x1e   : > { %6806 = vmatpush1.bf16.msra.mxu1 %v8657_v52  ;;  %6728 = vmatprep.subr.bf16.mxu0 %v8659_v53  ;;  %v6066_v15 = vld [vmem:[%s12406_s1 + $0xc8] sm:$0xff]  ;;  %v6068_v16 = vld [vmem:[%s12406_s1 + $0xd8] sm:$0xff]  ;;  %v8744_v21 = vpack.c.bf16 %v6063_v11, %v6061_v6  ;;  %v8746_v23 = vpack.c.bf16 %v238_v14, %v236_v12  ;;  %v235_v24 = vld [vmem:[%s12406_s1 + $0x40] sm:$0xff] }
  0x1f   : > { %6808 = vmatprep.subr.bf16.mxu1 %v8676_v57  ;;  %v8740_v20 = vld [vmem:[%s8664_s27 + $0x18] sm:$0x7f]  ;;  %v237_v25 = vld [vmem:[%s12406_s1 + $0x50] sm:$0xff]  ;;  %v6065_v28 = vld [vmem:[%s12406_s1 + $0xc0] sm:$0xff]  ;;  %v8758_v29 = vpack.c.bf16 %v6068_v16, %v6066_v15 }
  0x20   : > { %5995 = vmatmul.mubr.msk.f32.vlgmr.msra.gmra.mrb[0].mxu0 %vm263_vm0, %v8695_v63  ;;  %v6067_v30 = vld [vmem:[%s12406_s1 + $0xd0] sm:$0xff]  ;;  %v240_v32 = vld [vmem:[%s12406_s1 + $0x68] sm:$0xff]  ;;  %v242_v33 = vld [vmem:[%s12406_s1 + $0x78] sm:$0xff]  ;;  %v8780_v37 = vpack.c.bf16 %v237_v25, %v235_v24 }
  0x21   : > { %6730 = vmatpush1.bf16.msra.mxu0 %v8697_v0  ;;  %6089 = vmatmul.mubr.msk.f32.vlgmr.msra.gmra.mrb[0].mxu1 %vm263_vm0, %v8695_v63  ;;  %v6070_v34 = vld [vmem:[%s12406_s1 + $0xe8] sm:$0xff]  ;;  %v6072_v36 = vld [vmem:[%s12406_s1 + $0xf8] sm:$0xff]  ;;  %v8786_v38 = vpack.c.bf16 %v6067_v30, %v6065_v28  ;;  %v8788_v41 = vpack.c.bf16 %v242_v33, %v240_v32  ;;  %v239_v42 = vld [vmem:[%s12406_s1 + $0x60] sm:$0xff] }
  0x22   : > { %6810 = vmatpush1.bf16.msra.mxu1 %v8701_v1  ;;  %6732 = vmatprep.subr.bf16.mxu0 %v8703_v2  ;;  %v241_v43 = vld [vmem:[%s12406_s1 + $0x70] sm:$0xff]  ;;  %v6069_v45 = vld [vmem:[%s12406_s1 + $0xe0] sm:$0xff]  ;;  %v8800_v46 = vpack.c.bf16 %v6072_v36, %v6070_v34  ;;  %v6002_v48 = vld [vmem:[%s12406_s1 + $0x208] sm:$0xff] }
  0x23   : > { %6812 = vmatprep.subr.bf16.mxu1 %v8715_v10  ;;  %340 = vmatprep.mubr.f32.mxu0 %v12411_v7  ;;  %v6071_v47 = vld [vmem:[%s12406_s1 + $0xf0] sm:$0xff]  ;;  %v6004_v49 = vld [vmem:[%s12406_s1 + $0x218] sm:$0xff]  ;;  %v6094_v50 = vld [vmem:[%s12406_s1 + $0x288] sm:$0xff]  ;;  %v8820_v55 = vpack.c.bf16 %v241_v43, %v239_v42 }
  0x24   : > { %854 = vmatprep.mubr.f32.mxu1 %v12411_v7  ;;  %5996 = vmatmul.mubr.msk.f32.gmra.mrb[2].mxu0 %vm263_vm0, %v8740_v20  ;;  %v6096_v54 = vld [vmem:[%s12406_s1 + $0x298] sm:$0xff]  ;;  %v8824_v56 = vpack.c.bf16 %v6071_v47, %v6069_v45  ;;  %v8826_v58 = vpack.c.bf16 %v6004_v49, %v6002_v48  ;;  %v6001_v59 = vld [vmem:[%s12406_s1 + $0x200] sm:$0xff]  ;;  %v6003_v60 = vld [vmem:[%s12406_s1 + $0x210] sm:$0xff] }
  0x25   : > { %6734 = vmatpush1.bf16.msra.mxu0 %v8737_v19  ;;  %6090 = vmatmul.mubr.msk.f32.gmra.mrb[2].mxu1 %vm263_vm0, %v8740_v20  ;;  %v6093_v61 = vld [vmem:[%s12406_s1 + $0x280] sm:$0xff]  ;;  %v8838_v62 = vpack.c.bf16 %v6096_v54, %v6094_v50  ;;  %v6095_v4 = vld [vmem:[%s12406_s1 + $0x290] sm:$0xff]  ;;  %v6006_v5 = vld [vmem:[%s12406_s1 + $0x228] sm:$0xff]  ;;  %v8857_v15 = vpack.c.bf16 %v6003_v60, %v6001_v59 }
  0x26   : > { %6814 = vmatpush1.bf16.msra.mxu1 %v8744_v21  ;;  %6736 = vmatprep.subr.bf16.mxu0 %v8746_v23  ;;  %v6008_v6 = vld [vmem:[%s12406_s1 + $0x238] sm:$0xff]  ;;  %v6098_v11 = vld [vmem:[%s12406_s1 + $0x2a8] sm:$0xff]  ;;  %v225_v14 = vld [vmem:[%s8664_s27] sm:$0xff]  ;;  %v8861_v16 = vpack.c.bf16 %v6095_v4, %v6093_v61 }
  0x27   : > { %6816 = vmatprep.subr.bf16.mxu1 %v8758_v29  ;;  %417 = vmatprep.mubr.f32.mxu0 %v12411_v7  ;;  %12684 = vst [vmem:[#allocation2_spill] sm:$0xff] %v8838_v62  ;;  %v6100_v12 = vld [vmem:[%s12406_s1 + $0x2b8] sm:$0xff]  ;;  %12685 = vst [vmem:[#allocation3_spill] sm:$0xff] %v8857_v15  ;;  %v8863_v24 = vpack.c.bf16 %v6008_v6, %v6006_v5  ;;  %v6005_v25 = vld [vmem:[%s12406_s1 + $0x220] sm:$0xff] }
  0x28   : > { %925 = vmatprep.mubr.f32.mxu1 %v12411_v7  ;;  %12686 = vst [vmem:[#allocation4_spill] sm:$0xff] %v8861_v16  ;;  %v6007_v28 = vld [vmem:[%s12406_s1 + $0x230] sm:$0xff]  ;;  %v6097_v30 = vld [vmem:[%s12406_s1 + $0x2a0] sm:$0xff]  ;;  %v8875_v32 = vpack.c.bf16 %v6100_v12, %v6098_v11  ;;  %v6010_v34 = vld [vmem:[%s12406_s1 + $0x248] sm:$0xff] }
  0x29   : > { %6738 = vmatpush1.bf16.msra.mxu0 %v8780_v37  ;;  %12687 = vst [vmem:[#allocation5_spill] sm:$0xff] %v8863_v24  ;;  %v6099_v33 = vld [vmem:[%s12406_s1 + $0x2b0] sm:$0xff]  ;;  %v6012_v36 = vld [vmem:[%s12406_s1 + $0x258] sm:$0xff]  ;;  %v6102_v42 = vld [vmem:[%s12406_s1 + $0x2c8] sm:$0xff]  ;;  %v8895_v45 = vpack.c.bf16 %v6007_v28, %v6005_v25 }
  0x2a   : > { %6818 = vmatpush1.bf16.msra.mxu1 %v8786_v38  ;;  %6740 = vmatprep.subr.bf16.mxu0 %v8788_v41  ;;  %12688 = vst [vmem:[#allocation6_spill] sm:$0xff] %v8875_v32  ;;  %v6104_v43 = vld [vmem:[%s12406_s1 + $0x2d8] sm:$0xff]  ;;  %v226_v47 = vld [vmem:[%s8664_s27 + $0x8] sm:$0x7f]  ;;  %v8900_v48 = vpack.c.bf16 %v6099_v33, %v6097_v30  ;;  %v8902_v49 = vpack.c.bf16 %v6012_v36, %v6010_v34  ;;  %v6009_v50 = vld [vmem:[%s12406_s1 + $0x240] sm:$0xff] }
  0x2b   : > { %6820 = vmatprep.subr.bf16.mxu1 %v8800_v46  ;;  %12689 = vst [vmem:[#allocation7_spill] sm:$0xff] %v8895_v45  ;;  %v6011_v54 = vld [vmem:[%s12406_s1 + $0x250] sm:$0xff]  ;;  %v6101_v59 = vld [vmem:[%s12406_s1 + $0x2c0] sm:$0xff]  ;;  %v8914_v60 = vpack.c.bf16 %v6104_v43, %v6102_v42  ;;  %v6014_v4 = vld [vmem:[%s12406_s1 + $0x268] sm:$0xff] }
  0x2c   : > { %12690 = vst [vmem:[#allocation8_spill] sm:$0xff] %v8900_v48  ;;  %12691 = vst [vmem:[#allocation9_spill] sm:$0xff] %v8902_v49  ;;  %v6103_v61 = vld [vmem:[%s12406_s1 + $0x2d0] sm:$0xff]  ;;  %v6016_v5 = vld [vmem:[%s12406_s1 + $0x278] sm:$0xff]  ;;  %v8935_v12 = vpack.c.bf16 %v6011_v54, %v6009_v50 }
  0x2d   : > { %6742 = vmatpush1.bf16.msra.mxu0 %v8820_v55  ;;  %12692 = vst [vmem:[#allocation10_spill] sm:$0xff] %v8914_v60  ;;  %v6106_v6 = vld [vmem:[%s12406_s1 + $0x2e8] sm:$0xff]  ;;  %v6108_v11 = vld [vmem:[%s12406_s1 + $0x2f8] sm:$0xff]  ;;  %v8942_v25 = vpack.c.bf16 %v6016_v5, %v6014_v4  ;;  %v6013_v28 = vld [vmem:[%s12406_s1 + $0x260] sm:$0xff] }
  0x2e   : > { %6822 = vmatpush1.bf16.msra.mxu1 %v8824_v56  ;;  %6744 = vmatprep.subr.bf16.mxu0 %v8826_v58  ;;  %12693 = vst [vmem:[#allocation11_spill] sm:$0xff] %v8935_v12  ;;  %v6015_v30 = vld [vmem:[%s12406_s1 + $0x270] sm:$0xff]  ;;  %v6105_v33 = vld [vmem:[%s12406_s1 + $0x2e0] sm:$0xff]  ;;  %v8954_v34 = vpack.c.bf16 %v6108_v11, %v6106_v6  ;;  %v6022_v42 = vld [vmem:[%s12406_s1 + $0x308] sm:$0xff] }
  0x2f   : > { %6824 = vmatprep.subr.bf16.mxu1 %v8838_v62  ;;  %12695 = vst [vmem:[#allocation13_spill] sm:$0xff] %v8942_v25  ;;  %v6107_v36 = vld [vmem:[%s12406_s1 + $0x2f0] sm:$0xff]  ;;  %v6024_v43 = vld [vmem:[%s12406_s1 + $0x318] sm:$0xff]  ;;  %v8974_v54 = vpack.c.bf16 %v6015_v30, %v6013_v28  ;;  %v6021_v4 = vld [vmem:[%s12406_s1 + $0x300] sm:$0xff] }
  0x30   : > { %5997 = vmatmul.mubr.msk.f32.vlgmr.msra.gmra.mrb[0].mxu0 %vm263_vm0, %v225_v14  ;;  %12696 = vst [vmem:[#allocation14_spill] sm:$0xff] %v8954_v34  ;;  %v6114_v50 = vld [vmem:[%s12406_s1 + $0x398] sm:$0xff]  ;;  %v6023_v5 = vld [vmem:[%s12406_s1 + $0x310] sm:$0xff]  ;;  %v6111_v6 = vld [vmem:[%s12406_s1 + $0x380] sm:$0xff] }
  0x31   : > { %6746 = vmatpush1.bf16.msra.mxu0 %v8857_v15  ;;  %6091 = vmatmul.mubr.msk.f32.vlgmr.msra.gmra.mrb[0].mxu1 %vm263_vm0, %v225_v14  ;;  %v8940_v14 = vpack.c.bf16 %v6103_v61, %v6101_v59  ;;  %12697 = vst [vmem:[#allocation15_spill] sm:$0xff] %v8974_v54  ;;  %v8978_v59 = vpack.c.bf16 %v6107_v36, %v6105_v33  ;;  %v6113_v28 = vld [vmem:[%s12406_s1 + $0x390] sm:$0xff]  ;;  %v6026_v30 = vld [vmem:[%s12406_s1 + $0x328] sm:$0xff]  ;;  %v6028_v33 = vld [vmem:[%s12406_s1 + $0x338] sm:$0xff] }
  0x32   : > { %6826 = vmatpush1.bf16.msra.mxu1 %v8861_v16  ;;  %6748 = vmatprep.subr.bf16.mxu0 %v8863_v24  ;;  %v8980_v61 = vpack.c.bf16 %v6024_v43, %v6022_v42  ;;  %v6116_v36 = vld [vmem:[%s12406_s1 + $0x3a8] sm:$0xff]  ;;  %v6118_v42 = vld [vmem:[%s12406_s1 + $0x3b8] sm:$0xff]  ;;  %v9011_v43 = vld [vmem:[%s8664_s27 + $0x20] sm:$0xff] }
  0x33   : > { %6828 = vmatprep.subr.bf16.mxu1 %v8875_v32  ;;  %423 = vmatprep.mubr.f32.mxu0 %v12411_v7  ;;  %12694 = vst [vmem:[#allocation12_spill] sm:$0xff] %v8940_v14  ;;  %12698 = vst [vmem:[#allocation16_spill] sm:$0xff] %v8978_v59 }
  0x34   : > { %931 = vmatprep.mubr.f32.mxu1 %v12411_v7  ;;  %5998 = vmatmul.mubr.msk.f32.gmra.mrb[2].mxu0 %vm263_vm0, %v226_v47  ;;  %12699 = vst [vmem:[#allocation17_spill] sm:$0xff] %v8980_v61 }
  0x35   : > { %6750 = vmatpush1.bf16.msra.mxu0 %v8895_v45  ;;  %6092 = vmatmul.mubr.msk.f32.gmra.mrb[2].mxu1 %vm263_vm0, %v226_v47  ;;  %v6112_v47 = vld [vmem:[%s12406_s1 + $0x388] sm:$0xff] }
  0x36   : > { %6830 = vmatpush1.bf16.msra.mxu1 %v8900_v48  ;;  %6752 = vmatprep.subr.bf16.mxu0 %v8902_v49  ;;  %v8992_v11 = vpack.c.bf16 %v6114_v50, %v6112_v47  ;;  %v9013_v47 = vpack.c.bf16 %v6023_v5, %v6021_v4  ;;  %v9017_v50 = vpack.c.bf16 %v6113_v28, %v6111_v6  ;;  %v6115_v4 = vld [vmem:[%s12406_s1 + $0x3a0] sm:$0xff]  ;;  %v6117_v6 = vld [vmem:[%s12406_s1 + $0x3b0] sm:$0xff]  ;;  %v6030_v28 = vld [vmem:[%s12406_s1 + $0x348] sm:$0xff] }
  0x37   : > { %6832 = vmatprep.subr.bf16.mxu1 %v8914_v60  ;;  %520 = vmatprep.mubr.f32.mxu0 %v12411_v7  ;;  %v9031_v5 = vpack.c.bf16 %v6118_v42, %v6116_v36  ;;  %v6122_v36 = vld [vmem:[%s12406_s1 + $0x3d8] sm:$0xff]  ;;  %v6047_v60 = vld [vmem:[%s12406_s1 + $0x440] sm:$0xff] }
  0x38   : > { %1019 = vmatprep.mubr.f32.mxu1 %v12411_v7  ;;  %12700 = vst [vmem:[#allocation18_spill] sm:$0xff] %v8992_v11  ;;  %12701 = vst [vmem:[#allocation19_spill] sm:$0xff] %v9013_v47  ;;  %v9019_v7 = vpack.c.bf16 %v6028_v33, %v6026_v30  ;;  %v6032_v30 = vld [vmem:[%s12406_s1 + $0x358] sm:$0xff]  ;;  %v6120_v33 = vld [vmem:[%s12406_s1 + $0x3c8] sm:$0xff] }
  0x39   : > { %6754 = vmatpush1.bf16.msra.mxu0 %v8935_v12  ;;  %12702 = vst [vmem:[#allocation20_spill] sm:$0xff] %v9017_v50  ;;  %12704 = vst [vmem:[#allocation22_spill] sm:$0xff] %v9031_v5  ;;  %v6041_v12 = vld [vmem:[%s12406_s1 + $0x410] sm:$0xff] }
  0x3a   : > { %6834 = vmatpush1.bf16.msra.mxu1 %v8940_v14  ;;  %6756 = vmatprep.subr.bf16.mxu0 %v8942_v25  ;;  %12703 = vst [vmem:[#allocation21_spill] sm:$0xff] %v9019_v7  ;;  %v6029_v25 = vld [vmem:[%s12406_s1 + $0x340] sm:$0xff] }
  0x3b   : > { %6836 = vmatprep.subr.bf16.mxu1 %v8954_v34  ;;  %v6025_v34 = vld [vmem:[%s12406_s1 + $0x320] sm:$0xff] }
  0x3c   : > { %v6033_v14 = vld [vmem:[%s12406_s1 + $0x360] sm:$0xff] }
  0x3d   : > { %6758 = vmatpush1.bf16.msra.mxu0 %v8974_v54  ;;  %v6027_v54 = vld [vmem:[%s12406_s1 + $0x330] sm:$0xff] }
  0x3e   : > { %6838 = vmatpush1.bf16.msra.mxu1 %v8978_v59  ;;  %6760 = vmatprep.subr.bf16.mxu0 %v8980_v61  ;;  %v9053_v42 = vpack.c.bf16 %v6027_v54, %v6025_v34  ;;  %v9060_v61 = vpack.c.bf16 %v6117_v6, %v6115_v4  ;;  %v9062_v59 = vpack.c.bf16 %v6032_v30, %v6030_v28  ;;  %v6119_v34 = vld [vmem:[%s12406_s1 + $0x3c0] sm:$0xff]  ;;  %v6121_v4 = vld [vmem:[%s12406_s1 + $0x3d0] sm:$0xff]  ;;  %v12709_v6 = vmov 0.0   ;;  %v6034_v28 = vld [vmem:[%s12406_s1 + $0x368] sm:$0xff] }
  0x3f   : > { %6840 = vmatprep.subr.bf16.mxu1 %v8992_v11  ;;  %v9056_v11 = vld [vmem:[%s8664_s27 + $0x28] sm:$0x7f]  ;;  %v9074_v54 = vpack.c.bf16 %v6122_v36, %v6120_v33  ;;  %v6036_v30 = vld [vmem:[%s12406_s1 + $0x378] sm:$0xff] }
  0x40   : > { %6017 = vmatmul.mubr.msk.f32.vlgmr.msra.gmra.mrb[0].mxu0 %vm263_vm0, %v9011_v43  ;;  %12705 = vst [vmem:[#allocation23_spill] sm:$0xff] %v9053_v42  ;;  %12706 = vst [vmem:[#allocation24_spill] sm:$0xff] %v9060_v61  ;;  %v6124_v33 = vld [vmem:[%s12406_s1 + $0x3e8] sm:$0xff]  ;;  %v6126_v36 = vld [vmem:[%s12406_s1 + $0x3f8] sm:$0xff] }
  0x41   : > { %6762 = vmatpush1.bf16.msra.mxu0 %v9013_v47  ;;  %6109 = vmatmul.mubr.msk.f32.vlgmr.msra.gmra.mrb[0].mxu1 %vm263_vm0, %v9011_v43  ;;  %12707 = vst [vmem:[#allocation25_spill] sm:$0xff] %v9062_v59  ;;  %v6031_v47 = vld [vmem:[%s12406_s1 + $0x350] sm:$0xff]  ;;  %12708 = vst [vmem:[#allocation26_spill] sm:$0xff] %v9074_v54 }
  0x42   : > { %6842 = vmatpush1.bf16.msra.mxu1 %v9017_v50  ;;  %6764 = vmatprep.subr.bf16.mxu0 %v9019_v7  ;;  %v9102_v7 = vpack.c.bf16 %v6121_v4, %v6119_v34  ;;  %v9104_v50 = vpack.c.bf16 %v6036_v30, %v6034_v28  ;;  %v6125_v34 = vld [vmem:[%s12406_s1 + $0x3f0] sm:$0xff]  ;;  %v6040_v4 = vld [vmem:[%s12406_s1 + $0x408] sm:$0xff]  ;;  %v6042_v28 = vld [vmem:[%s12406_s1 + $0x418] sm:$0xff] }
  0x43   : > { %6844 = vmatprep.subr.bf16.mxu1 %v9031_v5  ;;  %526 = vmatprep.mubr.f32.mxu0 %v12709_v6  ;;  %v9096_v5 = vpack.c.bf16 %v6031_v47, %v6029_v25  ;;  %v6035_v25 = vld [vmem:[%s12406_s1 + $0x370] sm:$0xff]  ;;  %v6123_v47 = vld [vmem:[%s12406_s1 + $0x3e0] sm:$0xff]  ;;  %v6130_v30 = vld [vmem:[%s12406_s1 + $0x488] sm:$0xff] }
  0x44   : > { %1025 = vmatprep.mubr.f32.mxu1 %v12709_v6  ;;  %6018 = vmatmul.mubr.msk.f32.gmra.mrb[2].mxu0 %vm263_vm0, %v9056_v11  ;;  %12711 = vst [vmem:[#allocation28_spill] sm:$0xff] %v9102_v7  ;;  %12712 = vst [vmem:[#allocation29_spill] sm:$0xff] %v9104_v50 }
  0x45   : > { %6766 = vmatpush1.bf16.msra.mxu0 %v9053_v42  ;;  %12710 = vst [vmem:[#allocation27_spill] sm:$0xff] %v9096_v5  ;;  %6110 = vmatmul.mubr.msk.f32.gmra.mrb[2].mxu1 %vm263_vm0, %v9056_v11  ;;  %v6039_v42 = vld [vmem:[%s12406_s1 + $0x400] sm:$0xff] }
  0x46   : > { %6846 = vmatpush1.bf16.msra.mxu1 %v9060_v61  ;;  %6768 = vmatprep.subr.bf16.mxu0 %v9062_v59  ;;  %v9116_v61 = vpack.c.bf16 %v6126_v36, %v6124_v33  ;;  %v6132_v33 = vld [vmem:[%s12406_s1 + $0x498] sm:$0xff]  ;;  %v9136_v36 = vpack.c.bf16 %v6035_v25, %v6033_v14  ;;  %v9142_v59 = vpack.c.bf16 %v6042_v28, %v6040_v4  ;;  %v6129_v14 = vld [vmem:[%s12406_s1 + $0x480] sm:$0xff]  ;;  %v6134_v28 = vld [vmem:[%s12406_s1 + $0x4a8] sm:$0xff] }
  0x47   : > { %6848 = vmatprep.subr.bf16.mxu1 %v9074_v54  ;;  %627 = vmatprep.mubr.f32.mxu0 %v12709_v6  ;;  %v9140_v54 = vpack.c.bf16 %v6125_v34, %v6123_v47  ;;  %v9154_v25 = vpack.c.bf16 %v6132_v33, %v6130_v30  ;;  %v6131_v47 = vld [vmem:[%s12406_s1 + $0x490] sm:$0xff]  ;;  %v6044_v34 = vld [vmem:[%s12406_s1 + $0x428] sm:$0xff]  ;;  %v6046_v4 = vld [vmem:[%s12406_s1 + $0x438] sm:$0xff] }
  0x48   : > { %12713 = vst [vmem:[#allocation30_spill] sm:$0xff] %v9116_v61  ;;  %1117 = vmatprep.mubr.f32.mxu1 %v12709_v6  ;;  %12714 = vst [vmem:[#allocation31_spill] sm:$0xff] %v9136_v36  ;;  %v6136_v30 = vld [vmem:[%s12406_s1 + $0x4b8] sm:$0xff]  ;;  %v9173_v33 = vld [vmem:[%s8664_s27 + $0x30] sm:$0xff] }
  0x49   : > { %6770 = vmatpush1.bf16.msra.mxu0 %v9096_v5  ;;  %12715 = vst [vmem:[#allocation32_spill] sm:$0xff] %v9140_v54  ;;  %12716 = vst [vmem:[#allocation33_spill] sm:$0xff] %v9142_v59  ;;  %v6043_v5 = vld [vmem:[%s12406_s1 + $0x420] sm:$0xff] }
  0x4a   : > { %6850 = vmatpush1.bf16.msra.mxu1 %v9102_v7  ;;  %6772 = vmatprep.subr.bf16.mxu0 %v9104_v50  ;;  %12717 = vst [vmem:[#allocation34_spill] sm:$0xff] %v9154_v25  ;;  %12718 = vst [vmem:[#allocation35_spill] sm:$0xff] %v9173_v33  ;;  %v9179_v50 = vpack.c.bf16 %v6131_v47, %v6129_v14  ;;  %v9181_v7 = vpack.c.bf16 %v6046_v4, %v6044_v34  ;;  %v6135_v14 = vld [vmem:[%s12406_s1 + $0x4b0] sm:$0xff]  ;;  %v6048_v47 = vld [vmem:[%s12406_s1 + $0x448] sm:$0xff] }
  0x4b   : > { %6852 = vmatprep.subr.bf16.mxu1 %v9116_v61  ;;  %v9175_v61 = vpack.c.bf16 %v6041_v12, %v6039_v42  ;;  %v6133_v12 = vld [vmem:[%s12406_s1 + $0x4a0] sm:$0xff]  ;;  %v9193_v42 = vpack.c.bf16 %v6136_v30, %v6134_v28  ;;  %v6050_v34 = vld [vmem:[%s12406_s1 + $0x458] sm:$0xff]  ;;  %v6138_v4 = vld [vmem:[%s12406_s1 + $0x4c8] sm:$0xff] }
  0x4c   : > { %12720 = vst [vmem:[#allocation37_spill] sm:$0xff] %v9179_v50  ;;  %12721 = vst [vmem:[#allocation38_spill] sm:$0xff] %v9181_v7  ;;  %v6140_v28 = vld [vmem:[%s12406_s1 + $0x4d8] sm:$0xff] }
  0x4d   : > { %6774 = vmatpush1.bf16.msra.mxu0 %v9136_v36  ;;  %12719 = vst [vmem:[#allocation36_spill] sm:$0xff] %v9175_v61  ;;  %v6045_v36 = vld [vmem:[%s12406_s1 + $0x430] sm:$0xff]  ;;  %12722 = vst [vmem:[#allocation39_spill] sm:$0xff] %v9193_v42 }
  0x4e   : > { %6854 = vmatpush1.bf16.msra.mxu1 %v9140_v54  ;;  %6776 = vmatprep.subr.bf16.mxu0 %v9142_v59  ;;  %v9215_v30 = vpack.c.bf16 %v6045_v36, %v6043_v5  ;;  %v9222_v59 = vpack.c.bf16 %v6135_v14, %v6133_v12  ;;  %v9224_v54 = vpack.c.bf16 %v6050_v34, %v6048_v47  ;;  %v6137_v5 = vld [vmem:[%s12406_s1 + $0x4c0] sm:$0xff]  ;;  %v6139_v12 = vld [vmem:[%s12406_s1 + $0x4d0] sm:$0xff]  ;;  %v6052_v14 = vld [vmem:[%s12406_s1 + $0x468] sm:$0xff] }
  0x4f   : > { %6856 = vmatprep.subr.bf16.mxu1 %v9154_v25  ;;  %v9218_v25 = vld [vmem:[%s8664_s27 + $0x38] sm:$0x7f]  ;;  %v9236_v36 = vpack.c.bf16 %v6140_v28, %v6138_v4  ;;  %v6142_v34 = vld [vmem:[%s12406_s1 + $0x4e8] sm:$0xff] }
  0x50   : > { %6037 = vmatmul.mubr.msk.f32.vlgmr.msra.gmra.mrb[0].mxu0 %vm263_vm0, %v9173_v33  ;;  %12723 = vst [vmem:[#allocation40_spill] sm:$0xff] %v9218_v25  ;;  %12724 = vst [vmem:[#allocation41_spill] sm:$0xff] %v9222_v59  ;;  %v6054_v47 = vld [vmem:[%s12406_s1 + $0x478] sm:$0xff] }
  0x51   : > { %6778 = vmatpush1.bf16.msra.mxu0 %v9175_v61  ;;  %6127 = vmatmul.mubr.msk.f32.vlgmr.msra.gmra.mrb[0].mxu1 %vm263_vm0, %v9173_v33  ;;  %v6049_v61 = vld [vmem:[%s12406_s1 + $0x450] sm:$0xff]  ;;  %v6144_v4 = vld [vmem:[%s12406_s1 + $0x4f8] sm:$0xff] }
  0x52   : > { %6858 = vmatpush1.bf16.msra.mxu1 %v9179_v50  ;;  %6780 = vmatprep.subr.bf16.mxu0 %v9181_v7  ;;  %v9258_v28 = vpack.c.bf16 %v6049_v61, %v6047_v60  ;;  %v9266_v7 = vpack.c.bf16 %v6054_v47, %v6052_v14  ;;  %v6051_v50 = vld [vmem:[%s12406_s1 + $0x460] sm:$0xff]  ;;  %v6053_v60 = vld [vmem:[%s12406_s1 + $0x470] sm:$0xff]  ;;  %v9275_v61 = vpack.c.bf16 %v6144_v4, %v6142_v34  ;;  %v12727_v4 = vld [vmem:[#allocation11_spill] sm:$0xff] }
  0x53   : > { %6860 = vmatprep.subr.bf16.mxu1 %v9193_v42  ;;  %633 = vmatprep.mubr.f32.mxu0 %v12709_v6  ;;  %v9264_v42 = vpack.c.bf16 %v6139_v12, %v6137_v5  ;;  %v6141_v5 = vld [vmem:[%s12406_s1 + $0x4e0] sm:$0xff]  ;;  %v6143_v12 = vld [vmem:[%s12406_s1 + $0x4f0] sm:$0xff]  ;;  %v9286_v14 = vpack.c.bf16 %v6053_v60, %v6051_v50  ;;  %v9306_v50 = vld [vmem:[%s8664_s27 + $0x9] sm:$0x7f] }
  0x54   : > { %1123 = vmatprep.mubr.f32.mxu1 %v12709_v6  ;;  %6038 = vmatmul.mubr.msk.f32.gmra.mrb[2].mxu0 %vm263_vm0, %v9218_v25  ;;  %12725 = vst [vmem:[#allocation42_spill] sm:$0xff] %v9266_v7  ;;  %v9290_v47 = vpack.c.bf16 %v6143_v12, %v6141_v5  ;;  %v9295_v34 = vld [vmem:[%s8664_s27 + $0x1] sm:$0xff]  ;;  %v12728_v60 = vld [vmem:[#allocation12_spill] sm:$0xff]  ;;  %v12729_v5 = vld [vmem:[#allocation13_spill] sm:$0xff] }
  0x55   : > { %6782 = vmatpush1.bf16.msra.mxu0 %v9215_v30  ;;  %6128 = vmatmul.mubr.msk.f32.gmra.mrb[2].mxu1 %vm263_vm0, %v9218_v25  ;;  %v12730_v12 = vld [vmem:[#allocation14_spill] sm:$0xff] }
  0x56   : > { %6862 = vmatpush1.bf16.msra.mxu1 %v9222_v59  ;;  %6784 = vmatprep.subr.bf16.mxu0 %v9224_v54 }
  0x57   : > { %6864 = vmatprep.subr.bf16.mxu1 %v9236_v36  ;;  %733 = vmatprep.mubr.f32.mxu0 %v12709_v6 }
  0x58   : > { %1215 = vmatprep.mubr.f32.mxu1 %v12709_v6 }
  0x59   : > { %6786 = vmatpush1.bf16.msra.mxu0 %v9258_v28 }
  0x5a   : > { %6866 = vmatpush1.bf16.msra.mxu1 %v9264_v42  ;;  %6788 = vmatprep.subr.bf16.mxu0 %v9266_v7 }
  0x5b   : > { %6868 = vmatprep.subr.bf16.mxu1 %v9275_v61 }
  0x5d   : > { %6790 = vmatpush1.bf16.msra.mxu0 %v9286_v14 }
  0x5e   : > { %6870 = vmatpush1.bf16.msra.mxu1 %v9290_v47  ;;  %6872 = vmatprep.subr.bf16.mxu0 %v8500_v3 }
  0x5f   : > { %6952 = vmatprep.subr.bf16.mxu1 %v8513_v8 }
  0x60   : > { %6055 = vmatmul.mubr.msk.f32.vlgmr.msra.gmra.mrb[0].mxu0 %vm263_vm0, %v9295_v34 }
  0x61   : > { %6145 = vmatmul.mubr.msk.f32.vlgmr.msra.gmra.mrb[0].mxu1 %vm263_vm0, %v9295_v34  ;;  %6874 = vmatpush1.bf16.msra.mxu0 %v8515_v9 }
  0x62   : > { %6954 = vmatpush1.bf16.msra.mxu1 %v8533_v13  ;;  %739 = vmatprep.mubr.f32.mxu0 %v12709_v6 }
  0x63   : > { %1221 = vmatprep.mubr.f32.mxu1 %v12709_v6  ;;  %6876 = vmatprep.subr.bf16.mxu0 %v8546_v17 }
  0x64   : > { %6056 = vmatmul.mubr.msk.f32.gmra.mrb[2].mxu0 %vm263_vm0, %v9306_v50  ;;  %6956 = vmatprep.subr.bf16.mxu1 %v8548_v18 }
  0x65   : > { %6146 = vmatmul.mubr.msk.f32.gmra.mrb[2].mxu1 %vm263_vm0, %v9306_v50  ;;  %6878 = vmatpush1.bf16.msra.mxu0 %v8560_v22 }
  0x66   : > { %6958 = vmatpush1.bf16.msra.mxu1 %v8573_v26  ;;  %6880 = vmatprep.subr.bf16.mxu0 %v8575_v27 }
  0x67   : > { %6960 = vmatprep.subr.bf16.mxu1 %v8592_v31  ;;  %1300 = vmatprep.mubr.f32.mxu0 %v12709_v6 }
  0x68   : > { %1709 = vmatprep.mubr.f32.mxu1 %v12709_v6 }
  0x69   : > { %6882 = vmatpush1.bf16.msra.mxu0 %v8604_v35 }
  0x6a   : > { %6962 = vmatpush1.bf16.msra.mxu1 %v8617_v39  ;;  %6884 = vmatprep.subr.bf16.mxu0 %v8619_v40 }
  0x6b   : > { %6964 = vmatprep.subr.bf16.mxu1 %v8631_v44 }
  0x6d   : > { %6886 = vmatpush1.bf16.msra.mxu0 %v8653_v51 }
  0x6e   : > { %6966 = vmatpush1.bf16.msra.mxu1 %v8657_v52  ;;  %6888 = vmatprep.subr.bf16.mxu0 %v8659_v53 }
  0x6f   : > { %6968 = vmatprep.subr.bf16.mxu1 %v8676_v57 }
  0x70   : > { %6147 = vmatmul.mubr.msk.f32.vlgmr.msra.gmra.mrb[4].mxu0 %vm263_vm0, %v9011_v43 }
  0x71   : > { %6890 = vmatpush1.bf16.msra.mxu0 %v8697_v0  ;;  %6159 = vmatmul.mubr.msk.f32.vlgmr.msra.gmra.mrb[4].mxu1 %vm263_vm0, %v9011_v43 }
  0x72   : > { %6970 = vmatpush1.bf16.msra.mxu1 %v8701_v1  ;;  %6892 = vmatprep.subr.bf16.mxu0 %v8703_v2 }
  0x73   : > { %6972 = vmatprep.subr.bf16.mxu1 %v8715_v10  ;;  %1306 = vmatprep.mubr.f32.mxu0 %v12709_v6 }
  0x74   : > { %1715 = vmatprep.mubr.f32.mxu1 %v12709_v6  ;;  %6148 = vmatmul.mubr.msk.f32.gmra.mrb[6].mxu0 %vm263_vm0, %v9056_v11 }
  0x75   : > { %6894 = vmatpush1.bf16.msra.mxu0 %v8737_v19  ;;  %6160 = vmatmul.mubr.msk.f32.gmra.mrb[6].mxu1 %vm263_vm0, %v9056_v11 }
  0x76   : > { %6974 = vmatpush1.bf16.msra.mxu1 %v8744_v21  ;;  %6896 = vmatprep.subr.bf16.mxu0 %v8746_v23 }
  0x77   : > { %6976 = vmatprep.subr.bf16.mxu1 %v8758_v29  ;;  %1377 = vmatprep.mubr.f32.mxu0 %v12709_v6 }
  0x78   : > { %1786 = vmatprep.mubr.f32.mxu1 %v12709_v6 }
  0x79   : > { %6898 = vmatpush1.bf16.msra.mxu0 %v8780_v37 }
  0x7a   : > { %6978 = vmatpush1.bf16.msra.mxu1 %v8786_v38  ;;  %6900 = vmatprep.subr.bf16.mxu0 %v8788_v41 }
  0x7b   : > { %6980 = vmatprep.subr.bf16.mxu1 %v8800_v46 }
  0x7d   : > { %6902 = vmatpush1.bf16.msra.mxu0 %v8820_v55 }
  0x7e   : > { %6982 = vmatpush1.bf16.msra.mxu1 %v8824_v56  ;;  %6904 = vmatprep.subr.bf16.mxu0 %v8826_v58 }
  0x7f   : > { %6984 = vmatprep.subr.bf16.mxu1 %v8838_v62 }
  0x80   : > { %6149 = vmatmul.mubr.msk.f32.vlgmr.msra.gmra.mrb[4].mxu0 %vm263_vm0, %v8695_v63 }
  0x81   : > { %6906 = vmatpush1.bf16.msra.mxu0 %v8857_v15  ;;  %6161 = vmatmul.mubr.msk.f32.vlgmr.msra.gmra.mrb[4].mxu1 %vm263_vm0, %v8695_v63  ;;  %v12726_v63 = vld [vmem:[#allocation10_spill] sm:$0xff] }
  0x82   : > { %6986 = vmatpush1.bf16.msra.mxu1 %v8861_v16  ;;  %6908 = vmatprep.subr.bf16.mxu0 %v8863_v24 }
  0x83   : > { %6988 = vmatprep.subr.bf16.mxu1 %v8875_v32  ;;  %1383 = vmatprep.mubr.f32.mxu0 %v12709_v6 }
  0x84   : > { %1792 = vmatprep.mubr.f32.mxu1 %v12709_v6  ;;  %6150 = vmatmul.mubr.msk.f32.gmra.mrb[6].mxu0 %vm263_vm0, %v8740_v20 }
  0x85   : > { %6910 = vmatpush1.bf16.msra.mxu0 %v8895_v45  ;;  %6162 = vmatmul.mubr.msk.f32.gmra.mrb[6].mxu1 %vm263_vm0, %v8740_v20  ;;  %v12731_v45 = vld [vmem:[#allocation15_spill] sm:$0xff]  ;;  %v12732_v20 = vld [vmem:[#allocation16_spill] sm:$0xff] }
  0x86   : > { %6990 = vmatpush1.bf16.msra.mxu1 %v8900_v48  ;;  %6912 = vmatprep.subr.bf16.mxu0 %v8902_v49  ;;  %v12733_v48 = vld [vmem:[#allocation17_spill] sm:$0xff]  ;;  %v12734_v49 = vld [vmem:[#allocation18_spill] sm:$0xff] }
  0x87   : > { %6992 = vmatprep.subr.bf16.mxu1 %v12726_v63  ;;  %1454 = vmatprep.mubr.f32.mxu0 %v12709_v6  ;;  %v12735_v63 = vld [vmem:[#allocation19_spill] sm:$0xff] }
  0x88   : > { %1863 = vmatprep.mubr.f32.mxu1 %v12709_v6 }
  0x89   : > { %6914 = vmatpush1.bf16.msra.mxu0 %v12727_v4  ;;  %v12748_v4 = vld [vmem:[#allocation32_spill] sm:$0xff] }
  0x8a   : > { %6994 = vmatpush1.bf16.msra.mxu1 %v12728_v60  ;;  %6916 = vmatprep.subr.bf16.mxu0 %v12729_v5  ;;  %v12736_v60 = vld [vmem:[#allocation20_spill] sm:$0xff]  ;;  %v12737_v5 = vld [vmem:[#allocation21_spill] sm:$0xff] }
  0x8b   : > { %6996 = vmatprep.subr.bf16.mxu1 %v12730_v12  ;;  %v12738_v12 = vld [vmem:[#allocation22_spill] sm:$0xff] }
  0x8d   : > { %6918 = vmatpush1.bf16.msra.mxu0 %v12731_v45  ;;  %v12747_v45 = vld [vmem:[#allocation31_spill] sm:$0xff] }
  0x8e   : > { %6998 = vmatpush1.bf16.msra.mxu1 %v12732_v20  ;;  %6920 = vmatprep.subr.bf16.mxu0 %v12733_v48  ;;  %v12741_v48 = vld [vmem:[#allocation25_spill] sm:$0xff] }
  0x8f   : > { %7000 = vmatprep.subr.bf16.mxu1 %v12734_v49  ;;  %v12739_v49 = vld [vmem:[#allocation23_spill] sm:$0xff]  ;;  %v12745_v20 = vld [vmem:[#allocation29_spill] sm:$0xff] }
  0x90   : > { %6151 = vmatmul.mubr.msk.f32.vlgmr.msra.gmra.mrb[4].mxu0 %vm263_vm0, %v9173_v33 }
  0x91   : > { %6922 = vmatpush1.bf16.msra.mxu0 %v12735_v63  ;;  %6163 = vmatmul.mubr.msk.f32.vlgmr.msra.gmra.mrb[4].mxu1 %vm263_vm0, %v9173_v33  ;;  %v12740_v63 = vld [vmem:[#allocation24_spill] sm:$0xff] }
  0x92   : > { %7002 = vmatpush1.bf16.msra.mxu1 %v12736_v60  ;;  %6924 = vmatprep.subr.bf16.mxu0 %v12737_v5  ;;  %v12742_v60 = vld [vmem:[#allocation26_spill] sm:$0xff]  ;;  %v12744_v5 = vld [vmem:[#allocation28_spill] sm:$0xff] }
  0x93   : > { %7004 = vmatprep.subr.bf16.mxu1 %v12738_v12  ;;  %1460 = vmatprep.mubr.f32.mxu0 %v12709_v6  ;;  %v12743_v12 = vld [vmem:[#allocation27_spill] sm:$0xff] }
  0x94   : > { %1869 = vmatprep.mubr.f32.mxu1 %v12709_v6  ;;  %6152 = vmatmul.mubr.msk.f32.gmra.mrb[6].mxu0 %vm263_vm0, %v9218_v25 }
  0x95   : > { %6926 = vmatpush1.bf16.msra.mxu0 %v12739_v49  ;;  %6164 = vmatmul.mubr.msk.f32.gmra.mrb[6].mxu1 %vm263_vm0, %v9218_v25  ;;  %v12746_v49 = vld [vmem:[#allocation30_spill] sm:$0xff] }
  0x96   : > { %7006 = vmatpush1.bf16.msra.mxu1 %v12740_v63  ;;  %6928 = vmatprep.subr.bf16.mxu0 %v12741_v48  ;;  %v12749_v63 = vld [vmem:[#allocation33_spill] sm:$0xff]  ;;  %v12750_v48 = vld [vmem:[#allocation34_spill] sm:$0xff] }
  0x97   : > { %7008 = vmatprep.subr.bf16.mxu1 %v12742_v60  ;;  %1535 = vmatprep.mubr.f32.mxu0 %v12709_v6  ;;  %v12751_v60 = vld [vmem:[#allocation36_spill] sm:$0xff] }
  0x98   : > { %1944 = vmatprep.mubr.f32.mxu1 %v12709_v6 }
  0x99   : > { %6930 = vmatpush1.bf16.msra.mxu0 %v12743_v12 }
  0x9a   : > { %7010 = vmatpush1.bf16.msra.mxu1 %v12744_v5  ;;  %6932 = vmatprep.subr.bf16.mxu0 %v12745_v20  ;;  %v12752_v5 = vld [vmem:[#allocation37_spill] sm:$0xff]  ;;  %v12753_v20 = vld [vmem:[#allocation38_spill] sm:$0xff] }
  0x9b   : > { %7012 = vmatprep.subr.bf16.mxu1 %v12746_v49  ;;  %v12754_v49 = vld [vmem:[#allocation39_spill] sm:$0xff] }
  0x9d   : > { %6934 = vmatpush1.bf16.msra.mxu0 %v12747_v45 }
  0x9e   : > { %7014 = vmatpush1.bf16.msra.mxu1 %v12748_v4  ;;  %6936 = vmatprep.subr.bf16.mxu0 %v12749_v63 }
  0x9f   : > { %7016 = vmatprep.subr.bf16.mxu1 %v12750_v48 }
  0xa0   : > { %6153 = vmatmul.mubr.msk.f32.vlgmr.msra.gmra.mrb[4].mxu0 %vm263_vm0, %v9295_v34 }
  0xa1   : > { %6938 = vmatpush1.bf16.msra.mxu0 %v12751_v60  ;;  %6165 = vmatmul.mubr.msk.f32.vlgmr.msra.gmra.mrb[4].mxu1 %vm263_vm0, %v9295_v34 }
  0xa2   : > { %7018 = vmatpush1.bf16.msra.mxu1 %v12752_v5  ;;  %6940 = vmatprep.subr.bf16.mxu0 %v12753_v20 }
  0xa3   : > { %7020 = vmatprep.subr.bf16.mxu1 %v12754_v49  ;;  %1541 = vmatprep.mubr.f32.mxu0 %v12709_v6 }
  0xa4   : > { %1950 = vmatprep.mubr.f32.mxu1 %v12709_v6  ;;  %6154 = vmatmul.mubr.msk.f32.gmra.mrb[6].mxu0 %vm263_vm0, %v9306_v50 }
  0xa5   : > { %6942 = vmatpush1.bf16.msra.mxu0 %v9215_v30  ;;  %6166 = vmatmul.mubr.msk.f32.gmra.mrb[6].mxu1 %vm263_vm0, %v9306_v50 }
  0xa6   : > { %7022 = vmatpush1.bf16.msra.mxu1 %v9222_v59  ;;  %6944 = vmatprep.subr.bf16.mxu0 %v9224_v54  ;;  %v9441_v59 = vld [vmem:[%s8664_s27 + $0x11] sm:$0xff] }
  0xa7   : > { %7024 = vmatprep.subr.bf16.mxu1 %v9236_v36  ;;  %1624 = vmatprep.mubr.f32.mxu0 %v12709_v6 }
  0xa8   : > { %2025 = vmatprep.mubr.f32.mxu1 %v12709_v6 }
  0xa9   : > { %6946 = vmatpush1.bf16.msra.mxu0 %v9258_v28 }
  0xaa   : > { %7026 = vmatpush1.bf16.msra.mxu1 %v9264_v42  ;;  %6948 = vmatprep.subr.bf16.mxu0 %v9266_v7  ;;  %v9452_v7 = vld [vmem:[%s8664_s27 + $0x19] sm:$0x7f] }
  0xab   : > { %7028 = vmatprep.subr.bf16.mxu1 %v9275_v61 }
  0xad   : > { %6950 = vmatpush1.bf16.msra.mxu0 %v9286_v14 }
  0xae   : > { %7030 = vmatpush1.bf16.msra.mxu1 %v9290_v47  ;;  %7032 = vmatprep.subr.bf16.mxu0 %v8500_v3 }
  0xaf   : > { %7112 = vmatprep.subr.bf16.mxu1 %v8513_v8 }
  0xb0   : > { %6157 = vmatmul.mubr.msk.f32.vlgmr.msra.gmra.mrb[4].mxu0 %vm263_vm0, %v9441_v59 }
  0xb1   : > { %6167 = vmatmul.mubr.msk.f32.vlgmr.msra.gmra.mrb[4].mxu1 %vm263_vm0, %v9441_v59  ;;  %7034 = vmatpush1.bf16.msra.mxu0 %v8515_v9 }
  0xb2   : > { %7114 = vmatpush1.bf16.msra.mxu1 %v8533_v13  ;;  %1630 = vmatprep.mubr.f32.mxu0 %v12709_v6 }
  0xb3   : > { %2031 = vmatprep.mubr.f32.mxu1 %v12709_v6  ;;  %7036 = vmatprep.subr.bf16.mxu0 %v8546_v17 }
  0xb4   : > { %6158 = vmatmul.mubr.msk.f32.gmra.mrb[6].mxu0 %vm263_vm0, %v9452_v7  ;;  %7116 = vmatprep.subr.bf16.mxu1 %v8548_v18 }
  0xb5   : > { %6168 = vmatmul.mubr.msk.f32.gmra.mrb[6].mxu1 %vm263_vm0, %v9452_v7  ;;  %7038 = vmatpush1.bf16.msra.mxu0 %v8560_v22 }
  0xb6   : > { %7118 = vmatpush1.bf16.msra.mxu1 %v8573_v26  ;;  %7040 = vmatprep.subr.bf16.mxu0 %v8575_v27 }
  0xb7   : > { %7120 = vmatprep.subr.bf16.mxu1 %v8592_v31  ;;  %2130 = vmatprep.mubr.f32.mxu0 %v12709_v6 }
  0xb8   : > { %2535 = vmatprep.mubr.f32.mxu1 %v12709_v6 }
  0xb9   : > { %7042 = vmatpush1.bf16.msra.mxu0 %v8604_v35 }
  0xba   : > { %7122 = vmatpush1.bf16.msra.mxu1 %v8617_v39  ;;  %7044 = vmatprep.subr.bf16.mxu0 %v8619_v40 }
  0xbb   : > { %7124 = vmatprep.subr.bf16.mxu1 %v8631_v44 }
  0xbd   : > { %7046 = vmatpush1.bf16.msra.mxu0 %v8653_v51 }
  0xbe   : > { %7126 = vmatpush1.bf16.msra.mxu1 %v8657_v52  ;;  %7048 = vmatprep.subr.bf16.mxu0 %v8659_v53 }
  0xbf   : > { %7128 = vmatprep.subr.bf16.mxu1 %v8676_v57 }
  0xc0   : > { %6169 = vmatmul.mubr.msk.f32.vlgmr.msra.gmra.mrb[8].mxu0 %vm263_vm0, %v9173_v33 }
  0xc1   : > { %7050 = vmatpush1.bf16.msra.mxu0 %v8697_v0  ;;  %6181 = vmatmul.mubr.msk.f32.vlgmr.msra.gmra.mrb[8].mxu1 %vm263_vm0, %v9173_v33  ;;  %v12761_v33 = vld [vmem:[#allocation13_spill] sm:$0xff] }
  0xc2   : > { %7130 = vmatpush1.bf16.msra.mxu1 %v8701_v1  ;;  %7052 = vmatprep.subr.bf16.mxu0 %v8703_v2 }
  0xc3   : > { %7132 = vmatprep.subr.bf16.mxu1 %v8715_v10  ;;  %2136 = vmatprep.mubr.f32.mxu0 %v12709_v6 }
  0xc4   : > { %2541 = vmatprep.mubr.f32.mxu1 %v12709_v6  ;;  %6170 = vmatmul.mubr.msk.f32.gmra.mrb[10].mxu0 %vm263_vm0, %v9218_v25 }
  0xc5   : > { %7054 = vmatpush1.bf16.msra.mxu0 %v8737_v19  ;;  %6182 = vmatmul.mubr.msk.f32.gmra.mrb[10].mxu1 %vm263_vm0, %v9218_v25  ;;  %v12755_v25 = vld [vmem:[#allocation7_spill] sm:$0xff] }
  0xc6   : > { %7134 = vmatpush1.bf16.msra.mxu1 %v8744_v21  ;;  %7056 = vmatprep.subr.bf16.mxu0 %v8746_v23 }
  0xc7   : > { %7136 = vmatprep.subr.bf16.mxu1 %v8758_v29  ;;  %2207 = vmatprep.mubr.f32.mxu0 %v12709_v6 }
  0xc8   : > { %2612 = vmatprep.mubr.f32.mxu1 %v12709_v6 }
  0xc9   : > { %7058 = vmatpush1.bf16.msra.mxu0 %v8780_v37 }
  0xca   : > { %7138 = vmatpush1.bf16.msra.mxu1 %v8786_v38  ;;  %7060 = vmatprep.subr.bf16.mxu0 %v8788_v41 }
  0xcb   : > { %7140 = vmatprep.subr.bf16.mxu1 %v8800_v46 }
  0xcd   : > { %7062 = vmatpush1.bf16.msra.mxu0 %v8820_v55 }
  0xce   : > { %7142 = vmatpush1.bf16.msra.mxu1 %v8824_v56  ;;  %7064 = vmatprep.subr.bf16.mxu0 %v8826_v58 }
  0xcf   : > { %7144 = vmatprep.subr.bf16.mxu1 %v8838_v62  ;;  %v12763_v62 = vld [vmem:[#allocation15_spill] sm:$0xff] }
  0xd0   : > { %6171 = vmatmul.mubr.msk.f32.vlgmr.msra.gmra.mrb[8].mxu0 %vm263_vm0, %v9011_v43 }
  0xd1   : > { %7066 = vmatpush1.bf16.msra.mxu0 %v8857_v15  ;;  %6183 = vmatmul.mubr.msk.f32.vlgmr.msra.gmra.mrb[8].mxu1 %vm263_vm0, %v9011_v43  ;;  %v12756_v15 = vld [vmem:[#allocation8_spill] sm:$0xff]  ;;  %v12757_v43 = vld [vmem:[#allocation9_spill] sm:$0xff] }
  0xd2   : > { %7146 = vmatpush1.bf16.msra.mxu1 %v8861_v16  ;;  %7068 = vmatprep.subr.bf16.mxu0 %v8863_v24  ;;  %v12758_v16 = vld [vmem:[#allocation10_spill] sm:$0xff]  ;;  %v12760_v24 = vld [vmem:[#allocation12_spill] sm:$0xff] }
  0xd3   : > { %7148 = vmatprep.subr.bf16.mxu1 %v8875_v32  ;;  %2213 = vmatprep.mubr.f32.mxu0 %v12709_v6  ;;  %v12759_v32 = vld [vmem:[#allocation11_spill] sm:$0xff] }
  0xd4   : > { %2618 = vmatprep.mubr.f32.mxu1 %v12709_v6  ;;  %6172 = vmatmul.mubr.msk.f32.gmra.mrb[10].mxu0 %vm263_vm0, %v9056_v11 }
  0xd5   : > { %7070 = vmatpush1.bf16.msra.mxu0 %v12755_v25  ;;  %6184 = vmatmul.mubr.msk.f32.gmra.mrb[10].mxu1 %vm263_vm0, %v9056_v11  ;;  %v12762_v25 = vld [vmem:[#allocation14_spill] sm:$0xff]  ;;  %v12764_v11 = vld [vmem:[#allocation16_spill] sm:$0xff] }
  0xd6   : > { %7150 = vmatpush1.bf16.msra.mxu1 %v12756_v15  ;;  %7072 = vmatprep.subr.bf16.mxu0 %v12757_v43  ;;  %v12765_v15 = vld [vmem:[#allocation17_spill] sm:$0xff]  ;;  %v12766_v43 = vld [vmem:[#allocation18_spill] sm:$0xff] }
  0xd7   : > { %7152 = vmatprep.subr.bf16.mxu1 %v12758_v16  ;;  %2284 = vmatprep.mubr.f32.mxu0 %v12709_v6  ;;  %v12767_v16 = vld [vmem:[#allocation19_spill] sm:$0xff] }
  0xd8   : > { %2689 = vmatprep.mubr.f32.mxu1 %v12709_v6 }
  0xd9   : > { %7074 = vmatpush1.bf16.msra.mxu0 %v12759_v32 }
  0xda   : > { %7154 = vmatpush1.bf16.msra.mxu1 %v12760_v24  ;;  %7076 = vmatprep.subr.bf16.mxu0 %v12761_v33  ;;  %v12768_v24 = vld [vmem:[#allocation20_spill] sm:$0xff]  ;;  %v12769_v33 = vld [vmem:[#allocation21_spill] sm:$0xff] }
  0xdb   : > { %7156 = vmatprep.subr.bf16.mxu1 %v12762_v25  ;;  %v12770_v25 = vld [vmem:[#allocation22_spill] sm:$0xff] }
  0xdd   : > { %7078 = vmatpush1.bf16.msra.mxu0 %v12763_v62 }
  0xde   : > { %7158 = vmatpush1.bf16.msra.mxu1 %v12764_v11  ;;  %7080 = vmatprep.subr.bf16.mxu0 %v12765_v15  ;;  %v12773_v15 = vld [vmem:[#allocation25_spill] sm:$0xff] }
  0xdf   : > { %7160 = vmatprep.subr.bf16.mxu1 %v12766_v43  ;;  %v12771_v43 = vld [vmem:[#allocation23_spill] sm:$0xff] }
  0xe0   : > { %6173 = vmatmul.mubr.msk.f32.vlgmr.msra.gmra.mrb[8].mxu0 %vm263_vm0, %v9295_v34 }
  0xe1   : > { %7082 = vmatpush1.bf16.msra.mxu0 %v12767_v16  ;;  %6185 = vmatmul.mubr.msk.f32.vlgmr.msra.gmra.mrb[8].mxu1 %vm263_vm0, %v9295_v34  ;;  %v12772_v16 = vld [vmem:[#allocation24_spill] sm:$0xff] }
  0xe2   : > { %7162 = vmatpush1.bf16.msra.mxu1 %v12768_v24  ;;  %7084 = vmatprep.subr.bf16.mxu0 %v12769_v33  ;;  %v12774_v24 = vld [vmem:[#allocation26_spill] sm:$0xff]  ;;  %v12776_v33 = vld [vmem:[#allocation29_spill] sm:$0xff] }
  0xe3   : > { %7164 = vmatprep.subr.bf16.mxu1 %v12770_v25  ;;  %2290 = vmatprep.mubr.f32.mxu0 %v12709_v6  ;;  %v12775_v25 = vld [vmem:[#allocation28_spill] sm:$0xff] }
  0xe4   : > { %2695 = vmatprep.mubr.f32.mxu1 %v12709_v6  ;;  %6174 = vmatmul.mubr.msk.f32.gmra.mrb[10].mxu0 %vm263_vm0, %v9306_v50 }
  0xe5   : > { %7086 = vmatpush1.bf16.msra.mxu0 %v12771_v43  ;;  %6186 = vmatmul.mubr.msk.f32.gmra.mrb[10].mxu1 %vm263_vm0, %v9306_v50  ;;  %v12777_v43 = vld [vmem:[#allocation30_spill] sm:$0xff] }
  0xe6   : > { %7166 = vmatpush1.bf16.msra.mxu1 %v12772_v16  ;;  %7088 = vmatprep.subr.bf16.mxu0 %v12773_v15 }
  0xe7   : > { %7168 = vmatprep.subr.bf16.mxu1 %v12774_v24  ;;  %2365 = vmatprep.mubr.f32.mxu0 %v12709_v6 }
  0xe8   : > { %2770 = vmatprep.mubr.f32.mxu1 %v12709_v6 }
  0xe9   : > { %7090 = vmatpush1.bf16.msra.mxu0 %v12743_v12 }
  0xea   : > { %7170 = vmatpush1.bf16.msra.mxu1 %v12775_v25  ;;  %7092 = vmatprep.subr.bf16.mxu0 %v12776_v33 }
  0xeb   : > { %7172 = vmatprep.subr.bf16.mxu1 %v12777_v43 }
  0xed   : > { %7094 = vmatpush1.bf16.msra.mxu0 %v12747_v45 }
  0xee   : > { %7174 = vmatpush1.bf16.msra.mxu1 %v12748_v4  ;;  %7096 = vmatprep.subr.bf16.mxu0 %v12749_v63 }
  0xef   : > { %7176 = vmatprep.subr.bf16.mxu1 %v12750_v48 }
  0xf0   : > { %6175 = vmatmul.mubr.msk.f32.vlgmr.msra.gmra.mrb[8].mxu0 %vm263_vm0, %v9441_v59 }
  0xf1   : > { %7098 = vmatpush1.bf16.msra.mxu0 %v12751_v60  ;;  %6187 = vmatmul.mubr.msk.f32.vlgmr.msra.gmra.mrb[8].mxu1 %vm263_vm0, %v9441_v59  ;;  %v12778_v60 = vld [vmem:[#allocation41_spill] sm:$0xff] }
  0xf2   : > { %7178 = vmatpush1.bf16.msra.mxu1 %v12752_v5  ;;  %7100 = vmatprep.subr.bf16.mxu0 %v12753_v20 }
  0xf3   : > { %7180 = vmatprep.subr.bf16.mxu1 %v12754_v49  ;;  %2371 = vmatprep.mubr.f32.mxu0 %v12709_v6  ;;  %v12779_v49 = vld [vmem:[#allocation42_spill] sm:$0xff] }
  0xf4   : > { %2776 = vmatprep.mubr.f32.mxu1 %v12709_v6  ;;  %6176 = vmatmul.mubr.msk.f32.gmra.mrb[10].mxu0 %vm263_vm0, %v9452_v7 }
  0xf5   : > { %7102 = vmatpush1.bf16.msra.mxu0 %v9215_v30  ;;  %6188 = vmatmul.mubr.msk.f32.gmra.mrb[10].mxu1 %vm263_vm0, %v9452_v7 }
  0xf6   : > { %7182 = vmatpush1.bf16.msra.mxu1 %v12778_v60  ;;  %7104 = vmatprep.subr.bf16.mxu0 %v9224_v54  ;;  %v9587_v60 = vld [vmem:[%s8664_s27 + $0x21] sm:$0xff] }
  0xf7   : > { %7184 = vmatprep.subr.bf16.mxu1 %v9236_v36  ;;  %2454 = vmatprep.mubr.f32.mxu0 %v12709_v6 }
  0xf8   : > { %2851 = vmatprep.mubr.f32.mxu1 %v12709_v6 }
  0xf9   : > { %7106 = vmatpush1.bf16.msra.mxu0 %v9258_v28 }
  0xfa   : > { %7186 = vmatpush1.bf16.msra.mxu1 %v9264_v42  ;;  %7108 = vmatprep.subr.bf16.mxu0 %v12779_v49  ;;  %v9598_v49 = vld [vmem:[%s8664_s27 + $0x29] sm:$0x7f] }
  0xfb   : > { %7188 = vmatprep.subr.bf16.mxu1 %v9275_v61 }
  0xfd   : > { %7110 = vmatpush1.bf16.msra.mxu0 %v9286_v14 }
  0xfe   : > { %7190 = vmatpush1.bf16.msra.mxu1 %v9290_v47  ;;  %7192 = vmatprep.subr.bf16.mxu0 %v8500_v3  ;;  %v12780_v3 = vld [vmem:[#allocation2_spill] sm:$0xff] }
  0xff   : > { %7272 = vmatprep.subr.bf16.mxu1 %v8513_v8  ;;  %v12781_v8 = vld [vmem:[#allocation35_spill] sm:$0xff] }
 0x100   : > { %6179 = vmatmul.mubr.msk.f32.vlgmr.msra.gmra.mrb[8].mxu0 %vm263_vm0, %v9587_v60 }
 0x101   : > { %6189 = vmatmul.mubr.msk.f32.vlgmr.msra.gmra.mrb[8].mxu1 %vm263_vm0, %v9587_v60  ;;  %7194 = vmatpush1.bf16.msra.mxu0 %v8515_v9  ;;  %v12782_v9 = vld [vmem:[#allocation3_spill] sm:$0xff] }
 0x102   : > { %7274 = vmatpush1.bf16.msra.mxu1 %v8533_v13  ;;  %2460 = vmatprep.mubr.f32.mxu0 %v12709_v6  ;;  %v12783_v13 = vld [vmem:[#allocation4_spill] sm:$0xff] }
 0x103   : > { %2857 = vmatprep.mubr.f32.mxu1 %v12709_v6  ;;  %7196 = vmatprep.subr.bf16.mxu0 %v8546_v17  ;;  %v12784_v17 = vld [vmem:[#allocation5_spill] sm:$0xff] }
 0x104   : > { %6180 = vmatmul.mubr.msk.f32.gmra.mrb[10].mxu0 %vm263_vm0, %v9598_v49  ;;  %7276 = vmatprep.subr.bf16.mxu1 %v8548_v18  ;;  %v12785_v18 = vld [vmem:[#allocation6_spill] sm:$0xff] }
 0x105   : > { %6190 = vmatmul.mubr.msk.f32.gmra.mrb[10].mxu1 %vm263_vm0, %v9598_v49  ;;  %7198 = vmatpush1.bf16.msra.mxu0 %v8560_v22  ;;  %v12786_v22 = vld [vmem:[#allocation40_spill] sm:$0xff] }
 0x106   : > { %7278 = vmatpush1.bf16.msra.mxu1 %v8573_v26  ;;  %7200 = vmatprep.subr.bf16.mxu0 %v8575_v27  ;;  %v12787_v26 = vld [vmem:[#allocation7_spill] sm:$0xff]  ;;  %v12788_v27 = vld [vmem:[#allocation8_spill] sm:$0xff] }
 0x107   : > { %7280 = vmatprep.subr.bf16.mxu1 %v8592_v31  ;;  %2936 = vmatprep.mubr.f32.mxu0 %v12709_v6  ;;  %v12789_v31 = vld [vmem:[#allocation9_spill] sm:$0xff] }
 0x108   : > { %3345 = vmatprep.mubr.f32.mxu1 %v12709_v6 }
 0x109   : > { %7202 = vmatpush1.bf16.msra.mxu0 %v8604_v35  ;;  %v12790_v35 = vld [vmem:[#allocation10_spill] sm:$0xff] }
 0x10a   : > { %7282 = vmatpush1.bf16.msra.mxu1 %v8617_v39  ;;  %7204 = vmatprep.subr.bf16.mxu0 %v8619_v40  ;;  %v12791_v39 = vld [vmem:[#allocation12_spill] sm:$0xff]  ;;  %v12792_v40 = vld [vmem:[#allocation13_spill] sm:$0xff] }
 0x10b   : > { %7284 = vmatprep.subr.bf16.mxu1 %v8631_v44  ;;  %v12793_v44 = vld [vmem:[#allocation14_spill] sm:$0xff] }
 0x10d   : > { %7206 = vmatpush1.bf16.msra.mxu0 %v8653_v51  ;;  %v12794_v51 = vld [vmem:[#allocation17_spill] sm:$0xff] }
 0x10e   : > { %7286 = vmatpush1.bf16.msra.mxu1 %v8657_v52  ;;  %7208 = vmatprep.subr.bf16.mxu0 %v8659_v53  ;;  %v12795_v52 = vld [vmem:[#allocation18_spill] sm:$0xff]  ;;  %v12796_v53 = vld [vmem:[#allocation19_spill] sm:$0xff] }
 0x10f   : > { %7288 = vmatprep.subr.bf16.mxu1 %v8676_v57  ;;  %v12797_v57 = vld [vmem:[#allocation20_spill] sm:$0xff] }
 0x110   : > { %6191 = vmatmul.mubr.msk.f32.vlgmr.msra.gmra.mrb[12].mxu0 %vm263_vm0, %v9295_v34 }
 0x111   : > { %7210 = vmatpush1.bf16.msra.mxu0 %v8697_v0  ;;  %6203 = vmatmul.mubr.msk.f32.vlgmr.msra.gmra.mrb[12].mxu1 %vm263_vm0, %v9295_v34  ;;  %v12798_v0 = vld [vmem:[#allocation21_spill] sm:$0xff]  ;;  %v6470_v34 = vld [vmem:[%s12408_s3 + $0x488] sm:$0xff] }
 0x112   : > { %7290 = vmatpush1.bf16.msra.mxu1 %v8701_v1  ;;  %7212 = vmatprep.subr.bf16.mxu0 %v8703_v2  ;;  %v12799_v2 = vld [vmem:[#allocation22_spill] sm:$0xff] }
 0x113   : > { %7292 = vmatprep.subr.bf16.mxu1 %v8715_v10  ;;  %2942 = vmatprep.mubr.f32.mxu0 %v12709_v6 }
 0x114   : > { %3351 = vmatprep.mubr.f32.mxu1 %v12709_v6  ;;  %6192 = vmatmul.mubr.msk.f32.gmra.mrb[14].mxu0 %vm263_vm0, %v9306_v50 }
 0x115   : > { %7214 = vmatpush1.bf16.msra.mxu0 %v8737_v19  ;;  %6204 = vmatmul.mubr.msk.f32.gmra.mrb[14].mxu1 %vm263_vm0, %v9306_v50 }
 0x116   : > { %7294 = vmatpush1.bf16.msra.mxu1 %v8744_v21  ;;  %7216 = vmatprep.subr.bf16.mxu0 %v8746_v23 }
 0x117   : > { %7296 = vmatprep.subr.bf16.mxu1 %v8758_v29  ;;  %3013 = vmatprep.mubr.f32.mxu0 %v12709_v6  ;;  %v12800_v29 = vld [vmem:[#allocation23_spill] sm:$0xff] }
 0x118   : > { %3422 = vmatprep.mubr.f32.mxu1 %v12709_v6 }
 0x119   : > { %7218 = vmatpush1.bf16.msra.mxu0 %v8780_v37 }
 0x11a   : > { %7298 = vmatpush1.bf16.msra.mxu1 %v8786_v38  ;;  %7220 = vmatprep.subr.bf16.mxu0 %v8788_v41 }
 0x11b   : > { %7300 = vmatprep.subr.bf16.mxu1 %v8800_v46 }
 0x11d   : > { %7222 = vmatpush1.bf16.msra.mxu0 %v8820_v55 }
 0x11e   : > { %7302 = vmatpush1.bf16.msra.mxu1 %v8824_v56  ;;  %7224 = vmatprep.subr.bf16.mxu0 %v8826_v58  ;;  %v12801_v58 = vld [vmem:[#allocation36_spill] sm:$0xff] }
 0x11f   : > { %7304 = vmatprep.subr.bf16.mxu1 %v12780_v3 }
 0x120   : > { %6193 = vmatmul.mubr.msk.f32.vlgmr.msra.gmra.mrb[12].mxu0 %vm263_vm0, %v12781_v8 }
 0x121   : > { %7226 = vmatpush1.bf16.msra.mxu0 %v12782_v9  ;;  %6205 = vmatmul.mubr.msk.f32.vlgmr.msra.gmra.mrb[12].mxu1 %vm263_vm0, %v12781_v8  ;;  %v6472_v9 = vld [vmem:[%s12408_s3 + $0x498] sm:$0xff] }
 0x122   : > { %7306 = vmatpush1.bf16.msra.mxu1 %v12783_v13  ;;  %7228 = vmatprep.subr.bf16.mxu0 %v12784_v17  ;;  %v6474_v13 = vld [vmem:[%s12408_s3 + $0x4a8] sm:$0xff]  ;;  %v6221_v17 = vld [vmem:[%s12408_s3 + $0x320] sm:$0xff] }
 0x123   : > { %7308 = vmatprep.subr.bf16.mxu1 %v12785_v18  ;;  %3019 = vmatprep.mubr.f32.mxu0 %v12709_v6  ;;  %v9852_v18 = vpack.c.bf16 %v6474_v13, %v6472_v9  ;;  %v6238_v9 = vld [vmem:[%s12408_s3 + $0x3a8] sm:$0xff]  ;;  %v6240_v13 = vld [vmem:[%s12408_s3 + $0x3b8] sm:$0xff] }
 0x124   : > { %3428 = vmatprep.mubr.f32.mxu1 %v12709_v6  ;;  %6194 = vmatmul.mubr.msk.f32.gmra.mrb[14].mxu0 %vm263_vm0, %v12786_v22 }
 0x125   : > { %7230 = vmatpush1.bf16.msra.mxu0 %v12787_v26  ;;  %6206 = vmatmul.mubr.msk.f32.gmra.mrb[14].mxu1 %vm263_vm0, %v12786_v22  ;;  %v6223_v22 = vld [vmem:[%s12408_s3 + $0x330] sm:$0xff] }
 0x126   : > { %7310 = vmatpush1.bf16.msra.mxu1 %v12788_v27  ;;  %7232 = vmatprep.subr.bf16.mxu0 %v12789_v31  ;;  %v6471_v26 = vld [vmem:[%s12408_s3 + $0x490] sm:$0xff]  ;;  %v6473_v27 = vld [vmem:[%s12408_s3 + $0x4a0] sm:$0xff]  ;;  %v9864_v31 = vpack.c.bf16 %v6223_v22, %v6221_v17  ;;  %v6488_v17 = vld [vmem:[%s12408_s3 + $0x518] sm:$0xff] }
 0x127   : > { %7312 = vmatprep.subr.bf16.mxu1 %v12790_v35  ;;  %3090 = vmatprep.mubr.f32.mxu0 %v12709_v6  ;;  %v6226_v35 = vld [vmem:[%s12408_s3 + $0x348] sm:$0xff] }
 0x128   : > { %3499 = vmatprep.mubr.f32.mxu1 %v12709_v6  ;;  %v6490_v22 = vld [vmem:[%s12408_s3 + $0x528] sm:$0xff] }
 0x129   : > { %7234 = vmatpush1.bf16.msra.mxu0 %v12759_v32  ;;  %v6200_v32 = vld [vmem:[%s8664_s27 + $0x39] sm:$0x7f] }
 0x12a   : > { %7314 = vmatpush1.bf16.msra.mxu1 %v12791_v39  ;;  %7236 = vmatprep.subr.bf16.mxu0 %v12792_v40  ;;  %v6228_v39 = vld [vmem:[%s12408_s3 + $0x358] sm:$0xff] }
 0x12b   : > { %7316 = vmatprep.subr.bf16.mxu1 %v12793_v44  ;;  %v6476_v40 = vld [vmem:[%s12408_s3 + $0x4b8] sm:$0xff]  ;;  %v9877_v44 = vpack.c.bf16 %v6473_v27, %v6471_v26 }
 0x12d   : > { %7238 = vmatpush1.bf16.msra.mxu0 %v12763_v62  ;;  %v12802_v62 = vld [vmem:[#allocation39_spill] sm:$0xff] }
 0x12e   : > { %7318 = vmatpush1.bf16.msra.mxu1 %v12764_v11  ;;  %7240 = vmatprep.subr.bf16.mxu0 %v12794_v51  ;;  %v6224_v11 = vld [vmem:[%s12408_s3 + $0x338] sm:$0xff]  ;;  %v9879_v51 = vpack.c.bf16 %v6228_v39, %v6226_v35  ;;  %v9990_v35 = vpack.c.bf16 %v6240_v13, %v6238_v9  ;;  %v6237_v39 = vld [vmem:[%s12408_s3 + $0x3a0] sm:$0xff] }
 0x12f   : > { %7320 = vmatprep.subr.bf16.mxu1 %v12795_v52  ;;  %v6478_v52 = vld [vmem:[%s12408_s3 + $0x4c8] sm:$0xff]  ;;  %v6245_v13 = vld [vmem:[%s12408_s3 + $0x3e0] sm:$0xff] }
 0x130   : > { %6195 = vmatmul.mubr.msk.f32.vlgmr.msra.gmra.mrb[12].mxu0 %vm263_vm0, %v9441_v59 }
 0x131   : > { %7242 = vmatpush1.bf16.msra.mxu0 %v12796_v53  ;;  %6207 = vmatmul.mubr.msk.f32.vlgmr.msra.gmra.mrb[12].mxu1 %vm263_vm0, %v9441_v59  ;;  %v6225_v53 = vld [vmem:[%s12408_s3 + $0x340] sm:$0xff] }
 0x132   : > { %7322 = vmatpush1.bf16.msra.mxu1 %v12797_v57  ;;  %7244 = vmatprep.subr.bf16.mxu0 %v12798_v0  ;;  %v6227_v57 = vld [vmem:[%s12408_s3 + $0x350] sm:$0xff]  ;;  %v9891_v0 = vpack.c.bf16 %v6478_v52, %v6476_v40 }
 0x133   : > { %v9686_v1 = vpop.f32.mrb[0].mxu0  ;;  %7324 = vmatprep.subr.bf16.mxu1 %v12799_v2  ;;  %3096 = vmatprep.mubr.f32.mxu0 %v12709_v6  ;;  %v6475_v2 = vld [vmem:[%s12408_s3 + $0x4b0] sm:$0xff] }
 0x134   : > { %v9690_v10 = vpop.f32.mrb[0].mxu1  ;;  %v9692_v19 = vpop.f32.mrb[1].mxu0  ;;  %3505 = vmatprep.mubr.f32.mxu1 %v12709_v6  ;;  %6196 = vmatmul.mubr.msk.f32.gmra.mrb[14].mxu0 %vm263_vm0, %v9452_v7  ;;  %v6239_v40 = vld [vmem:[%s12408_s3 + $0x3b0] sm:$0xff] }
 0x135   : > { %v1232_v21 = vmax.f32 %v9686_v1, %v9690_v10  ;;  %v9699_v23 = vpop.f32.mrb[1].mxu1  ;;  %7246 = vmatpush1.bf16.msra.mxu0 %v12800_v29  ;;  %6208 = vmatmul.mubr.msk.f32.gmra.mrb[14].mxu1 %vm263_vm0, %v9452_v7  ;;  %v6477_v29 = vld [vmem:[%s12408_s3 + $0x4c0] sm:$0xff]  ;;  %v6487_v52 = vld [vmem:[%s12408_s3 + $0x510] sm:$0xff] }
 0x136   : > { %v1233_v37 = vmax.f32 %v9692_v19, %v9699_v23  ;;  %7326 = vmatpush1.bf16.msra.mxu1 %v12772_v16  ;;  %7248 = vmatprep.subr.bf16.mxu0 %v12773_v15  ;;  %v12803_v15 = vld [vmem:[#allocation41_spill] sm:$0xff]  ;;  %v12804_v16 = vld [vmem:[#allocation42_spill] sm:$0xff] }
 0x137   : > { %v9708_v38 = vpop.f32.mrb[2].mxu0  ;;  %7328 = vmatprep.subr.bf16.mxu1 %v12774_v24  ;;  %3171 = vmatprep.mubr.f32.mxu0 %v12709_v6  ;;  %v6199_v24 = vld [vmem:[%s8664_s27 + $0x31] sm:$0xff] }
 0x138   : > { %v9712_v41 = vpop.f32.mrb[2].mxu1  ;;  %v9714_v46 = vpop.f32.mrb[3].mxu0  ;;  %3580 = vmatprep.mubr.f32.mxu1 %v12709_v6 }
 0x139   : > { %v1234_v7 = vmax.f32 %v9708_v38, %v9712_v41  ;;  %v9719_v55 = vpop.f32.mrb[3].mxu1  ;;  %7250 = vmatpush1.bf16.msra.mxu0 %v12743_v12  ;;  %v6250_v38 = vld [vmem:[%s12408_s3 + $0x408] sm:$0xff]  ;;  %v6252_v41 = vld [vmem:[%s12408_s3 + $0x418] sm:$0xff] }
 0x13a   : > { %v1235_v56 = vmax.f32 %v9714_v46, %v9719_v55  ;;  %7330 = vmatpush1.bf16.msra.mxu1 %v12775_v25  ;;  %7252 = vmatprep.subr.bf16.mxu0 %v12776_v33  ;;  %v6215_v25 = vld [vmem:[%s12408_s3 + $0x2f0] sm:$0xff]  ;;  %v6500_v46 = vld [vmem:[%s12408_s3 + $0x578] sm:$0xff]  ;;  %v6502_v55 = vld [vmem:[%s12408_s3 + $0x588] sm:$0xff] }
 0x13b   : > { %7332 = vmatprep.subr.bf16.mxu1 %v12777_v43  ;;  %v6222_v43 = vld [vmem:[%s12408_s3 + $0x328] sm:$0xff] }
 0x13c   : > { %v9841_v8 = vpack.c.bf16 %v6224_v11, %v6222_v43  ;;  %v6485_v11 = vld [vmem:[%s12408_s3 + $0x500] sm:$0xff] }
 0x13d   : > { %7254 = vmatpush1.bf16.msra.mxu0 %v12747_v45  ;;  %v6214_v45 = vld [vmem:[%s12408_s3 + $0x2e8] sm:$0xff] }
 0x13e   : > { %7334 = vmatpush1.bf16.msra.mxu1 %v12748_v4  ;;  %7256 = vmatprep.subr.bf16.mxu0 %v12749_v63  ;;  %v6217_v4 = vld [vmem:[%s12408_s3 + $0x300] sm:$0xff] }
 0x13f   : > { %7336 = vmatprep.subr.bf16.mxu1 %v12750_v48  ;;  %v6216_v48 = vld [vmem:[%s12408_s3 + $0x2f8] sm:$0xff] }
 0x140   : > { %6197 = vmatmul.mubr.msk.f32.vlgmr.msra.gmra.mrb[12].mxu0 %vm263_vm0, %v9587_v60  ;;  %v9774_v59 = vpack.c.bf16 %v6216_v48, %v6214_v45  ;;  %v6229_v48 = vld [vmem:[%s12408_s3 + $0x360] sm:$0xff] }
 0x141   : > { %7258 = vmatpush1.bf16.msra.mxu0 %v12801_v58  ;;  %6209 = vmatmul.mubr.msk.f32.vlgmr.msra.gmra.mrb[12].mxu1 %vm263_vm0, %v9587_v60  ;;  %v6219_v60 = vld [vmem:[%s12408_s3 + $0x310] sm:$0xff]  ;;  %v6230_v58 = vld [vmem:[%s12408_s3 + $0x368] sm:$0xff] }
 0x142   : > { %7338 = vmatpush1.bf16.msra.mxu1 %v12752_v5  ;;  %7260 = vmatprep.subr.bf16.mxu0 %v12753_v20  ;;  %v6467_v5 = vld [vmem:[%s12408_s3 + $0x470] sm:$0xff]  ;;  %v9826_v12 = vpack.c.bf16 %v6219_v60, %v6217_v4  ;;  %v6469_v20 = vld [vmem:[%s12408_s3 + $0x480] sm:$0xff] }
 0x143   : > { %7340 = vmatprep.subr.bf16.mxu1 %v12802_v62  ;;  %3177 = vmatprep.mubr.f32.mxu0 %v12709_v6  ;;  %v9839_v3 = vpack.c.bf16 %v6469_v20, %v6467_v5  ;;  %v6232_v62 = vld [vmem:[%s12408_s3 + $0x378] sm:$0xff]  ;;  %v6233_v60 = vld [vmem:[%s12408_s3 + $0x380] sm:$0xff]  ;;  %v6235_v5 = vld [vmem:[%s12408_s3 + $0x390] sm:$0xff] }
 0x144   : > { %3586 = vmatprep.mubr.f32.mxu1 %v12709_v6  ;;  %6198 = vmatmul.mubr.msk.f32.gmra.mrb[14].mxu0 %vm263_vm0, %v9598_v49  ;;  %v9918_v45 = vpack.c.bf16 %v6232_v62, %v6230_v58  ;;  %v6483_v20 = vld [vmem:[%s12408_s3 + $0x4f0] sm:$0xff]  ;;  %v9984_v26 = vpack.c.bf16 %v6235_v5, %v6233_v60  ;;  %v6492_v58 = vld [vmem:[%s12408_s3 + $0x538] sm:$0xff]  ;;  %v6494_v62 = vld [vmem:[%s12408_s3 + $0x548] sm:$0xff] }
 0x145   : > { %7262 = vmatpush1.bf16.msra.mxu0 %v9215_v30  ;;  %6210 = vmatmul.mubr.msk.f32.gmra.mrb[14].mxu1 %vm263_vm0, %v9598_v49  ;;  %v6464_v49 = vld [vmem:[%s12408_s3 + $0x458] sm:$0xff]  ;;  %v6463_v30 = vld [vmem:[%s12408_s3 + $0x450] sm:$0xff]  ;;  %v9988_v27 = vpack.c.bf16 %v6485_v11, %v6483_v20  ;;  %v6498_v5 = vld [vmem:[%s12408_s3 + $0x568] sm:$0xff] }
 0x146   : > { %7342 = vmatpush1.bf16.msra.mxu1 %v12803_v15  ;;  %7264 = vmatprep.subr.bf16.mxu0 %v9224_v54  ;;  %v6466_v54 = vld [vmem:[%s12408_s3 + $0x468] sm:$0xff]  ;;  %v6480_v15 = vld [vmem:[%s12408_s3 + $0x4d8] sm:$0xff] }
 0x147   : > { %7344 = vmatprep.subr.bf16.mxu1 %v9236_v36  ;;  %3260 = vmatprep.mubr.f32.mxu0 %v12709_v6  ;;  %v9785_v33 = vpack.c.bf16 %v6466_v54, %v6464_v49  ;;  %v6465_v36 = vld [vmem:[%s12408_s3 + $0x460] sm:$0xff]  ;;  %v6231_v49 = vld [vmem:[%s12408_s3 + $0x370] sm:$0xff]  ;;  %v6496_v60 = vld [vmem:[%s12408_s3 + $0x558] sm:$0xff] }
 0x148   : > { %3661 = vmatprep.mubr.f32.mxu1 %v12709_v6  ;;  %v6479_v54 = vld [vmem:[%s12408_s3 + $0x4d0] sm:$0xff] }
 0x149   : > { %7266 = vmatpush1.bf16.msra.mxu0 %v9258_v28  ;;  %v6218_v28 = vld [vmem:[%s12408_s3 + $0x308] sm:$0xff] }
 0x14a   : > { %7346 = vmatpush1.bf16.msra.mxu1 %v9264_v42  ;;  %7268 = vmatprep.subr.bf16.mxu0 %v12804_v16  ;;  %v6482_v16 = vld [vmem:[%s12408_s3 + $0x4e8] sm:$0xff] }
 0x14b   : > { %7348 = vmatprep.subr.bf16.mxu1 %v9275_v61  ;;  %v9799_v61 = vpack.c.bf16 %v6465_v36, %v6463_v30  ;;  %v6234_v30 = vld [vmem:[%s12408_s3 + $0x388] sm:$0xff]  ;;  %v6236_v36 = vld [vmem:[%s12408_s3 + $0x398] sm:$0xff] }
 0x14c   : > { %v9954_v4 = vpack.c.bf16 %v6236_v36, %v6234_v30  ;;  %v10038_v30 = vpack.c.bf16 %v6494_v62, %v6492_v58  ;;  %v6493_v36 = vld [vmem:[%s12408_s3 + $0x540] sm:$0xff] }
 0x14d   : > { %7270 = vmatpush1.bf16.msra.mxu0 %v9286_v14  ;;  %v6220_v14 = vld [vmem:[%s12408_s3 + $0x318] sm:$0xff] }
 0x14e   : > { %7350 = vmatpush1.bf16.msra.mxu1 %v9290_v47  ;;  %7352 = vmatprep.subr.bf16.mxu0 %v9774_v59  ;;  %v6468_v47 = vld [vmem:[%s12408_s3 + $0x478] sm:$0xff]  ;;  %v9812_v50 = vpack.c.bf16 %v6220_v14, %v6218_v28  ;;  %v6486_v14 = vld [vmem:[%s12408_s3 + $0x508] sm:$0xff] }
 0x14f   : > { %7572 = vmatprep.subr.bf16.mxu1 %v9785_v33  ;;  %v9814_v63 = vpack.c.bf16 %v6470_v34, %v6468_v47  ;;  %v6484_v28 = vld [vmem:[%s12408_s3 + $0x4f8] sm:$0xff]  ;;  %v9948_v47 = vpack.c.bf16 %v6231_v49, %v6229_v48  ;;  %v6241_v49 = vld [vmem:[%s12408_s3 + $0x3c0] sm:$0xff] }
 0x150   : > { %6201 = vmatmul.mubr.msk.f32.vlgmr.msra.gmra.mrb[12].mxu0 %vm263_vm0, %v6199_v24  ;;  %v9966_v43 = vpack.c.bf16 %v6486_v14, %v6484_v28  ;;  %v6246_v28 = vld [vmem:[%s12408_s3 + $0x3e8] sm:$0xff]  ;;  %v6248_v14 = vld [vmem:[%s12408_s3 + $0x3f8] sm:$0xff] }
 0x151   : > { %6211 = vmatmul.mubr.msk.f32.vlgmr.msra.gmra.mrb[12].mxu1 %vm263_vm0, %v6199_v24  ;;  %3266 = vmatprep.mubr.f32.mxu0 %v12709_v6  ;;  %v9912_v24 = vpack.c.bf16 %v6227_v57, %v6225_v53  ;;  %v10002_v53 = vpack.c.bf16 %v6490_v22, %v6488_v17  ;;  %v6489_v57 = vld [vmem:[%s12408_s3 + $0x520] sm:$0xff]  ;;  %v10062_v9 = vpack.c.bf16 %v6248_v14, %v6246_v28  ;;  %v6247_v17 = vld [vmem:[%s12408_s3 + $0x3f0] sm:$0xff] }
 0x152   : > { %3667 = vmatprep.mubr.f32.mxu1 %v12709_v6  ;;  %v6213_v6 = vld [vmem:[%s12408_s3 + $0x2e0] sm:$0xff]  ;;  %7574 = vmatpush1.bf16.msra.mxu1 %v9799_v61  ;;  %v10071_v22 = vpack.c.bf16 %v6498_v5, %v6496_v60  ;;  %v6251_v60 = vld [vmem:[%s12408_s3 + $0x410] sm:$0xff]  ;;  %v10145_v5 = vpack.c.bf16 %v6502_v55, %v6500_v46 }
 0x153   : > { %v9787_v42 = vpack.c.bf16 %v6215_v25, %v6213_v6  ;;  %7576 = vmatprep.subr.bf16.mxu1 %v9814_v63  ;;  %v9930_v6 = vpack.c.bf16 %v6482_v16, %v6480_v15  ;;  %v6481_v25 = vld [vmem:[%s12408_s3 + $0x4e0] sm:$0xff]  ;;  %v10020_v15 = vpack.c.bf16 %v6239_v40, %v6237_v39  ;;  %v10024_v16 = vpack.c.bf16 %v6489_v57, %v6487_v52  ;;  %v6495_v39 = vld [vmem:[%s12408_s3 + $0x550] sm:$0xff] }
 0x154   : > { %6202 = vmatmul.mubr.msk.f32.gmra.mrb[14].mxu0 %vm263_vm0, %v6200_v32  ;;  %v9952_v34 = vpack.c.bf16 %v6481_v25, %v6479_v54  ;;  %v6243_v54 = vld [vmem:[%s12408_s3 + $0x3d0] sm:$0xff]  ;;  %12807 = vst [vmem:[#allocation32_spill] sm:$0xff] %v10062_v9  ;;  %12808 = vst [vmem:[#allocation33_spill] sm:$0xff] %v10071_v22  ;;  %v6497_v40 = vld [vmem:[%s12408_s3 + $0x560] sm:$0xff]  ;;  %v10080_v52 = vpack.c.bf16 %v6247_v17, %v6245_v13 }
 0x155   : > { %6212 = vmatmul.mubr.msk.f32.gmra.mrb[14].mxu1 %vm263_vm0, %v6200_v32  ;;  %7354 = vmatpush1.bf16.msra.mxu0 %v9787_v42  ;;  %v9916_v32 = vpack.c.bf16 %v6477_v29, %v6475_v2  ;;  %v6242_v2 = vld [vmem:[%s12408_s3 + $0x3c8] sm:$0xff]  ;;  %v6244_v29 = vld [vmem:[%s12408_s3 + $0x3d8] sm:$0xff]  ;;  %v6491_v25 = vld [vmem:[%s12408_s3 + $0x530] sm:$0xff]  ;;  %v10056_v20 = vpack.c.bf16 %v6243_v54, %v6241_v49  ;;  %v10084_v57 = vpack.c.bf16 %v6497_v40, %v6495_v39 }
 0x156   : > { %7356 = vmatprep.subr.bf16.mxu0 %v9812_v50  ;;  %7578 = vmatpush1.bf16.msra.mxu1 %v9839_v3  ;;  %v10026_v48 = vpack.c.bf16 %v6244_v29, %v6242_v2  ;;  %v10060_v11 = vpack.c.bf16 %v6493_v36, %v6491_v25  ;;  %12809 = vst [vmem:[#allocation34_spill] sm:$0xff] %v10080_v52  ;;  %12812 = vst [vmem:[#allocation11_spill] sm:$0xff] %v10145_v5  ;;  %v6499_v17 = vld [vmem:[%s12408_s3 + $0x570] sm:$0xff]  ;;  %v6501_v39 = vld [vmem:[%s12408_s3 + $0x580] sm:$0xff] }
 0x157   : > { %7580 = vmatprep.subr.bf16.mxu1 %v9852_v18  ;;  %12805 = vst [vmem:[#allocation27_spill] sm:$0xff] %v10056_v20  ;;  %12810 = vst [vmem:[#allocation37_spill] sm:$0xff] %v10084_v57  ;;  %v10156_v40 = vpack.c.bf16 %v6501_v39, %v6499_v17  ;;  %v6255_v46 = vld [vmem:[%s12408_s3 + $0x430] sm:$0xff]  ;;  %v6505_v17 = vld [vmem:[%s12408_s3 + $0x5a0] sm:$0xff] }
 0x158   : > { %12806 = vst [vmem:[#allocation31_spill] sm:$0xff] %v10060_v11 }
 0x159   : > { %7358 = vmatpush1.bf16.msra.mxu0 %v9826_v12  ;;  %12814 = vst [vmem:[#allocation16_spill] sm:$0xff] %v10156_v40 }
 0x15a   : > { %7360 = vmatprep.subr.bf16.mxu0 %v9841_v8  ;;  %7582 = vmatpush1.bf16.msra.mxu1 %v9877_v44 }
 0x15b   : > { %7584 = vmatprep.subr.bf16.mxu1 %v9891_v0 }
 0x15d   : > { %7362 = vmatpush1.bf16.msra.mxu0 %v9864_v31 }
 0x15e   : > { %7364 = vmatprep.subr.bf16.mxu0 %v9879_v51  ;;  %7586 = vmatpush1.bf16.msra.mxu1 %v9916_v32 }
 0x15f   : > { %7588 = vmatprep.subr.bf16.mxu1 %v9930_v6 }
 0x161   : > { %7366 = vmatpush1.bf16.msra.mxu0 %v9912_v24 }
 0x162   : > { %7368 = vmatprep.subr.bf16.mxu0 %v9918_v45  ;;  %7590 = vmatpush1.bf16.msra.mxu1 %v9952_v34 }
 0x163   : > { %7592 = vmatprep.subr.bf16.mxu1 %v9966_v43 }
 0x165   : > { %7370 = vmatpush1.bf16.msra.mxu0 %v9948_v47 }
 0x166   : > { %7372 = vmatprep.subr.bf16.mxu0 %v9954_v4  ;;  %7594 = vmatpush1.bf16.msra.mxu1 %v9988_v27 }
 0x167   : > { %7596 = vmatprep.subr.bf16.mxu1 %v10002_v53 }
 0x169   : > { %7374 = vmatpush1.bf16.msra.mxu0 %v9984_v26 }
 0x16a   : > { %7376 = vmatprep.subr.bf16.mxu0 %v9990_v35  ;;  %7598 = vmatpush1.bf16.msra.mxu1 %v10024_v16 }
 0x16b   : > { %7600 = vmatprep.subr.bf16.mxu1 %v10038_v30 }
 0x16d   : > { %7378 = vmatpush1.bf16.msra.mxu0 %v10020_v15 }
 0x16e   : > { %7380 = vmatprep.subr.bf16.mxu0 %v10026_v48  ;;  %7602 = vmatpush1.bf16.msra.mxu1 %v10060_v11 }
 0x16f   : > { %7604 = vmatprep.subr.bf16.mxu1 %v10071_v22 }
 0x171   : > { %7382 = vmatpush1.bf16.msra.mxu0 %v10056_v20 }
 0x172   : > { %7384 = vmatprep.subr.bf16.mxu0 %v10062_v9  ;;  %7606 = vmatpush1.bf16.msra.mxu1 %v10084_v57 }
 0x173   : > { %7608 = vmatprep.subr.bf16.mxu1 %v10145_v5 }
 0x175   : > { %7386 = vmatpush1.bf16.msra.mxu0 %v10080_v52 }
 0x176   : > { %7610 = vmatpush1.bf16.msra.mxu1 %v10156_v40 }
 0x183   : > { %v1626_v2 = vpop.f32.mrb[4].mxu0 }
 0x184   : > { %v10092_v29 = vmax.f32 %v1232_v21, %v1626_v2  ;;  %v10094_v58 = vpop.f32.mrb[4].mxu1  ;;  %v1628_v62 = vpop.f32.mrb[5].mxu0  ;;  %v6254_v2 = vld [vmem:[%s12408_s3 + $0x428] sm:$0xff] }
 0x185   : > { %v10099_v49 = vmax.f32 %v1233_v37, %v1628_v62  ;;  %v10101_v54 = vpop.f32.mrb[5].mxu1  ;;  %v6256_v62 = vld [vmem:[%s12408_s3 + $0x438] sm:$0xff] }
 0x187   : > { %v1632_v28 = vpop.f32.mrb[6].mxu0 }
 0x188   : > { %v10110_v1 = vmax.f32 %v1234_v7, %v1632_v28  ;;  %v10112_v10 = vpop.f32.mrb[6].mxu1  ;;  %v1634_v21 = vpop.f32.mrb[7].mxu0  ;;  %v10134_v7 = vpack.c.bf16 %v6252_v41, %v6250_v38  ;;  %v6504_v28 = vld [vmem:[%s12408_s3 + $0x598] sm:$0xff]  ;;  %v6506_v38 = vld [vmem:[%s12408_s3 + $0x5a8] sm:$0xff]  ;;  %v6253_v41 = vld [vmem:[%s12408_s3 + $0x420] sm:$0xff] }
 0x189   : > { %v10117_v19 = vmax.f32 %v1235_v56, %v1634_v21  ;;  %v10119_v23 = vpop.f32.mrb[7].mxu1  ;;  %v6249_v56 = vld [vmem:[%s12408_s3 + $0x400] sm:$0xff]  ;;  %v10170_v21 = vpack.c.bf16 %v6256_v62, %v6254_v2  ;;  %v10181_v55 = vpack.c.bf16 %v6506_v38, %v6504_v28  ;;  %v6258_v2 = vld [vmem:[%s12408_s3 + $0x448] sm:$0xf]  ;;  %v6508_v62 = vld [vmem:[%s12408_s3 + $0x5b8] sm:$0xf] }
 0x18a   : > { %12811 = vst [vmem:[#allocation38_spill] sm:$0xff] %v10134_v7  ;;  %v10147_v13 = vpack.c.bf16 %v6251_v60, %v6249_v56  ;;  %7388 = vmatprep.subr.bf16.mxu0 %v10134_v7  ;;  %v10183_v56 = vpack.c.bf16 %v6255_v46, %v6253_v41  ;;  %v6503_v60 = vld [vmem:[%s12408_s3 + $0x590] sm:$0xff]  ;;  %v3691_v28 = vld [vmem:[%s12408_s3 + $0x8] sm:$0xff]  ;;  %v6257_v38 = vld [vmem:[%s12408_s3 + $0x440] sm:$0xf] }
 0x18b   : > { %12815 = vst [vmem:[#allocation24_spill] sm:$0xff] %v10170_v21  ;;  %12816 = vst [vmem:[#allocation25_spill] sm:$0xff] %v10181_v55  ;;  %v10192_v39 = vpack.c.bf16 %v6505_v17, %v6503_v60  ;;  %7612 = vmatprep.subr.bf16.mxu1 %v10181_v55  ;;  %v6507_v41 = vld [vmem:[%s12408_s3 + $0x5b0] sm:$0xf]  ;;  %v3693_v46 = vld [vmem:[%s12408_s3 + $0x18] sm:$0xff] }
 0x18c   : > { %12813 = vst [vmem:[#allocation15_spill] sm:$0xff] %v10147_v13  ;;  %7390 = vmatpush1.bf16.msra.mxu0 %v10147_v13  ;;  %12817 = vst [vmem:[#allocation26_spill] sm:$0xff] %v10183_v56  ;;  %v10218_v60 = vpack.c.bf16 %v3693_v46, %v3691_v28  ;;  %v6418_v17 = vld [vmem:[%s12408_s3 + $0x178] sm:$0xff]  ;;  %v2048_v13 = vlaneseq  ;;  %v3690_v7 = vld [vmem:[%s12408_s3] sm:$0xff] }
 0x18d   : > { %7392 = vmatprep.subr.bf16.mxu0 %v10170_v21  ;;  %12818 = vst [vmem:[#allocation28_spill] sm:$0xff] %v10192_v39  ;;  %7614 = vmatpush1.bf16.msra.mxu1 %v10192_v39 }
 0x18e   : > { %6509 = vmatprep.subr.msk.mxu1 %vm3790_vm1, %v6508_v62  ;;  %12819 = vst [vmem:[#allocation29_spill] sm:$0xff] %v10218_v60 }
 0x190   : > { %7394 = vmatpush1.bf16.msra.mxu0 %v10183_v56 }
 0x191   : > { %6259 = vmatprep.subr.msk.mxu0 %vm3790_vm1, %v6258_v2  ;;  %v6420_v2 = vld [vmem:[%s12408_s3 + $0x188] sm:$0xff]  ;;  %6510 = vmatpush1.msk.msra.mxu1 %vm3790_vm1, %v6507_v41  ;;  %v10231_v41 = vshrl.u32 %v2048_v13, 7 }
 0x192   : > { %v10227_v62 = vpack.c.bf16 %v6420_v2, %v6418_v17  ;;  %v2046_v2 = vld [vmem:[%s12407_s2] sm:$0x3] }
 0x193   : > { %12821 = vst [vmem:[#allocation2_spill] sm:$0xff] %v10231_v41  ;;  %v12502_v17 = vsub.s32 0, %v10231_v41 }
 0x194   : > { %6260 = vmatpush1.msk.msra.mxu0 %vm3790_vm1, %v6257_v38  ;;  %12820 = vst [vmem:[#allocation30_spill] sm:$0xff] %v10227_v62  ;;  %7616 = vmatprep.subr.bf16.mxu1 %v10227_v62  ;;  %v12503_v62 = vsub.s32 1, %v10231_v41 }
 0x195   : > { %7396 = vmatprep.subr.bf16.mxu0 %v10218_v60 }
 0x1d3   : > { %v2456_v37 = vpop.f32.mrb[8].mxu0 }
 0x1d4   : > { %v2853_v38 = vpop.f32.mrb[8].mxu1  ;;  %v2458_v28 = vpop.f32.mrb[9].mxu0 }
 0x1d5   : > { %v2868_v46 = vmax.f32 %v2456_v37, %v2853_v38  ;;  %v2855_v25 = vpop.f32.mrb[9].mxu1 }
 0x1d6   : > { %v2869_v14 = vmax.f32 %v2458_v28, %v2855_v25 }
 0x1d7   : > { %v2462_v36 = vpop.f32.mrb[10].mxu0 }
 0x1d8   : > { %v2859_v39 = vpop.f32.mrb[10].mxu1  ;;  %v2464_v56 = vpop.f32.mrb[11].mxu0 }
 0x1d9   : > { %v2870_v55 = vmax.f32 %v2462_v36, %v2859_v39  ;;  %v2861_v21 = vpop.f32.mrb[11].mxu1  ;;  %v10240_v36 = vrot.slane %v2046_v2, %v12502_v17 }
 0x1da   : > { %v2871_v40 = vmax.f32 %v2464_v56, %v2861_v21  ;;  %v10244_v21 = vrot.slane %v2046_v2, %v12503_v62  ;;  %v6417_v2 = vld [vmem:[%s12408_s3 + $0x170] sm:$0xff] }
 0x223   : > { %v3262_v37 = vpop.f32.mrb[12].mxu0 }
 0x224   : > { %v3277_v38 = vmax.f32 %v2868_v46, %v3262_v37  ;;  %v3663_v25 = vpop.f32.mrb[12].mxu1  ;;  %v3264_v28 = vpop.f32.mrb[13].mxu0 }
 0x225   : > { %v3278_v60 = vmax.f32 %v2869_v14, %v3264_v28  ;;  %v3665_v5 = vpop.f32.mrb[13].mxu1  ;;  %v3692_v14 = vld [vmem:[%s12408_s3 + $0x10] sm:$0xff] }
 0x226   : > { %v3678_v13 = vmax.f32 %v3277_v38, %v3663_v25 }
 0x227   : > { %v3679_v56 = vmax.f32 %v3278_v60, %v3665_v5  ;;  %v3268_v39 = vpop.f32.mrb[14].mxu0  ;;  %v6419_v5 = vld [vmem:[%s12408_s3 + $0x180] sm:$0xff]  ;;  %v3695_v60 = vld [vmem:[%s12408_s3 + $0x28] sm:$0xff] }
 0x228   : > { %v3682_v46 = vadd.f32 %v3678_v13, %v10240_v36  ;;  %v3279_v37 = vmax.f32 %v2870_v55, %v3268_v39  ;;  %v3669_v28 = vpop.f32.mrb[14].mxu1  ;;  %v3270_v17 = vpop.f32.mrb[15].mxu0  ;;  %v3697_v55 = vld [vmem:[%s12408_s3 + $0x38] sm:$0xff]  ;;  %v6424_v39 = vld [vmem:[%s12408_s3 + $0x1a8] sm:$0xff] }
 0x229   : > { %v3683_v38 = vadd.f32 %v3679_v56, %v10244_v21  ;;  %v3280_v25 = vmax.f32 %v2871_v40, %v3270_v17  ;;  %v3671_v62 = vpop.f32.mrb[15].mxu1  ;;  %v6422_v13 = vld [vmem:[%s12408_s3 + $0x198] sm:$0xff]  ;;  %v10274_v56 = vpack.c.bf16 %v3692_v14, %v3690_v7  ;;  %v10276_v40 = vpack.c.bf16 %v6419_v5, %v6417_v2  ;;  %v3694_v17 = vld [vmem:[%s12408_s3 + $0x20] sm:$0xff]  ;;  %v6421_v7 = vld [vmem:[%s12408_s3 + $0x190] sm:$0xff] }
 0x22a   : > { %v3680_v41 = vmax.f32 %v3279_v37, %v3669_v28  ;;  %v10281_v22 = vmax.f32 %v3682_v46, 0.0  ;;  %v10284_v11 = vpack.c.bf16 %v3697_v55, %v3695_v60  ;;  %v10286_v20 = vpack.c.bf16 %v6424_v39, %v6422_v13  ;;  %v6423_v14 = vld [vmem:[%s12408_s3 + $0x1a0] sm:$0xff]  ;;  %v6426_v2 = vld [vmem:[%s12408_s3 + $0x1b8] sm:$0xff]  ;;  %v6428_v5 = vld [vmem:[%s12408_s3 + $0x1c8] sm:$0xff] }
 0x22b   : > { %v10272_v57 = vmax.f32 %v3683_v38, 0.0  ;;  %v3681_v52 = vmax.f32 %v3280_v25, %v3671_v62  ;;  %v3696_v62 = vld [vmem:[%s12408_s3 + $0x30] sm:$0xff]  ;;  %v12822_v37 = vmax.f32 %v10099_v49, %v10101_v54  ;;  %v10326_v54 = vpack.c.bf16 %v6423_v14, %v6421_v7  ;;  %v3698_v38 = vld [vmem:[%s12408_s3 + $0x40] sm:$0xff]  ;;  %v3705_v7 = vld [vmem:[%s12408_s3 + $0x78] sm:$0xff] }
 0x22c   : > { %v3684_v9 = vadd.f32 %v3680_v41, %v10240_v36  ;;  %v3699_v41 = vld [vmem:[%s12408_s3 + $0x48] sm:$0xff]  ;;  %v10324_v49 = vpack.c.bf16 %v3696_v62, %v3694_v17  ;;  %v3700_v25 = vld [vmem:[%s12408_s3 + $0x50] sm:$0xff]  ;;  %v6427_v39 = vld [vmem:[%s12408_s3 + $0x1c0] sm:$0xff]  ;;  %v10353_v62 = vpack.c.bf16 %v6428_v5, %v6426_v2 }
 0x22d   : > { %v3685_v46 = vadd.f32 %v3681_v52, %v10244_v21  ;;  %6261 = vmatprep.mubr.msk.f32.mxu0 %vm3783_vm2, %v10272_v57  ;;  %6511 = vmatprep.mubr.msk.f32.mxu1 %vm3783_vm2, %v10272_v57  ;;  %v2059_v28 = vadd.f32 %v10244_v21, %v12822_v37  ;;  %v3701_v52 = vld [vmem:[%s12408_s3 + $0x58] sm:$0xff]  ;;  %12825 = vst [vmem:[#allocation4_spill] sm:$0xff] %v10326_v54  ;;  %v6425_v13 = vld [vmem:[%s12408_s3 + $0x1b0] sm:$0xff]  ;;  %v3703_v17 = vld [vmem:[%s12408_s3 + $0x68] sm:$0xff] }
 0x22e   : > { %3862 = vmatmul.mubr.f32.vlgmr.msra.gmra.mrb[16].mxu0 %v10281_v22  ;;  %4572 = vmatmul.mubr.f32.vlgmr.msra.gmra.mrb[16].mxu1 %v10281_v22  ;;  %12824 = vst [vmem:[#allocation3_spill] sm:$0xff] %v10324_v49  ;;  %v10334_v55 = vmax.f32 %v3684_v9, 0.0  ;;  %v10351_v9 = vpack.c.bf16 %v3701_v52, %v3699_v41  ;;  %12828 = vst [vmem:[#allocation40_spill] sm:$0xff] %v10353_v62  ;;  %v6430_v14 = vld [vmem:[%s12408_s3 + $0x1d8] sm:$0xff]  ;;  %v10370_v41 = vpack.c.bf16 %v3700_v25, %v3698_v38  ;;  %v3702_v2 = vld [vmem:[%s12408_s3 + $0x60] sm:$0xff] }
 0x22f   : > { %v10320_v60 = vmax.f32 %v3685_v46, 0.0  ;;  %7398 = vmatpush1.bf16.msra.mxu0 %v10274_v56  ;;  %7618 = vmatpush1.bf16.msra.mxu1 %v10276_v40  ;;  %v6432_v46 = vld [vmem:[%s12408_s3 + $0x1e8] sm:$0xff]  ;;  %v10364_v37 = vmax.f32 %v2059_v28, 0.0  ;;  %v10372_v52 = vpack.c.bf16 %v6427_v39, %v6425_v13  ;;  %v3704_v28 = vld [vmem:[%s12408_s3 + $0x70] sm:$0xff]  ;;  %v10384_v5 = vpack.c.bf16 %v3705_v7, %v3703_v17  ;;  %v6431_v13 = vld [vmem:[%s12408_s3 + $0x1e0] sm:$0xff] }
 0x230   : > { %12826 = vst [vmem:[#allocation5_spill] sm:$0xff] %v10334_v55  ;;  %7400 = vmatprep.subr.bf16.mxu0 %v10284_v11  ;;  %7620 = vmatprep.subr.bf16.mxu1 %v10286_v20  ;;  %12827 = vst [vmem:[#allocation6_spill] sm:$0xff] %v10351_v9  ;;  %v10386_v38 = vpack.c.bf16 %v6432_v46, %v6430_v14  ;;  %v6429_v25 = vld [vmem:[%s12408_s3 + $0x1d0] sm:$0xff]  ;;  %v3707_v39 = vld [vmem:[%s12408_s3 + $0x88] sm:$0xff]  ;;  %v10410_v46 = vpack.c.bf16 %v3704_v28, %v3702_v2 }
 0x231   : > { %12823 = vst [vmem:[#allocation35_spill] sm:$0xff] %v10320_v60  ;;  %6262 = vmatprep.mubr.msk.f32.mxu0 %vm3783_vm2, %v10320_v60  ;;  %6512 = vmatprep.mubr.msk.f32.mxu1 %vm3783_vm2, %v10320_v60  ;;  %12829 = vst [vmem:[#allocation7_spill] sm:$0xff] %v10370_v41  ;;  %v3709_v17 = vld [vmem:[%s12408_s3 + $0x98] sm:$0xff]  ;;  %v6436_v14 = vld [vmem:[%s12408_s3 + $0x208] sm:$0xff] }
 0x232   : > { %3868 = vmatmul.mubr.f32.gmra.mrb[18].mxu0 %v10334_v55  ;;  %4578 = vmatmul.mubr.f32.gmra.mrb[18].mxu1 %v10334_v55  ;;  %12830 = vst [vmem:[#allocation8_spill] sm:$0xff] %v10372_v52  ;;  %12831 = vst [vmem:[#allocation9_spill] sm:$0xff] %v10384_v5  ;;  %v6434_v7 = vld [vmem:[%s12408_s3 + $0x1f8] sm:$0xff]  ;;  %v6433_v2 = vld [vmem:[%s12408_s3 + $0x1f0] sm:$0xff] }
 0x233   : > { %7402 = vmatpush1.bf16.msra.mxu0 %v10324_v49  ;;  %7622 = vmatpush1.bf16.msra.mxu1 %v10326_v54  ;;  %12832 = vst [vmem:[#allocation10_spill] sm:$0xff] %v10386_v38  ;;  %12833 = vst [vmem:[#allocation12_spill] sm:$0xff] %v10410_v46  ;;  %v3708_v54 = vld [vmem:[%s12408_s3 + $0x90] sm:$0xff]  ;;  %v10422_v49 = vpack.c.bf16 %v3709_v17, %v3707_v39  ;;  %v6435_v28 = vld [vmem:[%s12408_s3 + $0x200] sm:$0xff] }
 0x234   : > { %6265 = vmatprep.mubr.msk.f32.mxu0 %vm3783_vm2, %v10364_v37  ;;  %6515 = vmatprep.mubr.msk.f32.mxu1 %vm3783_vm2, %v10364_v37  ;;  %v6438_v39 = vld [vmem:[%s12408_s3 + $0x218] sm:$0xff]  ;;  %v6440_v17 = vld [vmem:[%s12408_s3 + $0x228] sm:$0xff] }
 0x235   : > { %7404 = vmatprep.subr.bf16.mxu0 %v10351_v9  ;;  %7624 = vmatprep.subr.bf16.mxu1 %v10353_v62  ;;  %v10412_v9 = vpack.c.bf16 %v6431_v13, %v6429_v25  ;;  %v3706_v62 = vld [vmem:[%s12408_s3 + $0x80] sm:$0xff]  ;;  %12835 = vst [vmem:[#allocation14_spill] sm:$0xff] %v10422_v49  ;;  %v3711_v25 = vld [vmem:[%s12408_s3 + $0xa8] sm:$0xff]  ;;  %v3713_v13 = vld [vmem:[%s12408_s3 + $0xb8] sm:$0xff] }
 0x237   : > { %7406 = vmatpush1.bf16.msra.mxu0 %v10370_v41  ;;  %7626 = vmatpush1.bf16.msra.mxu1 %v10372_v52  ;;  %12834 = vst [vmem:[#allocation13_spill] sm:$0xff] %v10412_v9  ;;  %v10424_v41 = vpack.c.bf16 %v6436_v14, %v6434_v7  ;;  %v10446_v7 = vpack.c.bf16 %v3708_v54, %v3706_v62  ;;  %v6437_v54 = vld [vmem:[%s12408_s3 + $0x210] sm:$0xff]  ;;  %v6439_v62 = vld [vmem:[%s12408_s3 + $0x220] sm:$0xff] }
 0x238   : > { %7408 = vmatprep.subr.bf16.mxu0 %v10384_v5  ;;  %7628 = vmatprep.subr.bf16.mxu1 %v10386_v38  ;;  %v10448_v14 = vpack.c.bf16 %v6435_v28, %v6433_v2  ;;  %v3710_v38 = vld [vmem:[%s12408_s3 + $0xa0] sm:$0xff]  ;;  %v3712_v5 = vld [vmem:[%s12408_s3 + $0xb0] sm:$0xff]  ;;  %v10458_v52 = vpack.c.bf16 %v3713_v13, %v3711_v25  ;;  %v3715_v2 = vld [vmem:[%s12408_s3 + $0xc8] sm:$0xff] }
 0x239   : > { %12836 = vst [vmem:[#allocation17_spill] sm:$0xff] %v10424_v41  ;;  %12837 = vst [vmem:[#allocation18_spill] sm:$0xff] %v10446_v7  ;;  %v3717_v28 = vld [vmem:[%s12408_s3 + $0xd8] sm:$0xff]  ;;  %v6444_v13 = vld [vmem:[%s12408_s3 + $0x248] sm:$0xff] }
 0x23a   : > { %12838 = vst [vmem:[#allocation19_spill] sm:$0xff] %v10448_v14  ;;  %12839 = vst [vmem:[#allocation20_spill] sm:$0xff] %v10458_v52  ;;  %v6442_v25 = vld [vmem:[%s12408_s3 + $0x238] sm:$0xff] }
 0x23b   : > { %7410 = vmatpush1.bf16.msra.mxu0 %v10410_v46  ;;  %7630 = vmatpush1.bf16.msra.mxu1 %v10412_v9  ;;  %v10460_v46 = vpack.c.bf16 %v6440_v17, %v6438_v39  ;;  %v10482_v39 = vpack.c.bf16 %v3712_v5, %v3710_v38  ;;  %v10484_v17 = vpack.c.bf16 %v6439_v62, %v6437_v54  ;;  %v6441_v5 = vld [vmem:[%s12408_s3 + $0x230] sm:$0xff]  ;;  %v6443_v38 = vld [vmem:[%s12408_s3 + $0x240] sm:$0xff]  ;;  %v3719_v54 = vld [vmem:[%s12408_s3 + $0xe8] sm:$0xff] }
 0x23c   : > { %7412 = vmatprep.subr.bf16.mxu0 %v10422_v49  ;;  %7632 = vmatprep.subr.bf16.mxu1 %v10424_v41  ;;  %v3714_v41 = vld [vmem:[%s12408_s3 + $0xc0] sm:$0xff]  ;;  %v3716_v49 = vld [vmem:[%s12408_s3 + $0xd0] sm:$0xff]  ;;  %v10494_v9 = vpack.c.bf16 %v3717_v28, %v3715_v2  ;;  %v3721_v62 = vld [vmem:[%s12408_s3 + $0xf8] sm:$0xff] }
 0x23d   : > { %12840 = vst [vmem:[#allocation21_spill] sm:$0xff] %v10460_v46  ;;  %12841 = vst [vmem:[#allocation22_spill] sm:$0xff] %v10482_v39  ;;  %v6446_v2 = vld [vmem:[%s12408_s3 + $0x258] sm:$0xff]  ;;  %v6448_v28 = vld [vmem:[%s12408_s3 + $0x268] sm:$0xff] }
 0x23e   : > { %12842 = vst [vmem:[#allocation23_spill] sm:$0xff] %v10484_v17  ;;  %12843 = vst [vmem:[#allocation36_spill] sm:$0xff] %v10494_v9 }
 0x23f   : > { %7414 = vmatpush1.bf16.msra.mxu0 %v10446_v7  ;;  %7634 = vmatpush1.bf16.msra.mxu1 %v10448_v14  ;;  %v10496_v7 = vpack.c.bf16 %v6444_v13, %v6442_v25  ;;  %v10518_v25 = vpack.c.bf16 %v3716_v49, %v3714_v41  ;;  %v10520_v13 = vpack.c.bf16 %v6443_v38, %v6441_v5  ;;  %v6445_v49 = vld [vmem:[%s12408_s3 + $0x250] sm:$0xff]  ;;  %v6447_v41 = vld [vmem:[%s12408_s3 + $0x260] sm:$0xff]  ;;  %v3723_v5 = vld [vmem:[%s12408_s3 + $0x108] sm:$0xff] }
 0x240   : > { %7416 = vmatprep.subr.bf16.mxu0 %v10458_v52  ;;  %7636 = vmatprep.subr.bf16.mxu1 %v10460_v46  ;;  %v3718_v46 = vld [vmem:[%s12408_s3 + $0xe0] sm:$0xff]  ;;  %v3720_v52 = vld [vmem:[%s12408_s3 + $0xf0] sm:$0xff]  ;;  %v10530_v14 = vpack.c.bf16 %v3721_v62, %v3719_v54  ;;  %v3725_v38 = vld [vmem:[%s12408_s3 + $0x118] sm:$0xff] }
 0x241   : > { %12844 = vst [vmem:[#allocation39_spill] sm:$0xff] %v10496_v7  ;;  %12845 = vst [vmem:[#allocation41_spill] sm:$0xff] %v10518_v25  ;;  %v6450_v54 = vld [vmem:[%s12408_s3 + $0x278] sm:$0xff]  ;;  %v6452_v62 = vld [vmem:[%s12408_s3 + $0x288] sm:$0xff] }
 0x242   : > { %12846 = vst [vmem:[#allocation42_spill] sm:$0xff] %v10520_v13  ;;  %12847 = vst [vmem:[#allocation43_spill] sm:$0xff] %v10530_v14 }
 0x243   : > { %7418 = vmatpush1.bf16.msra.mxu0 %v10482_v39  ;;  %7638 = vmatpush1.bf16.msra.mxu1 %v10484_v17  ;;  %v10532_v39 = vpack.c.bf16 %v6448_v28, %v6446_v2  ;;  %v10554_v2 = vpack.c.bf16 %v3720_v52, %v3718_v46  ;;  %v10556_v28 = vpack.c.bf16 %v6447_v41, %v6445_v49  ;;  %v6449_v52 = vld [vmem:[%s12408_s3 + $0x270] sm:$0xff]  ;;  %v6451_v46 = vld [vmem:[%s12408_s3 + $0x280] sm:$0xff]  ;;  %v3727_v49 = vld [vmem:[%s12408_s3 + $0x128] sm:$0xff] }
 0x244   : > { %7420 = vmatprep.subr.bf16.mxu0 %v10494_v9  ;;  %7640 = vmatprep.subr.bf16.mxu1 %v10496_v7  ;;  %v3722_v7 = vld [vmem:[%s12408_s3 + $0x100] sm:$0xff]  ;;  %v3724_v9 = vld [vmem:[%s12408_s3 + $0x110] sm:$0xff]  ;;  %v10566_v17 = vpack.c.bf16 %v3725_v38, %v3723_v5  ;;  %v3729_v41 = vld [vmem:[%s12408_s3 + $0x138] sm:$0xff] }
 0x245   : > { %12848 = vst [vmem:[#allocation44_spill] sm:$0xff] %v10532_v39  ;;  %12849 = vst [vmem:[#allocation45_spill] sm:$0xff] %v10554_v2  ;;  %v6454_v5 = vld [vmem:[%s12408_s3 + $0x298] sm:$0xff]  ;;  %v6456_v38 = vld [vmem:[%s12408_s3 + $0x2a8] sm:$0xff] }
 0x246   : > { %12850 = vst [vmem:[#allocation46_spill] sm:$0xff] %v10556_v28  ;;  %12851 = vst [vmem:[#allocation47_spill] sm:$0xff] %v10566_v17 }
 0x247   : > { %7422 = vmatpush1.bf16.msra.mxu0 %v10518_v25  ;;  %7642 = vmatpush1.bf16.msra.mxu1 %v10520_v13  ;;  %v10568_v25 = vpack.c.bf16 %v6452_v62, %v6450_v54  ;;  %v10590_v54 = vpack.c.bf16 %v3724_v9, %v3722_v7  ;;  %v10592_v62 = vpack.c.bf16 %v6451_v46, %v6449_v52  ;;  %v6453_v9 = vld [vmem:[%s12408_s3 + $0x290] sm:$0xff]  ;;  %v6455_v7 = vld [vmem:[%s12408_s3 + $0x2a0] sm:$0xff]  ;;  %v3731_v52 = vld [vmem:[%s12408_s3 + $0x148] sm:$0xff] }
 0x248   : > { %7424 = vmatprep.subr.bf16.mxu0 %v10530_v14  ;;  %7644 = vmatprep.subr.bf16.mxu1 %v10532_v39  ;;  %v3726_v39 = vld [vmem:[%s12408_s3 + $0x120] sm:$0xff]  ;;  %v3728_v14 = vld [vmem:[%s12408_s3 + $0x130] sm:$0xff]  ;;  %v10602_v13 = vpack.c.bf16 %v3729_v41, %v3727_v49  ;;  %v3733_v46 = vld [vmem:[%s12408_s3 + $0x158] sm:$0xff] }
 0x249   : > { %12852 = vst [vmem:[#allocation48_spill] sm:$0xff] %v10568_v25  ;;  %12853 = vst [vmem:[#allocation49_spill] sm:$0xff] %v10592_v62  ;;  %v6458_v49 = vld [vmem:[%s12408_s3 + $0x2b8] sm:$0xff]  ;;  %v6460_v41 = vld [vmem:[%s12408_s3 + $0x2c8] sm:$0xff] }
 0x24a   : > { %12854 = vst [vmem:[#allocation50_spill] sm:$0xff] %v10602_v13 }
 0x24b   : > { %7426 = vmatpush1.bf16.msra.mxu0 %v10554_v2  ;;  %7646 = vmatpush1.bf16.msra.mxu1 %v10556_v28  ;;  %v10604_v2 = vpack.c.bf16 %v6456_v38, %v6454_v5  ;;  %v10626_v5 = vpack.c.bf16 %v3728_v14, %v3726_v39  ;;  %v10628_v38 = vpack.c.bf16 %v6455_v7, %v6453_v9  ;;  %v6457_v14 = vld [vmem:[%s12408_s3 + $0x2b0] sm:$0xff]  ;;  %v6459_v39 = vld [vmem:[%s12408_s3 + $0x2c0] sm:$0xff] }
 0x24c   : > { %7428 = vmatprep.subr.bf16.mxu0 %v10566_v17  ;;  %7648 = vmatprep.subr.bf16.mxu1 %v10568_v25  ;;  %v3730_v25 = vld [vmem:[%s12408_s3 + $0x140] sm:$0xff]  ;;  %v10635_v17 = vpack.c.bf16 %v3733_v46, %v3731_v52  ;;  %v10637_v28 = vpack.c.bf16 %v6460_v41, %v6458_v49  ;;  %v10652_v7 = vpack.c.bf16 %v6459_v39, %v6457_v14  ;;  %v3735_v52 = vld [vmem:[%s12408_s3 + $0x168] sm:$0xf]  ;;  %v6270_v41 = vld [vmem:[%s12408_s3 + $0x5d8] sm:$0xff] }
 0x24d   : > { %12855 = vst [vmem:[#allocation51_spill] sm:$0xff] %v10604_v2  ;;  %12856 = vst [vmem:[#allocation52_spill] sm:$0xff] %v10626_v5  ;;  %v12862_v46 = vmax.f32 %v10117_v19, %v10119_v23  ;;  %v12863_v14 = vmax.f32 %v10092_v29, %v10094_v58  ;;  %v6518_v19 = vld [vmem:[%s12408_s3 + $0x738] sm:$0xff]  ;;  %v6520_v23 = vld [vmem:[%s12408_s3 + $0x748] sm:$0xff] }
 0x24e   : > { %12857 = vst [vmem:[#allocation53_spill] sm:$0xff] %v10628_v38  ;;  %12858 = vst [vmem:[#allocation54_spill] sm:$0xff] %v10635_v17  ;;  %v6267_v29 = vld [vmem:[%s12408_s3 + $0x5c0] sm:$0xff]  ;;  %v6269_v58 = vld [vmem:[%s12408_s3 + $0x5d0] sm:$0xff] }
 0x24f   : > { %7430 = vmatpush1.bf16.msra.mxu0 %v10590_v54  ;;  %7650 = vmatpush1.bf16.msra.mxu1 %v10592_v62  ;;  %12859 = vst [vmem:[#allocation55_spill] sm:$0xff] %v10637_v28  ;;  %v3732_v62 = vld [vmem:[%s12408_s3 + $0x150] sm:$0xff]  ;;  %12861 = vst [vmem:[#allocation57_spill] sm:$0xff] %v10652_v7  ;;  %v2061_v49 = vadd.f32 %v10244_v21, %v12862_v46  ;;  %v2058_v39 = vadd.f32 %v10240_v36, %v12863_v14  ;;  %v3734_v21 = vld [vmem:[%s12408_s3 + $0x160] sm:$0xf] }
 0x250   : > { %7432 = vmatprep.subr.bf16.mxu0 %v10602_v13  ;;  %7652 = vmatprep.subr.bf16.mxu1 %v10604_v2  ;;  %v10650_v9 = vpack.c.bf16 %v3732_v62, %v3730_v25  ;;  %v6462_v25 = vld [vmem:[%s12408_s3 + $0x2d8] sm:$0xf]  ;;  %v6268_v62 = vld [vmem:[%s12408_s3 + $0x5c8] sm:$0xff]  ;;  %v6461_v46 = vld [vmem:[%s12408_s3 + $0x2d0] sm:$0xf] }
 0x251   : > { %v10698_v14 = vpack.c.bf16 %v6270_v41, %v6268_v62  ;;  %v10716_v62 = vmax.f32 %v2058_v39, 0.0  ;;  %v12866_v41 = vmax.f32 %v10110_v1, %v10112_v10  ;;  %v6271_v1 = vld [vmem:[%s12408_s3 + $0x5e0] sm:$0xff]  ;;  %v6273_v10 = vld [vmem:[%s12408_s3 + $0x5f0] sm:$0xff]  ;;  %v6328_v2 = vld [vmem:[%s12408_s3 + $0x8f8] sm:$0xff] }
 0x252   : > { %12860 = vst [vmem:[#allocation56_spill] sm:$0xff] %v10650_v9  ;;  %v6325_v13 = vld [vmem:[%s12408_s3 + $0x8e0] sm:$0xff] }
 0x253   : > { %7434 = vmatpush1.bf16.msra.mxu0 %v10626_v5  ;;  %7654 = vmatpush1.bf16.msra.mxu1 %v10628_v38  ;;  %12864 = vst [vmem:[#allocation58_spill] sm:$0xff] %v10698_v14  ;;  %v2060_v38 = vadd.f32 %v10240_v36, %v12866_v41  ;;  %v10722_v5 = vpack.c.bf16 %v6269_v58, %v6267_v29  ;;  %v6278_v58 = vld [vmem:[%s12408_s3 + $0x618] sm:$0xff] }
 0x254   : > { %7436 = vmatprep.subr.bf16.mxu0 %v10635_v17  ;;  %7656 = vmatprep.subr.bf16.mxu1 %v10637_v28  ;;  %v10706_v28 = vmax.f32 %v2061_v49, 0.0  ;;  %v10708_v17 = vpack.c.bf16 %v6520_v23, %v6518_v19  ;;  %v6522_v49 = vld [vmem:[%s12408_s3 + $0x758] sm:$0xff]  ;;  %v6524_v19 = vld [vmem:[%s12408_s3 + $0x768] sm:$0xff]  ;;  %v6521_v23 = vld [vmem:[%s12408_s3 + $0x750] sm:$0xff]  ;;  %v10774_v41 = vpack.c.bf16 %v6273_v10, %v6271_v1 }
 0x255   : > { %12867 = vst [vmem:[#allocation60_spill] sm:$0xff] %v10722_v5  ;;  %v10758_v29 = vpack.c.bf16 %v6524_v19, %v6522_v49  ;;  %v4016_v49 = vrot.slane %v10364_v37, 1  ;;  %v6525_v1 = vld [vmem:[%s12408_s3 + $0x770] sm:$0xff] }
 0x256   : > { %12865 = vst [vmem:[#allocation59_spill] sm:$0xff] %v10708_v17  ;;  %12871 = vst [vmem:[#allocation64_spill] sm:$0xff] %v10774_v41 }
 0x257   : > { %7438 = vmatpush1.bf16.msra.mxu0 %v10650_v9  ;;  %7658 = vmatpush1.bf16.msra.mxu1 %v10652_v7  ;;  %v6517_v7 = vld [vmem:[%s12408_s3 + $0x730] sm:$0xff]  ;;  %v6519_v9 = vld [vmem:[%s12408_s3 + $0x740] sm:$0xff]  ;;  %12870 = vst [vmem:[#allocation63_spill] sm:$0xff] %v10758_v29 }
 0x258   : > { %6263 = vmatprep.subr.msk.mxu0 %vm3790_vm1, %v3735_v52  ;;  %6513 = vmatprep.subr.msk.mxu1 %vm3790_vm1, %v6462_v25  ;;  %v6272_v52 = vld [vmem:[%s12408_s3 + $0x5e8] sm:$0xff]  ;;  %v6274_v25 = vld [vmem:[%s12408_s3 + $0x5f8] sm:$0xff]  ;;  %v10732_v39 = vpack.c.bf16 %v6519_v9, %v6517_v7  ;;  %v6523_v9 = vld [vmem:[%s12408_s3 + $0x760] sm:$0xff] }
 0x259   : > { %v10742_v36 = vpack.c.bf16 %v6274_v25, %v6272_v52  ;;  %v6276_v7 = vld [vmem:[%s12408_s3 + $0x608] sm:$0xff]  ;;  %v10769_v25 = vmax.f32 %v2060_v38, 0.0  ;;  %v10780_v19 = vpack.c.bf16 %v6523_v9, %v6521_v23  ;;  %v6275_v38 = vld [vmem:[%s12408_s3 + $0x600] sm:$0xff] }
 0x25a   : > { %12868 = vst [vmem:[#allocation61_spill] sm:$0xff] %v10732_v39  ;;  %v6528_v52 = vld [vmem:[%s12408_s3 + $0x788] sm:$0xff]  ;;  %v10793_v10 = vpack.c.bf16 %v6278_v58, %v6276_v7  ;;  %v6527_v9 = vld [vmem:[%s12408_s3 + $0x780] sm:$0xff]  ;;  %v6530_v58 = vld [vmem:[%s12408_s3 + $0x798] sm:$0xff] }
 0x25b   : > { %6264 = vmatpush1.msk.msra.mxu0 %vm3790_vm1, %v3734_v21  ;;  %6514 = vmatpush1.msk.msra.mxu1 %vm3790_vm1, %v6461_v46  ;;  %12869 = vst [vmem:[#allocation62_spill] sm:$0xff] %v10742_v36  ;;  %v10754_v21 = vrot.slane %v10706_v28, 1  ;;  %v6526_v46 = vld [vmem:[%s12408_s3 + $0x778] sm:$0xff]  ;;  %12872 = vst [vmem:[#allocation65_spill] sm:$0xff] %v10780_v19 }
 0x25c   : > { %3951 = vmatmul.mubr.f32.vlgmr.msra.gmra.mrb[16].mxu0 %v10716_v62  ;;  %7440 = vmatprep.subr.bf16.mxu0 %v10698_v14  ;;  %12873 = vst [vmem:[#allocation66_spill] sm:$0xff] %v10793_v10  ;;  %v10795_v23 = vpack.c.bf16 %v6528_v52, %v6526_v46  ;;  %v6532_v46 = vld [vmem:[%s12408_s3 + $0x7a8] sm:$0xff]  ;;  %v6285_v14 = vld [vmem:[%s12408_s3 + $0x650] sm:$0xff] }
 0x25d   : > { %4655 = vmatmul.mubr.f32.vlgmr.msra.gmra.mrb[16].mxu1 %v10716_v62  ;;  %7660 = vmatprep.subr.bf16.mxu1 %v10708_v17  ;;  %v6282_v17 = vld [vmem:[%s12408_s3 + $0x638] sm:$0xff]  ;;  %v10810_v7 = vsel %vm4012_vm3, %v4016_v49, %v10754_v21  ;;  %v10826_v49 = vpack.c.bf16 %v6527_v9, %v6525_v1 }
 0x25e   : > { %6266 = vmatprep.mubr.msk.f32.mxu0 %vm3783_vm2, %v10706_v28  ;;  %7442 = vmatpush1.bf16.msra.mxu0 %v10722_v5  ;;  %v6277_v5 = vld [vmem:[%s12408_s3 + $0x610] sm:$0xff]  ;;  %12874 = vst [vmem:[#allocation67_spill] sm:$0xff] %v10795_v23  ;;  %v6286_v1 = vld [vmem:[%s12408_s3 + $0x658] sm:$0xff] }
 0x25f   : > { %6516 = vmatprep.mubr.msk.f32.mxu1 %vm3783_vm2, %v10706_v28  ;;  %7662 = vmatpush1.bf16.msra.mxu1 %v10732_v39  ;;  %v6280_v39 = vld [vmem:[%s12408_s3 + $0x628] sm:$0xff]  ;;  %v10821_v52 = vpack.c.bf16 %v6277_v5, %v6275_v38  ;;  %12876 = vst [vmem:[#allocation69_spill] sm:$0xff] %v10826_v49  ;;  %v6529_v5 = vld [vmem:[%s12408_s3 + $0x790] sm:$0xff]  ;;  %v10841_v38 = vpack.c.bf16 %v6532_v46, %v6530_v58  ;;  %v6534_v9 = vld [vmem:[%s12408_s3 + $0x7b8] sm:$0xff] }
 0x260   : > { %3957 = vmatmul.mubr.f32.gmra.mrb[18].mxu0 %v10769_v25  ;;  %7444 = vmatprep.subr.bf16.mxu0 %v10742_v36  ;;  %v6279_v36 = vld [vmem:[%s12408_s3 + $0x620] sm:$0xff]  ;;  %v6536_v58 = vld [vmem:[%s12408_s3 + $0x7c8] sm:$0xff] }
 0x261   : > { %4661 = vmatmul.mubr.f32.gmra.mrb[18].mxu1 %v10769_v25  ;;  %7664 = vmatprep.subr.bf16.mxu1 %v10758_v29  ;;  %12875 = vst [vmem:[#allocation68_spill] sm:$0xff] %v10821_v52  ;;  %v10828_v29 = vpack.c.bf16 %v6282_v17, %v6280_v39  ;;  %12878 = vst [vmem:[#allocation71_spill] sm:$0xff] %v10841_v38  ;;  %v6531_v17 = vld [vmem:[%s12408_s3 + $0x7a0] sm:$0xff]  ;;  %v6284_v39 = vld [vmem:[%s12408_s3 + $0x648] sm:$0xff] }
 0x262   : > { %7446 = vmatpush1.bf16.msra.mxu0 %v10774_v41  ;;  %6315 = vmatprep.mubr.msk.f32.mxu0 %vm3783_vm2, %v10810_v7  ;;  %v6281_v41 = vld [vmem:[%s12408_s3 + $0x630] sm:$0xff] }
 0x263   : > { %7666 = vmatpush1.bf16.msra.mxu1 %v10780_v19  ;;  %6565 = vmatprep.mubr.msk.f32.mxu1 %vm3783_vm2, %v10810_v7  ;;  %12877 = vst [vmem:[#allocation70_spill] sm:$0xff] %v10828_v29  ;;  %v10859_v46 = vpack.c.bf16 %v6281_v41, %v6279_v36  ;;  %v6283_v19 = vld [vmem:[%s12408_s3 + $0x640] sm:$0xff]  ;;  %v6533_v36 = vld [vmem:[%s12408_s3 + $0x7b0] sm:$0xff]  ;;  %v10877_v41 = vpack.c.bf16 %v6536_v58, %v6534_v9  ;;  %v6540_v9 = vld [vmem:[%s12408_s3 + $0x7e8] sm:$0xff] }
 0x264   : > { %7448 = vmatprep.subr.bf16.mxu0 %v10793_v10  ;;  %7668 = vmatprep.subr.bf16.mxu1 %v10795_v23  ;;  %v10863_v23 = vpack.c.bf16 %v6531_v17, %v6529_v5  ;;  %v10865_v10 = vpack.c.bf16 %v6286_v1, %v6284_v39  ;;  %v6535_v5 = vld [vmem:[%s12408_s3 + $0x7c0] sm:$0xff]  ;;  %v6288_v17 = vld [vmem:[%s12408_s3 + $0x668] sm:$0xff]  ;;  %v6290_v39 = vld [vmem:[%s12408_s3 + $0x678] sm:$0xff]  ;;  %v10895_v58 = vpack.c.bf16 %v6285_v14, %v6283_v19 }
 0x265   : > { %12879 = vst [vmem:[#allocation72_spill] sm:$0xff] %v10859_v46  ;;  %12882 = vst [vmem:[#allocation75_spill] sm:$0xff] %v10877_v41  ;;  %v6538_v1 = vld [vmem:[%s12408_s3 + $0x7d8] sm:$0xff]  ;;  %v6537_v14 = vld [vmem:[%s12408_s3 + $0x7d0] sm:$0xff] }
 0x266   : > { %7450 = vmatpush1.bf16.msra.mxu0 %v10821_v52  ;;  %12880 = vst [vmem:[#allocation73_spill] sm:$0xff] %v10863_v23  ;;  %12881 = vst [vmem:[#allocation74_spill] sm:$0xff] %v10865_v10  ;;  %v6289_v52 = vld [vmem:[%s12408_s3 + $0x670] sm:$0xff]  ;;  %v10913_v19 = vpack.c.bf16 %v6540_v9, %v6538_v1  ;;  %v6544_v1 = vld [vmem:[%s12408_s3 + $0x808] sm:$0xff] }
 0x267   : > { %7670 = vmatpush1.bf16.msra.mxu1 %v10826_v49  ;;  %7452 = vmatprep.subr.bf16.mxu0 %v10828_v29  ;;  %12883 = vst [vmem:[#allocation76_spill] sm:$0xff] %v10895_v58  ;;  %v10901_v29 = vpack.c.bf16 %v6290_v39, %v6288_v17  ;;  %v6287_v49 = vld [vmem:[%s12408_s3 + $0x660] sm:$0xff]  ;;  %v6294_v17 = vld [vmem:[%s12408_s3 + $0x698] sm:$0xff] }
 0x268   : > { %7672 = vmatprep.subr.bf16.mxu1 %v10841_v38  ;;  %v10899_v38 = vpack.c.bf16 %v6535_v5, %v6533_v36  ;;  %12886 = vst [vmem:[#allocation79_spill] sm:$0xff] %v10913_v19  ;;  %v6539_v36 = vld [vmem:[%s12408_s3 + $0x7e0] sm:$0xff]  ;;  %v6292_v5 = vld [vmem:[%s12408_s3 + $0x688] sm:$0xff]  ;;  %v6542_v39 = vld [vmem:[%s12408_s3 + $0x7f8] sm:$0xff]  ;;  %v10931_v9 = vpack.c.bf16 %v6289_v52, %v6287_v49 }
 0x269   : > { %12885 = vst [vmem:[#allocation78_spill] sm:$0xff] %v10901_v29  ;;  %v6541_v52 = vld [vmem:[%s12408_s3 + $0x7f0] sm:$0xff]  ;;  %v10949_v49 = vpack.c.bf16 %v6544_v1, %v6542_v39  ;;  %v6548_v39 = vld [vmem:[%s12408_s3 + $0x828] sm:$0xff] }
 0x26a   : > { %7454 = vmatpush1.bf16.msra.mxu0 %v10859_v46  ;;  %12884 = vst [vmem:[#allocation77_spill] sm:$0xff] %v10899_v38  ;;  %12887 = vst [vmem:[#allocation80_spill] sm:$0xff] %v10931_v9  ;;  %v6293_v46 = vld [vmem:[%s12408_s3 + $0x690] sm:$0xff] }
 0x26b   : > { %7674 = vmatpush1.bf16.msra.mxu1 %v10863_v23  ;;  %7456 = vmatprep.subr.bf16.mxu0 %v10865_v10  ;;  %v10937_v10 = vpack.c.bf16 %v6294_v17, %v6292_v5  ;;  %v6291_v23 = vld [vmem:[%s12408_s3 + $0x680] sm:$0xff]  ;;  %12890 = vst [vmem:[#allocation83_spill] sm:$0xff] %v10949_v49  ;;  %v6298_v5 = vld [vmem:[%s12408_s3 + $0x6b8] sm:$0xff] }
 0x26c   : > { %7676 = vmatprep.subr.bf16.mxu1 %v10877_v41  ;;  %v10935_v41 = vpack.c.bf16 %v6539_v36, %v6537_v14  ;;  %v6543_v14 = vld [vmem:[%s12408_s3 + $0x800] sm:$0xff]  ;;  %v6296_v36 = vld [vmem:[%s12408_s3 + $0x6a8] sm:$0xff]  ;;  %v6546_v17 = vld [vmem:[%s12408_s3 + $0x818] sm:$0xff]  ;;  %v10967_v1 = vpack.c.bf16 %v6293_v46, %v6291_v23 }
 0x26d   : > { %12889 = vst [vmem:[#allocation82_spill] sm:$0xff] %v10937_v10  ;;  %v6545_v23 = vld [vmem:[%s12408_s3 + $0x810] sm:$0xff]  ;;  %v10985_v46 = vpack.c.bf16 %v6548_v39, %v6546_v17  ;;  %v6552_v17 = vld [vmem:[%s12408_s3 + $0x848] sm:$0xff] }
 0x26e   : > { %7458 = vmatpush1.bf16.msra.mxu0 %v10895_v58  ;;  %12888 = vst [vmem:[#allocation81_spill] sm:$0xff] %v10935_v41  ;;  %12891 = vst [vmem:[#allocation84_spill] sm:$0xff] %v10967_v1  ;;  %v6297_v58 = vld [vmem:[%s12408_s3 + $0x6b0] sm:$0xff] }
 0x26f   : > { %7678 = vmatpush1.bf16.msra.mxu1 %v10899_v38  ;;  %7460 = vmatprep.subr.bf16.mxu0 %v10901_v29  ;;  %v10973_v29 = vpack.c.bf16 %v6298_v5, %v6296_v36  ;;  %v6295_v38 = vld [vmem:[%s12408_s3 + $0x6a0] sm:$0xff]  ;;  %12894 = vst [vmem:[#allocation87_spill] sm:$0xff] %v10985_v46  ;;  %v6302_v36 = vld [vmem:[%s12408_s3 + $0x6d8] sm:$0xff] }
 0x270   : > { %7680 = vmatprep.subr.bf16.mxu1 %v10913_v19  ;;  %v10971_v19 = vpack.c.bf16 %v6543_v14, %v6541_v52  ;;  %v6547_v52 = vld [vmem:[%s12408_s3 + $0x820] sm:$0xff]  ;;  %v6300_v14 = vld [vmem:[%s12408_s3 + $0x6c8] sm:$0xff]  ;;  %v6550_v5 = vld [vmem:[%s12408_s3 + $0x838] sm:$0xff]  ;;  %v11003_v39 = vpack.c.bf16 %v6297_v58, %v6295_v38 }
 0x271   : > { %12893 = vst [vmem:[#allocation86_spill] sm:$0xff] %v10973_v29  ;;  %v6549_v38 = vld [vmem:[%s12408_s3 + $0x830] sm:$0xff]  ;;  %v11021_v58 = vpack.c.bf16 %v6552_v17, %v6550_v5  ;;  %v6556_v5 = vld [vmem:[%s12408_s3 + $0x868] sm:$0xff] }
 0x272   : > { %7462 = vmatpush1.bf16.msra.mxu0 %v10931_v9  ;;  %12892 = vst [vmem:[#allocation85_spill] sm:$0xff] %v10971_v19  ;;  %12895 = vst [vmem:[#allocation88_spill] sm:$0xff] %v11003_v39  ;;  %v6301_v9 = vld [vmem:[%s12408_s3 + $0x6d0] sm:$0xff] }
 0x273   : > { %7682 = vmatpush1.bf16.msra.mxu1 %v10935_v41  ;;  %7464 = vmatprep.subr.bf16.mxu0 %v10937_v10  ;;  %v11009_v10 = vpack.c.bf16 %v6302_v36, %v6300_v14  ;;  %v6299_v41 = vld [vmem:[%s12408_s3 + $0x6c0] sm:$0xff]  ;;  %12898 = vst [vmem:[#allocation91_spill] sm:$0xff] %v11021_v58  ;;  %v6306_v14 = vld [vmem:[%s12408_s3 + $0x6f8] sm:$0xff] }
 0x274   : > { %7684 = vmatprep.subr.bf16.mxu1 %v10949_v49  ;;  %v11007_v49 = vpack.c.bf16 %v6547_v52, %v6545_v23  ;;  %v6551_v23 = vld [vmem:[%s12408_s3 + $0x840] sm:$0xff]  ;;  %v6304_v52 = vld [vmem:[%s12408_s3 + $0x6e8] sm:$0xff]  ;;  %v6554_v36 = vld [vmem:[%s12408_s3 + $0x858] sm:$0xff]  ;;  %v11039_v17 = vpack.c.bf16 %v6301_v9, %v6299_v41 }
 0x275   : > { %12897 = vst [vmem:[#allocation90_spill] sm:$0xff] %v11009_v10  ;;  %v6553_v41 = vld [vmem:[%s12408_s3 + $0x850] sm:$0xff]  ;;  %v11057_v9 = vpack.c.bf16 %v6556_v5, %v6554_v36  ;;  %v6560_v36 = vld [vmem:[%s12408_s3 + $0x888] sm:$0xff] }
 0x276   : > { %7466 = vmatpush1.bf16.msra.mxu0 %v10967_v1  ;;  %12896 = vst [vmem:[#allocation89_spill] sm:$0xff] %v11007_v49  ;;  %12899 = vst [vmem:[#allocation92_spill] sm:$0xff] %v11039_v17  ;;  %v6305_v1 = vld [vmem:[%s12408_s3 + $0x6f0] sm:$0xff] }
 0x277   : > { %7686 = vmatpush1.bf16.msra.mxu1 %v10971_v19  ;;  %7468 = vmatprep.subr.bf16.mxu0 %v10973_v29  ;;  %v11045_v29 = vpack.c.bf16 %v6306_v14, %v6304_v52  ;;  %v6303_v19 = vld [vmem:[%s12408_s3 + $0x6e0] sm:$0xff]  ;;  %12902 = vst [vmem:[#allocation95_spill] sm:$0xff] %v11057_v9  ;;  %v6310_v52 = vld [vmem:[%s12408_s3 + $0x718] sm:$0xff] }
 0x278   : > { %7688 = vmatprep.subr.bf16.mxu1 %v10985_v46  ;;  %v11043_v46 = vpack.c.bf16 %v6551_v23, %v6549_v38  ;;  %v6555_v38 = vld [vmem:[%s12408_s3 + $0x860] sm:$0xff]  ;;  %v6308_v23 = vld [vmem:[%s12408_s3 + $0x708] sm:$0xff]  ;;  %v6558_v14 = vld [vmem:[%s12408_s3 + $0x878] sm:$0xff]  ;;  %v11075_v5 = vpack.c.bf16 %v6305_v1, %v6303_v19 }
 0x279   : > { %12901 = vst [vmem:[#allocation94_spill] sm:$0xff] %v11045_v29  ;;  %v11090_v19 = vpack.c.bf16 %v6560_v36, %v6558_v14  ;;  %v6557_v1 = vld [vmem:[%s12408_s3 + $0x870] sm:$0xff]  ;;  %v6562_v14 = vld [vmem:[%s12408_s3 + $0x898] sm:$0xf]  ;;  %v11119_v36 = vrot.slane %v10769_v25, 1 }
 0x27a   : > { %7470 = vmatpush1.bf16.msra.mxu0 %v11003_v39  ;;  %12900 = vst [vmem:[#allocation93_spill] sm:$0xff] %v11043_v46  ;;  %12903 = vst [vmem:[#allocation96_spill] sm:$0xff] %v11075_v5  ;;  %v6309_v39 = vld [vmem:[%s12408_s3 + $0x710] sm:$0xff] }
 0x27b   : > { %7690 = vmatpush1.bf16.msra.mxu1 %v11007_v49  ;;  %7472 = vmatprep.subr.bf16.mxu0 %v11009_v10  ;;  %v11081_v10 = vpack.c.bf16 %v6310_v52, %v6308_v23  ;;  %v6307_v49 = vld [vmem:[%s12408_s3 + $0x700] sm:$0xff]  ;;  %12906 = vst [vmem:[#allocation99_spill] sm:$0xff] %v11090_v19  ;;  %v6312_v52 = vld [vmem:[%s12408_s3 + $0x728] sm:$0xf] }
 0x27c   : > { %7692 = vmatprep.subr.bf16.mxu1 %v11021_v58  ;;  %v11079_v58 = vpack.c.bf16 %v6555_v38, %v6553_v41  ;;  %v6559_v41 = vld [vmem:[%s12408_s3 + $0x880] sm:$0xff]  ;;  %v11099_v38 = vpack.c.bf16 %v6309_v39, %v6307_v49  ;;  %v6318_v49 = vld [vmem:[%s12408_s3 + $0x8a8] sm:$0xff]  ;;  %v6320_v39 = vld [vmem:[%s12408_s3 + $0x8b8] sm:$0xff] }
 0x27d   : > { %12905 = vst [vmem:[#allocation98_spill] sm:$0xff] %v11081_v10  ;;  %v11103_v23 = vpack.c.bf16 %v6559_v41, %v6557_v1  ;;  %v6568_v1 = vld [vmem:[%s12408_s3 + $0xa18] sm:$0xff]  ;;  %v6570_v41 = vld [vmem:[%s12408_s3 + $0xa28] sm:$0xff] }
 0x27e   : > { %7474 = vmatpush1.bf16.msra.mxu0 %v11039_v17  ;;  %12904 = vst [vmem:[#allocation97_spill] sm:$0xff] %v11079_v58  ;;  %12907 = vst [vmem:[#allocation100_spill] sm:$0xff] %v11099_v38 }
 0x27f   : > { %7694 = vmatpush1.bf16.msra.mxu1 %v11043_v46  ;;  %7476 = vmatprep.subr.bf16.mxu0 %v11045_v29  ;;  %12908 = vst [vmem:[#allocation101_spill] sm:$0xff] %v11103_v23  ;;  %v11152_v29 = vpack.c.bf16 %v6570_v41, %v6568_v1  ;;  %v6324_v46 = vld [vmem:[%s12408_s3 + $0x8d8] sm:$0xff]  ;;  %v6574_v41 = vld [vmem:[%s12408_s3 + $0xa48] sm:$0xff] }
 0x280   : > { %7696 = vmatprep.subr.bf16.mxu1 %v11057_v9  ;;  %v6569_v9 = vld [vmem:[%s12408_s3 + $0xa20] sm:$0xff]  ;;  %v6572_v1 = vld [vmem:[%s12408_s3 + $0xa38] sm:$0xff] }
 0x281   : > { %12910 = vst [vmem:[#allocation103_spill] sm:$0xff] %v11152_v29 }
 0x282   : > { %7478 = vmatpush1.bf16.msra.mxu0 %v11075_v5  ;;  %v6567_v5 = vld [vmem:[%s12408_s3 + $0xa10] sm:$0xff] }
 0x283   : > { %7698 = vmatpush1.bf16.msra.mxu1 %v11079_v58  ;;  %7480 = vmatprep.subr.bf16.mxu0 %v11081_v10  ;;  %v6319_v10 = vld [vmem:[%s12408_s3 + $0x8b0] sm:$0xff]  ;;  %v11144_v58 = vpack.c.bf16 %v6320_v39, %v6318_v49  ;;  %v11175_v17 = vpack.c.bf16 %v6569_v9, %v6567_v5  ;;  %v11191_v9 = vrot.slane %v10320_v60, 1  ;;  %v6573_v5 = vld [vmem:[%s12408_s3 + $0xa40] sm:$0xff] }
 0x284   : > { %7700 = vmatprep.subr.bf16.mxu1 %v11090_v19  ;;  %v6311_v19 = vld [vmem:[%s12408_s3 + $0x720] sm:$0xf] }
 0x285   : > { %12909 = vst [vmem:[#allocation102_spill] sm:$0xff] %v11144_v58  ;;  %12912 = vst [vmem:[#allocation105_spill] sm:$0xff] %v11175_v17 }
 0x286   : > { %7482 = vmatpush1.bf16.msra.mxu0 %v11099_v38  ;;  %v6317_v38 = vld [vmem:[%s12408_s3 + $0x8a0] sm:$0xff] }
 0x287   : > { %7702 = vmatpush1.bf16.msra.mxu1 %v11103_v23  ;;  %6313 = vmatprep.subr.msk.mxu0 %vm3790_vm1, %v6312_v52  ;;  %v6561_v23 = vld [vmem:[%s12408_s3 + $0x890] sm:$0xf]  ;;  %v4013_v52 = vrot.slane %v10716_v62, 1  ;;  %v11165_v39 = vpack.c.bf16 %v6319_v10, %v6317_v38 }
 0x288   : > { %6563 = vmatprep.subr.msk.mxu1 %vm3790_vm1, %v6562_v14  ;;  %v6322_v14 = vld [vmem:[%s12408_s3 + $0x8c8] sm:$0xff]  ;;  %v6323_v10 = vld [vmem:[%s12408_s3 + $0x8d0] sm:$0xff] }
 0x289   : > { %v11163_v49 = vsel %vm4012_vm3, %v4013_v52, %v11119_v36  ;;  %12911 = vst [vmem:[#allocation104_spill] sm:$0xff] %v11165_v39  ;;  %v6571_v38 = vld [vmem:[%s12408_s3 + $0xa30] sm:$0xff]  ;;  %v6326_v52 = vld [vmem:[%s12408_s3 + $0x8e8] sm:$0xff] }
 0x28a   : > { %6314 = vmatpush1.msk.msra.mxu0 %vm3790_vm1, %v6311_v19  ;;  %v6321_v19 = vld [vmem:[%s12408_s3 + $0x8c0] sm:$0xff] }
 0x28b   : > { %6564 = vmatpush1.msk.msra.mxu1 %vm3790_vm1, %v6561_v23  ;;  %4096 = vmatmul.mubr.f32.vlgmr.msra.gmra.mrb[16].mxu0 %v11163_v49  ;;  %v11188_v23 = vpack.c.bf16 %v6324_v46, %v6322_v14  ;;  %v11205_v46 = vpack.c.bf16 %v6574_v41, %v6572_v1  ;;  %v6576_v14 = vld [vmem:[%s12408_s3 + $0xa58] sm:$0xff]  ;;  %v11216_v60 = vpack.c.bf16 %v6323_v10, %v6321_v19  ;;  %v6575_v19 = vld [vmem:[%s12408_s3 + $0xa50] sm:$0xff] }
 0x28c   : > { %7484 = vmatprep.subr.bf16.mxu0 %v11144_v58  ;;  %4785 = vmatmul.mubr.f32.vlgmr.msra.gmra.mrb[16].mxu1 %v11163_v49  ;;  %v6578_v58 = vld [vmem:[%s12408_s3 + $0xa68] sm:$0xff]  ;;  %v11221_v1 = vpack.c.bf16 %v6573_v5, %v6571_v38  ;;  %v11223_v41 = vpack.c.bf16 %v6328_v2, %v6326_v52  ;;  %v6577_v38 = vld [vmem:[%s12408_s3 + $0xa60] sm:$0xff]  ;;  %v6332_v52 = vld [vmem:[%s12408_s3 + $0x918] sm:$0xff] }
 0x28d   : > { %12913 = vst [vmem:[#allocation106_spill] sm:$0xff] %v11188_v23  ;;  %7704 = vmatprep.subr.bf16.mxu1 %v11152_v29  ;;  %6316 = vmatprep.mubr.msk.f32.mxu0 %vm3783_vm2, %v10754_v21  ;;  %12914 = vst [vmem:[#allocation107_spill] sm:$0xff] %v11205_v46  ;;  %v4164_v29 = vrot.slane %v10272_v57, 1  ;;  %v11240_v10 = vpack.c.bf16 %v6578_v58, %v6576_v14  ;;  %v6330_v5 = vld [vmem:[%s12408_s3 + $0x908] sm:$0xff] }
 0x28e   : > { %7486 = vmatpush1.bf16.msra.mxu0 %v11165_v39  ;;  %6566 = vmatprep.mubr.msk.f32.mxu1 %vm3783_vm2, %v10754_v21  ;;  %12915 = vst [vmem:[#allocation108_spill] sm:$0xff] %v11216_v60  ;;  %12916 = vst [vmem:[#allocation109_spill] sm:$0xff] %v11221_v1  ;;  %v6327_v39 = vld [vmem:[%s12408_s3 + $0x8f0] sm:$0xff]  ;;  %v6582_v58 = vld [vmem:[%s12408_s3 + $0xa88] sm:$0xff] }
 0x28f   : > { %7706 = vmatpush1.bf16.msra.mxu1 %v11175_v17  ;;  %4102 = vmatmul.mubr.f32.gmra.mrb[18].mxu0 %v11119_v36  ;;  %12917 = vst [vmem:[#allocation110_spill] sm:$0xff] %v11223_v41  ;;  %v11238_v2 = vsel %vm4012_vm3, %v4164_v29, %v11191_v9  ;;  %12919 = vst [vmem:[#allocation112_spill] sm:$0xff] %v11240_v10  ;;  %v6580_v29 = vld [vmem:[%s12408_s3 + $0xa78] sm:$0xff]  ;;  %v11263_v14 = vpack.c.bf16 %v6327_v39, %v6325_v13  ;;  %v6329_v17 = vld [vmem:[%s12408_s3 + $0x900] sm:$0xff] }
 0x290   : > { %7488 = vmatprep.subr.bf16.mxu0 %v11188_v23  ;;  %4791 = vmatmul.mubr.f32.gmra.mrb[18].mxu1 %v11119_v36  ;;  %12918 = vst [vmem:[#allocation111_spill] sm:$0xff] %v11238_v2  ;;  %v11269_v23 = vpack.c.bf16 %v6332_v52, %v6330_v5  ;;  %v6579_v13 = vld [vmem:[%s12408_s3 + $0xa70] sm:$0xff]  ;;  %v11281_v39 = vpack.c.bf16 %v6582_v58, %v6580_v29  ;;  %v6336_v5 = vld [vmem:[%s12408_s3 + $0x938] sm:$0xff]  ;;  %v6586_v29 = vld [vmem:[%s12408_s3 + $0xaa8] sm:$0xff] }
 0x291   : > { %7708 = vmatprep.subr.bf16.mxu1 %v11205_v46  ;;  %6365 = vmatprep.mubr.msk.f32.mxu0 %vm3783_vm2, %v11238_v2  ;;  %12920 = vst [vmem:[#allocation113_spill] sm:$0xff] %v11263_v14  ;;  %v11267_v46 = vpack.c.bf16 %v6577_v38, %v6575_v19  ;;  %v6581_v19 = vld [vmem:[%s12408_s3 + $0xa80] sm:$0xff]  ;;  %v6334_v38 = vld [vmem:[%s12408_s3 + $0x928] sm:$0xff]  ;;  %v6584_v52 = vld [vmem:[%s12408_s3 + $0xa98] sm:$0xff] }
 0x292   : > { %7490 = vmatpush1.bf16.msra.mxu0 %v11216_v60  ;;  %6615 = vmatprep.mubr.msk.f32.mxu1 %vm3783_vm2, %v11238_v2  ;;  %12922 = vst [vmem:[#allocation115_spill] sm:$0xff] %v11269_v23  ;;  %v6331_v60 = vld [vmem:[%s12408_s3 + $0x910] sm:$0xff]  ;;  %12923 = vst [vmem:[#allocation116_spill] sm:$0xff] %v11281_v39 }
 0x293   : > { %7710 = vmatpush1.bf16.msra.mxu1 %v11221_v1  ;;  %7492 = vmatprep.subr.bf16.mxu0 %v11223_v41  ;;  %12921 = vst [vmem:[#allocation114_spill] sm:$0xff] %v11267_v46  ;;  %v11299_v58 = vpack.c.bf16 %v6331_v60, %v6329_v17  ;;  %v11305_v41 = vpack.c.bf16 %v6336_v5, %v6334_v38  ;;  %v6333_v1 = vld [vmem:[%s12408_s3 + $0x920] sm:$0xff]  ;;  %v6335_v2 = vld [vmem:[%s12408_s3 + $0x930] sm:$0xff]  ;;  %v6340_v38 = vld [vmem:[%s12408_s3 + $0x958] sm:$0xff] }
 0x294   : > { %7712 = vmatprep.subr.bf16.mxu1 %v11240_v10  ;;  %v11303_v10 = vpack.c.bf16 %v6581_v19, %v6579_v13  ;;  %v6583_v60 = vld [vmem:[%s12408_s3 + $0xa90] sm:$0xff]  ;;  %v11317_v17 = vpack.c.bf16 %v6586_v29, %v6584_v52  ;;  %v6585_v13 = vld [vmem:[%s12408_s3 + $0xaa0] sm:$0xff]  ;;  %v6338_v19 = vld [vmem:[%s12408_s3 + $0x948] sm:$0xff]  ;;  %v11335_v29 = vpack.c.bf16 %v6335_v2, %v6333_v1 }
 0x295   : > { %12924 = vst [vmem:[#allocation117_spill] sm:$0xff] %v11299_v58  ;;  %12926 = vst [vmem:[#allocation119_spill] sm:$0xff] %v11305_v41  ;;  %v6588_v5 = vld [vmem:[%s12408_s3 + $0xab8] sm:$0xff]  ;;  %v6590_v52 = vld [vmem:[%s12408_s3 + $0xac8] sm:$0xff] }
 0x296   : > { %7494 = vmatpush1.bf16.msra.mxu0 %v11263_v14  ;;  %12925 = vst [vmem:[#allocation118_spill] sm:$0xff] %v11303_v10  ;;  %12927 = vst [vmem:[#allocation120_spill] sm:$0xff] %v11317_v17  ;;  %v6339_v14 = vld [vmem:[%s12408_s3 + $0x950] sm:$0xff]  ;;  %v11353_v2 = vpack.c.bf16 %v6590_v52, %v6588_v5  ;;  %v6594_v5 = vld [vmem:[%s12408_s3 + $0xae8] sm:$0xff] }
 0x297   : > { %7714 = vmatpush1.bf16.msra.mxu1 %v11267_v46  ;;  %7496 = vmatprep.subr.bf16.mxu0 %v11269_v23  ;;  %12928 = vst [vmem:[#allocation121_spill] sm:$0xff] %v11335_v29  ;;  %v11341_v23 = vpack.c.bf16 %v6340_v38, %v6338_v19  ;;  %v6337_v46 = vld [vmem:[%s12408_s3 + $0x940] sm:$0xff]  ;;  %v6587_v1 = vld [vmem:[%s12408_s3 + $0xab0] sm:$0xff]  ;;  %v6344_v19 = vld [vmem:[%s12408_s3 + $0x978] sm:$0xff] }
 0x298   : > { %7716 = vmatprep.subr.bf16.mxu1 %v11281_v39  ;;  %v11339_v39 = vpack.c.bf16 %v6585_v13, %v6583_v60  ;;  %12931 = vst [vmem:[#allocation124_spill] sm:$0xff] %v11353_v2  ;;  %v6589_v60 = vld [vmem:[%s12408_s3 + $0xac0] sm:$0xff]  ;;  %v6342_v13 = vld [vmem:[%s12408_s3 + $0x968] sm:$0xff]  ;;  %v6592_v38 = vld [vmem:[%s12408_s3 + $0xad8] sm:$0xff]  ;;  %v11371_v52 = vpack.c.bf16 %v6339_v14, %v6337_v46 }
 0x299   : > { %12930 = vst [vmem:[#allocation123_spill] sm:$0xff] %v11341_v23  ;;  %v6591_v46 = vld [vmem:[%s12408_s3 + $0xad0] sm:$0xff]  ;;  %v11389_v14 = vpack.c.bf16 %v6594_v5, %v6592_v38  ;;  %v6598_v38 = vld [vmem:[%s12408_s3 + $0xb08] sm:$0xff] }
 0x29a   : > { %7498 = vmatpush1.bf16.msra.mxu0 %v11299_v58  ;;  %12929 = vst [vmem:[#allocation122_spill] sm:$0xff] %v11339_v39  ;;  %12932 = vst [vmem:[#allocation125_spill] sm:$0xff] %v11371_v52  ;;  %v6343_v58 = vld [vmem:[%s12408_s3 + $0x970] sm:$0xff] }
 0x29b   : > { %7718 = vmatpush1.bf16.msra.mxu1 %v11303_v10  ;;  %7500 = vmatprep.subr.bf16.mxu0 %v11305_v41  ;;  %v11377_v41 = vpack.c.bf16 %v6344_v19, %v6342_v13  ;;  %v6341_v10 = vld [vmem:[%s12408_s3 + $0x960] sm:$0xff]  ;;  %12935 = vst [vmem:[#allocation128_spill] sm:$0xff] %v11389_v14  ;;  %v6348_v13 = vld [vmem:[%s12408_s3 + $0x998] sm:$0xff] }
 0x29c   : > { %7720 = vmatprep.subr.bf16.mxu1 %v11317_v17  ;;  %v11375_v17 = vpack.c.bf16 %v6589_v60, %v6587_v1  ;;  %v6593_v1 = vld [vmem:[%s12408_s3 + $0xae0] sm:$0xff]  ;;  %v6346_v60 = vld [vmem:[%s12408_s3 + $0x988] sm:$0xff]  ;;  %v6596_v19 = vld [vmem:[%s12408_s3 + $0xaf8] sm:$0xff]  ;;  %v11407_v5 = vpack.c.bf16 %v6343_v58, %v6341_v10 }
 0x29d   : > { %12934 = vst [vmem:[#allocation127_spill] sm:$0xff] %v11377_v41  ;;  %v6595_v10 = vld [vmem:[%s12408_s3 + $0xaf0] sm:$0xff]  ;;  %v11425_v58 = vpack.c.bf16 %v6598_v38, %v6596_v19  ;;  %v6602_v19 = vld [vmem:[%s12408_s3 + $0xb28] sm:$0xff] }
 0x29e   : > { %7502 = vmatpush1.bf16.msra.mxu0 %v11335_v29  ;;  %12933 = vst [vmem:[#allocation126_spill] sm:$0xff] %v11375_v17  ;;  %12936 = vst [vmem:[#allocation129_spill] sm:$0xff] %v11407_v5  ;;  %v6347_v29 = vld [vmem:[%s12408_s3 + $0x990] sm:$0xff] }
 0x29f   : > { %7722 = vmatpush1.bf16.msra.mxu1 %v11339_v39  ;;  %7504 = vmatprep.subr.bf16.mxu0 %v11341_v23  ;;  %v11413_v23 = vpack.c.bf16 %v6348_v13, %v6346_v60  ;;  %v6345_v39 = vld [vmem:[%s12408_s3 + $0x980] sm:$0xff]  ;;  %12939 = vst [vmem:[#allocation132_spill] sm:$0xff] %v11425_v58  ;;  %v6352_v60 = vld [vmem:[%s12408_s3 + $0x9b8] sm:$0xff] }
 0x2a0   : > { %7724 = vmatprep.subr.bf16.mxu1 %v11353_v2  ;;  %v11411_v2 = vpack.c.bf16 %v6593_v1, %v6591_v46  ;;  %v6597_v46 = vld [vmem:[%s12408_s3 + $0xb00] sm:$0xff]  ;;  %v6350_v1 = vld [vmem:[%s12408_s3 + $0x9a8] sm:$0xff]  ;;  %v6600_v13 = vld [vmem:[%s12408_s3 + $0xb18] sm:$0xff]  ;;  %v11443_v38 = vpack.c.bf16 %v6347_v29, %v6345_v39 }
 0x2a1   : > { %12938 = vst [vmem:[#allocation131_spill] sm:$0xff] %v11413_v23  ;;  %v6599_v39 = vld [vmem:[%s12408_s3 + $0xb10] sm:$0xff]  ;;  %v11461_v29 = vpack.c.bf16 %v6602_v19, %v6600_v13  ;;  %v6606_v13 = vld [vmem:[%s12408_s3 + $0xb48] sm:$0xff] }
 0x2a2   : > { %7506 = vmatpush1.bf16.msra.mxu0 %v11371_v52  ;;  %12937 = vst [vmem:[#allocation130_spill] sm:$0xff] %v11411_v2  ;;  %12940 = vst [vmem:[#allocation133_spill] sm:$0xff] %v11443_v38  ;;  %v6351_v52 = vld [vmem:[%s12408_s3 + $0x9b0] sm:$0xff] }
 0x2a3   : > { %7726 = vmatpush1.bf16.msra.mxu1 %v11375_v17  ;;  %7508 = vmatprep.subr.bf16.mxu0 %v11377_v41  ;;  %v11449_v41 = vpack.c.bf16 %v6352_v60, %v6350_v1  ;;  %v6349_v17 = vld [vmem:[%s12408_s3 + $0x9a0] sm:$0xff]  ;;  %12943 = vst [vmem:[#allocation136_spill] sm:$0xff] %v11461_v29  ;;  %v6356_v1 = vld [vmem:[%s12408_s3 + $0x9d8] sm:$0xff] }
 0x2a4   : > { %7728 = vmatprep.subr.bf16.mxu1 %v11389_v14  ;;  %v11447_v14 = vpack.c.bf16 %v6597_v46, %v6595_v10  ;;  %v6601_v10 = vld [vmem:[%s12408_s3 + $0xb20] sm:$0xff]  ;;  %v6354_v46 = vld [vmem:[%s12408_s3 + $0x9c8] sm:$0xff]  ;;  %v6604_v60 = vld [vmem:[%s12408_s3 + $0xb38] sm:$0xff]  ;;  %v11479_v19 = vpack.c.bf16 %v6351_v52, %v6349_v17 }
 0x2a5   : > { %12942 = vst [vmem:[#allocation135_spill] sm:$0xff] %v11449_v41  ;;  %v6603_v17 = vld [vmem:[%s12408_s3 + $0xb30] sm:$0xff]  ;;  %v11497_v52 = vpack.c.bf16 %v6606_v13, %v6604_v60  ;;  %v6610_v60 = vld [vmem:[%s12408_s3 + $0xb68] sm:$0xff] }
 0x2a6   : > { %7510 = vmatpush1.bf16.msra.mxu0 %v11407_v5  ;;  %12941 = vst [vmem:[#allocation134_spill] sm:$0xff] %v11447_v14  ;;  %12944 = vst [vmem:[#allocation137_spill] sm:$0xff] %v11479_v19  ;;  %v6355_v5 = vld [vmem:[%s12408_s3 + $0x9d0] sm:$0xff] }
 0x2a7   : > { %7730 = vmatpush1.bf16.msra.mxu1 %v11411_v2  ;;  %7512 = vmatprep.subr.bf16.mxu0 %v11413_v23  ;;  %v11485_v23 = vpack.c.bf16 %v6356_v1, %v6354_v46  ;;  %v6353_v2 = vld [vmem:[%s12408_s3 + $0x9c0] sm:$0xff]  ;;  %12947 = vst [vmem:[#allocation140_spill] sm:$0xff] %v11497_v52  ;;  %v6360_v46 = vld [vmem:[%s12408_s3 + $0x9f8] sm:$0xff] }
 0x2a8   : > { %7732 = vmatprep.subr.bf16.mxu1 %v11425_v58  ;;  %v11483_v58 = vpack.c.bf16 %v6601_v10, %v6599_v39  ;;  %v6605_v39 = vld [vmem:[%s12408_s3 + $0xb40] sm:$0xff]  ;;  %v6358_v10 = vld [vmem:[%s12408_s3 + $0x9e8] sm:$0xff]  ;;  %v6608_v1 = vld [vmem:[%s12408_s3 + $0xb58] sm:$0xff]  ;;  %v11515_v13 = vpack.c.bf16 %v6355_v5, %v6353_v2 }
 0x2a9   : > { %12946 = vst [vmem:[#allocation139_spill] sm:$0xff] %v11485_v23  ;;  %v11530_v2 = vpack.c.bf16 %v6610_v60, %v6608_v1  ;;  %v6607_v5 = vld [vmem:[%s12408_s3 + $0xb50] sm:$0xff]  ;;  %v11554_v1 = vld [vmem:[%s12408_s3 + $0xb78] sm:$0xf]  ;;  %v11564_v60 = vrot.slane %v10334_v55, 1 }
 0x2aa   : > { %7514 = vmatpush1.bf16.msra.mxu0 %v11443_v38  ;;  %12945 = vst [vmem:[#allocation138_spill] sm:$0xff] %v11483_v58  ;;  %12948 = vst [vmem:[#allocation141_spill] sm:$0xff] %v11515_v13  ;;  %v6359_v38 = vld [vmem:[%s12408_s3 + $0x9f0] sm:$0xff]  ;;  %v6378_v55 = vld [vmem:[%s12408_s3 + $0xbd8] sm:$0xff] }
 0x2ab   : > { %7734 = vmatpush1.bf16.msra.mxu1 %v11447_v14  ;;  %7516 = vmatprep.subr.bf16.mxu0 %v11449_v41  ;;  %v11521_v41 = vpack.c.bf16 %v6360_v46, %v6358_v10  ;;  %v6357_v14 = vld [vmem:[%s12408_s3 + $0x9e0] sm:$0xff]  ;;  %12951 = vst [vmem:[#allocation144_spill] sm:$0xff] %v11530_v2  ;;  %v11549_v46 = vld [vmem:[%s12408_s3 + $0xa08] sm:$0xf]  ;;  %12955 = vst [vmem:[#allocation148_spill] sm:$0xff] %v11554_v1 }
 0x2ac   : > { %7736 = vmatprep.subr.bf16.mxu1 %v11461_v29  ;;  %v11519_v29 = vpack.c.bf16 %v6605_v39, %v6603_v17  ;;  %v6609_v17 = vld [vmem:[%s12408_s3 + $0xb60] sm:$0xff]  ;;  %v11539_v39 = vpack.c.bf16 %v6359_v38, %v6357_v14  ;;  %12954 = vst [vmem:[#allocation147_spill] sm:$0xff] %v11549_v46  ;;  %v6368_v14 = vld [vmem:[%s12408_s3 + $0xb88] sm:$0xff]  ;;  %v6370_v38 = vld [vmem:[%s12408_s3 + $0xb98] sm:$0xff] }
 0x2ad   : > { %12950 = vst [vmem:[#allocation143_spill] sm:$0xff] %v11521_v41  ;;  %v11543_v10 = vpack.c.bf16 %v6609_v17, %v6607_v5  ;;  %v6618_v5 = vld [vmem:[%s12408_s3 + $0xcf8] sm:$0xff]  ;;  %v6620_v17 = vld [vmem:[%s12408_s3 + $0xd08] sm:$0xff] }
 0x2ae   : > { %7518 = vmatpush1.bf16.msra.mxu0 %v11479_v19  ;;  %12949 = vst [vmem:[#allocation142_spill] sm:$0xff] %v11519_v29  ;;  %12952 = vst [vmem:[#allocation145_spill] sm:$0xff] %v11539_v39  ;;  %v11639_v19 = vrot.slane %v10706_v28, 2 }
 0x2af   : > { %7738 = vmatpush1.bf16.msra.mxu1 %v11483_v58  ;;  %7520 = vmatprep.subr.bf16.mxu0 %v11485_v23  ;;  %12953 = vst [vmem:[#allocation146_spill] sm:$0xff] %v11543_v10  ;;  %v11602_v23 = vpack.c.bf16 %v6620_v17, %v6618_v5  ;;  %v6374_v58 = vld [vmem:[%s12408_s3 + $0xbb8] sm:$0xff]  ;;  %v6624_v17 = vld [vmem:[%s12408_s3 + $0xd28] sm:$0xff] }
 0x2b0   : > { %7740 = vmatprep.subr.bf16.mxu1 %v11497_v52  ;;  %v6619_v52 = vld [vmem:[%s12408_s3 + $0xd00] sm:$0xff]  ;;  %v6622_v5 = vld [vmem:[%s12408_s3 + $0xd18] sm:$0xff] }
 0x2b1   : > { %12959 = vst [vmem:[#allocation152_spill] sm:$0xff] %v11602_v23  ;;  %v11657_v28 = vpack.c.bf16 %v6624_v17, %v6622_v5 }
 0x2b2   : > { %7522 = vmatpush1.bf16.msra.mxu0 %v11515_v13  ;;  %v6617_v13 = vld [vmem:[%s12408_s3 + $0xcf0] sm:$0xff] }
 0x2b3   : > { %7742 = vmatpush1.bf16.msra.mxu1 %v11519_v29  ;;  %7524 = vmatprep.subr.bf16.mxu0 %v11521_v41  ;;  %v6369_v41 = vld [vmem:[%s12408_s3 + $0xb90] sm:$0xff]  ;;  %v11594_v29 = vpack.c.bf16 %v6370_v38, %v6368_v14  ;;  %12964 = vst [vmem:[#allocation157_spill] sm:$0xff] %v11657_v28 }
 0x2b4   : > { %7744 = vmatprep.subr.bf16.mxu1 %v11530_v2  ;;  %v6367_v2 = vld [vmem:[%s12408_s3 + $0xb80] sm:$0xff] }
 0x2b5   : > { %12958 = vst [vmem:[#allocation151_spill] sm:$0xff] %v11594_v29  ;;  %v11616_v38 = vpack.c.bf16 %v6369_v41, %v6367_v2  ;;  %v6371_v41 = vld [vmem:[%s12408_s3 + $0xba0] sm:$0xff]  ;;  %v6373_v2 = vld [vmem:[%s12408_s3 + $0xbb0] sm:$0xff] }
 0x2b6   : > { %7526 = vmatpush1.bf16.msra.mxu0 %v11539_v39  ;;  %v11578_v39 = vld [vmem:[%s12408_s3 + $0xa00] sm:$0xf] }
 0x2b7   : > { %7746 = vmatpush1.bf16.msra.mxu1 %v11543_v10  ;;  %6363 = vmatprep.subr.msk.mxu0 %vm3790_vm1, %v11549_v46  ;;  %12956 = vst [vmem:[#allocation149_spill] sm:$0xff] %v11578_v39  ;;  %v11591_v46 = vld [vmem:[%s12408_s3 + $0xb70] sm:$0xf]  ;;  %v4161_v10 = vrot.slane %v10281_v22, 1  ;;  %12961 = vst [vmem:[#allocation154_spill] sm:$0xff] %v11616_v38 }
 0x2b8   : > { %6613 = vmatprep.subr.msk.mxu1 %vm3790_vm1, %v11554_v1  ;;  %12957 = vst [vmem:[#allocation150_spill] sm:$0xff] %v11591_v46  ;;  %v6372_v1 = vld [vmem:[%s12408_s3 + $0xba8] sm:$0xff] }
 0x2b9   : > { %v11614_v14 = vsel %vm4012_vm3, %v4161_v10, %v11564_v60  ;;  %v6621_v10 = vld [vmem:[%s12408_s3 + $0xd10] sm:$0xff] }
 0x2ba   : > { %6364 = vmatpush1.msk.msra.mxu0 %vm3790_vm1, %v11578_v39  ;;  %12960 = vst [vmem:[#allocation153_spill] sm:$0xff] %v11614_v14  ;;  %v11627_v39 = vpack.c.bf16 %v6619_v52, %v6617_v13  ;;  %v11643_v52 = vpack.c.bf16 %v6374_v58, %v6372_v1  ;;  %v6623_v13 = vld [vmem:[%s12408_s3 + $0xd20] sm:$0xff]  ;;  %v6626_v58 = vld [vmem:[%s12408_s3 + $0xd38] sm:$0xff]  ;;  %v6628_v1 = vld [vmem:[%s12408_s3 + $0xd48] sm:$0xff] }
 0x2bb   : > { %6614 = vmatpush1.msk.msra.mxu1 %vm3790_vm1, %v11591_v46  ;;  %4244 = vmatmul.mubr.f32.vlgmr.msra.gmra.mrb[16].mxu0 %v11614_v14  ;;  %v6376_v46 = vld [vmem:[%s12408_s3 + $0xbc8] sm:$0xff]  ;;  %v11673_v5 = vpack.c.bf16 %v6623_v13, %v6621_v10  ;;  %v6382_v10 = vld [vmem:[%s12408_s3 + $0xbf8] sm:$0xff] }
 0x2bc   : > { %12962 = vst [vmem:[#allocation155_spill] sm:$0xff] %v11627_v39  ;;  %7528 = vmatprep.subr.bf16.mxu0 %v11594_v29  ;;  %4919 = vmatmul.mubr.f32.vlgmr.msra.gmra.mrb[16].mxu1 %v11614_v14  ;;  %12963 = vst [vmem:[#allocation156_spill] sm:$0xff] %v11643_v52  ;;  %v4311_v29 = vrot.slane %v10364_v37, 2  ;;  %v11675_v17 = vpack.c.bf16 %v6378_v55, %v6376_v46  ;;  %v6375_v14 = vld [vmem:[%s12408_s3 + $0xbc0] sm:$0xff]  ;;  %v6625_v37 = vld [vmem:[%s12408_s3 + $0xd30] sm:$0xff]  ;;  %v11692_v46 = vpack.c.bf16 %v6628_v1, %v6626_v58 }
 0x2bd   : > { %7748 = vmatprep.subr.bf16.mxu1 %v11602_v23  ;;  %6366 = vmatprep.mubr.msk.f32.mxu0 %vm3783_vm2, %v11191_v9  ;;  %v11668_v23 = vpack.c.bf16 %v6373_v2, %v6371_v41  ;;  %12966 = vst [vmem:[#allocation159_spill] sm:$0xff] %v11673_v5  ;;  %v6627_v41 = vld [vmem:[%s12408_s3 + $0xd40] sm:$0xff]  ;;  %v6380_v2 = vld [vmem:[%s12408_s3 + $0xbe8] sm:$0xff] }
 0x2be   : > { %7530 = vmatpush1.bf16.msra.mxu0 %v11616_v38  ;;  %6616 = vmatprep.mubr.msk.f32.mxu1 %vm3783_vm2, %v11191_v9  ;;  %12967 = vst [vmem:[#allocation160_spill] sm:$0xff] %v11675_v17  ;;  %v6377_v38 = vld [vmem:[%s12408_s3 + $0xbd0] sm:$0xff]  ;;  %v11690_v55 = vsel %vm4307_vm4, %v4311_v29, %v11639_v19  ;;  %12968 = vst [vmem:[#allocation161_spill] sm:$0xff] %v11692_v46  ;;  %v6630_v29 = vld [vmem:[%s12408_s3 + $0xd58] sm:$0xff]  ;;  %v11719_v1 = vpack.c.bf16 %v6627_v41, %v6625_v37 }
 0x2bf   : > { %12965 = vst [vmem:[#allocation158_spill] sm:$0xff] %v11668_v23  ;;  %7750 = vmatpush1.bf16.msra.mxu1 %v11627_v39  ;;  %4250 = vmatmul.mubr.f32.gmra.mrb[18].mxu0 %v11564_v60  ;;  %v6632_v13 = vld [vmem:[%s12408_s3 + $0xd68] sm:$0xff]  ;;  %v11715_v58 = vpack.c.bf16 %v6377_v38, %v6375_v14  ;;  %v6629_v14 = vld [vmem:[%s12408_s3 + $0xd50] sm:$0xff]  ;;  %v6631_v37 = vld [vmem:[%s12408_s3 + $0xd60] sm:$0xff] }
 0x2c0   : > { %7532 = vmatprep.subr.bf16.mxu0 %v11643_v52  ;;  %4925 = vmatmul.mubr.f32.gmra.mrb[18].mxu1 %v11564_v60  ;;  %12970 = vst [vmem:[#allocation163_spill] sm:$0xff] %v11719_v1  ;;  %v6379_v52 = vld [vmem:[%s12408_s3 + $0xbe0] sm:$0xff]  ;;  %v11733_v38 = vpack.c.bf16 %v6632_v13, %v6630_v29  ;;  %v6384_v41 = vld [vmem:[%s12408_s3 + $0xc08] sm:$0xff]  ;;  %v6385_v39 = vld [vmem:[%s12408_s3 + $0xc10] sm:$0xff] }
 0x2c1   : > { %7752 = vmatprep.subr.bf16.mxu1 %v11657_v28  ;;  %6415 = vmatprep.mubr.msk.f32.mxu0 %vm3783_vm2, %v11690_v55  ;;  %12969 = vst [vmem:[#allocation162_spill] sm:$0xff] %v11715_v58  ;;  %v11721_v28 = vpack.c.bf16 %v6382_v10, %v6380_v2  ;;  %v6386_v2 = vld [vmem:[%s12408_s3 + $0xc18] sm:$0xff]  ;;  %v6636_v29 = vld [vmem:[%s12408_s3 + $0xd88] sm:$0xff] }
 0x2c2   : > { %7534 = vmatpush1.bf16.msra.mxu0 %v11668_v23  ;;  %6665 = vmatprep.mubr.msk.f32.mxu1 %vm3783_vm2, %v11690_v55  ;;  %v6381_v23 = vld [vmem:[%s12408_s3 + $0xbf0] sm:$0xff]  ;;  %12972 = vst [vmem:[#allocation165_spill] sm:$0xff] %v11733_v38  ;;  %v6634_v10 = vld [vmem:[%s12408_s3 + $0xd78] sm:$0xff] }
 0x2c3   : > { %7754 = vmatpush1.bf16.msra.mxu1 %v11673_v5  ;;  %7536 = vmatprep.subr.bf16.mxu0 %v11675_v17  ;;  %12971 = vst [vmem:[#allocation164_spill] sm:$0xff] %v11721_v28  ;;  %v11751_v13 = vpack.c.bf16 %v6381_v23, %v6379_v52  ;;  %v11757_v17 = vpack.c.bf16 %v6386_v2, %v6384_v41  ;;  %v6383_v5 = vld [vmem:[%s12408_s3 + $0xc00] sm:$0xff]  ;;  %v6633_v23 = vld [vmem:[%s12408_s3 + $0xd70] sm:$0xff]  ;;  %v6390_v41 = vld [vmem:[%s12408_s3 + $0xc38] sm:$0xff] }
 0x2c4   : > { %7756 = vmatprep.subr.bf16.mxu1 %v11692_v46  ;;  %v11755_v46 = vpack.c.bf16 %v6631_v37, %v6629_v14  ;;  %v11769_v52 = vpack.c.bf16 %v6636_v29, %v6634_v10  ;;  %v6635_v14 = vld [vmem:[%s12408_s3 + $0xd80] sm:$0xff]  ;;  %v6388_v37 = vld [vmem:[%s12408_s3 + $0xc28] sm:$0xff]  ;;  %v6638_v2 = vld [vmem:[%s12408_s3 + $0xd98] sm:$0xff]  ;;  %v11787_v29 = vpack.c.bf16 %v6385_v39, %v6383_v5 }
 0x2c5   : > { %12973 = vst [vmem:[#allocation166_spill] sm:$0xff] %v11751_v13  ;;  %12975 = vst [vmem:[#allocation168_spill] sm:$0xff] %v11757_v17  ;;  %v6640_v10 = vld [vmem:[%s12408_s3 + $0xda8] sm:$0xff]  ;;  %v6637_v39 = vld [vmem:[%s12408_s3 + $0xd90] sm:$0xff] }
 0x2c6   : > { %7538 = vmatpush1.bf16.msra.mxu0 %v11715_v58  ;;  %12974 = vst [vmem:[#allocation167_spill] sm:$0xff] %v11755_v46  ;;  %12976 = vst [vmem:[#allocation169_spill] sm:$0xff] %v11769_v52  ;;  %v6389_v58 = vld [vmem:[%s12408_s3 + $0xc30] sm:$0xff]  ;;  %v11805_v5 = vpack.c.bf16 %v6640_v10, %v6638_v2  ;;  %v6644_v2 = vld [vmem:[%s12408_s3 + $0xdc8] sm:$0xff] }
 0x2c7   : > { %7758 = vmatpush1.bf16.msra.mxu1 %v11719_v1  ;;  %7540 = vmatprep.subr.bf16.mxu0 %v11721_v28  ;;  %12977 = vst [vmem:[#allocation170_spill] sm:$0xff] %v11787_v29  ;;  %v11793_v28 = vpack.c.bf16 %v6390_v41, %v6388_v37  ;;  %v6387_v1 = vld [vmem:[%s12408_s3 + $0xc20] sm:$0xff]  ;;  %v6394_v37 = vld [vmem:[%s12408_s3 + $0xc58] sm:$0xff] }
 0x2c8   : > { %7760 = vmatprep.subr.bf16.mxu1 %v11733_v38  ;;  %v11791_v38 = vpack.c.bf16 %v6635_v14, %v6633_v23  ;;  %12980 = vst [vmem:[#allocation173_spill] sm:$0xff] %v11805_v5  ;;  %v6639_v23 = vld [vmem:[%s12408_s3 + $0xda0] sm:$0xff]  ;;  %v6392_v14 = vld [vmem:[%s12408_s3 + $0xc48] sm:$0xff]  ;;  %v6642_v41 = vld [vmem:[%s12408_s3 + $0xdb8] sm:$0xff]  ;;  %v11823_v10 = vpack.c.bf16 %v6389_v58, %v6387_v1 }
 0x2c9   : > { %12979 = vst [vmem:[#allocation172_spill] sm:$0xff] %v11793_v28  ;;  %v6641_v58 = vld [vmem:[%s12408_s3 + $0xdb0] sm:$0xff]  ;;  %v11841_v1 = vpack.c.bf16 %v6644_v2, %v6642_v41  ;;  %v6648_v41 = vld [vmem:[%s12408_s3 + $0xde8] sm:$0xff] }
 0x2ca   : > { %7542 = vmatpush1.bf16.msra.mxu0 %v11751_v13  ;;  %12978 = vst [vmem:[#allocation171_spill] sm:$0xff] %v11791_v38  ;;  %12981 = vst [vmem:[#allocation174_spill] sm:$0xff] %v11823_v10  ;;  %v6393_v13 = vld [vmem:[%s12408_s3 + $0xc50] sm:$0xff] }
 0x2cb   : > { %7762 = vmatpush1.bf16.msra.mxu1 %v11755_v46  ;;  %7544 = vmatprep.subr.bf16.mxu0 %v11757_v17  ;;  %v11829_v17 = vpack.c.bf16 %v6394_v37, %v6392_v14  ;;  %v6391_v46 = vld [vmem:[%s12408_s3 + $0xc40] sm:$0xff]  ;;  %12984 = vst [vmem:[#allocation177_spill] sm:$0xff] %v11841_v1  ;;  %v6398_v14 = vld [vmem:[%s12408_s3 + $0xc78] sm:$0xff] }
 0x2cc   : > { %7764 = vmatprep.subr.bf16.mxu1 %v11769_v52  ;;  %v11827_v52 = vpack.c.bf16 %v6639_v23, %v6637_v39  ;;  %v6643_v39 = vld [vmem:[%s12408_s3 + $0xdc0] sm:$0xff]  ;;  %v6396_v23 = vld [vmem:[%s12408_s3 + $0xc68] sm:$0xff]  ;;  %v6646_v37 = vld [vmem:[%s12408_s3 + $0xdd8] sm:$0xff]  ;;  %v11859_v2 = vpack.c.bf16 %v6393_v13, %v6391_v46 }
 0x2cd   : > { %12983 = vst [vmem:[#allocation176_spill] sm:$0xff] %v11829_v17  ;;  %v6645_v46 = vld [vmem:[%s12408_s3 + $0xdd0] sm:$0xff]  ;;  %v11877_v13 = vpack.c.bf16 %v6648_v41, %v6646_v37  ;;  %v6652_v37 = vld [vmem:[%s12408_s3 + $0xe08] sm:$0xff] }
 0x2ce   : > { %7546 = vmatpush1.bf16.msra.mxu0 %v11787_v29  ;;  %12982 = vst [vmem:[#allocation175_spill] sm:$0xff] %v11827_v52  ;;  %12985 = vst [vmem:[#allocation178_spill] sm:$0xff] %v11859_v2  ;;  %v6397_v29 = vld [vmem:[%s12408_s3 + $0xc70] sm:$0xff] }
 0x2cf   : > { %7766 = vmatpush1.bf16.msra.mxu1 %v11791_v38  ;;  %7548 = vmatprep.subr.bf16.mxu0 %v11793_v28  ;;  %v11865_v28 = vpack.c.bf16 %v6398_v14, %v6396_v23  ;;  %v6395_v38 = vld [vmem:[%s12408_s3 + $0xc60] sm:$0xff]  ;;  %12988 = vst [vmem:[#allocation181_spill] sm:$0xff] %v11877_v13  ;;  %v6402_v23 = vld [vmem:[%s12408_s3 + $0xc98] sm:$0xff] }
 0x2d0   : > { %7768 = vmatprep.subr.bf16.mxu1 %v11805_v5  ;;  %v11863_v5 = vpack.c.bf16 %v6643_v39, %v6641_v58  ;;  %v6647_v58 = vld [vmem:[%s12408_s3 + $0xde0] sm:$0xff]  ;;  %v6400_v39 = vld [vmem:[%s12408_s3 + $0xc88] sm:$0xff]  ;;  %v6650_v14 = vld [vmem:[%s12408_s3 + $0xdf8] sm:$0xff]  ;;  %v11895_v41 = vpack.c.bf16 %v6397_v29, %v6395_v38 }
 0x2d1   : > { %12987 = vst [vmem:[#allocation180_spill] sm:$0xff] %v11865_v28  ;;  %v6649_v38 = vld [vmem:[%s12408_s3 + $0xdf0] sm:$0xff]  ;;  %v11913_v29 = vpack.c.bf16 %v6652_v37, %v6650_v14  ;;  %v6656_v14 = vld [vmem:[%s12408_s3 + $0xe28] sm:$0xff] }
 0x2d2   : > { %7550 = vmatpush1.bf16.msra.mxu0 %v11823_v10  ;;  %12986 = vst [vmem:[#allocation179_spill] sm:$0xff] %v11863_v5  ;;  %12989 = vst [vmem:[#allocation182_spill] sm:$0xff] %v11895_v41  ;;  %v6401_v10 = vld [vmem:[%s12408_s3 + $0xc90] sm:$0xff] }
 0x2d3   : > { %7770 = vmatpush1.bf16.msra.mxu1 %v11827_v52  ;;  %7552 = vmatprep.subr.bf16.mxu0 %v11829_v17  ;;  %v11901_v17 = vpack.c.bf16 %v6402_v23, %v6400_v39  ;;  %v6399_v52 = vld [vmem:[%s12408_s3 + $0xc80] sm:$0xff]  ;;  %12992 = vst [vmem:[#allocation185_spill] sm:$0xff] %v11913_v29  ;;  %v6406_v39 = vld [vmem:[%s12408_s3 + $0xcb8] sm:$0xff] }
 0x2d4   : > { %7772 = vmatprep.subr.bf16.mxu1 %v11841_v1  ;;  %v11899_v1 = vpack.c.bf16 %v6647_v58, %v6645_v46  ;;  %v6651_v46 = vld [vmem:[%s12408_s3 + $0xe00] sm:$0xff]  ;;  %v6404_v58 = vld [vmem:[%s12408_s3 + $0xca8] sm:$0xff]  ;;  %v6654_v23 = vld [vmem:[%s12408_s3 + $0xe18] sm:$0xff]  ;;  %v11931_v37 = vpack.c.bf16 %v6401_v10, %v6399_v52 }
 0x2d5   : > { %12991 = vst [vmem:[#allocation184_spill] sm:$0xff] %v11901_v17  ;;  %v6653_v52 = vld [vmem:[%s12408_s3 + $0xe10] sm:$0xff]  ;;  %v11949_v10 = vpack.c.bf16 %v6656_v14, %v6654_v23  ;;  %v6660_v23 = vld [vmem:[%s12408_s3 + $0xe48] sm:$0xff] }
 0x2d6   : > { %7554 = vmatpush1.bf16.msra.mxu0 %v11859_v2  ;;  %12990 = vst [vmem:[#allocation183_spill] sm:$0xff] %v11899_v1  ;;  %v6405_v2 = vld [vmem:[%s12408_s3 + $0xcb0] sm:$0xff] }
 0x2d7   : > { %7774 = vmatpush1.bf16.msra.mxu1 %v11863_v5  ;;  %7556 = vmatprep.subr.bf16.mxu0 %v11865_v28  ;;  %v11937_v28 = vpack.c.bf16 %v6406_v39, %v6404_v58  ;;  %v6403_v5 = vld [vmem:[%s12408_s3 + $0xca0] sm:$0xff]  ;;  %v6410_v58 = vld [vmem:[%s12408_s3 + $0xcd8] sm:$0xff] }
 0x2d8   : > { %7776 = vmatprep.subr.bf16.mxu1 %v11877_v13  ;;  %v11935_v13 = vpack.c.bf16 %v6651_v46, %v6649_v38  ;;  %v6655_v38 = vld [vmem:[%s12408_s3 + $0xe20] sm:$0xff]  ;;  %v6408_v46 = vld [vmem:[%s12408_s3 + $0xcc8] sm:$0xff]  ;;  %v6658_v39 = vld [vmem:[%s12408_s3 + $0xe38] sm:$0xff]  ;;  %v11967_v14 = vpack.c.bf16 %v6405_v2, %v6403_v5 }
 0x2d9   : > { %v11982_v5 = vpack.c.bf16 %v6660_v23, %v6658_v39  ;;  %v6657_v2 = vld [vmem:[%s12408_s3 + $0xe30] sm:$0xff]  ;;  %v12006_v39 = vld [vmem:[%s12408_s3 + $0xe58] sm:$0xf]  ;;  %v4308_v23 = vrot.slane %v10716_v62, 2 }
 0x2da   : > { %7558 = vmatpush1.bf16.msra.mxu0 %v11895_v41  ;;  %v6409_v41 = vld [vmem:[%s12408_s3 + $0xcd0] sm:$0xff] }
 0x2db   : > { %7778 = vmatpush1.bf16.msra.mxu1 %v11899_v1  ;;  %7560 = vmatprep.subr.bf16.mxu0 %v11901_v17  ;;  %v11973_v17 = vpack.c.bf16 %v6410_v58, %v6408_v46  ;;  %v6407_v1 = vld [vmem:[%s12408_s3 + $0xcc0] sm:$0xff]  ;;  %v12001_v58 = vld [vmem:[%s12408_s3 + $0xce8] sm:$0xf]  ;;  %v13023_v62 = vld [vmem:[#allocation20_spill] sm:$0xff] }
 0x2dc   : > { %7780 = vmatprep.subr.bf16.mxu1 %v11913_v29  ;;  %v11971_v29 = vpack.c.bf16 %v6655_v38, %v6653_v52  ;;  %v6659_v52 = vld [vmem:[%s12408_s3 + $0xe40] sm:$0xff]  ;;  %v11991_v38 = vpack.c.bf16 %v6409_v41, %v6407_v1  ;;  %v12009_v1 = vrot.slane %v10769_v25, 2  ;;  %v12025_v25 = vld [vmem:[%s12408_s3 + $0xe50] sm:$0xf] }
 0x2dd   : > { %v11995_v46 = vpack.c.bf16 %v6659_v52, %v6657_v2  ;;  %v12018_v41 = vld [vmem:[%s12408_s3 + $0xce0] sm:$0xf]  ;;  %v13028_v52 = vld [vmem:[#allocation39_spill] sm:$0xff] }
 0x2de   : > { %7562 = vmatpush1.bf16.msra.mxu0 %v11931_v37  ;;  %v12032_v2 = vsel %vm4307_vm4, %v4308_v23, %v12009_v1  ;;  %v13029_v23 = vld [vmem:[#allocation41_spill] sm:$0xff] }
 0x2df   : > { %7782 = vmatpush1.bf16.msra.mxu1 %v11935_v13  ;;  %7564 = vmatprep.subr.bf16.mxu0 %v11937_v28 }
 0x2e0   : > { %7784 = vmatprep.subr.bf16.mxu1 %v11949_v10 }
 0x2e2   : > { %7566 = vmatpush1.bf16.msra.mxu0 %v11967_v14 }
 0x2e3   : > { %7786 = vmatpush1.bf16.msra.mxu1 %v11971_v29  ;;  %7568 = vmatprep.subr.bf16.mxu0 %v11973_v17 }
 0x2e4   : > { %7788 = vmatprep.subr.bf16.mxu1 %v11982_v5 }
 0x2e6   : > { %7570 = vmatpush1.bf16.msra.mxu0 %v11991_v38 }
 0x2e7   : > { %7790 = vmatpush1.bf16.msra.mxu1 %v11995_v46  ;;  %6413 = vmatprep.subr.msk.mxu0 %vm3790_vm1, %v12001_v58 }
 0x2e8   : > { %6663 = vmatprep.subr.msk.mxu1 %vm3790_vm1, %v12006_v39 }
 0x2ea   : > { %6414 = vmatpush1.msk.msra.mxu0 %vm3790_vm1, %v12018_v41 }
 0x2eb   : > { %6664 = vmatpush1.msk.msra.mxu1 %vm3790_vm1, %v12025_v25  ;;  %4391 = vmatmul.mubr.f32.vlgmr.msra.gmra.mrb[16].mxu0 %v12032_v2 }
 0x2ec   : > { %5053 = vmatmul.mubr.f32.vlgmr.msra.gmra.mrb[16].mxu1 %v12032_v2  ;;  %7792 = vmatprep.subr.bf16.mxu0 %v9774_v59  ;;  %v12993_v59 = vld [vmem:[#allocation27_spill] sm:$0xff] }
 0x2ed   : > { %8012 = vmatprep.subr.bf16.mxu1 %v9785_v33  ;;  %6416 = vmatprep.mubr.msk.f32.mxu0 %vm3783_vm2, %v11639_v19  ;;  %v12994_v33 = vld [vmem:[#allocation31_spill] sm:$0xff] }
 0x2ee   : > { %6666 = vmatprep.mubr.msk.f32.mxu1 %vm3783_vm2, %v11639_v19  ;;  %7794 = vmatpush1.bf16.msra.mxu0 %v9787_v42  ;;  %v12995_v42 = vld [vmem:[#allocation32_spill] sm:$0xff] }
 0x2ef   : > { %8014 = vmatpush1.bf16.msra.mxu1 %v9799_v61  ;;  %4397 = vmatmul.mubr.f32.gmra.mrb[18].mxu0 %v12009_v1  ;;  %v12996_v61 = vld [vmem:[#allocation33_spill] sm:$0xff] }
 0x2f0   : > { %5059 = vmatmul.mubr.f32.gmra.mrb[18].mxu1 %v12009_v1  ;;  %7796 = vmatprep.subr.bf16.mxu0 %v9812_v50  ;;  %v12997_v50 = vld [vmem:[#allocation34_spill] sm:$0xff] }
 0x2f1   : > { %8016 = vmatprep.subr.bf16.mxu1 %v9814_v63  ;;  %6669 = vmatprep.mubr.msk.f32.mxu0 %vm3783_vm2, %v10810_v7  ;;  %v12998_v63 = vld [vmem:[#allocation37_spill] sm:$0xff] }
 0x2f2   : > { %7798 = vmatpush1.bf16.msra.mxu0 %v9826_v12  ;;  %6689 = vmatprep.mubr.msk.f32.mxu1 %vm3783_vm2, %v10810_v7  ;;  %v12999_v12 = vld [vmem:[#allocation38_spill] sm:$0xff] }
 0x2f3   : > { %8018 = vmatpush1.bf16.msra.mxu1 %v9839_v3  ;;  %7800 = vmatprep.subr.bf16.mxu0 %v9841_v8  ;;  %v13000_v3 = vld [vmem:[#allocation11_spill] sm:$0xff]  ;;  %v13025_v7 = vld [vmem:[#allocation22_spill] sm:$0xff] }
 0x2f4   : > { %8020 = vmatprep.subr.bf16.mxu1 %v9852_v18  ;;  %v13001_v8 = vld [vmem:[#allocation15_spill] sm:$0xff]  ;;  %v13002_v18 = vld [vmem:[#allocation16_spill] sm:$0xff] }
 0x2f6   : > { %7802 = vmatpush1.bf16.msra.mxu0 %v9864_v31  ;;  %v13003_v31 = vld [vmem:[#allocation24_spill] sm:$0xff] }
 0x2f7   : > { %8022 = vmatpush1.bf16.msra.mxu1 %v9877_v44  ;;  %7804 = vmatprep.subr.bf16.mxu0 %v9879_v51  ;;  %v13004_v44 = vld [vmem:[#allocation25_spill] sm:$0xff]  ;;  %v13005_v51 = vld [vmem:[#allocation26_spill] sm:$0xff] }
 0x2f8   : > { %8024 = vmatprep.subr.bf16.mxu1 %v9891_v0  ;;  %v13006_v0 = vld [vmem:[#allocation28_spill] sm:$0xff] }
 0x2fa   : > { %7806 = vmatpush1.bf16.msra.mxu0 %v9912_v24  ;;  %v8432_v24 = vld [vmem:[%s12408_s3 + $0x448] sm:$0xf] }
 0x2fb   : > { %8026 = vmatpush1.bf16.msra.mxu1 %v9916_v32  ;;  %7808 = vmatprep.subr.bf16.mxu0 %v9918_v45  ;;  %v8433_v32 = vld [vmem:[%s12408_s3 + $0x5b8] sm:$0xf]  ;;  %v8434_v45 = vld [vmem:[%s12408_s3 + $0x440] sm:$0xf] }
 0x2fc   : > { %8028 = vmatprep.subr.bf16.mxu1 %v9930_v6  ;;  %v8435_v6 = vld [vmem:[%s12408_s3 + $0x5b0] sm:$0xf] }
 0x2fe   : > { %7810 = vmatpush1.bf16.msra.mxu0 %v9948_v47  ;;  %v13007_v47 = vld [vmem:[#allocation29_spill] sm:$0xff] }
 0x2ff   : > { %8030 = vmatpush1.bf16.msra.mxu1 %v9952_v34  ;;  %7812 = vmatprep.subr.bf16.mxu0 %v9954_v4  ;;  %v13008_v34 = vld [vmem:[#allocation30_spill] sm:$0xff]  ;;  %v13009_v4 = vld [vmem:[#allocation3_spill] sm:$0xff] }
 0x300   : > { %8032 = vmatprep.subr.bf16.mxu1 %v9966_v43  ;;  %v13010_v43 = vld [vmem:[#allocation4_spill] sm:$0xff] }
 0x302   : > { %7814 = vmatpush1.bf16.msra.mxu0 %v9984_v26  ;;  %v13011_v26 = vld [vmem:[#allocation6_spill] sm:$0xff] }
 0x303   : > { %8034 = vmatpush1.bf16.msra.mxu1 %v9988_v27  ;;  %7816 = vmatprep.subr.bf16.mxu0 %v9990_v35  ;;  %v13012_v27 = vld [vmem:[#allocation40_spill] sm:$0xff]  ;;  %v13013_v35 = vld [vmem:[#allocation7_spill] sm:$0xff] }
 0x304   : > { %8036 = vmatprep.subr.bf16.mxu1 %v10002_v53  ;;  %v13014_v53 = vld [vmem:[#allocation8_spill] sm:$0xff] }
 0x306   : > { %7818 = vmatpush1.bf16.msra.mxu0 %v10020_v15  ;;  %v13015_v15 = vld [vmem:[#allocation9_spill] sm:$0xff] }
 0x307   : > { %8038 = vmatpush1.bf16.msra.mxu1 %v10024_v16  ;;  %7820 = vmatprep.subr.bf16.mxu0 %v10026_v48  ;;  %v13016_v16 = vld [vmem:[#allocation10_spill] sm:$0xff]  ;;  %v13017_v48 = vld [vmem:[#allocation12_spill] sm:$0xff] }
 0x308   : > { %8040 = vmatprep.subr.bf16.mxu1 %v10038_v30  ;;  %v13018_v30 = vld [vmem:[#allocation13_spill] sm:$0xff] }
 0x30a   : > { %7822 = vmatpush1.bf16.msra.mxu0 %v12993_v59  ;;  %v13030_v59 = vld [vmem:[#allocation42_spill] sm:$0xff] }
 0x30b   : > { %8042 = vmatpush1.bf16.msra.mxu1 %v12994_v33  ;;  %7824 = vmatprep.subr.bf16.mxu0 %v12995_v42  ;;  %v13031_v33 = vld [vmem:[#allocation43_spill] sm:$0xff]  ;;  %v13032_v42 = vld [vmem:[#allocation44_spill] sm:$0xff] }
 0x30c   : > { %8044 = vmatprep.subr.bf16.mxu1 %v12996_v61  ;;  %v13033_v61 = vld [vmem:[#allocation45_spill] sm:$0xff] }
 0x30e   : > { %7826 = vmatpush1.bf16.msra.mxu0 %v12997_v50  ;;  %v13034_v50 = vld [vmem:[#allocation46_spill] sm:$0xff] }
 0x30f   : > { %8046 = vmatpush1.bf16.msra.mxu1 %v12998_v63  ;;  %7828 = vmatprep.subr.bf16.mxu0 %v12999_v12  ;;  %v13035_v63 = vld [vmem:[#allocation47_spill] sm:$0xff]  ;;  %v13036_v12 = vld [vmem:[#allocation48_spill] sm:$0xff] }
 0x310   : > { %8048 = vmatprep.subr.bf16.mxu1 %v13000_v3  ;;  %v13037_v3 = vld [vmem:[#allocation49_spill] sm:$0xff] }
 0x312   : > { %7830 = vmatpush1.bf16.msra.mxu0 %v13001_v8  ;;  %v13038_v8 = vld [vmem:[#allocation50_spill] sm:$0xff] }
 0x313   : > { %8050 = vmatpush1.bf16.msra.mxu1 %v13002_v18  ;;  %7832 = vmatprep.subr.bf16.mxu0 %v13003_v31  ;;  %v13039_v18 = vld [vmem:[#allocation51_spill] sm:$0xff]  ;;  %v13040_v31 = vld [vmem:[#allocation52_spill] sm:$0xff] }
 0x314   : > { %8052 = vmatprep.subr.bf16.mxu1 %v13004_v44  ;;  %v13041_v44 = vld [vmem:[#allocation53_spill] sm:$0xff] }
 0x316   : > { %7834 = vmatpush1.bf16.msra.mxu0 %v13005_v51  ;;  %v13042_v51 = vld [vmem:[#allocation54_spill] sm:$0xff] }
 0x317   : > { %8054 = vmatpush1.bf16.msra.mxu1 %v13006_v0  ;;  %6667 = vmatprep.subr.msk.mxu0 %vm3790_vm1, %v8432_v24  ;;  %v13043_v0 = vld [vmem:[#allocation55_spill] sm:$0xff]  ;;  %v13044_v24 = vld [vmem:[#allocation56_spill] sm:$0xff] }
 0x318   : > { %6687 = vmatprep.subr.msk.mxu1 %vm3790_vm1, %v8433_v32  ;;  %v13045_v32 = vld [vmem:[#allocation57_spill] sm:$0xff] }
 0x31a   : > { %6668 = vmatpush1.msk.msra.mxu0 %vm3790_vm1, %v8434_v45  ;;  %v8437_v45 = vld [vmem:[%s12408_s3 + $0x2d8] sm:$0xf] }
 0x31b   : > { %6688 = vmatpush1.msk.msra.mxu1 %vm3790_vm1, %v8435_v6  ;;  %5138 = vmatmul.mubr.f32.vlgmr.msra.gmra.mrb[20].mxu0 %v11163_v49  ;;  %v8438_v6 = vld [vmem:[%s12408_s3 + $0x160] sm:$0xf] }
 0x31c   : > { %7836 = vmatprep.subr.bf16.mxu0 %v13007_v47  ;;  %5551 = vmatmul.mubr.f32.vlgmr.msra.gmra.mrb[20].mxu1 %v11163_v49  ;;  %v13027_v49 = vld [vmem:[#allocation36_spill] sm:$0xff] }
 0x31d   : > { %8056 = vmatprep.subr.bf16.mxu1 %v13008_v34  ;;  %6670 = vmatprep.mubr.msk.f32.mxu0 %vm3783_vm2, %v10754_v21  ;;  %v8439_v47 = vld [vmem:[%s12408_s3 + $0x2d0] sm:$0xf]  ;;  %v13046_v34 = vld [vmem:[#allocation58_spill] sm:$0xff] }
 0x31e   : > { %7838 = vmatpush1.bf16.msra.mxu0 %v10274_v56  ;;  %6690 = vmatprep.mubr.msk.f32.mxu1 %vm3783_vm2, %v10754_v21  ;;  %v13021_v56 = vld [vmem:[#allocation18_spill] sm:$0xff]  ;;  %v13024_v21 = vld [vmem:[#allocation21_spill] sm:$0xff] }
 0x31f   : > { %8058 = vmatpush1.bf16.msra.mxu1 %v10276_v40  ;;  %5144 = vmatmul.mubr.f32.gmra.mrb[22].mxu0 %v11119_v36  ;;  %v13022_v40 = vld [vmem:[#allocation19_spill] sm:$0xff] }
 0x320   : > { %7840 = vmatprep.subr.bf16.mxu0 %v10284_v11  ;;  %5557 = vmatmul.mubr.f32.gmra.mrb[22].mxu1 %v11119_v36  ;;  %v13020_v11 = vld [vmem:[#allocation17_spill] sm:$0xff]  ;;  %v13026_v36 = vld [vmem:[#allocation23_spill] sm:$0xff] }
 0x321   : > { %8060 = vmatprep.subr.bf16.mxu1 %v10286_v20  ;;  %6673 = vmatprep.mubr.msk.f32.mxu0 %vm3783_vm2, %v10272_v57  ;;  %v13019_v20 = vld [vmem:[#allocation14_spill] sm:$0xff] }
 0x322   : > { %7842 = vmatpush1.bf16.msra.mxu0 %v13009_v4  ;;  %6693 = vmatprep.mubr.msk.f32.mxu1 %vm3783_vm2, %v10272_v57  ;;  %v13047_v4 = vld [vmem:[#allocation59_spill] sm:$0xff] }
 0x323   : > { %8062 = vmatpush1.bf16.msra.mxu1 %v13010_v43  ;;  %7844 = vmatprep.subr.bf16.mxu0 %v13011_v26  ;;  %v13048_v43 = vld [vmem:[#allocation35_spill] sm:$0xff]  ;;  %v13049_v26 = vld [vmem:[#allocation60_spill] sm:$0xff] }
 0x324   : > { %8064 = vmatprep.subr.bf16.mxu1 %v13012_v27  ;;  %v13050_v27 = vld [vmem:[#allocation61_spill] sm:$0xff] }
 0x326   : > { %7846 = vmatpush1.bf16.msra.mxu0 %v13013_v35  ;;  %v13051_v35 = vld [vmem:[#allocation5_spill] sm:$0xff] }
 0x327   : > { %8066 = vmatpush1.bf16.msra.mxu1 %v13014_v53  ;;  %7848 = vmatprep.subr.bf16.mxu0 %v13015_v15  ;;  %v13052_v53 = vld [vmem:[#allocation62_spill] sm:$0xff]  ;;  %v13053_v15 = vld [vmem:[#allocation63_spill] sm:$0xff] }
 0x328   : > { %8068 = vmatprep.subr.bf16.mxu1 %v13016_v16  ;;  %v13054_v16 = vld [vmem:[#allocation111_spill] sm:$0xff] }
 0x32a   : > { %7850 = vmatpush1.bf16.msra.mxu0 %v13017_v48  ;;  %v13055_v48 = vld [vmem:[#allocation64_spill] sm:$0xff] }
 0x32b   : > { %8070 = vmatpush1.bf16.msra.mxu1 %v13018_v30  ;;  %7852 = vmatprep.subr.bf16.mxu0 %v13019_v20  ;;  %v13056_v30 = vld [vmem:[#allocation65_spill] sm:$0xff]  ;;  %v13057_v20 = vld [vmem:[#allocation66_spill] sm:$0xff] }
 0x32c   : > { %8072 = vmatprep.subr.bf16.mxu1 %v13020_v11  ;;  %v13058_v11 = vld [vmem:[#allocation67_spill] sm:$0xff] }
 0x32e   : > { %7854 = vmatpush1.bf16.msra.mxu0 %v13021_v56  ;;  %v13059_v56 = vld [vmem:[#allocation68_spill] sm:$0xff] }
 0x32f   : > { %8074 = vmatpush1.bf16.msra.mxu1 %v13022_v40  ;;  %7856 = vmatprep.subr.bf16.mxu0 %v13023_v62  ;;  %v13060_v40 = vld [vmem:[#allocation69_spill] sm:$0xff]  ;;  %v13061_v62 = vld [vmem:[#allocation70_spill] sm:$0xff] }
 0x330   : > { %8076 = vmatprep.subr.bf16.mxu1 %v13024_v21  ;;  %v13062_v21 = vld [vmem:[#allocation71_spill] sm:$0xff] }
 0x332   : > { %7858 = vmatpush1.bf16.msra.mxu0 %v13025_v7  ;;  %v13063_v7 = vld [vmem:[#allocation72_spill] sm:$0xff] }
 0x333   : > { %8078 = vmatpush1.bf16.msra.mxu1 %v13026_v36  ;;  %7860 = vmatprep.subr.bf16.mxu0 %v13027_v49  ;;  %v13064_v36 = vld [vmem:[#allocation73_spill] sm:$0xff]  ;;  %v13065_v49 = vld [vmem:[#allocation74_spill] sm:$0xff] }
 0x334   : > { %8080 = vmatprep.subr.bf16.mxu1 %v13028_v52  ;;  %v13066_v52 = vld [vmem:[#allocation75_spill] sm:$0xff] }
 0x336   : > { %7862 = vmatpush1.bf16.msra.mxu0 %v13029_v23  ;;  %v13067_v23 = vld [vmem:[#allocation76_spill] sm:$0xff] }
 0x337   : > { %8082 = vmatpush1.bf16.msra.mxu1 %v13030_v59  ;;  %7864 = vmatprep.subr.bf16.mxu0 %v13031_v33  ;;  %v13068_v59 = vld [vmem:[#allocation77_spill] sm:$0xff]  ;;  %v13069_v33 = vld [vmem:[#allocation78_spill] sm:$0xff] }
 0x338   : > { %8084 = vmatprep.subr.bf16.mxu1 %v13032_v42  ;;  %v13070_v42 = vld [vmem:[#allocation79_spill] sm:$0xff] }
 0x33a   : > { %7866 = vmatpush1.bf16.msra.mxu0 %v13033_v61  ;;  %v13071_v61 = vld [vmem:[#allocation80_spill] sm:$0xff] }
 0x33b   : > { %8086 = vmatpush1.bf16.msra.mxu1 %v13034_v50  ;;  %7868 = vmatprep.subr.bf16.mxu0 %v13035_v63  ;;  %v13072_v50 = vld [vmem:[#allocation81_spill] sm:$0xff]  ;;  %v13073_v63 = vld [vmem:[#allocation82_spill] sm:$0xff] }
 0x33c   : > { %8088 = vmatprep.subr.bf16.mxu1 %v13036_v12  ;;  %v13074_v12 = vld [vmem:[#allocation83_spill] sm:$0xff] }
 0x33e   : > { %7870 = vmatpush1.bf16.msra.mxu0 %v10590_v54  ;;  %v8436_v54 = vld [vmem:[%s12408_s3 + $0x168] sm:$0xf] }
 0x33f   : > { %8090 = vmatpush1.bf16.msra.mxu1 %v13037_v3  ;;  %7872 = vmatprep.subr.bf16.mxu0 %v13038_v8  ;;  %v13075_v3 = vld [vmem:[#allocation84_spill] sm:$0xff]  ;;  %v13076_v8 = vld [vmem:[#allocation85_spill] sm:$0xff] }
 0x340   : > { %8092 = vmatprep.subr.bf16.mxu1 %v13039_v18  ;;  %v13077_v18 = vld [vmem:[#allocation86_spill] sm:$0xff] }
 0x342   : > { %7874 = vmatpush1.bf16.msra.mxu0 %v13040_v31  ;;  %v13078_v31 = vld [vmem:[#allocation87_spill] sm:$0xff] }
 0x343   : > { %8094 = vmatpush1.bf16.msra.mxu1 %v13041_v44  ;;  %7876 = vmatprep.subr.bf16.mxu0 %v13042_v51  ;;  %v13079_v44 = vld [vmem:[#allocation88_spill] sm:$0xff]  ;;  %v13080_v51 = vld [vmem:[#allocation89_spill] sm:$0xff] }
 0x344   : > { %8096 = vmatprep.subr.bf16.mxu1 %v13043_v0  ;;  %v13081_v0 = vld [vmem:[#allocation90_spill] sm:$0xff] }
 0x346   : > { %7878 = vmatpush1.bf16.msra.mxu0 %v13044_v24  ;;  %v13082_v24 = vld [vmem:[#allocation91_spill] sm:$0xff] }
 0x347   : > { %8098 = vmatpush1.bf16.msra.mxu1 %v13045_v32  ;;  %6671 = vmatprep.subr.msk.mxu0 %vm3790_vm1, %v8436_v54  ;;  %v13083_v32 = vld [vmem:[#allocation92_spill] sm:$0xff]  ;;  %v13084_v54 = vld [vmem:[#allocation93_spill] sm:$0xff] }
 0x348   : > { %6691 = vmatprep.subr.msk.mxu1 %vm3790_vm1, %v8437_v45  ;;  %v13085_v45 = vld [vmem:[#allocation94_spill] sm:$0xff] }
 0x34a   : > { %6672 = vmatpush1.msk.msra.mxu0 %vm3790_vm1, %v8438_v6  ;;  %v13086_v6 = vld [vmem:[#allocation95_spill] sm:$0xff] }
 0x34b   : > { %6692 = vmatpush1.msk.msra.mxu1 %vm3790_vm1, %v8439_v47  ;;  %5215 = vmatmul.mubr.f32.vlgmr.msra.gmra.mrb[20].mxu0 %v10281_v22  ;;  %v13087_v47 = vld [vmem:[#allocation96_spill] sm:$0xff] }
 0x34c   : > { %7880 = vmatprep.subr.bf16.mxu0 %v13046_v34  ;;  %5628 = vmatmul.mubr.f32.vlgmr.msra.gmra.mrb[20].mxu1 %v10281_v22  ;;  %v13088_v34 = vld [vmem:[#allocation97_spill] sm:$0xff] }
 0x34d   : > { %8100 = vmatprep.subr.bf16.mxu1 %v13047_v4  ;;  %6674 = vmatprep.mubr.msk.f32.mxu0 %vm3783_vm2, %v13048_v43  ;;  %v13089_v4 = vld [vmem:[#allocation98_spill] sm:$0xff] }
 0x34e   : > { %7882 = vmatpush1.bf16.msra.mxu0 %v13049_v26  ;;  %6694 = vmatprep.mubr.msk.f32.mxu1 %vm3783_vm2, %v13048_v43  ;;  %v13090_v26 = vld [vmem:[#allocation99_spill] sm:$0xff] }
 0x34f   : > { %8102 = vmatpush1.bf16.msra.mxu1 %v13050_v27  ;;  %5221 = vmatmul.mubr.f32.gmra.mrb[22].mxu0 %v13051_v35  ;;  %v13091_v27 = vld [vmem:[#allocation100_spill] sm:$0xff] }
 0x350   : > { %7884 = vmatprep.subr.bf16.mxu0 %v13052_v53  ;;  %5634 = vmatmul.mubr.f32.gmra.mrb[22].mxu1 %v13051_v35  ;;  %v13092_v53 = vld [vmem:[#allocation101_spill] sm:$0xff] }
 0x351   : > { %8104 = vmatprep.subr.bf16.mxu1 %v13053_v15  ;;  %6677 = vmatprep.mubr.msk.f32.mxu0 %vm3783_vm2, %v13054_v16  ;;  %v8440_v15 = vld [vmem:[%s12408_s3 + $0x728] sm:$0xf] }
 0x352   : > { %7886 = vmatpush1.bf16.msra.mxu0 %v13055_v48  ;;  %6697 = vmatprep.mubr.msk.f32.mxu1 %vm3783_vm2, %v13054_v16  ;;  %v8441_v16 = vld [vmem:[%s12408_s3 + $0x898] sm:$0xf]  ;;  %v8442_v48 = vld [vmem:[%s12408_s3 + $0x720] sm:$0xf] }
 0x353   : > { %8106 = vmatpush1.bf16.msra.mxu1 %v13056_v30  ;;  %7888 = vmatprep.subr.bf16.mxu0 %v13057_v20  ;;  %v8443_v30 = vld [vmem:[%s12408_s3 + $0x890] sm:$0xf]  ;;  %v13093_v20 = vld [vmem:[#allocation153_spill] sm:$0xff] }
 0x354   : > { %8108 = vmatprep.subr.bf16.mxu1 %v13058_v11  ;;  %v13094_v11 = vld [vmem:[#allocation102_spill] sm:$0xff] }
 0x356   : > { %7890 = vmatpush1.bf16.msra.mxu0 %v13059_v56  ;;  %v13095_v56 = vld [vmem:[#allocation103_spill] sm:$0xff] }
 0x357   : > { %8110 = vmatpush1.bf16.msra.mxu1 %v13060_v40  ;;  %7892 = vmatprep.subr.bf16.mxu0 %v13061_v62  ;;  %v13096_v40 = vld [vmem:[#allocation104_spill] sm:$0xff]  ;;  %v13097_v62 = vld [vmem:[#allocation105_spill] sm:$0xff] }
 0x358   : > { %8112 = vmatprep.subr.bf16.mxu1 %v13062_v21  ;;  %v13098_v21 = vld [vmem:[#allocation106_spill] sm:$0xff] }
 0x35a   : > { %7894 = vmatpush1.bf16.msra.mxu0 %v13063_v7  ;;  %v13099_v7 = vld [vmem:[#allocation107_spill] sm:$0xff] }
 0x35b   : > { %8114 = vmatpush1.bf16.msra.mxu1 %v13064_v36  ;;  %7896 = vmatprep.subr.bf16.mxu0 %v13065_v49  ;;  %v13100_v36 = vld [vmem:[#allocation108_spill] sm:$0xff]  ;;  %v13101_v49 = vld [vmem:[#allocation109_spill] sm:$0xff] }
 0x35c   : > { %8116 = vmatprep.subr.bf16.mxu1 %v13066_v52  ;;  %v13103_v52 = vld [vmem:[#allocation112_spill] sm:$0xff] }
 0x35e   : > { %7898 = vmatpush1.bf16.msra.mxu0 %v13067_v23  ;;  %v13104_v23 = vld [vmem:[#allocation113_spill] sm:$0xff] }
 0x35f   : > { %8118 = vmatpush1.bf16.msra.mxu1 %v13068_v59  ;;  %7900 = vmatprep.subr.bf16.mxu0 %v13069_v33  ;;  %v13105_v59 = vld [vmem:[#allocation114_spill] sm:$0xff]  ;;  %v13107_v33 = vld [vmem:[#allocation116_spill] sm:$0xff] }
 0x360   : > { %8120 = vmatprep.subr.bf16.mxu1 %v13070_v42  ;;  %v13108_v42 = vld [vmem:[#allocation117_spill] sm:$0xff] }
 0x362   : > { %7902 = vmatpush1.bf16.msra.mxu0 %v13071_v61  ;;  %v13109_v61 = vld [vmem:[#allocation118_spill] sm:$0xff] }
 0x363   : > { %8122 = vmatpush1.bf16.msra.mxu1 %v13072_v50  ;;  %7904 = vmatprep.subr.bf16.mxu0 %v13073_v63  ;;  %v13110_v50 = vld [vmem:[#allocation119_spill] sm:$0xff]  ;;  %v13112_v63 = vld [vmem:[#allocation121_spill] sm:$0xff] }
 0x364   : > { %8124 = vmatprep.subr.bf16.mxu1 %v13074_v12  ;;  %v13113_v12 = vld [vmem:[#allocation122_spill] sm:$0xff] }
 0x366   : > { %7906 = vmatpush1.bf16.msra.mxu0 %v13075_v3  ;;  %v13114_v3 = vld [vmem:[#allocation123_spill] sm:$0xff] }
 0x367   : > { %8126 = vmatpush1.bf16.msra.mxu1 %v13076_v8  ;;  %7908 = vmatprep.subr.bf16.mxu0 %v13077_v18  ;;  %v13115_v8 = vld [vmem:[#allocation124_spill] sm:$0xff]  ;;  %v13116_v18 = vld [vmem:[#allocation125_spill] sm:$0xff] }
 0x368   : > { %8128 = vmatprep.subr.bf16.mxu1 %v13078_v31  ;;  %v13117_v31 = vld [vmem:[#allocation126_spill] sm:$0xff] }
 0x36a   : > { %7910 = vmatpush1.bf16.msra.mxu0 %v13079_v44  ;;  %v13118_v44 = vld [vmem:[#allocation127_spill] sm:$0xff] }
 0x36b   : > { %8130 = vmatpush1.bf16.msra.mxu1 %v13080_v51  ;;  %7912 = vmatprep.subr.bf16.mxu0 %v13081_v0  ;;  %v13119_v51 = vld [vmem:[#allocation128_spill] sm:$0xff]  ;;  %v13120_v0 = vld [vmem:[#allocation129_spill] sm:$0xff] }
 0x36c   : > { %8132 = vmatprep.subr.bf16.mxu1 %v13082_v24  ;;  %v13121_v24 = vld [vmem:[#allocation130_spill] sm:$0xff] }
 0x36e   : > { %7914 = vmatpush1.bf16.msra.mxu0 %v13083_v32  ;;  %v13122_v32 = vld [vmem:[#allocation131_spill] sm:$0xff] }
 0x36f   : > { %8134 = vmatpush1.bf16.msra.mxu1 %v13084_v54  ;;  %7916 = vmatprep.subr.bf16.mxu0 %v13085_v45  ;;  %v13123_v54 = vld [vmem:[#allocation132_spill] sm:$0xff]  ;;  %v13124_v45 = vld [vmem:[#allocation133_spill] sm:$0xff] }
 0x370   : > { %8136 = vmatprep.subr.bf16.mxu1 %v13086_v6  ;;  %v13125_v6 = vld [vmem:[#allocation134_spill] sm:$0xff] }
 0x372   : > { %7918 = vmatpush1.bf16.msra.mxu0 %v13087_v47  ;;  %v13126_v47 = vld [vmem:[#allocation135_spill] sm:$0xff] }
 0x373   : > { %8138 = vmatpush1.bf16.msra.mxu1 %v13088_v34  ;;  %7920 = vmatprep.subr.bf16.mxu0 %v13089_v4  ;;  %v13127_v34 = vld [vmem:[#allocation136_spill] sm:$0xff]  ;;  %v13128_v4 = vld [vmem:[#allocation137_spill] sm:$0xff] }
 0x374   : > { %8140 = vmatprep.subr.bf16.mxu1 %v13090_v26  ;;  %v13129_v26 = vld [vmem:[#allocation138_spill] sm:$0xff] }
 0x376   : > { %7922 = vmatpush1.bf16.msra.mxu0 %v13091_v27  ;;  %v13130_v27 = vld [vmem:[#allocation139_spill] sm:$0xff] }
 0x377   : > { %8142 = vmatpush1.bf16.msra.mxu1 %v13092_v53  ;;  %6675 = vmatprep.subr.msk.mxu0 %vm3790_vm1, %v8440_v15  ;;  %v13131_v53 = vld [vmem:[#allocation140_spill] sm:$0xff]  ;;  %v13132_v15 = vld [vmem:[#allocation141_spill] sm:$0xff] }
 0x378   : > { %6695 = vmatprep.subr.msk.mxu1 %vm3790_vm1, %v8441_v16  ;;  %v13133_v16 = vld [vmem:[#allocation142_spill] sm:$0xff] }
 0x37a   : > { %6676 = vmatpush1.msk.msra.mxu0 %vm3790_vm1, %v8442_v48  ;;  %v13134_v48 = vld [vmem:[#allocation143_spill] sm:$0xff] }
 0x37b   : > { %6696 = vmatpush1.msk.msra.mxu1 %vm3790_vm1, %v8443_v30  ;;  %5292 = vmatmul.mubr.f32.vlgmr.msra.gmra.mrb[20].mxu0 %v13093_v20  ;;  %v13135_v30 = vld [vmem:[#allocation144_spill] sm:$0xff] }
 0x37c   : > { %7924 = vmatprep.subr.bf16.mxu0 %v13094_v11  ;;  %5705 = vmatmul.mubr.f32.vlgmr.msra.gmra.mrb[20].mxu1 %v13093_v20  ;;  %v13136_v20 = vld [vmem:[#allocation145_spill] sm:$0xff]  ;;  %v13137_v11 = vld [vmem:[#allocation146_spill] sm:$0xff] }
 0x37d   : > { %8144 = vmatprep.subr.bf16.mxu1 %v13095_v56  ;;  %6678 = vmatprep.mubr.msk.f32.mxu0 %vm3783_vm2, %v11191_v9  ;;  %v13138_v56 = vld [vmem:[#allocation147_spill] sm:$0xff] }
 0x37e   : > { %7926 = vmatpush1.bf16.msra.mxu0 %v13096_v40  ;;  %6698 = vmatprep.mubr.msk.f32.mxu1 %vm3783_vm2, %v11191_v9  ;;  %v13102_v9 = vld [vmem:[#allocation110_spill] sm:$0xff]  ;;  %v13139_v40 = vld [vmem:[#allocation148_spill] sm:$0xff] }
 0x37f   : > { %8146 = vmatpush1.bf16.msra.mxu1 %v13097_v62  ;;  %5298 = vmatmul.mubr.f32.gmra.mrb[22].mxu0 %v11564_v60  ;;  %v13140_v62 = vld [vmem:[#allocation149_spill] sm:$0xff] }
 0x380   : > { %7928 = vmatprep.subr.bf16.mxu0 %v13098_v21  ;;  %5711 = vmatmul.mubr.f32.gmra.mrb[22].mxu1 %v11564_v60  ;;  %v13106_v60 = vld [vmem:[#allocation115_spill] sm:$0xff]  ;;  %v13141_v21 = vld [vmem:[#allocation150_spill] sm:$0xff] }
 0x381   : > { %8148 = vmatprep.subr.bf16.mxu1 %v13099_v7  ;;  %6681 = vmatprep.mubr.msk.f32.mxu0 %vm3783_vm2, %v11690_v55  ;;  %v13142_v7 = vld [vmem:[#allocation151_spill] sm:$0xff] }
 0x382   : > { %7930 = vmatpush1.bf16.msra.mxu0 %v13100_v36  ;;  %6701 = vmatprep.mubr.msk.f32.mxu1 %vm3783_vm2, %v11690_v55  ;;  %v13111_v55 = vld [vmem:[#allocation120_spill] sm:$0xff]  ;;  %v12320_v36 = vrot.slane %v13048_v43, 2 }
 0x383   : > { %8150 = vmatpush1.bf16.msra.mxu1 %v13101_v49  ;;  %7932 = vmatprep.subr.bf16.mxu0 %v13102_v9  ;;  %v13143_v49 = vld [vmem:[#allocation152_spill] sm:$0xff]  ;;  %v13144_v9 = vld [vmem:[#allocation154_spill] sm:$0xff] }
 0x384   : > { %8152 = vmatprep.subr.bf16.mxu1 %v13103_v52  ;;  %v5392_v52 = vrot.slane %v10272_v57, 2  ;;  %v13149_v57 = vld [vmem:[#allocation159_spill] sm:$0xff] }
 0x386   : > { %7934 = vmatpush1.bf16.msra.mxu0 %v13104_v23  ;;  %v13145_v23 = vld [vmem:[#allocation155_spill] sm:$0xff]  ;;  %v5394_v43 = vsel %vm4307_vm4, %v5392_v52, %v12320_v36 }
 0x387   : > { %8154 = vmatpush1.bf16.msra.mxu1 %v13105_v59  ;;  %7936 = vmatprep.subr.bf16.mxu0 %v13106_v60  ;;  %v13147_v59 = vld [vmem:[#allocation157_spill] sm:$0xff]  ;;  %v13148_v60 = vld [vmem:[#allocation158_spill] sm:$0xff] }
 0x388   : > { %8156 = vmatprep.subr.bf16.mxu1 %v13107_v33  ;;  %v13151_v33 = vld [vmem:[#allocation161_spill] sm:$0xff] }
 0x38a   : > { %7938 = vmatpush1.bf16.msra.mxu0 %v13108_v42  ;;  %v13152_v42 = vld [vmem:[#allocation162_spill] sm:$0xff] }
 0x38b   : > { %8158 = vmatpush1.bf16.msra.mxu1 %v13109_v61  ;;  %7940 = vmatprep.subr.bf16.mxu0 %v13110_v50  ;;  %v13154_v61 = vld [vmem:[#allocation164_spill] sm:$0xff]  ;;  %v13155_v50 = vld [vmem:[#allocation165_spill] sm:$0xff] }
 0x38c   : > { %8160 = vmatprep.subr.bf16.mxu1 %v13111_v55  ;;  %v13156_v55 = vld [vmem:[#allocation166_spill] sm:$0xff] }
 0x38e   : > { %7942 = vmatpush1.bf16.msra.mxu0 %v13112_v63  ;;  %v13157_v63 = vld [vmem:[#allocation167_spill] sm:$0xff] }
 0x38f   : > { %8162 = vmatpush1.bf16.msra.mxu1 %v13113_v12  ;;  %7944 = vmatprep.subr.bf16.mxu0 %v13114_v3  ;;  %v13158_v12 = vld [vmem:[#allocation168_spill] sm:$0xff]  ;;  %v13159_v3 = vld [vmem:[#allocation169_spill] sm:$0xff] }
 0x390   : > { %8164 = vmatprep.subr.bf16.mxu1 %v13115_v8  ;;  %v13160_v8 = vld [vmem:[#allocation170_spill] sm:$0xff] }
 0x392   : > { %7946 = vmatpush1.bf16.msra.mxu0 %v13116_v18 }
 0x393   : > { %8166 = vmatpush1.bf16.msra.mxu1 %v13117_v31  ;;  %7948 = vmatprep.subr.bf16.mxu0 %v13118_v44  ;;  %v13161_v31 = vld [vmem:[#allocation171_spill] sm:$0xff]  ;;  %v13162_v44 = vld [vmem:[#allocation172_spill] sm:$0xff] }
 0x394   : > { %8168 = vmatprep.subr.bf16.mxu1 %v13119_v51 }
 0x396   : > { %7950 = vmatpush1.bf16.msra.mxu0 %v13120_v0 }
 0x397   : > { %8170 = vmatpush1.bf16.msra.mxu1 %v13121_v24  ;;  %7952 = vmatprep.subr.bf16.mxu0 %v13122_v32  ;;  %v13163_v24 = vld [vmem:[#allocation173_spill] sm:$0xff] }
 0x398   : > { %8172 = vmatprep.subr.bf16.mxu1 %v13123_v54 }
 0x39a   : > { %7954 = vmatpush1.bf16.msra.mxu0 %v13124_v45 }
 0x39b   : > { %8174 = vmatpush1.bf16.msra.mxu1 %v13125_v6  ;;  %7956 = vmatprep.subr.bf16.mxu0 %v13126_v47  ;;  %v13164_v6 = vld [vmem:[#allocation174_spill] sm:$0xff] }
 0x39c   : > { %8176 = vmatprep.subr.bf16.mxu1 %v13127_v34  ;;  %v13165_v34 = vld [vmem:[#allocation175_spill] sm:$0xff] }
 0x39e   : > { %7958 = vmatpush1.bf16.msra.mxu0 %v13128_v4  ;;  %v13166_v4 = vld [vmem:[#allocation176_spill] sm:$0xff] }
 0x39f   : > { %8178 = vmatpush1.bf16.msra.mxu1 %v13129_v26  ;;  %7960 = vmatprep.subr.bf16.mxu0 %v13130_v27 }
 0x3a0   : > { %8180 = vmatprep.subr.bf16.mxu1 %v13131_v53  ;;  %v13167_v53 = vld [vmem:[#allocation177_spill] sm:$0xff] }
 0x3a2   : > { %7962 = vmatpush1.bf16.msra.mxu0 %v13132_v15 }
 0x3a3   : > { %8182 = vmatpush1.bf16.msra.mxu1 %v13133_v16  ;;  %7964 = vmatprep.subr.bf16.mxu0 %v13134_v48 }
 0x3a4   : > { %8184 = vmatprep.subr.bf16.mxu1 %v13135_v30  ;;  %v13168_v30 = vld [vmem:[#allocation178_spill] sm:$0xff] }
 0x3a6   : > { %7966 = vmatpush1.bf16.msra.mxu0 %v13136_v20  ;;  %v13169_v20 = vld [vmem:[#allocation179_spill] sm:$0xff] }
 0x3a7   : > { %8186 = vmatpush1.bf16.msra.mxu1 %v13137_v11  ;;  %6679 = vmatprep.subr.msk.mxu0 %vm3790_vm1, %v13138_v56  ;;  %v13170_v11 = vld [vmem:[#allocation180_spill] sm:$0xff]  ;;  %v13171_v56 = vld [vmem:[#allocation181_spill] sm:$0xff] }
 0x3a8   : > { %6699 = vmatprep.subr.msk.mxu1 %vm3790_vm1, %v13139_v40  ;;  %v13172_v40 = vld [vmem:[#allocation182_spill] sm:$0xff] }
 0x3aa   : > { %6680 = vmatpush1.msk.msra.mxu0 %vm3790_vm1, %v13140_v62  ;;  %v13173_v62 = vld [vmem:[#allocation183_spill] sm:$0xff] }
 0x3ab   : > { %6700 = vmatpush1.msk.msra.mxu1 %vm3790_vm1, %v13141_v21  ;;  %5373 = vmatmul.mubr.f32.vlgmr.msra.gmra.mrb[20].mxu0 %v12032_v2  ;;  %v13174_v21 = vld [vmem:[#allocation184_spill] sm:$0xff] }
 0x3ac   : > { %7968 = vmatprep.subr.bf16.mxu0 %v13142_v7  ;;  %5786 = vmatmul.mubr.f32.vlgmr.msra.gmra.mrb[20].mxu1 %v12032_v2  ;;  %v13146_v2 = vld [vmem:[#allocation156_spill] sm:$0xff]  ;;  %v13175_v7 = vld [vmem:[#allocation185_spill] sm:$0xff] }
 0x3ad   : > { %8188 = vmatprep.subr.bf16.mxu1 %v13143_v49  ;;  %6682 = vmatprep.mubr.msk.f32.mxu0 %vm3783_vm2, %v11639_v19  ;;  %v5390_v49 = vrot.slane %v13051_v35, 2 }
 0x3ae   : > { %7970 = vmatpush1.bf16.msra.mxu0 %v13144_v9  ;;  %6702 = vmatprep.mubr.msk.f32.mxu1 %vm3783_vm2, %v11639_v19  ;;  %v13150_v19 = vld [vmem:[#allocation160_spill] sm:$0xff] }
 0x3af   : > { %8190 = vmatpush1.bf16.msra.mxu1 %v13145_v23  ;;  %5379 = vmatmul.mubr.f32.gmra.mrb[22].mxu0 %v12009_v1 }
 0x3b0   : > { %7972 = vmatprep.subr.bf16.mxu0 %v13146_v2  ;;  %5792 = vmatmul.mubr.f32.gmra.mrb[22].mxu1 %v12009_v1  ;;  %v13153_v1 = vld [vmem:[#allocation163_spill] sm:$0xff] }
 0x3b1   : > { %8192 = vmatprep.subr.bf16.mxu1 %v13147_v59  ;;  %6685 = vmatprep.mubr.msk.f32.mxu0 %vm3783_vm2, %v5394_v43 }
 0x3b2   : > { %7974 = vmatpush1.bf16.msra.mxu0 %v13148_v60  ;;  %6705 = vmatprep.mubr.msk.f32.mxu1 %vm3783_vm2, %v5394_v43 }
 0x3b3   : > { %8194 = vmatpush1.bf16.msra.mxu1 %v13149_v57  ;;  %7976 = vmatprep.subr.bf16.mxu0 %v13150_v19 }
 0x3b4   : > { %8196 = vmatprep.subr.bf16.mxu1 %v13151_v33 }
 0x3b6   : > { %7978 = vmatpush1.bf16.msra.mxu0 %v13152_v42 }
 0x3b7   : > { %8198 = vmatpush1.bf16.msra.mxu1 %v13153_v1  ;;  %7980 = vmatprep.subr.bf16.mxu0 %v13154_v61 }
 0x3b8   : > { %8200 = vmatprep.subr.bf16.mxu1 %v13155_v50 }
 0x3ba   : > { %7982 = vmatpush1.bf16.msra.mxu0 %v13156_v55 }
 0x3bb   : > { %8202 = vmatpush1.bf16.msra.mxu1 %v13157_v63  ;;  %7984 = vmatprep.subr.bf16.mxu0 %v13158_v12 }
 0x3bc   : > { %8204 = vmatprep.subr.bf16.mxu1 %v13159_v3 }
 0x3be   : > { %7986 = vmatpush1.bf16.msra.mxu0 %v13160_v8  ;;  %v4392_v18 = vpop.f32.mrb[16].mxu0 }
 0x3bf   : > { %8206 = vmatpush1.bf16.msra.mxu1 %v13161_v31  ;;  %7988 = vmatprep.subr.bf16.mxu0 %v13162_v44  ;;  %v5054_v51 = vpop.f32.mrb[16].mxu1  ;;  %v4394_v0 = vpop.f32.mrb[17].mxu0 }
 0x3c0   : > { %8208 = vmatprep.subr.bf16.mxu1 %v13163_v24  ;;  %v5069_v32 = vmax.f32 %v4392_v18, %v5054_v51  ;;  %v5056_v54 = vpop.f32.mrb[17].mxu1 }
 0x3c1   : > { %v5070_v45 = vmax.f32 %v4394_v0, %v5056_v54 }
 0x3c2   : > { %7990 = vmatpush1.bf16.msra.mxu0 %v13164_v6  ;;  %v4398_v47 = vpop.f32.mrb[18].mxu0 }
 0x3c3   : > { %8210 = vmatpush1.bf16.msra.mxu1 %v13165_v34  ;;  %7992 = vmatprep.subr.bf16.mxu0 %v13166_v4  ;;  %v5060_v26 = vpop.f32.mrb[18].mxu1  ;;  %v4400_v27 = vpop.f32.mrb[19].mxu0 }
 0x3c4   : > { %8212 = vmatprep.subr.bf16.mxu1 %v13167_v53  ;;  %v5071_v15 = vmax.f32 %v4398_v47, %v5060_v26  ;;  %v5062_v16 = vpop.f32.mrb[19].mxu1 }
 0x3c5   : > { %v5072_v48 = vmax.f32 %v4400_v27, %v5062_v16 }
 0x3c6   : > { %7994 = vmatpush1.bf16.msra.mxu0 %v13168_v30 }
 0x3c7   : > { %8214 = vmatpush1.bf16.msra.mxu1 %v13169_v20  ;;  %7996 = vmatprep.subr.bf16.mxu0 %v13170_v11 }
 0x3c8   : > { %8216 = vmatprep.subr.bf16.mxu1 %v13171_v56 }
 0x3ca   : > { %7998 = vmatpush1.bf16.msra.mxu0 %v13172_v40 }
 0x3cb   : > { %8218 = vmatpush1.bf16.msra.mxu1 %v13173_v62  ;;  %8000 = vmatprep.subr.bf16.mxu0 %v13174_v21 }
 0x3cc   : > { %8220 = vmatprep.subr.bf16.mxu1 %v13175_v7 }
 0x3ce   : > { %8002 = vmatpush1.bf16.msra.mxu0 %v11931_v37 }
 0x3cf   : > { %8222 = vmatpush1.bf16.msra.mxu1 %v11935_v13  ;;  %8004 = vmatprep.subr.bf16.mxu0 %v11937_v28  ;;  %v5389_v28 = vrot.slane %v10281_v22, 2  ;;  %v5887_v22 = vld [vmem:[%s12409_s4] sm:$0x3] }
 0x3d0   : > { %8224 = vmatprep.subr.bf16.mxu1 %v11949_v10  ;;  %v13176_v10 = vld [vmem:[#allocation2_spill] sm:$0xff] }
 0x3d2   : > { %8006 = vmatpush1.bf16.msra.mxu0 %v11967_v14  ;;  %v13177_v14 = vsub.s32 0, %v13176_v10 }
 0x3d3   : > { %8226 = vmatpush1.bf16.msra.mxu1 %v11971_v29  ;;  %8008 = vmatprep.subr.bf16.mxu0 %v11973_v17  ;;  %v5391_v17 = vsel %vm4307_vm4, %v5389_v28, %v5390_v49 }
 0x3d4   : > { %8228 = vmatprep.subr.bf16.mxu1 %v11982_v5  ;;  %v5892_v5 = vrot.slane %v5887_v22, %v13177_v14 }
 0x3d6   : > { %8010 = vmatpush1.bf16.msra.mxu0 %v11991_v38 }
 0x3d7   : > { %8230 = vmatpush1.bf16.msra.mxu1 %v11995_v46  ;;  %6683 = vmatprep.subr.msk.mxu0 %vm3790_vm1, %v12001_v58 }
 0x3d8   : > { %6703 = vmatprep.subr.msk.mxu1 %vm3790_vm1, %v12006_v39  ;;  %v13178_v39 = vsub.s32 1, %v13176_v10 }
 0x3da   : > { %6684 = vmatpush1.msk.msra.mxu0 %vm3790_vm1, %v12018_v41  ;;  %v5896_v41 = vrot.slane %v5887_v22, %v13178_v39 }
 0x3db   : > { %6704 = vmatpush1.msk.msra.mxu1 %vm3790_vm1, %v12025_v25  ;;  %5466 = vmatmul.mubr.f32.vlgmr.msra.gmra.mrb[20].mxu0 %v5391_v17 }
 0x3dc   : > { %5867 = vmatmul.mubr.f32.vlgmr.msra.gmra.mrb[20].mxu1 %v5391_v17  ;;  %6686 = vmatprep.mubr.msk.f32.mxu0 %vm3783_vm2, %v12320_v36 }
 0x3dd   : > { %6706 = vmatprep.mubr.msk.f32.mxu1 %vm3783_vm2, %v12320_v36 }
 0x3df   : > { %5472 = vmatmul.mubr.f32.gmra.mrb[22].mxu0 %v5390_v49 }
 0x3e0   : > { %5873 = vmatmul.mubr.f32.gmra.mrb[22].mxu1 %v5390_v49 }
 0x4ae   : > { %v5467_v13 = vpop.f32.mrb[20].mxu0 }
 0x4af   : > { %v5482_v29 = vmax.f32 %v5069_v32, %v5467_v13  ;;  %v5868_v37 = vpop.f32.mrb[20].mxu1  ;;  %v5469_v38 = vpop.f32.mrb[21].mxu0 }
 0x4b0   : > { %v5483_v46 = vmax.f32 %v5070_v45, %v5469_v38  ;;  %v5870_v58 = vpop.f32.mrb[21].mxu1 }
 0x4b1   : > { %v5883_v25 = vmax.f32 %v5482_v29, %v5868_v37 }
 0x4b2   : > { %v5884_v35 = vmax.f32 %v5483_v46, %v5870_v58  ;;  %v5473_v36 = vpop.f32.mrb[22].mxu0 }
 0x4b3   : > { %v5899_v9 = vadd.f32 %v5892_v5, %v5883_v25  ;;  %v5484_v52 = vmax.f32 %v5071_v15, %v5473_v36  ;;  %v5874_v23 = vpop.f32.mrb[22].mxu1  ;;  %v5475_v2 = vpop.f32.mrb[23].mxu0 }
 0x4b4   : > { %v5900_v43 = vadd.f32 %v5896_v41, %v5884_v35  ;;  %v5485_v59 = vmax.f32 %v5072_v48, %v5475_v2  ;;  %v5876_v60 = vpop.f32.mrb[23].mxu1 }
 0x4b5   : > { %v5903_v57 = vmax.f32 %v5899_v9, 0.0  ;;  %v5885_v19 = vmax.f32 %v5484_v52, %v5874_v23 }
 0x4b6   : > { %v5904_v33 = vmax.f32 %v5900_v43, 0.0  ;;  %v5886_v42 = vmax.f32 %v5485_v59, %v5876_v60 }
 0x4b7   : > { %5907 = vst [vmem:[%s224_s17] sm:$0xff] %v5903_v57  ;;  %v5901_v1 = vadd.f32 %v5892_v5, %v5885_v19 }
 0x4b8   : > { %5909 = vst.msk [vmem:[%s224_s17 + $0x8] sm:$0xff] %vm5908_vm5, %v5904_v33  ;;  %v5902_v61 = vadd.f32 %v5896_v41, %v5886_v42 }
 0x4b9   : > { %v5905_v50 = vmax.f32 %v5901_v1, 0.0 }
 0x4ba   : > { %v5906_v55 = vmax.f32 %v5902_v61, 0.0 }
 0x4bb   : > { %5910 = vst [vmem:[%s224_s17 + $0x10] sm:$0x1f] %v5905_v50 }
 0x4bc   : > { %5912 = vst.msk [vmem:[%s224_s17 + $0x18] sm:$0x1f] %vm5911_vm6, %v5906_v55 }
 0x4bd PF: > { %s15_s18 = sadd.s32 1, %s8450_s18  }
 0x4be   : > { %p12_p4 = scmp.ge.s32.totalorder %s15_s18, 4  }
 0x4c0   :  { %14 = sbr.rel (!%p12_p4) target bundleno = 1 (0x1), region = 91 }

</bundles_post_ra>
